<compile_context>
chip_gen: v7x
topology: tpu7x:2x2x1
jax: 0.10.0
libtpu: 0.0.40
codegen_flags: <defaults>
</compile_context>

<pallas_src>
import functools

import jax
import jax.numpy as jnp
from jax.experimental import pallas as pl
from jax.experimental.pallas import tpu as pltpu

# ---------------- problem configuration (small, consistent with the module) ---
N_POINTS = 256          # number of query points
DIM_XYZ = 3             # spatial dim of points
MOTION_IN_FEATURES = 32 # len(c_m) latent code for the motion net
NUM_FILTERS = 8         # MotionModel num_filters
MOTION_OUT = 3          # MotionModel out_features (offset)
SHAPE_LATENT = 32       # len(c_s) latent code for the shape net
SHAPE_DIMS = [64, 64]   # ShapeModel hidden dims (latent_in=(), norm_layers=(), xyz_in_all=None)

DIMZ = DIM_XYZ + 1 + MOTION_IN_FEATURES   # = MotionModel.dimz (dim=4 -> xyz(3)+t(1)) = 36
PACKED_IN = DIMZ + SHAPE_LATENT           # packed kernel input width = 68

# Fused skip/latent projection weight layout: every block's output columns
# start on a 128-lane boundary so in-kernel slices never need a lane rotate.
_FB = (0, 128, 256, 384, 512, 640)                                # block starts
_FW = (NUM_FILTERS * 16, NUM_FILTERS * 8, NUM_FILTERS * 4,
       NUM_FILTERS * 2, NUM_FILTERS * 1, SHAPE_DIMS[0])           # block widths
FUSED_WIDTH = _FB[-1] + _FW[-1]                                   # = 704


# ------------------------------- kernel ---------------------------------------
def _leaky_relu(v, slope=0.2):
    # identical to leaky_relu for 0 < slope < 1; mul+max instead of cmp+sel+mul
    return jnp.maximum(v, slope * v)


def _mm(a, w_ref):
    """bf16 MXU matmul with f32 accumulation (operand cast only)."""
    return jnp.dot(a.astype(jnp.bfloat16), w_ref[...],
                   preferred_element_type=jnp.float32)


def decoder_kernel(
    xin_ref,                               # (TN, 68) f32 = [x(3) | t(1) | c_m(32) | c_s(32)]
    wfused_ref,                            # (68, 704) bf16 fused skip + c_s projections
    b0_ref,
    w1h_ref, b1_ref,
    w2h_ref, b2_ref,
    w3h_ref, b3_ref,
    w4h_ref, b4_ref,
    w5_ref, b5_ref,                        # f32, computed on the VPU
    ws0x_ref, bs0_ref,                     # f32, xyz branch on the VPU
    ws1_ref, bs1_ref,
    ws2t_ref, bs2_ref,                     # f32, final layer as lane reduce
    out_ref,
):
    xin = xin_ref[...]                     # (TN, 68) f32
    x = xin[:, :DIM_XYZ]                   # (TN, 3)  f32
    t = xin[:, DIM_XYZ:DIM_XYZ + 1]        # (TN, 1)  f32

    # One MXU push covers fc0, the feat-branch of fc1..fc4, and c_s @ W_cs.
    fused = jnp.dot(xin.astype(jnp.bfloat16), wfused_ref[...],
                    preferred_element_type=jnp.float32)           # (TN, 704) f32

    # ---------------- MotionModel ----------------
    # Original: h = activ(fc_i(cat([h, feat]))) == activ(h @ W_h + feat @ W_f + b)
    h = _leaky_relu(fused[:, _FB[0]:_FB[0] + _FW[0]] + b0_ref[...])
    h = _leaky_relu(_mm(h, w1h_ref) + fused[:, _FB[1]:_FB[1] + _FW[1]] + b1_ref[...])
    h = _leaky_relu(_mm(h, w2h_ref) + fused[:, _FB[2]:_FB[2] + _FW[2]] + b2_ref[...])
    h = _leaky_relu(_mm(h, w3h_ref) + fused[:, _FB[3]:_FB[3] + _FW[3]] + b3_ref[...])
    h = _leaky_relu(_mm(h, w4h_ref) + fused[:, _FB[4]:_FB[4] + _FW[4]] + b4_ref[...])

    # fc5 (K=8, N=3): unrolled f32 FMAs on the VPU (no degenerate MXU push,
    # coordinates never round-trip through bf16).
    w5 = w5_ref[...]                       # (8, 3) f32
    offset = h[:, 0:1] * w5[0:1, :]
    for k in range(1, NUM_FILTERS):
        offset = offset + h[:, k:k + 1] * w5[k:k + 1, :]
    offset = offset + b5_ref[...]

    # Deformation: only rows with t != 0 get displaced (row mask == gather/scatter)
    coords_ed = x + jnp.where(t != 0.0, offset, 0.0)

    # ---------------- ShapeModel ----------------
    # lin0(cat([c_s, coords_ED])) == c_s @ W_cs (already in `fused`)
    #                                + coords_ED @ W_xyz (K=3, f32 VPU) + b
    ws0x = ws0x_ref[...]                   # (3, 64) f32
    s = fused[:, _FB[5]:_FB[5] + _FW[5]] + bs0_ref[...]
    for k in range(DIM_XYZ):
        s = s + coords_ed[:, k:k + 1] * ws0x[k:k + 1, :]
    s = jnp.maximum(s, 0.0)
    s = jnp.maximum(_mm(s, ws1_ref) + bs1_ref[...], 0.0)
    # lin2 (K=64, N=1): elementwise mul + lane reduce instead of an N=1 matmul.
    sdf = jnp.tanh(jnp.sum(s * ws2t_ref[...], axis=-1, keepdims=True) + bs2_ref[...])

    # Two direct sub-slice stores; no lane-axis concat in the epilogue.
    out_ref[:, :DIM_XYZ] = coords_ed
    out_ref[:, DIM_XYZ:DIM_XYZ + 1] = sdf


# ------------------------------ wrapper ----------------------------------------
@functools.partial(jax.jit, static_argnames=("tile_n",))
def decoder_pallas(coords, t, c_m, c_s, flat_params, tile_n=256):
    n = coords.shape[0]
    assert n % tile_n == 0, "number of points must be a multiple of tile_n"

    # Host-side packing: one lane-dense (N, 68) input -> a single DMA stream.
    xin = jnp.concatenate(
        [coords, t.reshape(n, 1), c_m, c_s], axis=-1).astype(jnp.float32)

    row_spec = lambda width: pl.BlockSpec((tile_n, width), lambda i: (i, 0))
    # Weights: constant block index; at grid=(1,) (the default at N=256) they
    # are DMA'd exactly once per call.
    param_spec = lambda p: pl.BlockSpec(p.shape, lambda i: (0, 0))

    in_specs = [row_spec(xin.shape[1])] + [param_spec(p) for p in flat_params]

    out = pl.pallas_call(
        decoder_kernel,
        grid=(n // tile_n,),
        in_specs=in_specs,
        out_specs=row_spec(DIM_XYZ + 1),
        out_shape=jax.ShapeDtypeStruct((n, DIM_XYZ + 1), jnp.float32),
        compiler_params=pltpu.CompilerParams(
            dimension_semantics=("parallel",)),
    )(xin, *flat_params)

    return out[:, :DIM_XYZ], out[:, DIM_XYZ:DIM_XYZ + 1]


# --------------------------- parameter construction ----------------------------
def _linear(key, fan_in, fan_out):
    """PyTorch nn.Linear default init, weight stored as (in, out), f32."""
    kw, kb = jax.random.split(key)
    bound = 1.0 / (fan_in ** 0.5)
    w = jax.random.uniform(kw, (fan_in, fan_out), jnp.float32, -bound, bound)
    b = jax.random.uniform(kb, (1, fan_out), jnp.float32, -bound, bound)
    return w, b


def build_params(key):
    nf = NUM_FILTERS
    motion_io = [
        (DIMZ, nf * 16),
        (DIMZ + nf * 16, nf * 8),
        (DIMZ + nf * 8, nf * 4),
        (DIMZ + nf * 4, nf * 2),
        (DIMZ + nf * 2, nf * 1),
        (nf * 1, MOTION_OUT),
    ]
    shape_dims = [SHAPE_LATENT + 3] + SHAPE_DIMS + [1]
    shape_io = [(shape_dims[i], shape_dims[i + 1]) for i in range(len(shape_dims) - 1)]

    keys = jax.random.split(key, len(motion_io) + len(shape_io))
    motion_params = [_linear(keys[i], fi, fo) for i, (fi, fo) in enumerate(motion_io)]
    shape_params = [_linear(keys[len(motion_io) + i], fi, fo)
                    for i, (fi, fo) in enumerate(shape_io)]
    return motion_params, shape_params


def prepare_params(motion_params, shape_params):
    """Host-side weight prep.

    * Builds the fused (68, 704) bf16 weight: block i holds the feat-branch
      rows of motion layer i at column offset _FB[i]; the last block holds the
      c_s rows of the shape net's first layer.  The c_s rows of the motion
      blocks (and feat rows of the c_s block) are zero, so the fused matmul is
      mathematically identical to the original per-layer matmuls.
    * The "h"-branch rows of fc1..fc4 and shape-lin1 stay as separate bf16
      weights (MXU); fc5, the xyz rows of shape-lin0, and shape-lin2
      (transposed) stay f32 for the in-kernel VPU/XLU paths.
    """
    nf = NUM_FILTERS
    bf = lambda a: a.astype(jnp.bfloat16)

    (w0, b0), (w1, b1), (w2, b2), (w3, b3), (w4, b4), (w5, b5) = motion_params
    (s0w, s0b), (s1w, s1b), (s2w, s2b) = shape_params

    # cat order in the module is [h, feat]: feat rows are the trailing DIMZ rows
    feat_rows = [w0, w1[nf * 16:], w2[nf * 8:], w3[nf * 4:], w4[nf * 2:]]

    wfused = jnp.zeros((PACKED_IN, FUSED_WIDTH), jnp.float32)
    for blk, wpart in enumerate(feat_rows):
        wfused = wfused.at[:DIMZ, _FB[blk]:_FB[blk] + _FW[blk]].set(wpart)
    # c_s half of shape-lin0 (input cat order is [c_s, coords_ED])
    wfused = wfused.at[DIMZ:, _FB[5]:_FB[5] + _FW[5]].set(s0w[:SHAPE_LATENT])

    flat = [
        bf(wfused),
        b0,
        bf(w1[:nf * 16]), b1,
        bf(w2[:nf * 8]), b2,
        bf(w3[:nf * 4]), b3,
        bf(w4[:nf * 2]), b4,
        w5, b5,                      # (8, 3), (1, 3) f32  — VPU
        s0w[SHAPE_LATENT:], s0b,     # (3, 64), (1, 64) f32 — VPU xyz branch
        bf(s1w), s1b,
        s2w.T, s2b,                  # (1, 64), (1, 1) f32  — lane-reduce layer
    ]
    return flat


# ------------------------------ pure-JAX reference ------------------------------
def decoder_reference(coords, t, c_m, c_s, motion_params, shape_params):
    feat = jnp.concatenate([coords, t[:, None], c_m], axis=-1)
    h = feat
    for i in range(4):
        w, b = motion_params[i]
        h = _leaky_relu(h @ w + b)
        h = jnp.concatenate([h, feat], axis=-1)
    w, b = motion_params[4]
    h = _leaky_relu(h @ w + b)
    w, b = motion_params[5]
    offset = h @ w + b
    coords_ed = coords + jnp.where((t != 0.0)[:, None], offset, 0.0)

    s = jnp.concatenate([c_s, coords_ed], axis=-1)
    for l, (w, b) in enumerate(shape_params):
        s = s @ w + b
        if l < len(shape_params) - 1:
            s = jnp.maximum(s, 0.0)
    return coords_ed, jnp.tanh(s)


# ----------------------------------- main ---------------------------------------
if __name__ == "__main__":
    key = jax.random.PRNGKey(0)
    k_coords, k_t, k_cm, k_cs, k_params = jax.random.split(key, 5)

    coords = jax.random.normal(k_coords, (N_POINTS, DIM_XYZ), jnp.float32)
    # roughly half the points at the ED frame (t == 0), half deformed (t != 0)
    t_raw = jax.random.uniform(k_t, (N_POINTS,), jnp.float32)
    t = jnp.where(t_raw > 0.5, t_raw, 0.0)
    c_m = jax.random.normal(k_cm, (N_POINTS, MOTION_IN_FEATURES), jnp.float32)
    c_s = jax.random.normal(k_cs, (N_POINTS, SHAPE_LATENT), jnp.float32)

    motion_params, shape_params = build_params(k_params)
    flat_params = prepare_params(motion_params, shape_params)

    coords_ed, sdf = decoder_pallas(coords, t, c_m, c_s, flat_params)
    jax.block_until_ready((coords_ed, sdf))

    ref_coords_ed, ref_sdf = decoder_reference(coords, t, c_m, c_s,
                                               motion_params, shape_params)
    assert coords_ed.shape == (N_POINTS, DIM_XYZ) and sdf.shape == (N_POINTS, 1)
    assert jnp.allclose(coords_ed, ref_coords_ed, rtol=2e-2, atol=2e-2)
    assert jnp.allclose(sdf, ref_sdf, rtol=2e-2, atol=2e-2)

    print("KERNEL_OK")
</pallas_src>

<mosaic_0001>
module attributes {stable_mosaic.version = 11 : i64} {
  func.func @decoder_kernel(%arg0: i32, %arg1: memref<256x68xf32, #tpu.memory_space<vmem>>, %arg2: memref<68x704xbf16, #tpu.memory_space<vmem>>, %arg3: memref<1x128xf32, #tpu.memory_space<vmem>>, %arg4: memref<128x64xbf16, #tpu.memory_space<vmem>>, %arg5: memref<1x64xf32, #tpu.memory_space<vmem>>, %arg6: memref<64x32xbf16, #tpu.memory_space<vmem>>, %arg7: memref<1x32xf32, #tpu.memory_space<vmem>>, %arg8: memref<32x16xbf16, #tpu.memory_space<vmem>>, %arg9: memref<1x16xf32, #tpu.memory_space<vmem>>, %arg10: memref<16x8xbf16, #tpu.memory_space<vmem>>, %arg11: memref<1x8xf32, #tpu.memory_space<vmem>>, %arg12: memref<8x3xf32, #tpu.memory_space<vmem>>, %arg13: memref<1x3xf32, #tpu.memory_space<vmem>>, %arg14: memref<3x64xf32, #tpu.memory_space<vmem>>, %arg15: memref<1x64xf32, #tpu.memory_space<vmem>>, %arg16: memref<64x64xbf16, #tpu.memory_space<vmem>>, %arg17: memref<1x64xf32, #tpu.memory_space<vmem>>, %arg18: memref<1x64xf32, #tpu.memory_space<vmem>>, %arg19: memref<1x1xf32, #tpu.memory_space<vmem>>, %arg20: memref<256x4xf32, #tpu.memory_space<vmem>>) attributes {dimension_semantics = [#tpu.dimension_semantics<parallel>], iteration_bounds = array<i64: 1>, scalar_prefetch = 0 : i64, scratch_operands = 0 : i64, tpu.core_type = #tpu.core_type<tc>, window_params = [{transform_indices = @transform_0, window_bounds = array<i64: 256, 68>}, {pipeline_mode = #tpu.pipeline_mode<synchronous>, transform_indices = @transform_1, window_bounds = array<i64: 68, 704>}, {pipeline_mode = #tpu.pipeline_mode<synchronous>, transform_indices = @transform_2, window_bounds = array<i64: 1, 128>}, {pipeline_mode = #tpu.pipeline_mode<synchronous>, transform_indices = @transform_3, window_bounds = array<i64: 128, 64>}, {pipeline_mode = #tpu.pipeline_mode<synchronous>, transform_indices = @transform_4, window_bounds = array<i64: 1, 64>}, {pipeline_mode = #tpu.pipeline_mode<synchronous>, transform_indices = @transform_5, window_bounds = array<i64: 64, 32>}, {pipeline_mode = #tpu.pipeline_mode<synchronous>, transform_indices = @transform_6, window_bounds = array<i64: 1, 32>}, {pipeline_mode = #tpu.pipeline_mode<synchronous>, transform_indices = @transform_7, window_bounds = array<i64: 32, 16>}, {pipeline_mode = #tpu.pipeline_mode<synchronous>, transform_indices = @transform_8, window_bounds = array<i64: 1, 16>}, {pipeline_mode = #tpu.pipeline_mode<synchronous>, transform_indices = @transform_9, window_bounds = array<i64: 16, 8>}, {pipeline_mode = #tpu.pipeline_mode<synchronous>, transform_indices = @transform_10, window_bounds = array<i64: 1, 8>}, {pipeline_mode = #tpu.pipeline_mode<synchronous>, transform_indices = @transform_11, window_bounds = array<i64: 8, 3>}, {pipeline_mode = #tpu.pipeline_mode<synchronous>, transform_indices = @transform_12, window_bounds = array<i64: 1, 3>}, {pipeline_mode = #tpu.pipeline_mode<synchronous>, transform_indices = @transform_13, window_bounds = array<i64: 3, 64>}, {pipeline_mode = #tpu.pipeline_mode<synchronous>, transform_indices = @transform_14, window_bounds = array<i64: 1, 64>}, {pipeline_mode = #tpu.pipeline_mode<synchronous>, transform_indices = @transform_15, window_bounds = array<i64: 64, 64>}, {pipeline_mode = #tpu.pipeline_mode<synchronous>, transform_indices = @transform_16, window_bounds = array<i64: 1, 64>}, {pipeline_mode = #tpu.pipeline_mode<synchronous>, transform_indices = @transform_17, window_bounds = array<i64: 1, 64>}, {pipeline_mode = #tpu.pipeline_mode<synchronous>, transform_indices = @transform_18, window_bounds = array<i64: 1, 1>}, {transform_indices = @transform_19, window_bounds = array<i64: 256, 4>}]} {
    %c0 = arith.constant 0 : index
    %c0_0 = arith.constant 0 : index
    %0 = vector.load %arg1[%c0, %c0_0] : memref<256x68xf32, #tpu.memory_space<vmem>>, vector<256x68xf32>
    %1 = vector.extract_strided_slice %0 {offsets = [0, 0], sizes = [256, 3], strides = [1, 1]} : vector<256x68xf32> to vector<256x3xf32>
    %2 = vector.extract_strided_slice %0 {offsets = [0, 3], sizes = [256, 1], strides = [1, 1]} : vector<256x68xf32> to vector<256x1xf32>
    %3 = arith.truncf %0 : vector<256x68xf32> to vector<256x68xbf16>
    %c0_1 = arith.constant 0 : index
    %c0_2 = arith.constant 0 : index
    %4 = vector.load %arg2[%c0_1, %c0_2] : memref<68x704xbf16, #tpu.memory_space<vmem>>, vector<68x704xbf16>
    %cst = arith.constant dense<0.000000e+00> : vector<256x704xf32>
    %5 = tpu.matmul %3, %4, %cst {dimension_numbers = #tpu.dot_dimension_numbers<[1], [0], [0], [1], [0, 0, 1, 1], [], []>} : vector<256x68xbf16>, vector<68x704xbf16>, vector<256x704xf32> -> vector<256x704xf32>
    %6 = vector.extract_strided_slice %5 {offsets = [0, 0], sizes = [256, 128], strides = [1, 1]} : vector<256x704xf32> to vector<256x128xf32>
    %c0_3 = arith.constant 0 : index
    %c0_4 = arith.constant 0 : index
    %7 = vector.load %arg3[%c0_3, %c0_4] : memref<1x128xf32, #tpu.memory_space<vmem>>, vector<1x128xf32>
    %8 = vector.broadcast %7 : vector<1x128xf32> to vector<256x128xf32>
    %9 = arith.addf %6, %8 : vector<256x128xf32>
    %cst_5 = arith.constant 2.000000e-01 : f32
    %10 = vector.broadcast %cst_5 : f32 to vector<256x128xf32>
    %11 = arith.mulf %10, %9 : vector<256x128xf32>
    %12 = arith.maximumf %9, %11 : vector<256x128xf32>
    %13 = arith.truncf %12 : vector<256x128xf32> to vector<256x128xbf16>
    %c0_6 = arith.constant 0 : index
    %c0_7 = arith.constant 0 : index
    %14 = vector.load %arg4[%c0_6, %c0_7] : memref<128x64xbf16, #tpu.memory_space<vmem>>, vector<128x64xbf16>
    %cst_8 = arith.constant dense<0.000000e+00> : vector<256x64xf32>
    %15 = tpu.matmul %13, %14, %cst_8 {dimension_numbers = #tpu.dot_dimension_numbers<[1], [0], [0], [1], [0, 0, 1, 1], [], []>} : vector<256x128xbf16>, vector<128x64xbf16>, vector<256x64xf32> -> vector<256x64xf32>
    %16 = vector.extract_strided_slice %5 {offsets = [0, 128], sizes = [256, 64], strides = [1, 1]} : vector<256x704xf32> to vector<256x64xf32>
    %17 = arith.addf %15, %16 : vector<256x64xf32>
    %c0_9 = arith.constant 0 : index
    %c0_10 = arith.constant 0 : index
    %18 = vector.load %arg5[%c0_9, %c0_10] : memref<1x64xf32, #tpu.memory_space<vmem>>, vector<1x64xf32>
    %19 = vector.broadcast %18 : vector<1x64xf32> to vector<256x64xf32>
    %20 = arith.addf %17, %19 : vector<256x64xf32>
    %cst_11 = arith.constant 2.000000e-01 : f32
    %21 = vector.broadcast %cst_11 : f32 to vector<256x64xf32>
    %22 = arith.mulf %21, %20 : vector<256x64xf32>
    %23 = arith.maximumf %20, %22 : vector<256x64xf32>
    %24 = arith.truncf %23 : vector<256x64xf32> to vector<256x64xbf16>
    %c0_12 = arith.constant 0 : index
    %c0_13 = arith.constant 0 : index
    %25 = vector.load %arg6[%c0_12, %c0_13] : memref<64x32xbf16, #tpu.memory_space<vmem>>, vector<64x32xbf16>
    %cst_14 = arith.constant dense<0.000000e+00> : vector<256x32xf32>
    %26 = tpu.matmul %24, %25, %cst_14 {dimension_numbers = #tpu.dot_dimension_numbers<[1], [0], [0], [1], [0, 0, 1, 1], [], []>} : vector<256x64xbf16>, vector<64x32xbf16>, vector<256x32xf32> -> vector<256x32xf32>
    %27 = vector.extract_strided_slice %5 {offsets = [0, 256], sizes = [256, 32], strides = [1, 1]} : vector<256x704xf32> to vector<256x32xf32>
    %28 = arith.addf %26, %27 : vector<256x32xf32>
    %c0_15 = arith.constant 0 : index
    %c0_16 = arith.constant 0 : index
    %29 = vector.load %arg7[%c0_15, %c0_16] : memref<1x32xf32, #tpu.memory_space<vmem>>, vector<1x32xf32>
    %30 = vector.broadcast %29 : vector<1x32xf32> to vector<256x32xf32>
    %31 = arith.addf %28, %30 : vector<256x32xf32>
    %cst_17 = arith.constant 2.000000e-01 : f32
    %32 = vector.broadcast %cst_17 : f32 to vector<256x32xf32>
    %33 = arith.mulf %32, %31 : vector<256x32xf32>
    %34 = arith.maximumf %31, %33 : vector<256x32xf32>
    %35 = arith.truncf %34 : vector<256x32xf32> to vector<256x32xbf16>
    %c0_18 = arith.constant 0 : index
    %c0_19 = arith.constant 0 : index
    %36 = vector.load %arg8[%c0_18, %c0_19] : memref<32x16xbf16, #tpu.memory_space<vmem>>, vector<32x16xbf16>
    %cst_20 = arith.constant dense<0.000000e+00> : vector<256x16xf32>
    %37 = tpu.matmul %35, %36, %cst_20 {dimension_numbers = #tpu.dot_dimension_numbers<[1], [0], [0], [1], [0, 0, 1, 1], [], []>} : vector<256x32xbf16>, vector<32x16xbf16>, vector<256x16xf32> -> vector<256x16xf32>
    %38 = vector.extract_strided_slice %5 {offsets = [0, 384], sizes = [256, 16], strides = [1, 1]} : vector<256x704xf32> to vector<256x16xf32>
    %39 = arith.addf %37, %38 : vector<256x16xf32>
    %c0_21 = arith.constant 0 : index
    %c0_22 = arith.constant 0 : index
    %40 = vector.load %arg9[%c0_21, %c0_22] : memref<1x16xf32, #tpu.memory_space<vmem>>, vector<1x16xf32>
    %41 = vector.broadcast %40 : vector<1x16xf32> to vector<256x16xf32>
    %42 = arith.addf %39, %41 : vector<256x16xf32>
    %cst_23 = arith.constant 2.000000e-01 : f32
    %43 = vector.broadcast %cst_23 : f32 to vector<256x16xf32>
    %44 = arith.mulf %43, %42 : vector<256x16xf32>
    %45 = arith.maximumf %42, %44 : vector<256x16xf32>
    %46 = arith.truncf %45 : vector<256x16xf32> to vector<256x16xbf16>
    %c0_24 = arith.constant 0 : index
    %c0_25 = arith.constant 0 : index
    %47 = vector.load %arg10[%c0_24, %c0_25] : memref<16x8xbf16, #tpu.memory_space<vmem>>, vector<16x8xbf16>
    %cst_26 = arith.constant dense<0.000000e+00> : vector<256x8xf32>
    %48 = tpu.matmul %46, %47, %cst_26 {dimension_numbers = #tpu.dot_dimension_numbers<[1], [0], [0], [1], [0, 0, 1, 1], [], []>} : vector<256x16xbf16>, vector<16x8xbf16>, vector<256x8xf32> -> vector<256x8xf32>
    %49 = vector.extract_strided_slice %5 {offsets = [0, 512], sizes = [256, 8], strides = [1, 1]} : vector<256x704xf32> to vector<256x8xf32>
    %50 = arith.addf %48, %49 : vector<256x8xf32>
    %c0_27 = arith.constant 0 : index
    %c0_28 = arith.constant 0 : index
    %51 = vector.load %arg11[%c0_27, %c0_28] : memref<1x8xf32, #tpu.memory_space<vmem>>, vector<1x8xf32>
    %52 = vector.broadcast %51 : vector<1x8xf32> to vector<256x8xf32>
    %53 = arith.addf %50, %52 : vector<256x8xf32>
    %cst_29 = arith.constant 2.000000e-01 : f32
    %54 = vector.broadcast %cst_29 : f32 to vector<256x8xf32>
    %55 = arith.mulf %54, %53 : vector<256x8xf32>
    %56 = arith.maximumf %53, %55 : vector<256x8xf32>
    %c0_30 = arith.constant 0 : index
    %c0_31 = arith.constant 0 : index
    %57 = vector.load %arg12[%c0_30, %c0_31] : memref<8x3xf32, #tpu.memory_space<vmem>>, vector<8x3xf32>
    %58 = vector.extract_strided_slice %56 {offsets = [0, 0], sizes = [256, 1], strides = [1, 1]} : vector<256x8xf32> to vector<256x1xf32>
    %59 = vector.extract_strided_slice %57 {offsets = [0, 0], sizes = [1, 3], strides = [1, 1]} : vector<8x3xf32> to vector<1x3xf32>
    %60 = vector.broadcast %58 : vector<256x1xf32> to vector<256x3xf32>
    %61 = vector.broadcast %59 : vector<1x3xf32> to vector<256x3xf32>
    %62 = arith.mulf %60, %61 : vector<256x3xf32>
    %63 = vector.extract_strided_slice %56 {offsets = [0, 1], sizes = [256, 1], strides = [1, 1]} : vector<256x8xf32> to vector<256x1xf32>
    %64 = vector.extract_strided_slice %57 {offsets = [1, 0], sizes = [1, 3], strides = [1, 1]} : vector<8x3xf32> to vector<1x3xf32>
    %65 = vector.broadcast %63 : vector<256x1xf32> to vector<256x3xf32>
    %66 = vector.broadcast %64 : vector<1x3xf32> to vector<256x3xf32>
    %67 = arith.mulf %65, %66 : vector<256x3xf32>
    %68 = arith.addf %62, %67 : vector<256x3xf32>
    %69 = vector.extract_strided_slice %56 {offsets = [0, 2], sizes = [256, 1], strides = [1, 1]} : vector<256x8xf32> to vector<256x1xf32>
    %70 = vector.extract_strided_slice %57 {offsets = [2, 0], sizes = [1, 3], strides = [1, 1]} : vector<8x3xf32> to vector<1x3xf32>
    %71 = vector.broadcast %69 : vector<256x1xf32> to vector<256x3xf32>
    %72 = vector.broadcast %70 : vector<1x3xf32> to vector<256x3xf32>
    %73 = arith.mulf %71, %72 : vector<256x3xf32>
    %74 = arith.addf %68, %73 : vector<256x3xf32>
    %75 = vector.extract_strided_slice %56 {offsets = [0, 3], sizes = [256, 1], strides = [1, 1]} : vector<256x8xf32> to vector<256x1xf32>
    %76 = vector.extract_strided_slice %57 {offsets = [3, 0], sizes = [1, 3], strides = [1, 1]} : vector<8x3xf32> to vector<1x3xf32>
    %77 = vector.broadcast %75 : vector<256x1xf32> to vector<256x3xf32>
    %78 = vector.broadcast %76 : vector<1x3xf32> to vector<256x3xf32>
    %79 = arith.mulf %77, %78 : vector<256x3xf32>
    %80 = arith.addf %74, %79 : vector<256x3xf32>
    %81 = vector.extract_strided_slice %56 {offsets = [0, 4], sizes = [256, 1], strides = [1, 1]} : vector<256x8xf32> to vector<256x1xf32>
    %82 = vector.extract_strided_slice %57 {offsets = [4, 0], sizes = [1, 3], strides = [1, 1]} : vector<8x3xf32> to vector<1x3xf32>
    %83 = vector.broadcast %81 : vector<256x1xf32> to vector<256x3xf32>
    %84 = vector.broadcast %82 : vector<1x3xf32> to vector<256x3xf32>
    %85 = arith.mulf %83, %84 : vector<256x3xf32>
    %86 = arith.addf %80, %85 : vector<256x3xf32>
    %87 = vector.extract_strided_slice %56 {offsets = [0, 5], sizes = [256, 1], strides = [1, 1]} : vector<256x8xf32> to vector<256x1xf32>
    %88 = vector.extract_strided_slice %57 {offsets = [5, 0], sizes = [1, 3], strides = [1, 1]} : vector<8x3xf32> to vector<1x3xf32>
    %89 = vector.broadcast %87 : vector<256x1xf32> to vector<256x3xf32>
    %90 = vector.broadcast %88 : vector<1x3xf32> to vector<256x3xf32>
    %91 = arith.mulf %89, %90 : vector<256x3xf32>
    %92 = arith.addf %86, %91 : vector<256x3xf32>
    %93 = vector.extract_strided_slice %56 {offsets = [0, 6], sizes = [256, 1], strides = [1, 1]} : vector<256x8xf32> to vector<256x1xf32>
    %94 = vector.extract_strided_slice %57 {offsets = [6, 0], sizes = [1, 3], strides = [1, 1]} : vector<8x3xf32> to vector<1x3xf32>
    %95 = vector.broadcast %93 : vector<256x1xf32> to vector<256x3xf32>
    %96 = vector.broadcast %94 : vector<1x3xf32> to vector<256x3xf32>
    %97 = arith.mulf %95, %96 : vector<256x3xf32>
    %98 = arith.addf %92, %97 : vector<256x3xf32>
    %99 = vector.extract_strided_slice %56 {offsets = [0, 7], sizes = [256, 1], strides = [1, 1]} : vector<256x8xf32> to vector<256x1xf32>
    %100 = vector.extract_strided_slice %57 {offsets = [7, 0], sizes = [1, 3], strides = [1, 1]} : vector<8x3xf32> to vector<1x3xf32>
    %101 = vector.broadcast %99 : vector<256x1xf32> to vector<256x3xf32>
    %102 = vector.broadcast %100 : vector<1x3xf32> to vector<256x3xf32>
    %103 = arith.mulf %101, %102 : vector<256x3xf32>
    %104 = arith.addf %98, %103 : vector<256x3xf32>
    %c0_32 = arith.constant 0 : index
    %c0_33 = arith.constant 0 : index
    %105 = vector.load %arg13[%c0_32, %c0_33] : memref<1x3xf32, #tpu.memory_space<vmem>>, vector<1x3xf32>
    %106 = vector.broadcast %105 : vector<1x3xf32> to vector<256x3xf32>
    %107 = arith.addf %104, %106 : vector<256x3xf32>
    %cst_34 = arith.constant 0.000000e+00 : f32
    %108 = vector.broadcast %cst_34 : f32 to vector<256x1xf32>
    %109 = arith.cmpf one, %2, %108 : vector<256x1xf32>
    %cst_35 = arith.constant 0.000000e+00 : f32
    %110 = vector.shape_cast %109 : vector<256x1xi1> to vector<256x1xi1>
    %111 = vector.broadcast %110 : vector<256x1xi1> to vector<256x3xi1>
    %112 = vector.broadcast %cst_35 : f32 to vector<256x3xf32>
    %113 = arith.select %111, %107, %112 : vector<256x3xi1>, vector<256x3xf32>
    %114 = arith.addf %1, %113 : vector<256x3xf32>
    %c0_36 = arith.constant 0 : index
    %c0_37 = arith.constant 0 : index
    %115 = vector.load %arg14[%c0_36, %c0_37] : memref<3x64xf32, #tpu.memory_space<vmem>>, vector<3x64xf32>
    %116 = vector.extract_strided_slice %5 {offsets = [0, 640], sizes = [256, 64], strides = [1, 1]} : vector<256x704xf32> to vector<256x64xf32>
    %c0_38 = arith.constant 0 : index
    %c0_39 = arith.constant 0 : index
    %117 = vector.load %arg15[%c0_38, %c0_39] : memref<1x64xf32, #tpu.memory_space<vmem>>, vector<1x64xf32>
    %118 = vector.broadcast %117 : vector<1x64xf32> to vector<256x64xf32>
    %119 = arith.addf %116, %118 : vector<256x64xf32>
    %120 = vector.extract_strided_slice %114 {offsets = [0, 0], sizes = [256, 1], strides = [1, 1]} : vector<256x3xf32> to vector<256x1xf32>
    %121 = vector.extract_strided_slice %115 {offsets = [0, 0], sizes = [1, 64], strides = [1, 1]} : vector<3x64xf32> to vector<1x64xf32>
    %122 = vector.broadcast %120 : vector<256x1xf32> to vector<256x64xf32>
    %123 = vector.broadcast %121 : vector<1x64xf32> to vector<256x64xf32>
    %124 = arith.mulf %122, %123 : vector<256x64xf32>
    %125 = arith.addf %119, %124 : vector<256x64xf32>
    %126 = vector.extract_strided_slice %114 {offsets = [0, 1], sizes = [256, 1], strides = [1, 1]} : vector<256x3xf32> to vector<256x1xf32>
    %127 = vector.extract_strided_slice %115 {offsets = [1, 0], sizes = [1, 64], strides = [1, 1]} : vector<3x64xf32> to vector<1x64xf32>
    %128 = vector.broadcast %126 : vector<256x1xf32> to vector<256x64xf32>
    %129 = vector.broadcast %127 : vector<1x64xf32> to vector<256x64xf32>
    %130 = arith.mulf %128, %129 : vector<256x64xf32>
    %131 = arith.addf %125, %130 : vector<256x64xf32>
    %132 = vector.extract_strided_slice %114 {offsets = [0, 2], sizes = [256, 1], strides = [1, 1]} : vector<256x3xf32> to vector<256x1xf32>
    %133 = vector.extract_strided_slice %115 {offsets = [2, 0], sizes = [1, 64], strides = [1, 1]} : vector<3x64xf32> to vector<1x64xf32>
    %134 = vector.broadcast %132 : vector<256x1xf32> to vector<256x64xf32>
    %135 = vector.broadcast %133 : vector<1x64xf32> to vector<256x64xf32>
    %136 = arith.mulf %134, %135 : vector<256x64xf32>
    %137 = arith.addf %131, %136 : vector<256x64xf32>
    %cst_40 = arith.constant 0.000000e+00 : f32
    %138 = vector.broadcast %cst_40 : f32 to vector<256x64xf32>
    %139 = arith.maximumf %137, %138 : vector<256x64xf32>
    %140 = arith.truncf %139 : vector<256x64xf32> to vector<256x64xbf16>
    %c0_41 = arith.constant 0 : index
    %c0_42 = arith.constant 0 : index
    %141 = vector.load %arg16[%c0_41, %c0_42] : memref<64x64xbf16, #tpu.memory_space<vmem>>, vector<64x64xbf16>
    %cst_43 = arith.constant dense<0.000000e+00> : vector<256x64xf32>
    %142 = tpu.matmul %140, %141, %cst_43 {dimension_numbers = #tpu.dot_dimension_numbers<[1], [0], [0], [1], [0, 0, 1, 1], [], []>} : vector<256x64xbf16>, vector<64x64xbf16>, vector<256x64xf32> -> vector<256x64xf32>
    %c0_44 = arith.constant 0 : index
    %c0_45 = arith.constant 0 : index
    %143 = vector.load %arg17[%c0_44, %c0_45] : memref<1x64xf32, #tpu.memory_space<vmem>>, vector<1x64xf32>
    %144 = vector.broadcast %143 : vector<1x64xf32> to vector<256x64xf32>
    %145 = arith.addf %142, %144 : vector<256x64xf32>
    %cst_46 = arith.constant 0.000000e+00 : f32
    %146 = vector.broadcast %cst_46 : f32 to vector<256x64xf32>
    %147 = arith.maximumf %145, %146 : vector<256x64xf32>
    %c0_47 = arith.constant 0 : index
    %c0_48 = arith.constant 0 : index
    %148 = vector.load %arg18[%c0_47, %c0_48] : memref<1x64xf32, #tpu.memory_space<vmem>>, vector<1x64xf32>
    %149 = vector.broadcast %148 : vector<1x64xf32> to vector<256x64xf32>
    %150 = arith.mulf %147, %149 : vector<256x64xf32>
    %cst_49 = arith.constant dense<0.000000e+00> : vector<256xf32>
    %151 = vector.multi_reduction <add>, %150, %cst_49 [1] : vector<256x64xf32> to vector<256xf32>
    %152 = vector.shape_cast %151 : vector<256xf32> to vector<256x1xf32>
    %c0_50 = arith.constant 0 : index
    %c0_51 = arith.constant 0 : index
    %153 = vector.load %arg19[%c0_50, %c0_51] : memref<1x1xf32, #tpu.memory_space<vmem>>, vector<1x1xf32>
    %154 = vector.broadcast %153 : vector<1x1xf32> to vector<256x1xf32>
    %155 = arith.addf %152, %154 : vector<256x1xf32>
    %156 = math.tanh %155 : vector<256x1xf32>
    %c0_52 = arith.constant 0 : index
    %c0_53 = arith.constant 0 : index
    %157 = vector.load %arg20[%c0_52, %c0_53] : memref<256x4xf32, #tpu.memory_space<vmem>>, vector<256x3xf32>
    tpu.vector_store %arg20[%c0_52, %c0_53], %114 {strides = array<i32>} : memref<256x4xf32, #tpu.memory_space<vmem>>, vector<256x3xf32>,
    %c0_54 = arith.constant 0 : index
    %c3 = arith.constant 3 : index
    %158 = vector.load %arg20[%c0_54, %c3] : memref<256x4xf32, #tpu.memory_space<vmem>>, vector<256x1xf32>
    tpu.vector_store %arg20[%c0_54, %c3], %156 {strides = array<i32>} : memref<256x4xf32, #tpu.memory_space<vmem>>, vector<256x1xf32>,
    return
  }
  func.func @transform_0(%arg0: i32) -> (i32, i32) {
    %c0_i32 = arith.constant 0 : i32
    %c0_i32_0 = arith.constant 0 : i32
    return %arg0, %c0_i32 : i32, i32
  }
  func.func @transform_1(%arg0: i32) -> (i32, i32) {
    %c0_i32 = arith.constant 0 : i32
    %c0_i32_0 = arith.constant 0 : i32
    %c0_i32_1 = arith.constant 0 : i32
    return %c0_i32, %c0_i32_0 : i32, i32
  }
  func.func @transform_2(%arg0: i32) -> (i32, i32) {
    %c0_i32 = arith.constant 0 : i32
    %c0_i32_0 = arith.constant 0 : i32
    %c0_i32_1 = arith.constant 0 : i32
    return %c0_i32, %c0_i32_0 : i32, i32
  }
  func.func @transform_3(%arg0: i32) -> (i32, i32) {
    %c0_i32 = arith.constant 0 : i32
    %c0_i32_0 = arith.constant 0 : i32
    %c0_i32_1 = arith.constant 0 : i32
    return %c0_i32, %c0_i32_0 : i32, i32
  }
  func.func @transform_4(%arg0: i32) -> (i32, i32) {
    %c0_i32 = arith.constant 0 : i32
    %c0_i32_0 = arith.constant 0 : i32
    %c0_i32_1 = arith.constant 0 : i32
    return %c0_i32, %c0_i32_0 : i32, i32
  }
  func.func @transform_5(%arg0: i32) -> (i32, i32) {
    %c0_i32 = arith.constant 0 : i32
    %c0_i32_0 = arith.constant 0 : i32
    %c0_i32_1 = arith.constant 0 : i32
    return %c0_i32, %c0_i32_0 : i32, i32
  }
  func.func @transform_6(%arg0: i32) -> (i32, i32) {
    %c0_i32 = arith.constant 0 : i32
    %c0_i32_0 = arith.constant 0 : i32
    %c0_i32_1 = arith.constant 0 : i32
    return %c0_i32, %c0_i32_0 : i32, i32
  }
  func.func @transform_7(%arg0: i32) -> (i32, i32) {
    %c0_i32 = arith.constant 0 : i32
    %c0_i32_0 = arith.constant 0 : i32
    %c0_i32_1 = arith.constant 0 : i32
    return %c0_i32, %c0_i32_0 : i32, i32
  }
  func.func @transform_8(%arg0: i32) -> (i32, i32) {
    %c0_i32 = arith.constant 0 : i32
    %c0_i32_0 = arith.constant 0 : i32
    %c0_i32_1 = arith.constant 0 : i32
    return %c0_i32, %c0_i32_0 : i32, i32
  }
  func.func @transform_9(%arg0: i32) -> (i32, i32) {
    %c0_i32 = arith.constant 0 : i32
    %c0_i32_0 = arith.constant 0 : i32
    %c0_i32_1 = arith.constant 0 : i32
    return %c0_i32, %c0_i32_0 : i32, i32
  }
  func.func @transform_10(%arg0: i32) -> (i32, i32) {
    %c0_i32 = arith.constant 0 : i32
    %c0_i32_0 = arith.constant 0 : i32
    %c0_i32_1 = arith.constant 0 : i32
    return %c0_i32, %c0_i32_0 : i32, i32
  }
  func.func @transform_11(%arg0: i32) -> (i32, i32) {
    %c0_i32 = arith.constant 0 : i32
    %c0_i32_0 = arith.constant 0 : i32
    %c0_i32_1 = arith.constant 0 : i32
    return %c0_i32, %c0_i32_0 : i32, i32
  }
  func.func @transform_12(%arg0: i32) -> (i32, i32) {
    %c0_i32 = arith.constant 0 : i32
    %c0_i32_0 = arith.constant 0 : i32
    %c0_i32_1 = arith.constant 0 : i32
    return %c0_i32, %c0_i32_0 : i32, i32
  }
  func.func @transform_13(%arg0: i32) -> (i32, i32) {
    %c0_i32 = arith.constant 0 : i32
    %c0_i32_0 = arith.constant 0 : i32
    %c0_i32_1 = arith.constant 0 : i32
    return %c0_i32, %c0_i32_0 : i32, i32
  }
  func.func @transform_14(%arg0: i32) -> (i32, i32) {
    %c0_i32 = arith.constant 0 : i32
    %c0_i32_0 = arith.constant 0 : i32
    %c0_i32_1 = arith.constant 0 : i32
    return %c0_i32, %c0_i32_0 : i32, i32
  }
  func.func @transform_15(%arg0: i32) -> (i32, i32) {
    %c0_i32 = arith.constant 0 : i32
    %c0_i32_0 = arith.constant 0 : i32
    %c0_i32_1 = arith.constant 0 : i32
    return %c0_i32, %c0_i32_0 : i32, i32
  }
  func.func @transform_16(%arg0: i32) -> (i32, i32) {
    %c0_i32 = arith.constant 0 : i32
    %c0_i32_0 = arith.constant 0 : i32
    %c0_i32_1 = arith.constant 0 : i32
    return %c0_i32, %c0_i32_0 : i32, i32
  }
  func.func @transform_17(%arg0: i32) -> (i32, i32) {
    %c0_i32 = arith.constant 0 : i32
    %c0_i32_0 = arith.constant 0 : i32
    %c0_i32_1 = arith.constant 0 : i32
    return %c0_i32, %c0_i32_0 : i32, i32
  }
  func.func @transform_18(%arg0: i32) -> (i32, i32) {
    %c0_i32 = arith.constant 0 : i32
    %c0_i32_0 = arith.constant 0 : i32
    %c0_i32_1 = arith.constant 0 : i32
    return %c0_i32, %c0_i32_0 : i32, i32
  }
  func.func @transform_19(%arg0: i32) -> (i32, i32) {
    %c0_i32 = arith.constant 0 : i32
    %c0_i32_0 = arith.constant 0 : i32
    return %arg0, %c0_i32 : i32, i32
  }
}

</mosaic_0001>

<bundles_post_ra>
// kernel: decoder_pallas.1
= control target key start
LH: loop header
LB: loop body
LE: loop exit
PB: predicated region body
PF: predicated region fallthrough
CT: control target
= control target key end

     0   :  { %v10431_v1 = vmov 0   ;;  %vm324_vm0 = vcmask 1041408   ;;  %vm275_vm1 = vcmask 556032   ;;  %vm1417_vm2 = vcmask 523264   ;;  %s10407_s1 = inlined_call_operand.vmem [shape: bf16[68,704], index: 1, kind: input, shape index: {}]   ;;  %s10408_s0 = inlined_call_operand.vmem [shape: f32[256,68], index: 0, kind: input, shape index: {}]   ;;  %s10409_s3 = inlined_call_operand.vmem [shape: bf16[128,64], index: 3, kind: input, shape index: {}]   ;;  %s10410_s5 = inlined_call_operand.vmem [shape: bf16[64,32], index: 5, kind: input, shape index: {}]   ;;  %s10411_s2 = inlined_call_operand.vmem [shape: f32[1,128], index: 2, kind: input, shape index: {}]   ;;  %s10412_s7 = inlined_call_operand.vmem [shape: bf16[32,16], index: 7, kind: input, shape index: {}]   ;;  %s10413_s4 = inlined_call_operand.vmem [shape: f32[1,64], index: 4, kind: input, shape index: {}]   ;;  %s10414_s9 = inlined_call_operand.vmem [shape: bf16[16,8], index: 9, kind: input, shape index: {}]   ;;  %s10415_s6 = inlined_call_operand.vmem [shape: f32[1,32], index: 6, kind: input, shape index: {}]   ;;  %s10416_s8 = inlined_call_operand.vmem [shape: f32[1,16], index: 8, kind: input, shape index: {}]   ;;  %s10417_s10 = inlined_call_operand.vmem [shape: f32[1,8], index: 10, kind: input, shape index: {}]   ;;  %s10418_s11 = inlined_call_operand.vmem [shape: f32[8,3], index: 11, kind: input, shape index: {}]   ;;  %s10419_s12 = inlined_call_operand.vmem [shape: f32[1,3], index: 12, kind: input, shape index: {}]   ;;  %s10420_s19 = inlined_call_operand.vmem [shape: f32[256,4], index: 19, kind: output, shape index: {}]   ;;  %s10421_s15 = inlined_call_operand.vmem [shape: bf16[64,64], index: 15, kind: input, shape index: {}]   ;;  %s10422_s13 = inlined_call_operand.vmem [shape: f32[3,64], index: 13, kind: input, shape index: {}]   ;;  %s10423_s14 = inlined_call_operand.vmem [shape: f32[1,64], index: 14, kind: input, shape index: {}]   ;;  %s10424_s18 = inlined_call_operand.<no memory space> [shape: f32[1,1], index: 18, kind: input, shape index: {}]   ;;  %s10425_s16 = inlined_call_operand.vmem [shape: f32[1,64], index: 16, kind: input, shape index: {}]   ;;  %s10426_s17 = inlined_call_operand.vmem [shape: f32[1,64], index: 17, kind: input, shape index: {}]  }
   0x1   :  { %10452 = sst [smem:[#allocation75_spill]] %s10407_s1  ;;  %375 = vmatprep.mubr.bf16.mxu0 %v10431_v1  ;;  %495 = vmatprep.mubr.bf16.mxu1 %v10431_v1  ;;  %vm1762_vm3 = vcmask 261120  }
   0x2   :  { %10453 = sst [smem:[#allocation76_spill]] %s10408_s0  ;;  %s10456_s20 = sld [smem:[#allocation75_spill]] }
   0x3   :  { %10454 = sst [smem:[#allocation77_spill]] %s10409_s3  ;;  %s10457_s23 = sld [smem:[#allocation76_spill]] }
   0x4   :  { %10455 = sst [smem:[#allocation78_spill]] %s10410_s5  ;;  %s10458_s26 = sld [smem:[#allocation77_spill]] }
   0x5   :  { %s10460_s22 = sld [smem:[#allocation78_spill]] }
   0x8   :  { %v6499_v0 = vld [vmem:[%s10456_s20 + $0x4] ss:$24 sps:$4 sm:$0xff]   ;;  %v6501_v2 = vld [vmem:[%s10456_s20] ss:$24 sps:$4 sm:$0xff]   ;;  %v6502_v3 = vld [vmem:[%s10456_s20 + $0x34] ss:$24 sps:$4 sm:$0xff]  }
   0x9   :  { %343 = vmatprep.subr.bf16.mxu0 %v6499_v0  ;;  %6139 = vmatprep.subr.bf16.mxu1 %v6499_v0  ;;  %v6504_v4 = vld [vmem:[%s10456_s20 + $0x30] ss:$24 sps:$4 sm:$0xff]   ;;  %v6505_v5 = vld [vmem:[%s10456_s20 + $0x64] ss:$24 sps:$4 sm:$0xff]   ;;  %v6507_v6 = vld [vmem:[%s10456_s20 + $0x60] ss:$24 sps:$4 sm:$0xff]  }
   0xa   :  { %344 = vmatpush1.bf16.msra.mxu0 %v6501_v2  ;;  %6144 = vmatpush1.bf16.msra.mxu1 %v6501_v2  ;;  %v6508_v7 = vld [vmem:[%s10456_s20 + $0x94] ss:$24 sps:$4 sm:$0xff]   ;;  %v137_v8 = vld [vmem:[%s10456_s20 + $0xc0] sm:$0x33]  ;;  %v6510_v9 = vld [vmem:[%s10456_s20 + $0x90] ss:$24 sps:$4 sm:$0xff]  }
   0xb   :  { %345 = vmatprep.subr.bf16.mxu0 %v6502_v3  ;;  %6140 = vmatprep.subr.bf16.mxu1 %v6502_v3  ;;  %v5693_v10 = vcombine.high %v137_v8, %v137_v8  ;;  %v5692_v11 = vcombine.low %v137_v8, %v137_v8  ;;  %v65_v12 = vld [vmem:[%s10457_s23] sm:$0xff]  ;;  %v66_v13 = vld [vmem:[%s10457_s23 + $0x8] sm:$0xff]  ;;  %v6518_v21 = vld [vmem:[%s10456_s20 + $0x3c] ss:$24 sps:$4 sm:$0xff]  }
   0xc   :  { %v89_v14 = vld [vmem:[%s10457_s23 + $0xc0] sm:$0xff]  ;;  %v90_v15 = vld [vmem:[%s10457_s23 + $0xc8] sm:$0xff]  ;;  %v6848_v18 = vpack.c.bf16 %v66_v13, %v65_v12  ;;  %v67_v22 = vld [vmem:[%s10457_s23 + $0x10] sm:$0xff] }
   0xd   :  { %v326_v16 = vsel %vm324_vm0, %v5692_v11, 0  ;;  %v6515_v17 = vld [vmem:[%s10456_s20 + $0xc] ss:$24 sps:$4 sm:$0xff]   ;;  %v6850_v19 = vpack.c.bf16 %v90_v15, %v89_v14  ;;  %v6513_v20 = vld [vmem:[%s10456_s20 + $0x8] ss:$24 sps:$4 sm:$0xff]   ;;  %v68_v23 = vld [vmem:[%s10457_s23 + $0x18] sm:$0xff] }
   0xe   :  { %346 = vmatpush1.bf16.msra.mxu0 %v6504_v4  ;;  %6145 = vmatpush1.bf16.msra.mxu1 %v6504_v4  ;;  %v91_v24 = vld [vmem:[%s10457_s23 + $0xd0] sm:$0xff]  ;;  %v92_v25 = vld [vmem:[%s10457_s23 + $0xd8] sm:$0xff]  ;;  %v6521_v27 = vld [vmem:[%s10456_s20 + $0x6c] ss:$24 sps:$4 sm:$0xff]   ;;  %v6882_v28 = vpack.c.bf16 %v68_v23, %v67_v22 }
   0xf   :  { %347 = vmatprep.subr.bf16.mxu0 %v6505_v5  ;;  %6141 = vmatprep.subr.bf16.mxu1 %v6505_v5  ;;  %v6516_v26 = vld [vmem:[%s10456_s20 + $0x38] ss:$24 sps:$4 sm:$0xff]   ;;  %v6884_v29 = vpack.c.bf16 %v92_v25, %v91_v24  ;;  %v6519_v30 = vld [vmem:[%s10456_s20 + $0x68] ss:$24 sps:$4 sm:$0xff]   ;;  %v6524_v31 = vld [vmem:[%s10456_s20 + $0x9c] ss:$24 sps:$4 sm:$0xff]  }
  0x10   :  { %v138_v32 = vld [vmem:[%s10456_s20 + $0xc8] sm:$0x33]  ;;  %v69_v33 = vld [vmem:[%s10457_s23 + $0x20] sm:$0xff]  ;;  %v6522_v37 = vld [vmem:[%s10456_s20 + $0x98] ss:$24 sps:$4 sm:$0xff]  }
  0x11   :  { %v70_v34 = vld [vmem:[%s10457_s23 + $0x28] sm:$0xff]  ;;  %v93_v35 = vld [vmem:[%s10457_s23 + $0xe0] sm:$0xff]  ;;  %v5695_v38 = vcombine.high %v138_v32, %v138_v32  ;;  %v5694_v39 = vcombine.low %v138_v32, %v138_v32  ;;  %v71_v44 = vld [vmem:[%s10457_s23 + $0x30] sm:$0xff] }
  0x12   :  { %348 = vmatpush1.bf16.msra.mxu0 %v6507_v6  ;;  %6146 = vmatpush1.bf16.msra.mxu1 %v6507_v6  ;;  %v94_v36 = vld [vmem:[%s10457_s23 + $0xe8] sm:$0xff]  ;;  %v6916_v40 = vpack.c.bf16 %v70_v34, %v69_v33  ;;  %v6527_v43 = vld [vmem:[%s10458_s26] sm:$0xff]   ;;  %v72_v45 = vld [vmem:[%s10457_s23 + $0x38] sm:$0xff] }
  0x13   :  { %349 = vmatprep.subr.bf16.mxu0 %v6508_v7  ;;  %6142 = vmatprep.subr.bf16.mxu1 %v6508_v7  ;;  %v6918_v41 = vpack.c.bf16 %v94_v36, %v93_v35  ;;  %v332_v42 = vsel %vm324_vm0, %v5694_v39, 0  ;;  %v95_v46 = vld [vmem:[%s10457_s23 + $0xf0] sm:$0xff]  ;;  %v96_v47 = vld [vmem:[%s10457_s23 + $0xf8] sm:$0xff]  ;;  %v6943_v48 = vpack.c.bf16 %v72_v45, %v71_v44  ;;  %v73_v50 = vld [vmem:[%s10457_s23 + $0x40] sm:$0xff] }
  0x14   :  { %v6945_v49 = vpack.c.bf16 %v96_v47, %v95_v46  ;;  %v74_v51 = vld [vmem:[%s10457_s23 + $0x48] sm:$0xff]  ;;  %v75_v54 = vld [vmem:[%s10457_s23 + $0x50] sm:$0xff]  ;;  %v76_v55 = vld [vmem:[%s10457_s23 + $0x58] sm:$0xff] }
  0x15   :  { %v6959_v52 = vpack.c.bf16 %v74_v51, %v73_v50  ;;  %v6528_v53 = vld [vmem:[%s10458_s26 + $0x8] sm:$0xff]   ;;  %v6529_v56 = vld [vmem:[%s10458_s26 + $0x10] sm:$0xff]   ;;  %v6979_v57 = vpack.c.bf16 %v76_v55, %v75_v54  ;;  %v6530_v58 = vld [vmem:[%s10458_s26 + $0x18] sm:$0xff]  }
  0x16   :  { %350 = vmatpush1.bf16.msra.mxu0 %v6510_v9  ;;  %6147 = vmatpush1.bf16.msra.mxu1 %v6510_v9  ;;  %10459 = vst [vmem:[#allocation3_spill] sm:$0xff] %v6945_v49  ;;  %v77_v59 = vld [vmem:[%s10457_s23 + $0x60] sm:$0xff]  ;;  %v78_v60 = vld [vmem:[%s10457_s23 + $0x68] sm:$0xff]  ;;  %v79_v0 = vld [vmem:[%s10457_s23 + $0x70] sm:$0xff] }
  0x17   :  { %5698 = vmatprep.subr.msk.bf16.mxu0 %vm324_vm0, %v5693_v10  ;;  %6143 = vmatprep.subr.msk.bf16.mxu1 %vm324_vm0, %v5693_v10  ;;  %v6531_v61 = vld [vmem:[%s10458_s26 + $0x20] sm:$0xff]   ;;  %v6999_v62 = vpack.c.bf16 %v78_v60, %v77_v59  ;;  %v6532_v63 = vld [vmem:[%s10458_s26 + $0x28] sm:$0xff]   ;;  %v80_v2 = vld [vmem:[%s10457_s23 + $0x78] sm:$0xff] }
  0x18   :  { %v6533_v3 = vld [vmem:[%s10458_s26 + $0x30] sm:$0xff]   ;;  %v7019_v4 = vpack.c.bf16 %v80_v2, %v79_v0  ;;  %v81_v5 = vld [vmem:[%s10457_s23 + $0x80] sm:$0xff]  ;;  %v82_v6 = vld [vmem:[%s10457_s23 + $0x88] sm:$0xff] }
  0x19   :  { %v7033_v7 = vpack.c.bf16 %v82_v6, %v81_v5  ;;  %v83_v8 = vld [vmem:[%s10457_s23 + $0x90] sm:$0xff]  ;;  %v84_v9 = vld [vmem:[%s10457_s23 + $0x98] sm:$0xff]  ;;  %v85_v11 = vld [vmem:[%s10457_s23 + $0xa0] sm:$0xff] }
  0x1a   :  { %352 = vmatpush1.bf16.msra.mxu0 %v326_v16  ;;  %6148 = vmatpush1.bf16.msra.mxu1 %v326_v16  ;;  %v7047_v10 = vpack.c.bf16 %v84_v9, %v83_v8  ;;  %v86_v12 = vld [vmem:[%s10457_s23 + $0xa8] sm:$0xff]  ;;  %v87_v14 = vld [vmem:[%s10457_s23 + $0xb0] sm:$0xff]  ;;  %v88_v15 = vld [vmem:[%s10457_s23 + $0xb8] sm:$0xff] }
  0x1b   :  { %536 = vmatprep.subr.bf16.mxu1 %v6515_v17  ;;  %v7061_v13 = vpack.c.bf16 %v86_v12, %v85_v11  ;;  %v7075_v16 = vpack.c.bf16 %v88_v15, %v87_v14  ;;  %v6534_v17 = vld [vmem:[%s10458_s26 + $0x38] sm:$0xff]  }
  0x1d   :  { %5699 = vmatmul.mubr.msk.bf16.vlgmr.msra.gmra.mrb[0].mxu0 %vm275_vm1, %v6848_v18  ;;  %5711 = vmatmul.mubr.msk.bf16.vlgmr.msra.gmra.mrb[0].mxu1 %vm275_vm1, %v6850_v19 }
  0x1e   :  { %385 = vmatprep.mubr.bf16.mxu0 %v10431_v1  ;;  %537 = vmatpush1.bf16.msra.mxu1 %v6513_v20  ;;  %v7112_v20 = vld [vmem:[%s10460_s22] sm:$0xff]  }
  0x1f   :  { %505 = vmatprep.mubr.bf16.mxu1 %v10431_v1  ;;  %538 = vmatprep.subr.bf16.mxu1 %v6518_v21  ;;  %v7118_v21 = vld [vmem:[%s10411_s2] ss:$0 sm:$0xff] }
  0x22   :  { %539 = vmatpush1.bf16.msra.mxu1 %v6516_v26 }
  0x23   :  { %540 = vmatprep.subr.bf16.mxu1 %v6521_v27 }
  0x25   :  { %5700 = vmatmul.mubr.msk.bf16.gmra.mrb[4].mxu0 %vm275_vm1, %v6882_v28  ;;  %5712 = vmatmul.mubr.msk.bf16.gmra.mrb[4].mxu1 %vm275_vm1, %v6884_v29 }
  0x26   :  { %395 = vmatprep.mubr.bf16.mxu0 %v10431_v1  ;;  %515 = vmatprep.mubr.bf16.mxu1 %v10431_v1 }
  0x27   :  { %541 = vmatpush1.bf16.msra.mxu1 %v6519_v30 }
  0x28   :  { %542 = vmatprep.subr.bf16.mxu1 %v6524_v31 }
  0x2b   :  { %543 = vmatpush1.bf16.msra.mxu1 %v6522_v37 }
  0x2c   :  { %5715 = vmatprep.subr.msk.bf16.mxu1 %vm324_vm0, %v5695_v38 }
  0x2d   :  { %5701 = vmatmul.mubr.msk.bf16.gmra.mrb[8].mxu0 %vm275_vm1, %v6916_v40  ;;  %5713 = vmatmul.mubr.msk.bf16.gmra.mrb[8].mxu1 %vm275_vm1, %v6918_v41 }
  0x2e   :  { %405 = vmatprep.mubr.bf16.mxu0 %v10431_v1  ;;  %525 = vmatprep.mubr.bf16.mxu1 %v10431_v1 }
  0x2f   :  { %545 = vmatpush1.bf16.msra.mxu1 %v332_v42 }
  0x30   :  { %5941 = vmatprep.subr.bf16.mxu1 %v6527_v43 }
  0x35   :  { %5702 = vmatmul.mubr.msk.bf16.gmra.mrb[12].mxu0 %vm275_vm1, %v6943_v48  ;;  %5714 = vmatmul.mubr.msk.bf16.gmra.mrb[12].mxu1 %vm275_vm1, %v6945_v49 }
  0x36   :  { %415 = vmatprep.mubr.bf16.mxu0 %v10431_v1  ;;  %568 = vmatprep.mubr.bf16.mxu1 %v10431_v1 }
  0x3d   :  { %5703 = vmatmul.mubr.msk.bf16.gmra.mrb[16].mxu0 %vm275_vm1, %v6959_v52  ;;  %5716 = vmatmul.mubr.msk.bf16.vlgmr.msra.gmra.mrb[16].mxu1 %vm275_vm1, %v6848_v18 }
  0x3e   :  { %425 = vmatprep.mubr.bf16.mxu0 %v10431_v1  ;;  %5942 = vmatpush3.bf16.msra.mxu1 %v6527_v43 }
  0x3f   :  { %578 = vmatprep.mubr.bf16.mxu1 %v10431_v1  ;;  %5943 = vmatprep.subr.bf16.mxu1 %v6528_v53 }
  0x42   :  { %5944 = vmatpush3.bf16.msra.mxu1 %v6528_v53 }
  0x43   :  { %5945 = vmatprep.subr.bf16.mxu1 %v6529_v56 }
  0x45   :  { %5704 = vmatmul.mubr.msk.bf16.gmra.mrb[20].mxu0 %vm275_vm1, %v6979_v57  ;;  %5717 = vmatmul.mubr.msk.bf16.gmra.mrb[20].mxu1 %vm275_vm1, %v6882_v28 }
  0x46   :  { %435 = vmatprep.mubr.bf16.mxu0 %v10431_v1  ;;  %588 = vmatprep.mubr.bf16.mxu1 %v10431_v1 }
  0x47   :  { %5946 = vmatpush3.bf16.msra.mxu1 %v6529_v56 }
  0x48   :  { %5947 = vmatprep.subr.bf16.mxu1 %v6530_v58 }
  0x4b   :  { %5948 = vmatpush3.bf16.msra.mxu1 %v6530_v58 }
  0x4c   :  { %5949 = vmatprep.subr.bf16.mxu1 %v6531_v61 }
  0x4d   :  { %5705 = vmatmul.mubr.msk.bf16.gmra.mrb[24].mxu0 %vm275_vm1, %v6999_v62  ;;  %5718 = vmatmul.mubr.msk.bf16.gmra.mrb[24].mxu1 %vm275_vm1, %v6916_v40 }
  0x4e   :  { %445 = vmatprep.mubr.bf16.mxu0 %v10431_v1  ;;  %598 = vmatprep.mubr.bf16.mxu1 %v10431_v1 }
  0x4f   :  { %5950 = vmatpush3.bf16.msra.mxu1 %v6531_v61 }
  0x50   :  { %5951 = vmatprep.subr.bf16.mxu1 %v6532_v63 }
  0x53   :  { %5952 = vmatpush3.bf16.msra.mxu1 %v6532_v63 }
  0x54   :  { %5953 = vmatprep.subr.bf16.mxu1 %v6533_v3 }
  0x55   :  { %5706 = vmatmul.mubr.msk.bf16.gmra.mrb[28].mxu0 %vm275_vm1, %v7019_v4  ;;  %5719 = vmatmul.mubr.msk.bf16.gmra.mrb[28].mxu1 %vm275_vm1, %v6943_v48 }
  0x56   :  { %455 = vmatprep.mubr.bf16.mxu0 %v10431_v1  ;;  %608 = vmatprep.mubr.bf16.mxu1 %v10431_v1 }
  0x57   :  { %5954 = vmatpush3.bf16.msra.mxu1 %v6533_v3 }
  0x58   :  { %5955 = vmatprep.subr.bf16.mxu1 %v6534_v17 }
  0x5b   :  { %5956 = vmatpush3.bf16.msra.mxu1 %v6534_v17 }
  0x5c   :  { %5989 = vmatprep.subr.bf16.mxu1 %v7112_v20 }
  0x5d   :  { %5707 = vmatmul.mubr.msk.bf16.gmra.mrb[32].mxu0 %vm275_vm1, %v7033_v7  ;;  %5720 = vmatmul.mubr.msk.bf16.gmra.mrb[32].mxu1 %vm275_vm1, %v6959_v52 }
  0x5e   :  { %465 = vmatprep.mubr.bf16.mxu0 %v10431_v1  ;;  %618 = vmatprep.mubr.bf16.mxu1 %v10431_v1 }
  0x65   :  { %5708 = vmatmul.mubr.msk.bf16.gmra.mrb[36].mxu0 %vm275_vm1, %v7047_v10  ;;  %5721 = vmatmul.mubr.msk.bf16.gmra.mrb[36].mxu1 %vm275_vm1, %v6979_v57 }
  0x66   :  { %475 = vmatprep.mubr.bf16.mxu0 %v10431_v1  ;;  %628 = vmatprep.mubr.bf16.mxu1 %v10431_v1 }
  0x6d   :  { %5709 = vmatmul.mubr.msk.bf16.gmra.mrb[40].mxu0 %vm275_vm1, %v7061_v13  ;;  %5722 = vmatmul.mubr.msk.bf16.gmra.mrb[40].mxu1 %vm275_vm1, %v6999_v62 }
  0x6e   :  { %485 = vmatprep.mubr.bf16.mxu0 %v10431_v1  ;;  %638 = vmatprep.mubr.bf16.mxu1 %v10431_v1 }
  0x75   :  { %5710 = vmatmul.mubr.msk.bf16.gmra.mrb[44].mxu0 %vm275_vm1, %v7075_v16  ;;  %5723 = vmatmul.mubr.msk.bf16.gmra.mrb[44].mxu1 %vm275_vm1, %v7019_v4 }
  0x76   :  { %648 = vmatprep.mubr.bf16.mxu1 %v10431_v1  ;;  %761 = vmatprep.mubr.bf16.mxu0 %v10431_v1 }
  0x7d   :  { %5724 = vmatmul.mubr.msk.bf16.gmra.mrb[48].mxu1 %vm275_vm1, %v7033_v7 }
  0x7e   :  { %658 = vmatprep.mubr.bf16.mxu1 %v10431_v1 }
  0x85   :  { %5725 = vmatmul.mubr.msk.bf16.gmra.mrb[52].mxu1 %vm275_vm1, %v7047_v10 }
  0x86   :  { %668 = vmatprep.mubr.bf16.mxu1 %v10431_v1 }
  0x8d   :  { %5726 = vmatmul.mubr.msk.bf16.gmra.mrb[56].mxu1 %vm275_vm1, %v7061_v13 }
  0x8e   :  { %678 = vmatprep.mubr.bf16.mxu1 %v10431_v1 }
  0x95   :  { %5727 = vmatmul.mubr.msk.bf16.gmra.mrb[60].mxu1 %vm275_vm1, %v7075_v16 }
  0x96   :  { %688 = vmatprep.mubr.bf16.mxu1 %v10431_v1 }
  0x9d   :  { %5728 = vmatmul.mubr.msk.bf16.gmra.mrb[64].mxu1 %vm275_vm1, %v6850_v19 }
  0x9e   :  { %698 = vmatprep.mubr.bf16.mxu1 %v10431_v1 }
  0xa5   :  { %5729 = vmatmul.mubr.msk.bf16.gmra.mrb[68].mxu1 %vm275_vm1, %v6884_v29 }
  0xa6   :  { %708 = vmatprep.mubr.bf16.mxu1 %v10431_v1 }
  0xad   :  { %5730 = vmatmul.mubr.msk.bf16.gmra.mrb[72].mxu1 %vm275_vm1, %v6918_v41 }
  0xae   :  { %718 = vmatprep.mubr.bf16.mxu1 %v10431_v1 }
  0xb5   :  { %5731 = vmatmul.mubr.msk.bf16.gmra.mrb[76].mxu1 %vm275_vm1, %v6945_v49 }
  0xf0   :  { %v377_v22 = vpop.f32.mrb[0].mxu0  ;;  %v497_v23 = vpop.f32.mrb[0].mxu1 }
  0xf1   :  { %v929_v24 = vadd.f32 %v7118_v21, %v377_v22  ;;  %v7121_v25 = vpop.f32.mrb[1].mxu0  ;;  %v953_v26 = vadd.f32 %v7118_v21, %v497_v23  ;;  %v7124_v27 = vpop.f32.mrb[1].mxu1 }
  0xf2   :  { %v381_v30 = vpop.f32.mrb[2].mxu0  ;;  %v501_v31 = vpop.f32.mrb[2].mxu1 }
  0xf3   :  { %v961_v32 = vmul.f32 0.2, %v929_v24  ;;  %v930_v33 = vadd.f32 %v7118_v21, %v381_v30  ;;  %v7127_v34 = vpop.f32.mrb[3].mxu0  ;;  %v985_v35 = vmul.f32 0.2, %v953_v26  ;;  %v954_v36 = vadd.f32 %v7118_v21, %v501_v31  ;;  %v7130_v37 = vpop.f32.mrb[3].mxu1 }
  0xf4   :  { %v6536_v31 = vld [vmem:[%s10460_s22 + $0x8] sm:$0xff]  }
  0xf5   :  { %v962_v38 = vmul.f32 0.2, %v930_v33  ;;  %v1017_v39 = vmax.f32 %v953_v26, %v985_v35  ;;  %v986_v42 = vmul.f32 0.2, %v954_v36  ;;  %v993_v43 = vmax.f32 %v929_v24, %v961_v32 }
  0xf7   :  { %v994_v44 = vmax.f32 %v930_v33, %v962_v38  ;;  %v1018_v45 = vmax.f32 %v954_v36, %v986_v42 }
  0xf8   :  { %v387_v46 = vpop.f32.mrb[4].mxu0  ;;  %v507_v47 = vpop.f32.mrb[4].mxu1 }
  0xf9   :  { %v931_v50 = vadd.f32 %v7118_v21, %v387_v46  ;;  %v7133_v51 = vpop.f32.mrb[5].mxu0  ;;  %v1025_v53 = vpack.c.bf16 %v994_v44, %v993_v43  ;;  %v955_v54 = vadd.f32 %v7118_v21, %v507_v47  ;;  %v7136_v55 = vpop.f32.mrb[5].mxu1  ;;  %v7138_v56 = vpack.c.bf16 %v1018_v45, %v1017_v39 }
  0xfa   :  { %v391_v58 = vpop.f32.mrb[6].mxu0  ;;  %v511_v59 = vpop.f32.mrb[6].mxu1 }
  0xfb   :  { %v963_v60 = vmul.f32 0.2, %v931_v50  ;;  %v932_v61 = vadd.f32 %v7118_v21, %v391_v58  ;;  %v7141_v63 = vpop.f32.mrb[7].mxu0  ;;  %5957 = vmatprep.mubr.bf16.mxu1 %v1025_v53  ;;  %v987_v0 = vmul.f32 0.2, %v955_v54  ;;  %v956_v2 = vadd.f32 %v7118_v21, %v511_v59  ;;  %v7144_v3 = vpop.f32.mrb[7].mxu1 }
  0xfd   :  { %v964_v5 = vmul.f32 0.2, %v932_v61  ;;  %v1019_v6 = vmax.f32 %v955_v54, %v987_v0  ;;  %v988_v8 = vmul.f32 0.2, %v956_v2  ;;  %v995_v9 = vmax.f32 %v931_v50, %v963_v60  ;;  %v6537_v50 = vld [vmem:[%s10460_s22 + $0x10] sm:$0xff]  }
  0xff   :  { %v996_v11 = vmax.f32 %v932_v61, %v964_v5  ;;  %v1020_v12 = vmax.f32 %v956_v2, %v988_v8 }
 0x100   :  { %v397_v14 = vpop.f32.mrb[8].mxu0  ;;  %v517_v15 = vpop.f32.mrb[8].mxu1 }
 0x101   :  { %v1026_v17 = vpack.c.bf16 %v996_v11, %v995_v9  ;;  %v933_v22 = vadd.f32 %v7118_v21, %v397_v14  ;;  %v7147_v23 = vpop.f32.mrb[9].mxu0  ;;  %v957_v24 = vadd.f32 %v7118_v21, %v517_v15  ;;  %v7150_v26 = vpop.f32.mrb[9].mxu1  ;;  %v7152_v30 = vpack.c.bf16 %v1020_v12, %v1019_v6 }
 0x102   :  { %10461 = vst [vmem:[#allocation4_spill] sm:$0xff] %v7150_v26  ;;  %v401_v32 = vpop.f32.mrb[10].mxu0  ;;  %v521_v33 = vpop.f32.mrb[10].mxu1 }
 0x103   :  { %5958 = vmatmul.mubr.bf16.vlgmr.msra.gmra.mrb[80].mxu1 %v1026_v17  ;;  %v965_v35 = vmul.f32 0.2, %v933_v22  ;;  %v934_v36 = vadd.f32 %v7118_v21, %v401_v32  ;;  %v7158_v38 = vpop.f32.mrb[11].mxu0  ;;  %v989_v39 = vmul.f32 0.2, %v957_v24  ;;  %v958_v42 = vadd.f32 %v7118_v21, %v521_v33  ;;  %v7161_v43 = vpop.f32.mrb[11].mxu1 }
 0x104   :  { %10462 = vst [vmem:[#allocation5_spill] sm:$0xff] %v7161_v43  ;;  %5990 = vmatpush3.bf16.msra.mxu1 %v7112_v20 }
 0x105   :  { %v997_v44 = vmax.f32 %v933_v22, %v965_v35  ;;  %v966_v45 = vmul.f32 0.2, %v934_v36  ;;  %v1021_v46 = vmax.f32 %v957_v24, %v989_v39  ;;  %v990_v47 = vmul.f32 0.2, %v958_v42  ;;  %5991 = vmatprep.subr.bf16.mxu1 %v6536_v31  ;;  %v6538_v22 = vld [vmem:[%s10460_s22 + $0x18] sm:$0xff]  }
 0x107   :  { %v998_v53 = vmax.f32 %v934_v36, %v966_v45  ;;  %v1022_v54 = vmax.f32 %v958_v42, %v990_v47 }
 0x108   :  { %v407_v58 = vpop.f32.mrb[12].mxu0  ;;  %v527_v59 = vpop.f32.mrb[12].mxu1  ;;  %5992 = vmatpush3.bf16.msra.mxu1 %v6536_v31 }
 0x109   :  { %v935_v60 = vadd.f32 %v7118_v21, %v407_v58  ;;  %v7168_v61 = vpop.f32.mrb[13].mxu0  ;;  %v1027_v0 = vpack.c.bf16 %v998_v53, %v997_v44  ;;  %v959_v20 = vadd.f32 %v7118_v21, %v527_v59  ;;  %v7171_v2 = vpop.f32.mrb[13].mxu1  ;;  %v7173_v5 = vpack.c.bf16 %v1022_v54, %v1021_v46  ;;  %5993 = vmatprep.subr.bf16.mxu1 %v6537_v50 }
 0x10a   :  { %v411_v6 = vpop.f32.mrb[14].mxu0  ;;  %v531_v8 = vpop.f32.mrb[14].mxu1 }
 0x10b   :  { %v967_v9 = vmul.f32 0.2, %v935_v60  ;;  %v936_v11 = vadd.f32 %v7118_v21, %v411_v6  ;;  %5961 = vmatprep.mubr.bf16.mxu1 %v1027_v0  ;;  %v7176_v12 = vpop.f32.mrb[15].mxu0  ;;  %v991_v14 = vmul.f32 0.2, %v959_v20  ;;  %v960_v15 = vadd.f32 %v7118_v21, %v531_v8  ;;  %v7179_v17 = vpop.f32.mrb[15].mxu1 }
 0x10c   :  { %10463 = vst [vmem:[#allocation6_spill] sm:$0xff] %v7179_v17  ;;  %5994 = vmatpush3.bf16.msra.mxu1 %v6537_v50 }
 0x10d   :  { %v999_v24 = vmax.f32 %v935_v60, %v967_v9  ;;  %v968_v31 = vmul.f32 0.2, %v936_v11  ;;  %v1023_v32 = vmax.f32 %v959_v20, %v991_v14  ;;  %v992_v33 = vmul.f32 0.2, %v960_v15  ;;  %5995 = vmatprep.subr.bf16.mxu1 %v6538_v22 }
 0x10f   :  { %v1000_v35 = vmax.f32 %v936_v11, %v968_v31  ;;  %v1024_v36 = vmax.f32 %v960_v15, %v992_v33 }
 0x110   :  { %v417_v39 = vpop.f32.mrb[16].mxu0  ;;  %v7184_v42 = vpop.f32.mrb[16].mxu1  ;;  %5996 = vmatpush3.bf16.msra.mxu1 %v6538_v22 }
 0x111   :  { %10464 = vst [vmem:[#allocation7_spill] sm:$0xff] %v7184_v42  ;;  %v1028_v44 = vpack.c.bf16 %v1000_v35, %v999_v24  ;;  %v937_v45 = vadd.f32 %v7118_v21, %v417_v39  ;;  %v7187_v46 = vpop.f32.mrb[17].mxu0  ;;  %v7189_v47 = vpop.f32.mrb[17].mxu1  ;;  %v7191_v50 = vpack.c.bf16 %v1024_v36, %v1023_v32 }
 0x112   :  { %10465 = vst [vmem:[#allocation8_spill] sm:$0xff] %v7189_v47  ;;  %v421_v53 = vpop.f32.mrb[18].mxu0  ;;  %v7193_v54 = vpop.f32.mrb[18].mxu1 }
 0x113   :  { %10466 = vst [vmem:[#allocation9_spill] sm:$0xff] %v7193_v54  ;;  %5962 = vmatmul.mubr.bf16.gmra.mrb[84].mxu1 %v1028_v44  ;;  %v969_v58 = vmul.f32 0.2, %v937_v45  ;;  %v938_v59 = vadd.f32 %v7118_v21, %v421_v53  ;;  %v7196_v60 = vpop.f32.mrb[19].mxu0  ;;  %v7198_v0 = vpop.f32.mrb[19].mxu1 }
 0x114   :  { %10467 = vst [vmem:[#allocation10_spill] sm:$0xff] %v7198_v0 }
 0x115   :  { %v1001_v20 = vmax.f32 %v937_v45, %v969_v58  ;;  %v970_v6 = vmul.f32 0.2, %v938_v59 }
 0x117   :  { %v1002_v8 = vmax.f32 %v938_v59, %v970_v6 }
 0x118   :  { %v427_v9 = vpop.f32.mrb[20].mxu0  ;;  %v7200_v11 = vpop.f32.mrb[20].mxu1 }
 0x119   :  { %10468 = vst [vmem:[#allocation11_spill] sm:$0xff] %v7200_v11  ;;  %v939_v14 = vadd.f32 %v7118_v21, %v427_v9  ;;  %v7203_v15 = vpop.f32.mrb[21].mxu0  ;;  %v1029_v22 = vpack.c.bf16 %v1002_v8, %v1001_v20  ;;  %v7205_v24 = vpop.f32.mrb[21].mxu1 }
 0x11a   :  { %10469 = vst [vmem:[#allocation12_spill] sm:$0xff] %v7205_v24  ;;  %v431_v31 = vpop.f32.mrb[22].mxu0  ;;  %v7207_v32 = vpop.f32.mrb[22].mxu1 }
 0x11b   :  { %10470 = vst [vmem:[#allocation13_spill] sm:$0xff] %v7207_v32  ;;  %v971_v33 = vmul.f32 0.2, %v939_v14  ;;  %v940_v35 = vadd.f32 %v7118_v21, %v431_v31  ;;  %5965 = vmatprep.mubr.bf16.mxu1 %v1029_v22  ;;  %v7210_v36 = vpop.f32.mrb[23].mxu0  ;;  %v7212_v39 = vpop.f32.mrb[23].mxu1 }
 0x11c   :  { %10471 = vst [vmem:[#allocation14_spill] sm:$0xff] %v7212_v39 }
 0x11d   :  { %v1003_v44 = vmax.f32 %v939_v14, %v971_v33  ;;  %v972_v45 = vmul.f32 0.2, %v940_v35 }
 0x11f   :  { %v1004_v53 = vmax.f32 %v940_v35, %v972_v45 }
 0x120   :  { %v437_v58 = vpop.f32.mrb[24].mxu0  ;;  %v7214_v59 = vpop.f32.mrb[24].mxu1 }
 0x121   :  { %10472 = vst [vmem:[#allocation15_spill] sm:$0xff] %v7214_v59  ;;  %v1030_v20 = vpack.c.bf16 %v1004_v53, %v1003_v44  ;;  %v941_v6 = vadd.f32 %v7118_v21, %v437_v58  ;;  %v7217_v8 = vpop.f32.mrb[25].mxu0  ;;  %v7219_v9 = vpop.f32.mrb[25].mxu1 }
 0x122   :  { %10473 = vst [vmem:[#allocation16_spill] sm:$0xff] %v7219_v9  ;;  %v441_v1 = vpop.f32.mrb[26].mxu0  ;;  %v7221_v31 = vpop.f32.mrb[26].mxu1 }
 0x123   :  { %10474 = vst [vmem:[#allocation17_spill] sm:$0xff] %v7221_v31  ;;  %5966 = vmatmul.mubr.bf16.gmra.mrb[88].mxu1 %v1030_v20  ;;  %v973_v22 = vmul.f32 0.2, %v941_v6  ;;  %v942_v0 = vadd.f32 %v7118_v21, %v441_v1  ;;  %v7224_v14 = vpop.f32.mrb[27].mxu0  ;;  %v7226_v33 = vpop.f32.mrb[27].mxu1 }
 0x124   :  { %10475 = vst [vmem:[#allocation18_spill] sm:$0xff] %v7226_v33 }
 0x125   :  { %v1005_v35 = vmax.f32 %v941_v6, %v973_v22  ;;  %v974_v45 = vmul.f32 0.2, %v942_v0 }
 0x127   :  { %v1006_v44 = vmax.f32 %v942_v0, %v974_v45 }
 0x128   :  { %v447_v53 = vpop.f32.mrb[28].mxu0  ;;  %v7228_v58 = vpop.f32.mrb[28].mxu1 }
 0x129   :  { %10476 = vst [vmem:[#allocation19_spill] sm:$0xff] %v7228_v58  ;;  %v943_v39 = vadd.f32 %v7118_v21, %v447_v53  ;;  %v7231_v9 = vpop.f32.mrb[29].mxu0  ;;  %v1031_v47 = vpack.c.bf16 %v1006_v44, %v1005_v35  ;;  %v7233_v24 = vpop.f32.mrb[29].mxu1 }
 0x12a   :  { %10477 = vst [vmem:[#allocation20_spill] sm:$0xff] %v7233_v24  ;;  %v451_v20 = vpop.f32.mrb[30].mxu0  ;;  %v7235_v31 = vpop.f32.mrb[30].mxu1 }
 0x12b   :  { %10478 = vst [vmem:[#allocation21_spill] sm:$0xff] %v7235_v31  ;;  %v975_v1 = vmul.f32 0.2, %v943_v39  ;;  %v944_v59 = vadd.f32 %v7118_v21, %v451_v20  ;;  %5969 = vmatprep.mubr.bf16.mxu1 %v1031_v47  ;;  %v7238_v6 = vpop.f32.mrb[31].mxu0  ;;  %v7240_v0 = vpop.f32.mrb[31].mxu1 }
 0x12c   :  { %10479 = vst [vmem:[#allocation22_spill] sm:$0xff] %v7240_v0 }
 0x12d   :  { %v1007_v22 = vmax.f32 %v943_v39, %v975_v1  ;;  %v976_v45 = vmul.f32 0.2, %v944_v59 }
 0x12f   :  { %v1008_v33 = vmax.f32 %v944_v59, %v976_v45 }
 0x130   :  { %v457_v53 = vpop.f32.mrb[32].mxu0  ;;  %v7242_v58 = vpop.f32.mrb[32].mxu1 }
 0x131   :  { %10480 = vst [vmem:[#allocation23_spill] sm:$0xff] %v7242_v58  ;;  %v1032_v35 = vpack.c.bf16 %v1008_v33, %v1007_v22  ;;  %v945_v44 = vadd.f32 %v7118_v21, %v457_v53  ;;  %v7245_v24 = vpop.f32.mrb[33].mxu0  ;;  %v7247_v31 = vpop.f32.mrb[33].mxu1 }
 0x132   :  { %10481 = vst [vmem:[#allocation24_spill] sm:$0xff] %v7247_v31  ;;  %v461_v54 = vpop.f32.mrb[34].mxu0  ;;  %v7249_v20 = vpop.f32.mrb[34].mxu1 }
 0x133   :  { %10482 = vst [vmem:[#allocation25_spill] sm:$0xff] %v7249_v20  ;;  %5970 = vmatmul.mubr.bf16.gmra.mrb[92].mxu1 %v1032_v35  ;;  %v977_v47 = vmul.f32 0.2, %v945_v44  ;;  %v946_v0 = vadd.f32 %v7118_v21, %v461_v54  ;;  %v7252_v39 = vpop.f32.mrb[35].mxu0  ;;  %v7254_v59 = vpop.f32.mrb[35].mxu1 }
 0x134   :  { %10483 = vst [vmem:[#allocation26_spill] sm:$0xff] %v7254_v59 }
 0x135   :  { %v1009_v1 = vmax.f32 %v945_v44, %v977_v47  ;;  %v978_v45 = vmul.f32 0.2, %v946_v0 }
 0x137   :  { %v1010_v33 = vmax.f32 %v946_v0, %v978_v45 }
 0x138   :  { %v467_v22 = vpop.f32.mrb[36].mxu0  ;;  %v7256_v53 = vpop.f32.mrb[36].mxu1 }
 0x139   :  { %10484 = vst [vmem:[#allocation27_spill] sm:$0xff] %v7256_v53  ;;  %v947_v58 = vadd.f32 %v7118_v21, %v467_v22  ;;  %v7259_v31 = vpop.f32.mrb[37].mxu0  ;;  %v1033_v32 = vpack.c.bf16 %v1010_v33, %v1009_v1  ;;  %v7261_v20 = vpop.f32.mrb[37].mxu1 }
 0x13a   :  { %10485 = vst [vmem:[#allocation28_spill] sm:$0xff] %v7261_v20  ;;  %v471_v35 = vpop.f32.mrb[38].mxu0  ;;  %v7263_v42 = vpop.f32.mrb[38].mxu1 }
 0x13b   :  { %10486 = vst [vmem:[#allocation29_spill] sm:$0xff] %v7263_v42  ;;  %v979_v54 = vmul.f32 0.2, %v947_v58  ;;  %v948_v11 = vadd.f32 %v7118_v21, %v471_v35  ;;  %5973 = vmatprep.mubr.bf16.mxu1 %v1033_v32  ;;  %v7266_v44 = vpop.f32.mrb[39].mxu0  ;;  %v7268_v0 = vpop.f32.mrb[39].mxu1 }
 0x13c   :  { %10487 = vst [vmem:[#allocation30_spill] sm:$0xff] %v7268_v0 }
 0x13d   :  { %v1011_v47 = vmax.f32 %v947_v58, %v979_v54  ;;  %v980_v45 = vmul.f32 0.2, %v948_v11 }
 0x13f   :  { %v1012_v59 = vmax.f32 %v948_v11, %v980_v45 }
 0x140   :  { %v477_v22 = vpop.f32.mrb[40].mxu0  ;;  %v7270_v53 = vpop.f32.mrb[40].mxu1 }
 0x141   :  { %10488 = vst [vmem:[#allocation31_spill] sm:$0xff] %v7270_v53  ;;  %v1034_v1 = vpack.c.bf16 %v1012_v59, %v1011_v47  ;;  %v949_v33 = vadd.f32 %v7118_v21, %v477_v22  ;;  %v7273_v20 = vpop.f32.mrb[41].mxu0  ;;  %v7275_v42 = vpop.f32.mrb[41].mxu1 }
 0x142   :  { %10489 = vst [vmem:[#allocation32_spill] sm:$0xff] %v7275_v42  ;;  %v481_v49 = vpop.f32.mrb[42].mxu0  ;;  %v7277_v35 = vpop.f32.mrb[42].mxu1 }
 0x143   :  { %10490 = vst [vmem:[#allocation33_spill] sm:$0xff] %v7277_v35  ;;  %5974 = vmatmul.mubr.bf16.gmra.mrb[96].mxu1 %v1034_v1  ;;  %v981_v32 = vmul.f32 0.2, %v949_v33  ;;  %v950_v0 = vadd.f32 %v7118_v21, %v481_v49  ;;  %v7280_v58 = vpop.f32.mrb[43].mxu0  ;;  %v7282_v11 = vpop.f32.mrb[43].mxu1 }
 0x144   :  { %10491 = vst [vmem:[#allocation34_spill] sm:$0xff] %v7282_v11 }
 0x145   :  { %v1013_v54 = vmax.f32 %v949_v33, %v981_v32  ;;  %v982_v45 = vmul.f32 0.2, %v950_v0 }
 0x147   :  { %v1014_v59 = vmax.f32 %v950_v0, %v982_v45 }
 0x148   :  { %v487_v47 = vpop.f32.mrb[44].mxu0  ;;  %v7284_v22 = vpop.f32.mrb[44].mxu1 }
 0x149   :  { %10492 = vst [vmem:[#allocation35_spill] sm:$0xff] %v7284_v22  ;;  %v951_v53 = vadd.f32 %v7118_v21, %v487_v47  ;;  %v7287_v42 = vpop.f32.mrb[45].mxu0  ;;  %v1035_v43 = vpack.c.bf16 %v1014_v59, %v1013_v54  ;;  %v7289_v35 = vpop.f32.mrb[45].mxu1 }
 0x14a   :  { %10493 = vst [vmem:[#allocation36_spill] sm:$0xff] %v7289_v35  ;;  %v491_v1 = vpop.f32.mrb[46].mxu0  ;;  %v7291_v17 = vpop.f32.mrb[46].mxu1 }
 0x14b   :  { %v983_v49 = vmul.f32 0.2, %v951_v53  ;;  %v952_v26 = vadd.f32 %v7118_v21, %v491_v1  ;;  %5977 = vmatprep.mubr.bf16.mxu1 %v1035_v43  ;;  %v7294_v33 = vpop.f32.mrb[47].mxu1  ;;  %v7296_v0 = vpop.f32.mrb[47].mxu0 }
 0x14c   :  { %10494 = vst [vmem:[#allocation37_spill] sm:$0xff] %v7294_v33 }
 0x14d   :  { %v1015_v32 = vmax.f32 %v951_v53, %v983_v49  ;;  %v984_v45 = vmul.f32 0.2, %v952_v26  ;;  %v6539_v49 = vld [vmem:[%s10456_s20 + $0x10] ss:$24 sps:$4 sm:$0xff]  }
 0x14f   :  { %v1016_v11 = vmax.f32 %v952_v26, %v984_v45 }
 0x150   :  { %v7298_v47 = vpop.f32.mrb[48].mxu1 }
 0x151   :  { %v1036_v22 = vpack.c.bf16 %v1016_v11, %v1015_v32  ;;  %v7300_v54 = vpop.f32.mrb[49].mxu1 }
 0x152   :  { %10495 = vst [vmem:[#allocation38_spill] sm:$0xff] %v7300_v54  ;;  %v7302_v59 = vpop.f32.mrb[50].mxu1 }
 0x153   :  { %5978 = vmatmul.mubr.bf16.gmra.mrb[100].mxu1 %v1036_v22  ;;  %v7304_v35 = vpop.f32.mrb[51].mxu1 }
 0x154   :  { %10496 = vst [vmem:[#allocation39_spill] sm:$0xff] %v7304_v35  ;;  %5981 = vmatprep.mubr.bf16.mxu1 %v7138_v56 }
 0x158   :  { %v7307_v21 = vpop.f32.mrb[52].mxu1 }
 0x159   :  { %v7309_v43 = vpop.f32.mrb[53].mxu1 }
 0x15a   :  { %10497 = vst [vmem:[#allocation40_spill] sm:$0xff] %v7309_v43  ;;  %v7311_v1 = vpop.f32.mrb[54].mxu1 }
 0x15b   :  { %5982 = vmatmul.mubr.bf16.gmra.mrb[104].mxu1 %v7152_v30  ;;  %v7314_v26 = vpop.f32.mrb[55].mxu1  ;;  %v6541_v30 = vld [vmem:[%s10456_s20 + $0x14] ss:$24 sps:$4 sm:$0xff]  }
 0x15c   :  { %10498 = vst [vmem:[#allocation41_spill] sm:$0xff] %v7314_v26  ;;  %5985 = vmatprep.mubr.bf16.mxu1 %v7173_v5  ;;  %729 = vmatprep.subr.bf16.mxu0 %v6541_v30 }
 0x15d   :  { %730 = vmatpush1.bf16.msra.mxu0 %v6539_v49 }
 0x160   :  { %v7317_v53 = vpop.f32.mrb[56].mxu1 }
 0x161   :  { %v7319_v11 = vpop.f32.mrb[57].mxu1 }
 0x162   :  { %10499 = vst [vmem:[#allocation42_spill] sm:$0xff] %v7319_v11  ;;  %v7321_v22 = vpop.f32.mrb[58].mxu1 }
 0x163   :  { %10500 = vst [vmem:[#allocation43_spill] sm:$0xff] %v7321_v22  ;;  %5986 = vmatmul.mubr.bf16.gmra.mrb[108].mxu1 %v7191_v50  ;;  %v7324_v56 = vpop.f32.mrb[59].mxu1 }
 0x164   :  { %10501 = vst [vmem:[#allocation44_spill] sm:$0xff] %v7324_v56 }
 0x168   :  { %v7332_v5 = vpop.f32.mrb[60].mxu1 }
 0x169   :  { %v7334_v32 = vpop.f32.mrb[61].mxu1 }
 0x16a   :  { %10502 = vst [vmem:[#allocation45_spill] sm:$0xff] %v7334_v32  ;;  %v7336_v45 = vpop.f32.mrb[62].mxu1 }
 0x16b   :  { %v7338_v11 = vpop.f32.mrb[63].mxu1 }
 0x16c   :  { %10503 = vst [vmem:[#allocation46_spill] sm:$0xff] %v7338_v11 }
 0x170   :  { %v7340_v50 = vpop.f32.mrb[64].mxu1 }
 0x171   :  { %10504 = vst [vmem:[#allocation47_spill] sm:$0xff] %v7340_v50  ;;  %v7342_v56 = vpop.f32.mrb[65].mxu1 }
 0x172   :  { %10505 = vst [vmem:[#allocation48_spill] sm:$0xff] %v7342_v56  ;;  %v7344_v35 = vpop.f32.mrb[66].mxu1  ;;  %v6542_v56 = vld [vmem:[%s10456_s20 + $0x40] ss:$24 sps:$4 sm:$0xff]  }
 0x173   :  { %10506 = vst [vmem:[#allocation49_spill] sm:$0xff] %v7344_v35  ;;  %v7346_v26 = vpop.f32.mrb[67].mxu1 }
 0x174   :  { %10507 = vst [vmem:[#allocation50_spill] sm:$0xff] %v7346_v26  ;;  %v6544_v26 = vld [vmem:[%s10456_s20 + $0x44] ss:$24 sps:$4 sm:$0xff]  }
 0x175   :  { %731 = vmatprep.subr.bf16.mxu0 %v6544_v26  ;;  %v6548_v26 = vld [vmem:[%s10456_s20 + $0xa0] ss:$24 sps:$4 sm:$0xff]  }
 0x176   :  { %732 = vmatpush1.bf16.msra.mxu0 %v6542_v56  ;;  %v6550_v56 = vld [vmem:[%s10456_s20 + $0xa4] ss:$24 sps:$4 sm:$0xff]  }
 0x178   :  { %v7348_v54 = vpop.f32.mrb[68].mxu1 }
 0x179   :  { %10508 = vst [vmem:[#allocation51_spill] sm:$0xff] %v7348_v54  ;;  %v7350_v30 = vpop.f32.mrb[69].mxu1 }
 0x17a   :  { %10509 = vst [vmem:[#allocation52_spill] sm:$0xff] %v7350_v30  ;;  %v7352_v43 = vpop.f32.mrb[70].mxu1 }
 0x17b   :  { %10510 = vst [vmem:[#allocation53_spill] sm:$0xff] %v7352_v43  ;;  %v7354_v49 = vpop.f32.mrb[71].mxu1  ;;  %v6547_v43 = vld [vmem:[%s10456_s20 + $0x74] ss:$24 sps:$4 sm:$0xff]  }
 0x17c   :  { %10511 = vst [vmem:[#allocation54_spill] sm:$0xff] %v7354_v49  ;;  %733 = vmatprep.subr.bf16.mxu0 %v6547_v43 }
 0x180   :  { %v7356_v32 = vpop.f32.mrb[72].mxu1 }
 0x181   :  { %10512 = vst [vmem:[#allocation55_spill] sm:$0xff] %v7356_v32  ;;  %v7358_v33 = vpop.f32.mrb[73].mxu1 }
 0x182   :  { %10513 = vst [vmem:[#allocation56_spill] sm:$0xff] %v7358_v33  ;;  %v7360_v11 = vpop.f32.mrb[74].mxu1 }
 0x183   :  { %10514 = vst [vmem:[#allocation57_spill] sm:$0xff] %v7360_v11  ;;  %v7368_v35 = vpop.f32.mrb[75].mxu1  ;;  %v6545_v11 = vld [vmem:[%s10456_s20 + $0x70] ss:$24 sps:$4 sm:$0xff]  }
 0x184   :  { %10515 = vst [vmem:[#allocation58_spill] sm:$0xff] %v7368_v35  ;;  %734 = vmatpush1.bf16.msra.mxu0 %v6545_v11  ;;  %v139_v35 = vld [vmem:[%s10456_s20 + $0xd0] sm:$0x33]  ;;  %v10520_v11 = vmov 0  }
 0x185   :  { %735 = vmatprep.subr.bf16.mxu0 %v6550_v56  ;;  %v6554_v56 = vld [vmem:[%s10412_s7 + $0x8] sm:$0xff]  }
 0x188   :  { %v7370_v30 = vpop.f32.mrb[76].mxu1  ;;  %736 = vmatpush1.bf16.msra.mxu0 %v6548_v26  ;;  %v6553_v26 = vld [vmem:[%s10412_s7] sm:$0xff]  }
 0x189   :  { %10516 = vst [vmem:[#allocation59_spill] sm:$0xff] %v7370_v30  ;;  %v7372_v49 = vpop.f32.mrb[77].mxu1 }
 0x18a   :  { %10517 = vst [vmem:[#allocation60_spill] sm:$0xff] %v7372_v49  ;;  %v7374_v32 = vpop.f32.mrb[78].mxu1  ;;  %v5696_v49 = vcombine.low %v139_v35, %v139_v35 }
 0x18b   :  { %10518 = vst [vmem:[#allocation61_spill] sm:$0xff] %v7374_v32  ;;  %v7376_v33 = vpop.f32.mrb[79].mxu1 }
 0x18c   :  { %10519 = vst [vmem:[#allocation62_spill] sm:$0xff] %v7376_v33  ;;  %v5697_v33 = vcombine.high %v139_v35, %v139_v35  ;;  %v338_v43 = vsel %vm324_vm0, %v5696_v49, 0  ;;  %v7413_v35 = vld [vmem:[%s10413_s4] ss:$0 sm:$0xff] }
 0x18e   :  { %5732 = vmatprep.subr.msk.bf16.mxu0 %vm324_vm0, %v5697_v33 }
 0x18f   :  { %738 = vmatpush1.bf16.msra.mxu0 %v338_v43 }
 0x190   :  { %6029 = vmatprep.subr.bf16.mxu0 %v6553_v26 }
 0x192   :  { %5733 = vmatmul.mubr.msk.bf16.vlgmr.msra.gmra.mrb[48].mxu0 %vm275_vm1, %v6848_v18 }
 0x193   :  { %771 = vmatprep.mubr.bf16.mxu0 %v10520_v11  ;;  %6030 = vmatpush3.bf16.msra.mxu0 %v6553_v26 }
 0x194   :  { %6031 = vmatprep.subr.bf16.mxu0 %v6554_v56 }
 0x197   :  { %6032 = vmatpush3.bf16.msra.mxu0 %v6554_v56 }
 0x19a   :  { %5734 = vmatmul.mubr.msk.bf16.gmra.mrb[52].mxu0 %vm275_vm1, %v6882_v28 }
 0x19b   :  { %781 = vmatprep.mubr.bf16.mxu0 %v10520_v11 }
 0x1a2   :  { %5735 = vmatmul.mubr.msk.bf16.gmra.mrb[56].mxu0 %vm275_vm1, %v6916_v40 }
 0x1a3   :  { %791 = vmatprep.mubr.bf16.mxu0 %v10520_v11 }
 0x1aa   :  { %5736 = vmatmul.mubr.msk.bf16.gmra.mrb[60].mxu0 %vm275_vm1, %v6943_v48 }
 0x1ab   :  { %801 = vmatprep.mubr.bf16.mxu0 %v10520_v11 }
 0x1b2   :  { %5737 = vmatmul.mubr.msk.bf16.gmra.mrb[64].mxu0 %vm275_vm1, %v6959_v52 }
 0x1b3   :  { %811 = vmatprep.mubr.bf16.mxu0 %v10520_v11 }
 0x1ba   :  { %5738 = vmatmul.mubr.msk.bf16.gmra.mrb[68].mxu0 %vm275_vm1, %v6979_v57 }
 0x1bb   :  { %821 = vmatprep.mubr.bf16.mxu0 %v10520_v11 }
 0x1c2   :  { %5739 = vmatmul.mubr.msk.bf16.gmra.mrb[72].mxu0 %vm275_vm1, %v6999_v62 }
 0x1c3   :  { %831 = vmatprep.mubr.bf16.mxu0 %v10520_v11 }
 0x1ca   :  { %5740 = vmatmul.mubr.msk.bf16.gmra.mrb[76].mxu0 %vm275_vm1, %v7019_v4 }
 0x1cb   :  { %841 = vmatprep.mubr.bf16.mxu0 %v10520_v11 }
 0x1d2   :  { %5741 = vmatmul.mubr.msk.bf16.gmra.mrb[80].mxu0 %vm275_vm1, %v7033_v7 }
 0x1d3   :  { %851 = vmatprep.mubr.bf16.mxu0 %v10520_v11 }
 0x1d6   :  { %v5959_v18 = vpop.f32.mrb[80].mxu1 }
 0x1d7   :  { %v1148_v33 = vadd.f32 %v5959_v18, %v7133_v51  ;;  %v1139_v49 = vpop.f32.mrb[81].mxu1 }
 0x1d8   :  { %v1140_v28 = vadd.f32 %v1139_v49, %v7121_v25  ;;  %v5960_v43 = vpop.f32.mrb[82].mxu1 }
 0x1d9   :  { %v1275_v26 = vadd.f32 %v7413_v35, %v1148_v33  ;;  %v1151_v56 = vadd.f32 %v5960_v43, %v7141_v63  ;;  %v1142_v32 = vpop.f32.mrb[83].mxu1 }
 0x1da   :  { %v1273_v40 = vadd.f32 %v7413_v35, %v1140_v28  ;;  %v1143_v30 = vadd.f32 %v1142_v32, %v7127_v34  ;;  %5742 = vmatmul.mubr.msk.bf16.gmra.mrb[84].mxu0 %vm275_vm1, %v7047_v10 }
 0x1db   :  { %v1307_v50 = vmul.f32 0.2, %v1275_v26  ;;  %v1276_v54 = vadd.f32 %v7413_v35, %v1151_v56  ;;  %861 = vmatprep.mubr.bf16.mxu0 %v10520_v11 }
 0x1dc   :  { %v1305_v51 = vmul.f32 0.2, %v1273_v40  ;;  %v1274_v25 = vadd.f32 %v7413_v35, %v1143_v30 }
 0x1dd   :  { %v1308_v18 = vmul.f32 0.2, %v1276_v54  ;;  %v1339_v49 = vmax.f32 %v1275_v26, %v1307_v50 }
 0x1de   :  { %v1306_v33 = vmul.f32 0.2, %v1274_v25  ;;  %v1337_v43 = vmax.f32 %v1273_v40, %v1305_v51 }
 0x1df   :  { %v1340_v63 = vmax.f32 %v1276_v54, %v1308_v18 }
 0x1e0   :  { %v1338_v22 = vmax.f32 %v1274_v25, %v1306_v33 }
 0x1e1   :  { %v1370_v28 = vpack.c.bf16 %v1340_v63, %v1339_v49 }
 0x1e2   :  { %v1369_v34 = vpack.c.bf16 %v1338_v22, %v1337_v43  ;;  %5743 = vmatmul.mubr.msk.bf16.gmra.mrb[88].mxu0 %vm275_vm1, %v7061_v13 }
 0x1e3   :  { %871 = vmatprep.mubr.bf16.mxu0 %v10520_v11 }
 0x1e4   :  { %5997 = vmatprep.mubr.msk.bf16.mxu1 %vm1417_vm2, %v1369_v34 }
 0x1e5   :  { %5998 = vmatmul.mubr.msk.bf16.vlgmr.msra.gmra.mrb[112].mxu1 %vm1417_vm2, %v1370_v28 }
 0x1e6   :  { %v5963_v48 = vpop.f32.mrb[84].mxu1 }
 0x1e7   :  { %v1164_v32 = vadd.f32 %v5963_v48, %v7168_v61  ;;  %v1155_v30 = vpop.f32.mrb[85].mxu1 }
 0x1e8   :  { %v1156_v54 = vadd.f32 %v1155_v30, %v7147_v23  ;;  %v5964_v50 = vpop.f32.mrb[86].mxu1 }
 0x1e9   :  { %v1279_v26 = vadd.f32 %v7413_v35, %v1164_v32  ;;  %v1167_v22 = vadd.f32 %v5964_v50, %v7176_v12  ;;  %v1158_v56 = vpop.f32.mrb[87].mxu1 }
 0x1ea   :  { %v1277_v52 = vadd.f32 %v7413_v35, %v1156_v54  ;;  %v1159_v40 = vadd.f32 %v1158_v56, %v7158_v38  ;;  %5744 = vmatmul.mubr.msk.bf16.gmra.mrb[92].mxu0 %vm275_vm1, %v7075_v16 }
 0x1eb   :  { %v1311_v51 = vmul.f32 0.2, %v1279_v26  ;;  %v1280_v25 = vadd.f32 %v7413_v35, %v1167_v22  ;;  %881 = vmatprep.mubr.bf16.mxu0 %v10520_v11 }
 0x1ec   :  { %v1309_v61 = vmul.f32 0.2, %v1277_v52  ;;  %v1278_v23 = vadd.f32 %v7413_v35, %v1159_v40 }
 0x1ed   :  { %v1312_v18 = vmul.f32 0.2, %v1280_v25  ;;  %v1343_v49 = vmax.f32 %v1279_v26, %v1311_v51 }
 0x1ee   :  { %v1310_v33 = vmul.f32 0.2, %v1278_v23  ;;  %v1341_v63 = vmax.f32 %v1277_v52, %v1309_v61 }
 0x1ef   :  { %v1344_v12 = vmax.f32 %v1280_v25, %v1312_v18 }
 0x1f0   :  { %v1342_v43 = vmax.f32 %v1278_v23, %v1310_v33 }
 0x1f1   :  { %v1372_v28 = vpack.c.bf16 %v1344_v12, %v1343_v49 }
 0x1f2   :  { %v1371_v34 = vpack.c.bf16 %v1342_v43, %v1341_v63  ;;  %5745 = vmatmul.mubr.msk.bf16.gmra.mrb[96].mxu0 %vm275_vm1, %v6850_v19 }
 0x1f3   :  { %891 = vmatprep.mubr.bf16.mxu0 %v10520_v11 }
 0x1f4   :  { %6001 = vmatprep.mubr.msk.bf16.mxu1 %vm1417_vm2, %v1371_v34 }
 0x1f5   :  { %6002 = vmatmul.mubr.msk.bf16.gmra.mrb[116].mxu1 %vm1417_vm2, %v1372_v28 }
 0x1f6   :  { %v5967_v57 = vpop.f32.mrb[88].mxu1 }
 0x1f7   :  { %v1180_v38 = vadd.f32 %v5967_v57, %v7203_v15  ;;  %v1171_v48 = vpop.f32.mrb[89].mxu1 }
 0x1f8   :  { %v1172_v32 = vadd.f32 %v1171_v48, %v7187_v46  ;;  %v5968_v30 = vpop.f32.mrb[90].mxu1 }
 0x1f9   :  { %v1283_v54 = vadd.f32 %v7413_v35, %v1180_v38  ;;  %v1183_v50 = vadd.f32 %v5968_v30, %v7210_v36  ;;  %v1174_v26 = vpop.f32.mrb[91].mxu1 }
 0x1fa   :  { %v1281_v62 = vadd.f32 %v7413_v35, %v1172_v32  ;;  %v1175_v22 = vadd.f32 %v1174_v26, %v7196_v60  ;;  %5746 = vmatmul.mubr.msk.bf16.gmra.mrb[100].mxu0 %vm275_vm1, %v6884_v29 }
 0x1fb   :  { %v1315_v56 = vmul.f32 0.2, %v1283_v54  ;;  %v1284_v52 = vadd.f32 %v7413_v35, %v1183_v50  ;;  %901 = vmatprep.mubr.bf16.mxu0 %v10520_v11 }
 0x1fc   :  { %v1313_v15 = vmul.f32 0.2, %v1281_v62  ;;  %v1282_v46 = vadd.f32 %v7413_v35, %v1175_v22 }
 0x1fd   :  { %v1316_v40 = vmul.f32 0.2, %v1284_v52  ;;  %v1347_v25 = vmax.f32 %v1283_v54, %v1315_v56 }
 0x1fe   :  { %v1314_v51 = vmul.f32 0.2, %v1282_v46  ;;  %v1345_v61 = vmax.f32 %v1281_v62, %v1313_v15 }
 0x1ff   :  { %v1348_v36 = vmax.f32 %v1284_v52, %v1316_v40 }
 0x200   :  { %v1346_v23 = vmax.f32 %v1282_v46, %v1314_v51 }
 0x201   :  { %v1374_v18 = vpack.c.bf16 %v1348_v36, %v1347_v25 }
 0x202   :  { %v1373_v33 = vpack.c.bf16 %v1346_v23, %v1345_v61  ;;  %5747 = vmatmul.mubr.msk.bf16.gmra.mrb[104].mxu0 %vm275_vm1, %v6918_v41 }
 0x203   :  { %911 = vmatprep.mubr.bf16.mxu0 %v10520_v11 }
 0x204   :  { %6005 = vmatprep.mubr.msk.bf16.mxu1 %vm1417_vm2, %v1373_v33 }
 0x205   :  { %6006 = vmatmul.mubr.msk.bf16.gmra.mrb[120].mxu1 %vm1417_vm2, %v1374_v18 }
 0x206   :  { %v5971_v4 = vpop.f32.mrb[92].mxu1 }
 0x207   :  { %v1196_v60 = vadd.f32 %v5971_v4, %v7231_v9  ;;  %v1187_v49 = vpop.f32.mrb[93].mxu1 }
 0x208   :  { %v1188_v12 = vadd.f32 %v1187_v49, %v7217_v8  ;;  %v5972_v63 = vpop.f32.mrb[94].mxu1 }
 0x209   :  { %v1287_v43 = vadd.f32 %v7413_v35, %v1196_v60  ;;  %v1199_v28 = vadd.f32 %v5972_v63, %v7238_v6  ;;  %v1190_v34 = vpop.f32.mrb[95].mxu1 }
 0x20a   :  { %v1285_v7 = vadd.f32 %v7413_v35, %v1188_v12  ;;  %v1191_v57 = vadd.f32 %v1190_v34, %v7224_v14 }
 0x20b   :  { %v1319_v38 = vmul.f32 0.2, %v1287_v43  ;;  %v1288_v48 = vadd.f32 %v7413_v35, %v1199_v28 }
 0x20c   :  { %v1317_v9 = vmul.f32 0.2, %v1285_v7  ;;  %v1286_v8 = vadd.f32 %v7413_v35, %v1191_v57 }
 0x20d   :  { %v1320_v32 = vmul.f32 0.2, %v1288_v48  ;;  %v1351_v54 = vmax.f32 %v1287_v43, %v1319_v38 }
 0x20e   :  { %v1318_v30 = vmul.f32 0.2, %v1286_v8  ;;  %v1349_v50 = vmax.f32 %v1285_v7, %v1317_v9 }
 0x20f   :  { %v1352_v6 = vmax.f32 %v1288_v48, %v1320_v32 }
 0x210   :  { %v1350_v26 = vmax.f32 %v1286_v8, %v1318_v30 }
 0x211   :  { %v1376_v62 = vpack.c.bf16 %v1352_v6, %v1351_v54 }
 0x212   :  { %v1375_v22 = vpack.c.bf16 %v1350_v26, %v1349_v50 }
 0x214   :  { %6009 = vmatprep.mubr.msk.bf16.mxu1 %vm1417_vm2, %v1375_v22 }
 0x215   :  { %6010 = vmatmul.mubr.msk.bf16.gmra.mrb[124].mxu1 %vm1417_vm2, %v1376_v62 }
 0x216   :  { %v5975_v10 = vpop.f32.mrb[96].mxu1 }
 0x217   :  { %v1212_v14 = vadd.f32 %v5975_v10, %v7259_v31  ;;  %v1203_v56 = vpop.f32.mrb[97].mxu1 }
 0x218   :  { %v1204_v52 = vadd.f32 %v1203_v56, %v7245_v24  ;;  %v5976_v15 = vpop.f32.mrb[98].mxu1 }
 0x219   :  { %v1291_v46 = vadd.f32 %v7413_v35, %v1212_v14  ;;  %v1215_v40 = vadd.f32 %v5976_v15, %v7266_v44  ;;  %v1206_v51 = vpop.f32.mrb[99].mxu1 }
 0x21a   :  { %v1289_v13 = vadd.f32 %v7413_v35, %v1204_v52  ;;  %v1207_v25 = vadd.f32 %v1206_v51, %v7252_v39 }
 0x21b   :  { %v1323_v36 = vmul.f32 0.2, %v1291_v46  ;;  %v1292_v61 = vadd.f32 %v7413_v35, %v1215_v40 }
 0x21c   :  { %v1321_v31 = vmul.f32 0.2, %v1289_v13  ;;  %v1290_v24 = vadd.f32 %v7413_v35, %v1207_v25 }
 0x21d   :  { %v1324_v23 = vmul.f32 0.2, %v1292_v61  ;;  %v1355_v33 = vmax.f32 %v1291_v46, %v1323_v36 }
 0x21e   :  { %v1322_v18 = vmul.f32 0.2, %v1290_v24  ;;  %v1353_v4 = vmax.f32 %v1289_v13, %v1321_v31 }
 0x21f   :  { %v1356_v44 = vmax.f32 %v1292_v61, %v1324_v23  ;;  %v10521_v23 = vld [vmem:[#allocation4_spill] sm:$0xff] }
 0x220   :  { %v1354_v60 = vmax.f32 %v1290_v24, %v1322_v18 }
 0x221   :  { %v1378_v49 = vpack.c.bf16 %v1356_v44, %v1355_v33 }
 0x222   :  { %v1377_v12 = vpack.c.bf16 %v1354_v60, %v1353_v4  ;;  %v10522_v60 = vld [vmem:[#allocation6_spill] sm:$0xff] }
 0x224   :  { %6013 = vmatprep.mubr.msk.bf16.mxu1 %vm1417_vm2, %v1377_v12 }
 0x225   :  { %6014 = vmatmul.mubr.msk.bf16.gmra.mrb[128].mxu1 %vm1417_vm2, %v1378_v49 }
 0x226   :  { %v5979_v16 = vpop.f32.mrb[100].mxu1 }
 0x227   :  { %v1228_v39 = vadd.f32 %v5979_v16, %v7287_v42  ;;  %v1219_v63 = vpop.f32.mrb[101].mxu1 }
 0x228   :  { %v1220_v43 = vadd.f32 %v1219_v63, %v7273_v20  ;;  %v5980_v28 = vpop.f32.mrb[102].mxu1  ;;  %v10523_v63 = vld [vmem:[#allocation5_spill] sm:$0xff] }
 0x229   :  { %v1295_v34 = vadd.f32 %v7413_v35, %v1228_v39  ;;  %v1231_v7 = vadd.f32 %v5980_v28, %v7296_v0  ;;  %v1222_v57 = vpop.f32.mrb[103].mxu1  ;;  %v10524_v28 = vld [vmem:[#allocation3_spill] sm:$0xff] }
 0x22a   :  { %v1293_v19 = vadd.f32 %v7413_v35, %v1220_v43  ;;  %v1223_v38 = vadd.f32 %v1222_v57, %v7280_v58  ;;  %5748 = vmatmul.mubr.msk.bf16.gmra.mrb[108].mxu0 %vm275_vm1, %v10524_v28 }
 0x22b   :  { %v1327_v48 = vmul.f32 0.2, %v1295_v34  ;;  %v1296_v9 = vadd.f32 %v7413_v35, %v1231_v7 }
 0x22c   :  { %v1325_v42 = vmul.f32 0.2, %v1293_v19  ;;  %v1294_v20 = vadd.f32 %v7413_v35, %v1223_v38 }
 0x22d   :  { %v1328_v8 = vmul.f32 0.2, %v1296_v9  ;;  %v1359_v0 = vmax.f32 %v1295_v34, %v1327_v48 }
 0x22e   :  { %v1326_v32 = vmul.f32 0.2, %v1294_v20  ;;  %v5983_v30 = vpop.f32.mrb[104].mxu1  ;;  %v1357_v58 = vmax.f32 %v1293_v19, %v1325_v42 }
 0x22f   :  { %v1360_v54 = vmax.f32 %v1296_v9, %v1328_v8  ;;  %v1244_v6 = vadd.f32 %v5983_v30, %v7136_v55  ;;  %v1235_v50 = vpop.f32.mrb[105].mxu1 }
 0x230   :  { %v1358_v26 = vmax.f32 %v1294_v20, %v1326_v32  ;;  %v1236_v29 = vadd.f32 %v1235_v50, %v7124_v27  ;;  %v5984_v62 = vpop.f32.mrb[106].mxu1 }
 0x231   :  { %v1380_v22 = vpack.c.bf16 %v1360_v54, %v1359_v0  ;;  %v1299_v10 = vadd.f32 %v7413_v35, %v1244_v6  ;;  %v1247_v14 = vadd.f32 %v5984_v62, %v7144_v3  ;;  %v1238_v56 = vpop.f32.mrb[107].mxu1 }
 0x232   :  { %v1379_v52 = vpack.c.bf16 %v1358_v26, %v1357_v58  ;;  %v1297_v15 = vadd.f32 %v7413_v35, %v1236_v29  ;;  %v1239_v46 = vadd.f32 %v1238_v56, %v7130_v37 }
 0x233   :  { %v1331_v55 = vmul.f32 0.2, %v1299_v10  ;;  %v1300_v40 = vadd.f32 %v7413_v35, %v1247_v14 }
 0x234   :  { %v1329_v27 = vmul.f32 0.2, %v1297_v15  ;;  %v1298_v51 = vadd.f32 %v7413_v35, %v1239_v46  ;;  %6017 = vmatprep.mubr.msk.bf16.mxu1 %vm1417_vm2, %v1379_v52 }
 0x235   :  { %v1332_v3 = vmul.f32 0.2, %v1300_v40  ;;  %6018 = vmatmul.mubr.msk.bf16.gmra.mrb[132].mxu1 %vm1417_vm2, %v1380_v22  ;;  %v1363_v36 = vmax.f32 %v1299_v10, %v1331_v55  ;;  %v6555_v10 = vld [vmem:[%s10414_s9] sm:$0xff]  }
 0x236   :  { %v1330_v13 = vmul.f32 0.2, %v1298_v51  ;;  %v5987_v25 = vpop.f32.mrb[108].mxu1  ;;  %v1361_v31 = vmax.f32 %v1297_v15, %v1329_v27  ;;  %6065 = vmatprep.subr.bf16.mxu1 %v6555_v10 }
 0x237   :  { %v1364_v37 = vmax.f32 %v1300_v40, %v1332_v3  ;;  %v1260_v61 = vadd.f32 %v5987_v25, %v7171_v2  ;;  %v1251_v41 = vpop.f32.mrb[109].mxu1  ;;  %6066 = vmatpush3.bf16.msra.mxu1 %v6555_v10  ;;  %v7577_v3 = vld [vmem:[%s10415_s6] ss:$0 sm:$0xff]  ;;  %v10535_v25 = vld [vmem:[#allocation11_spill] sm:$0xff] }
 0x238   :  { %v1362_v24 = vmax.f32 %v1298_v51, %v1330_v13  ;;  %v1252_v18 = vadd.f32 %v1251_v41, %v10521_v23  ;;  %v5988_v33 = vpop.f32.mrb[110].mxu1  ;;  %v10537_v23 = vld [vmem:[#allocation13_spill] sm:$0xff] }
 0x239   :  { %v1382_v44 = vpack.c.bf16 %v1364_v37, %v1363_v36  ;;  %v1303_v4 = vadd.f32 %v7413_v35, %v1260_v61  ;;  %v1263_v49 = vadd.f32 %v5988_v33, %v10522_v60  ;;  %v1254_v12 = vpop.f32.mrb[111].mxu1  ;;  %v10536_v61 = vld [vmem:[#allocation7_spill] sm:$0xff] }
 0x23a   :  { %v1381_v16 = vpack.c.bf16 %v1362_v24, %v1361_v31  ;;  %v1301_v39 = vadd.f32 %v7413_v35, %v1252_v18  ;;  %v1255_v43 = vadd.f32 %v1254_v12, %v10523_v63 }
 0x23b   :  { %v1335_v2 = vmul.f32 0.2, %v1303_v4  ;;  %v1304_v34 = vadd.f32 %v7413_v35, %v1263_v49 }
 0x23c   :  { %v1333_v7 = vmul.f32 0.2, %v1301_v39  ;;  %v1302_v57 = vadd.f32 %v7413_v35, %v1255_v43  ;;  %6021 = vmatprep.mubr.msk.bf16.mxu1 %vm1417_vm2, %v1381_v16 }
 0x23d   :  { %v1336_v19 = vmul.f32 0.2, %v1304_v34  ;;  %6022 = vmatmul.mubr.msk.bf16.gmra.mrb[136].mxu1 %vm1417_vm2, %v1382_v44  ;;  %v1367_v48 = vmax.f32 %v1303_v4, %v1335_v2  ;;  %v10538_v4 = vld [vmem:[#allocation9_spill] sm:$0xff] }
 0x23e   :  { %v1334_v38 = vmul.f32 0.2, %v1302_v57  ;;  %v1365_v42 = vmax.f32 %v1301_v39, %v1333_v7 }
 0x23f   :  { %v1368_v9 = vmax.f32 %v1304_v34, %v1336_v19 }
 0x240   :  { %v1366_v20 = vmax.f32 %v1302_v57, %v1334_v38 }
 0x241   :  { %v1384_v8 = vpack.c.bf16 %v1368_v9, %v1367_v48 }
 0x242   :  { %v1383_v32 = vpack.c.bf16 %v1366_v20, %v1365_v42 }
 0x244   :  { %6025 = vmatprep.mubr.msk.bf16.mxu1 %vm1417_vm2, %v1383_v32 }
 0x245   :  { %6026 = vmatmul.mubr.msk.bf16.gmra.mrb[140].mxu1 %vm1417_vm2, %v1384_v8 }
 0x265   :  { %v7533_v30 = vpop.f32.mrb[48].mxu0 }
 0x266   :  { %v7535_v0 = vpop.f32.mrb[49].mxu0 }
 0x267   :  { %10525 = vst [vmem:[#allocation4_spill] sm:$0xff] %v7535_v0  ;;  %v7537_v35 = vpop.f32.mrb[50].mxu0 }
 0x268   :  { %v7539_v54 = vpop.f32.mrb[51].mxu0 }
 0x269   :  { %10526 = vst [vmem:[#allocation6_spill] sm:$0xff] %v7539_v54 }
 0x26d   :  { %v7541_v6 = vpop.f32.mrb[52].mxu0 }
 0x26e   :  { %v7543_v50 = vpop.f32.mrb[53].mxu0 }
 0x26f   :  { %10527 = vst [vmem:[#allocation5_spill] sm:$0xff] %v7543_v50  ;;  %v7545_v58 = vpop.f32.mrb[54].mxu0 }
 0x270   :  { %v7547_v26 = vpop.f32.mrb[55].mxu0 }
 0x271   :  { %10528 = vst [vmem:[#allocation3_spill] sm:$0xff] %v7547_v26  ;;  %v10641_v26 = vmov 5  }
 0x275   :  { %v7549_v29 = vpop.f32.mrb[56].mxu0 }
 0x276   :  { %v7551_v62 = vpop.f32.mrb[57].mxu0 }
 0x277   :  { %10529 = vst [vmem:[#allocation63_spill] sm:$0xff] %v7551_v62  ;;  %v7553_v22 = vpop.f32.mrb[58].mxu0 }
 0x278   :  { %v7558_v14 = vpop.f32.mrb[59].mxu0 }
 0x279   :  { %10530 = vst [vmem:[#allocation64_spill] sm:$0xff] %v7558_v14  ;;  %v10575_v14 = vld [vmem:[#allocation53_spill] sm:$0xff] }
 0x27d   :  { %v7560_v56 = vpop.f32.mrb[60].mxu0 }
 0x27e   :  { %v7562_v52 = vpop.f32.mrb[61].mxu0 }
 0x27f   :  { %10531 = vst [vmem:[#allocation65_spill] sm:$0xff] %v7562_v52  ;;  %v7564_v15 = vpop.f32.mrb[62].mxu0 }
 0x280   :  { %v7566_v46 = vpop.f32.mrb[63].mxu0 }
 0x281   :  { %10532 = vst [vmem:[#allocation66_spill] sm:$0xff] %v7566_v46 }
 0x285   :  { %v7568_v55 = vpop.f32.mrb[64].mxu0 }
 0x286   :  { %v7570_v40 = vpop.f32.mrb[65].mxu0 }
 0x287   :  { %10533 = vst [vmem:[#allocation67_spill] sm:$0xff] %v7570_v40  ;;  %v7572_v27 = vpop.f32.mrb[66].mxu0  ;;  %v10574_v40 = vld [vmem:[#allocation47_spill] sm:$0xff] }
 0x288   :  { %v7579_v13 = vpop.f32.mrb[67].mxu0 }
 0x289   :  { %10534 = vst [vmem:[#allocation68_spill] sm:$0xff] %v7579_v13 }
 0x28d   :  { %v7588_v16 = vpop.f32.mrb[68].mxu0 }
 0x28e   :  { %v7591_v43 = vpop.f32.mrb[69].mxu0 }
 0x28f   :  { %10539 = vst [vmem:[#allocation11_spill] sm:$0xff] %v7591_v43  ;;  %v7593_v2 = vpop.f32.mrb[70].mxu0 }
 0x290   :  { %v7595_v7 = vpop.f32.mrb[71].mxu0 }
 0x291   :  { %10540 = vst [vmem:[#allocation7_spill] sm:$0xff] %v7595_v7 }
 0x295   :  { %v7597_v20 = vpop.f32.mrb[72].mxu0 }
 0x296   :  { %v7600_v8 = vpop.f32.mrb[73].mxu0 }
 0x297   :  { %10541 = vst [vmem:[#allocation13_spill] sm:$0xff] %v7600_v8  ;;  %v7603_v32 = vpop.f32.mrb[74].mxu0 }
 0x2b8   :  { %v5999_v51 = vpop.f32.mrb[112].mxu1 }
 0x2b9   :  { %v1509_v36 = vadd.f32 %v5999_v51, %v10535_v25  ;;  %v1500_v37 = vpop.f32.mrb[113].mxu1  ;;  %v7605_v51 = vpop.f32.mrb[75].mxu0  ;;  %v10543_v25 = vld [vmem:[#allocation19_spill] sm:$0xff] }
 0x2ba   :  { %v1501_v41 = vadd.f32 %v1500_v37, %v10536_v61  ;;  %v6000_v31 = vpop.f32.mrb[114].mxu1  ;;  %10542 = vst [vmem:[#allocation9_spill] sm:$0xff] %v7605_v51  ;;  %v10544_v61 = vld [vmem:[#allocation15_spill] sm:$0xff] }
 0x2bb   :  { %v1636_v24 = vadd.f32 %v7577_v3, %v1509_v36  ;;  %v1512_v18 = vadd.f32 %v6000_v31, %v10537_v23  ;;  %v1503_v33 = vpop.f32.mrb[115].mxu1  ;;  %v10545_v23 = vld [vmem:[#allocation21_spill] sm:$0xff] }
 0x2bc   :  { %v1634_v44 = vadd.f32 %v7577_v3, %v1501_v41  ;;  %v1504_v60 = vadd.f32 %v1503_v33, %v10538_v4  ;;  %v10546_v4 = vld [vmem:[#allocation17_spill] sm:$0xff] }
 0x2bd   :  { %v1668_v49 = vmul.f32 0.2, %v1636_v24  ;;  %v1637_v12 = vadd.f32 %v7577_v3, %v1512_v18 }
 0x2be   :  { %v1666_v39 = vmul.f32 0.2, %v1634_v44  ;;  %v1635_v63 = vadd.f32 %v7577_v3, %v1504_v60 }
 0x2bf   :  { %v1669_v28 = vmul.f32 0.2, %v1637_v12  ;;  %v1700_v57 = vmax.f32 %v1636_v24, %v1668_v49 }
 0x2c0   :  { %v1667_v34 = vmul.f32 0.2, %v1635_v63  ;;  %v1698_v38 = vmax.f32 %v1634_v44, %v1666_v39  ;;  %v7614_v39 = vpop.f32.mrb[76].mxu0 }
 0x2c1   :  { %v1701_v19 = vmax.f32 %v1637_v12, %v1669_v28 }
 0x2c2   :  { %v1699_v48 = vmax.f32 %v1635_v63, %v1667_v34  ;;  %v7617_v34 = vpop.f32.mrb[77].mxu0 }
 0x2c3   :  { %v1731_v9 = vpack.c.bf16 %v1701_v19, %v1700_v57  ;;  %10547 = vst [vmem:[#allocation19_spill] sm:$0xff] %v7617_v34  ;;  %v7619_v19 = vpop.f32.mrb[78].mxu0 }
 0x2c4   :  { %v1730_v42 = vpack.c.bf16 %v1699_v48, %v1698_v38  ;;  %v7621_v48 = vpop.f32.mrb[79].mxu0 }
 0x2c5   :  { %10548 = vst [vmem:[#allocation15_spill] sm:$0xff] %v7621_v48 }
 0x2c6   :  { %6033 = vmatprep.mubr.msk.bf16.mxu0 %vm1762_vm3, %v1730_v42 }
 0x2c7   :  { %6034 = vmatmul.mubr.msk.bf16.vlgmr.msra.gmra.mrb[112].mxu0 %vm1762_vm3, %v1731_v9 }
 0x2c8   :  { %v6003_v10 = vpop.f32.mrb[116].mxu1 }
 0x2c9   :  { %v1525_v36 = vadd.f32 %v6003_v10, %v10543_v25  ;;  %v1516_v37 = vpop.f32.mrb[117].mxu1 }
 0x2ca   :  { %v1517_v41 = vadd.f32 %v1516_v37, %v10544_v61  ;;  %v6004_v31 = vpop.f32.mrb[118].mxu1  ;;  %v7623_v61 = vpop.f32.mrb[80].mxu0 }
 0x2cb   :  { %v1640_v24 = vadd.f32 %v7577_v3, %v1525_v36  ;;  %v1528_v18 = vadd.f32 %v6004_v31, %v10545_v23  ;;  %v1519_v33 = vpop.f32.mrb[119].mxu1 }
 0x2cc   :  { %v1638_v44 = vadd.f32 %v7577_v3, %v1517_v41  ;;  %v1520_v60 = vadd.f32 %v1519_v33, %v10546_v4  ;;  %v7626_v41 = vpop.f32.mrb[81].mxu0  ;;  %v10551_v33 = vld [vmem:[#allocation27_spill] sm:$0xff] }
 0x2cd   :  { %v1672_v49 = vmul.f32 0.2, %v1640_v24  ;;  %v1641_v12 = vadd.f32 %v7577_v3, %v1528_v18  ;;  %10549 = vst [vmem:[#allocation21_spill] sm:$0xff] %v7626_v41  ;;  %v7629_v31 = vpop.f32.mrb[82].mxu0 }
 0x2ce   :  { %v1670_v63 = vmul.f32 0.2, %v1638_v44  ;;  %v1639_v28 = vadd.f32 %v7577_v3, %v1520_v60  ;;  %v7631_v18 = vpop.f32.mrb[83].mxu0 }
 0x2cf   :  { %v1673_v57 = vmul.f32 0.2, %v1641_v12  ;;  %v1704_v9 = vmax.f32 %v1640_v24, %v1672_v49  ;;  %10550 = vst [vmem:[#allocation17_spill] sm:$0xff] %v7631_v18 }
 0x2d0   :  { %v1671_v38 = vmul.f32 0.2, %v1639_v28  ;;  %v1702_v10 = vmax.f32 %v1638_v44, %v1670_v63  ;;  %v10552_v44 = vld [vmem:[#allocation23_spill] sm:$0xff]  ;;  %v10553_v63 = vld [vmem:[#allocation29_spill] sm:$0xff] }
 0x2d1   :  { %v1705_v42 = vmax.f32 %v1641_v12, %v1673_v57 }
 0x2d2   :  { %v1703_v25 = vmax.f32 %v1639_v28, %v1671_v38 }
 0x2d3   :  { %v1733_v36 = vpack.c.bf16 %v1705_v42, %v1704_v9  ;;  %v10554_v9 = vld [vmem:[#allocation25_spill] sm:$0xff] }
 0x2d4   :  { %v1732_v37 = vpack.c.bf16 %v1703_v25, %v1702_v10 }
 0x2d6   :  { %6037 = vmatprep.mubr.msk.bf16.mxu0 %vm1762_vm3, %v1732_v37 }
 0x2d7   :  { %6038 = vmatmul.mubr.msk.bf16.gmra.mrb[116].mxu0 %vm1762_vm3, %v1733_v36  ;;  %v7640_v36 = vpop.f32.mrb[84].mxu0 }
 0x2d8   :  { %v6007_v23 = vpop.f32.mrb[120].mxu1 }
 0x2d9   :  { %v1541_v24 = vadd.f32 %v6007_v23, %v10551_v33  ;;  %v1532_v4 = vpop.f32.mrb[121].mxu1  ;;  %v7643_v33 = vpop.f32.mrb[85].mxu0 }
 0x2da   :  { %v1533_v60 = vadd.f32 %v1532_v4, %v10552_v44  ;;  %v6008_v49 = vpop.f32.mrb[122].mxu1  ;;  %10555 = vst [vmem:[#allocation27_spill] sm:$0xff] %v7643_v33  ;;  %v7645_v44 = vpop.f32.mrb[86].mxu0 }
 0x2db   :  { %v1644_v12 = vadd.f32 %v7577_v3, %v1541_v24  ;;  %v1544_v28 = vadd.f32 %v6008_v49, %v10553_v63  ;;  %v1535_v57 = vpop.f32.mrb[123].mxu1  ;;  %v7647_v49 = vpop.f32.mrb[87].mxu0 }
 0x2dc   :  { %v1642_v38 = vadd.f32 %v7577_v3, %v1533_v60  ;;  %v1536_v42 = vadd.f32 %v1535_v57, %v10554_v9  ;;  %10556 = vst [vmem:[#allocation23_spill] sm:$0xff] %v7647_v49  ;;  %v10559_v49 = vld [vmem:[#allocation35_spill] sm:$0xff] }
 0x2dd   :  { %v1676_v10 = vmul.f32 0.2, %v1644_v12  ;;  %v1645_v25 = vadd.f32 %v7577_v3, %v1544_v28  ;;  %v7649_v28 = vpop.f32.mrb[88].mxu0 }
 0x2de   :  { %v1674_v37 = vmul.f32 0.2, %v1642_v38  ;;  %v1643_v23 = vadd.f32 %v7577_v3, %v1536_v42  ;;  %v7652_v51 = vpop.f32.mrb[89].mxu0 }
 0x2df   :  { %v1677_v4 = vmul.f32 0.2, %v1645_v25  ;;  %v1708_v63 = vmax.f32 %v1644_v12, %v1676_v10  ;;  %10557 = vst [vmem:[#allocation29_spill] sm:$0xff] %v7652_v51  ;;  %v7655_v42 = vpop.f32.mrb[90].mxu0 }
 0x2e0   :  { %v1675_v24 = vmul.f32 0.2, %v1643_v23  ;;  %v1706_v18 = vmax.f32 %v1642_v38, %v1674_v37  ;;  %v7657_v8 = vpop.f32.mrb[91].mxu0  ;;  %v10560_v38 = vld [vmem:[#allocation31_spill] sm:$0xff] }
 0x2e1   :  { %v1709_v60 = vmax.f32 %v1645_v25, %v1677_v4  ;;  %10558 = vst [vmem:[#allocation25_spill] sm:$0xff] %v7657_v8 }
 0x2e2   :  { %v1707_v57 = vmax.f32 %v1643_v23, %v1675_v24  ;;  %v10561_v24 = vld [vmem:[#allocation33_spill] sm:$0xff] }
 0x2e3   :  { %v1735_v9 = vpack.c.bf16 %v1709_v60, %v1708_v63 }
 0x2e4   :  { %v1734_v41 = vpack.c.bf16 %v1707_v57, %v1706_v18 }
 0x2e6   :  { %6041 = vmatprep.mubr.msk.bf16.mxu0 %vm1762_vm3, %v1734_v41 }
 0x2e7   :  { %6042 = vmatmul.mubr.msk.bf16.gmra.mrb[120].mxu0 %vm1762_vm3, %v1735_v9  ;;  %v7666_v9 = vpop.f32.mrb[92].mxu0 }
 0x2e8   :  { %v6011_v33 = vpop.f32.mrb[124].mxu1 }
 0x2e9   :  { %v1557_v12 = vadd.f32 %v6011_v33, %v10559_v49  ;;  %v1548_v10 = vpop.f32.mrb[125].mxu1  ;;  %v7669_v49 = vpop.f32.mrb[93].mxu0 }
 0x2ea   :  { %v1549_v25 = vadd.f32 %v1548_v10, %v10560_v38  ;;  %v6012_v37 = vpop.f32.mrb[126].mxu1  ;;  %10562 = vst [vmem:[#allocation35_spill] sm:$0xff] %v7669_v49  ;;  %v7671_v38 = vpop.f32.mrb[94].mxu0 }
 0x2eb   :  { %v1648_v18 = vadd.f32 %v7577_v3, %v1557_v12  ;;  %v1560_v23 = vadd.f32 %v6012_v37, %v7291_v17  ;;  %v1551_v41 = vpop.f32.mrb[127].mxu1  ;;  %v7673_v17 = vpop.f32.mrb[95].mxu0 }
 0x2ec   :  { %v1646_v4 = vadd.f32 %v7577_v3, %v1549_v25  ;;  %v1552_v63 = vadd.f32 %v1551_v41, %v10561_v24  ;;  %10563 = vst [vmem:[#allocation31_spill] sm:$0xff] %v7673_v17 }
 0x2ed   :  { %v1680_v60 = vmul.f32 0.2, %v1648_v18  ;;  %v1649_v57 = vadd.f32 %v7577_v3, %v1560_v23  ;;  %v7675_v23 = vpop.f32.mrb[96].mxu0 }
 0x2ee   :  { %v1678_v8 = vmul.f32 0.2, %v1646_v4  ;;  %v1647_v33 = vadd.f32 %v7577_v3, %v1552_v63  ;;  %v7678_v34 = vpop.f32.mrb[97].mxu0 }
 0x2ef   :  { %v1681_v10 = vmul.f32 0.2, %v1649_v57  ;;  %v1712_v37 = vmax.f32 %v1648_v18, %v1680_v60  ;;  %10564 = vst [vmem:[#allocation33_spill] sm:$0xff] %v7678_v34  ;;  %v7681_v63 = vpop.f32.mrb[98].mxu0 }
 0x2f0   :  { %v1679_v12 = vmul.f32 0.2, %v1647_v33  ;;  %v1710_v51 = vmax.f32 %v1646_v4, %v1678_v8  ;;  %v7683_v13 = vpop.f32.mrb[99].mxu0 }
 0x2f1   :  { %v1713_v25 = vmax.f32 %v1649_v57, %v1681_v10  ;;  %10565 = vst [vmem:[#allocation69_spill] sm:$0xff] %v7683_v13 }
 0x2f2   :  { %v1711_v41 = vmax.f32 %v1647_v33, %v1679_v12 }
 0x2f3   :  { %v1737_v24 = vpack.c.bf16 %v1713_v25, %v1712_v37  ;;  %v7692_v25 = vpop.f32.mrb[100].mxu0 }
 0x2f4   :  { %v1736_v48 = vpack.c.bf16 %v1711_v41, %v1710_v51 }
 0x2f6   :  { %6045 = vmatprep.mubr.msk.bf16.mxu0 %vm1762_vm3, %v1736_v48 }
 0x2f7   :  { %6046 = vmatmul.mubr.msk.bf16.gmra.mrb[124].mxu0 %vm1762_vm3, %v1737_v24 }
 0x2f8   :  { %v6015_v49 = vpop.f32.mrb[128].mxu1 }
 0x2f9   :  { %v1573_v18 = vadd.f32 %v6015_v49, %v7307_v21  ;;  %v1564_v60 = vpop.f32.mrb[129].mxu1  ;;  %v7695_v49 = vpop.f32.mrb[101].mxu0 }
 0x2fa   :  { %v1565_v8 = vadd.f32 %v1564_v60, %v7298_v47  ;;  %v6016_v4 = vpop.f32.mrb[130].mxu1  ;;  %10566 = vst [vmem:[#allocation70_spill] sm:$0xff] %v7695_v49  ;;  %v7697_v24 = vpop.f32.mrb[102].mxu0 }
 0x2fb   :  { %v1652_v51 = vadd.f32 %v7577_v3, %v1573_v18  ;;  %v1576_v57 = vadd.f32 %v6016_v4, %v7311_v1  ;;  %v1567_v48 = vpop.f32.mrb[131].mxu1  ;;  %v7699_v1 = vpop.f32.mrb[103].mxu0 }
 0x2fc   :  { %v1650_v33 = vadd.f32 %v7577_v3, %v1565_v8  ;;  %v1568_v10 = vadd.f32 %v1567_v48, %v7302_v59  ;;  %10567 = vst [vmem:[#allocation71_spill] sm:$0xff] %v7699_v1 }
 0x2fd   :  { %v1684_v12 = vmul.f32 0.2, %v1652_v51  ;;  %v1653_v37 = vadd.f32 %v7577_v3, %v1576_v57  ;;  %v7701_v57 = vpop.f32.mrb[104].mxu0 }
 0x2fe   :  { %v1682_v41 = vmul.f32 0.2, %v1650_v33  ;;  %v1651_v21 = vadd.f32 %v7577_v3, %v1568_v10  ;;  %v7704_v34 = vpop.f32.mrb[105].mxu0 }
 0x2ff   :  { %v1685_v47 = vmul.f32 0.2, %v1653_v37  ;;  %v1716_v60 = vmax.f32 %v1652_v51, %v1684_v12  ;;  %10568 = vst [vmem:[#allocation72_spill] sm:$0xff] %v7704_v34  ;;  %v7707_v10 = vpop.f32.mrb[106].mxu0 }
 0x300   :  { %v1683_v18 = vmul.f32 0.2, %v1651_v21  ;;  %v1714_v4 = vmax.f32 %v1650_v33, %v1682_v41  ;;  %v7709_v17 = vpop.f32.mrb[107].mxu0 }
 0x301   :  { %v1717_v8 = vmax.f32 %v1653_v37, %v1685_v47  ;;  %10569 = vst [vmem:[#allocation73_spill] sm:$0xff] %v7709_v17 }
 0x302   :  { %v1715_v59 = vmax.f32 %v1651_v21, %v1683_v18  ;;  %v10570_v18 = vld [vmem:[#allocation43_spill] sm:$0xff] }
 0x303   :  { %v1739_v48 = vpack.c.bf16 %v1717_v8, %v1716_v60 }
 0x304   :  { %v1738_v13 = vpack.c.bf16 %v1715_v59, %v1714_v4  ;;  %v7718_v59 = vpop.f32.mrb[108].mxu0 }
 0x306   :  { %6049 = vmatprep.mubr.msk.bf16.mxu0 %vm1762_vm3, %v1738_v13 }
 0x307   :  { %6050 = vmatmul.mubr.msk.bf16.gmra.mrb[128].mxu0 %vm1762_vm3, %v1739_v48 }
 0x308   :  { %v6019_v49 = vpop.f32.mrb[132].mxu1 }
 0x309   :  { %v1589_v51 = vadd.f32 %v6019_v49, %v7332_v5  ;;  %v1580_v12 = vpop.f32.mrb[133].mxu1  ;;  %v7721_v49 = vpop.f32.mrb[109].mxu0 }
 0x30a   :  { %v1581_v33 = vadd.f32 %v1580_v12, %v7317_v53  ;;  %v6020_v37 = vpop.f32.mrb[134].mxu1  ;;  %10571 = vst [vmem:[#allocation43_spill] sm:$0xff] %v7721_v49  ;;  %v7723_v12 = vpop.f32.mrb[110].mxu0 }
 0x30b   :  { %v1656_v41 = vadd.f32 %v7577_v3, %v1589_v51  ;;  %v1592_v21 = vadd.f32 %v6020_v37, %v7336_v45  ;;  %v1583_v13 = vpop.f32.mrb[135].mxu1  ;;  %v7725_v37 = vpop.f32.mrb[111].mxu0 }
 0x30c   :  { %v1654_v47 = vadd.f32 %v7577_v3, %v1581_v33  ;;  %v1584_v60 = vadd.f32 %v1583_v13, %v10570_v18  ;;  %10572 = vst [vmem:[#allocation74_spill] sm:$0xff] %v7725_v37  ;;  %v10573_v13 = vld [vmem:[#allocation51_spill] sm:$0xff]  ;;  %v10576_v37 = vld [vmem:[#allocation49_spill] sm:$0xff] }
 0x30d   :  { %v1688_v8 = vmul.f32 0.2, %v1656_v41  ;;  %v1657_v4 = vadd.f32 %v7577_v3, %v1592_v21 }
 0x30e   :  { %v1686_v48 = vmul.f32 0.2, %v1654_v47  ;;  %v1655_v5 = vadd.f32 %v7577_v3, %v1584_v60 }
 0x30f   :  { %v1689_v53 = vmul.f32 0.2, %v1657_v4  ;;  %v1720_v33 = vmax.f32 %v1656_v41, %v1688_v8 }
 0x310   :  { %v1687_v51 = vmul.f32 0.2, %v1655_v5  ;;  %v6023_v45 = vpop.f32.mrb[136].mxu1  ;;  %v1718_v21 = vmax.f32 %v1654_v47, %v1686_v48 }
 0x311   :  { %v1721_v17 = vmax.f32 %v1657_v4, %v1689_v53  ;;  %v1605_v18 = vadd.f32 %v6023_v45, %v10573_v13  ;;  %v1596_v34 = vpop.f32.mrb[137].mxu1  ;;  %v10579_v13 = vld [vmem:[#allocation61_spill] sm:$0xff] }
 0x312   :  { %v1719_v1 = vmax.f32 %v1655_v5, %v1687_v51  ;;  %v1597_v7 = vadd.f32 %v1596_v34, %v10574_v40  ;;  %v6024_v43 = vpop.f32.mrb[138].mxu1  ;;  %v10578_v51 = vld [vmem:[#allocation55_spill] sm:$0xff] }
 0x313   :  { %v1741_v60 = vpack.c.bf16 %v1721_v17, %v1720_v33  ;;  %v1660_v49 = vadd.f32 %v7577_v3, %v1605_v18  ;;  %v1608_v46 = vadd.f32 %v6024_v43, %v10575_v14  ;;  %v1599_v62 = vpop.f32.mrb[139].mxu1 }
 0x314   :  { %v1740_v52 = vpack.c.bf16 %v1719_v1, %v1718_v21  ;;  %v1658_v54 = vadd.f32 %v7577_v3, %v1597_v7  ;;  %v1600_v41 = vadd.f32 %v1599_v62, %v10576_v37  ;;  %v10577_v1 = vld [vmem:[#allocation59_spill] sm:$0xff] }
 0x315   :  { %v1692_v8 = vmul.f32 0.2, %v1660_v49  ;;  %v1661_v4 = vadd.f32 %v7577_v3, %v1608_v46 }
 0x316   :  { %v1690_v53 = vmul.f32 0.2, %v1658_v54  ;;  %v1659_v47 = vadd.f32 %v7577_v3, %v1600_v41  ;;  %6053 = vmatprep.mubr.msk.bf16.mxu0 %vm1762_vm3, %v1740_v52  ;;  %v10580_v41 = vld [vmem:[#allocation57_spill] sm:$0xff] }
 0x317   :  { %v1693_v40 = vmul.f32 0.2, %v1661_v4  ;;  %6054 = vmatmul.mubr.msk.bf16.gmra.mrb[132].mxu0 %vm1762_vm3, %v1741_v60  ;;  %v1724_v14 = vmax.f32 %v1660_v49, %v1692_v8 }
 0x318   :  { %v1691_v34 = vmul.f32 0.2, %v1659_v47  ;;  %v6027_v17 = vpop.f32.mrb[140].mxu1  ;;  %v1722_v5 = vmax.f32 %v1658_v54, %v1690_v53 }
 0x319   :  { %v1725_v43 = vmax.f32 %v1661_v4, %v1693_v40  ;;  %v1621_v48 = vadd.f32 %v6027_v17, %v10577_v1  ;;  %v1612_v7 = vpop.f32.mrb[141].mxu1 }
 0x31a   :  { %v1723_v62 = vmax.f32 %v1659_v47, %v1691_v34  ;;  %v1613_v45 = vadd.f32 %v1612_v7, %v10578_v51  ;;  %v6028_v46 = vpop.f32.mrb[142].mxu1  ;;  %v10434_v7 = vmov 3  }
 0x31b   :  { %v1743_v37 = vpack.c.bf16 %v1725_v43, %v1724_v14  ;;  %v1664_v33 = vadd.f32 %v7577_v3, %v1621_v48  ;;  %v1624_v52 = vadd.f32 %v6028_v46, %v10579_v13  ;;  %v1615_v18 = vpop.f32.mrb[143].mxu1  ;;  %6158 = vset.pattern.permute.xlu1 %v10434_v7  ;;  %6159 = vset.pattern.permute.xlu0 %v10434_v7  ;;  %v6628_v13 = vld [vmem:[%s10457_s23 + $0x38] sm:$0xff] }
 0x31c   :  { %v1742_v21 = vpack.c.bf16 %v1723_v62, %v1722_v5  ;;  %v1662_v60 = vadd.f32 %v7577_v3, %v1613_v45  ;;  %v1616_v49 = vadd.f32 %v1615_v18, %v10580_v41  ;;  %v6625_v62 = vld [vmem:[%s10457_s23 + $0x10] sm:$0xff]  ;;  %v6626_v45 = vld [vmem:[%s10457_s23 + $0x18] sm:$0xff]  ;;  %vm4027_vm8 = vcmp.ne.f32.partialorder %v6628_v13, 0.0  ;;  %v6629_v18 = vld [vmem:[%s10457_s23 + $0x48] sm:$0xff] }
 0x31d   :  { %v1696_v8 = vmul.f32 0.2, %v1664_v33  ;;  %v1665_v4 = vadd.f32 %v7577_v3, %v1624_v52  ;;  %vm4022_vm5 = vcmp.ne.f32.partialorder %v6625_v62, 0.0  ;;  %vm4023_vm6 = vcmp.ne.f32.partialorder %v6626_v45, 0.0  ;;  %v10582_v45 = vld [vmem:[#allocation8_spill] sm:$0xff]  ;;  %v10583_v13 = vld [vmem:[#allocation14_spill] sm:$0xff] }
 0x31e   :  { %v1694_v40 = vmul.f32 0.2, %v1662_v60  ;;  %v1663_v54 = vadd.f32 %v7577_v3, %v1616_v49  ;;  %6057 = vmatprep.mubr.msk.bf16.mxu0 %vm1762_vm3, %v1742_v21  ;;  %v6624_v3 = vld [vmem:[%s10457_s23] sm:$0xff]  ;;  %v4054_v51 = vsel %vm4022_vm5, 1, %v10520_v11  ;;  %v4055_v46 = vsel %vm4023_vm6, 1, %v10520_v11  ;;  %v6630_v21 = vld [vmem:[%s10457_s23 + $0x8] sm:$0xff] }
 0x31f   :  { %v1697_v53 = vmul.f32 0.2, %v1665_v4  ;;  %6058 = vmatmul.mubr.msk.bf16.gmra.mrb[136].mxu0 %vm1762_vm3, %v1743_v37  ;;  %v1728_v34 = vmax.f32 %v1664_v33, %v1696_v8  ;;  %vm4020_vm4 = vcmp.ne.f32.partialorder %v6624_v3, 0.0  ;;  %v6627_v37 = vld [vmem:[%s10457_s23 + $0x28] sm:$0xff]  ;;  %v4059_v52 = vsel %vm4027_vm8, 1, %v10520_v11  ;;  %v6632_v8 = vld [vmem:[%s10457_s23 + $0x58] sm:$0xff] }
 0x320   :  { %v1695_v47 = vmul.f32 0.2, %v1663_v54  ;;  %v1726_v14 = vmax.f32 %v1662_v60, %v1694_v40  ;;  %v4052_v5 = vsel %vm4020_vm4, 1, %v10520_v11  ;;  %vm4025_vm7 = vcmp.ne.f32.partialorder %v6627_v37, 0.0  ;;  %v6631_v60 = vld [vmem:[%s10457_s23 + $0x20] sm:$0xff]  ;;  %v6633_v40 = vld [vmem:[%s10457_s23 + $0x30] sm:$0xff] }
 0x321   :  { %v1729_v17 = vmax.f32 %v1665_v4, %v1697_v53  ;;  %4085 = vperm.xlu1 %6158, %v4052_v5   ;;  %v4057_v33 = vsel %vm4025_vm7, 1, %v10520_v11  ;;  %vm4029_vm9 = vcmp.ne.f32.partialorder %v6629_v18, 0.0  ;;  %vm4021_vm10 = vcmp.ne.f32.partialorder %v6630_v21, 0.0  ;;  %v6634_v53 = vld [vmem:[%s10457_s23 + $0x68] sm:$0xff]  ;;  %v10608_v7 = vld [vmem:[#allocation50_spill] sm:$0xff] }
 0x322   :  { %v1727_v43 = vmax.f32 %v1663_v54, %v1695_v47  ;;  %vm4024_vm11 = vcmp.ne.f32.partialorder %v6631_v60, 0.0  ;;  %v4053_v41 = vsel %vm4021_vm10, 1, %v10520_v11  ;;  %v4061_v49 = vsel %vm4029_vm9, 1, %v10520_v11  ;;  %v10581_v3 = vld [vmem:[#allocation12_spill] sm:$0xff] }
 0x323   :  { %v1745_v1 = vpack.c.bf16 %v1729_v17, %v1728_v34  ;;  %4088 = vperm.xlu0 %6159, %v4053_v41   ;;  %vm4031_vm12 = vcmp.ne.f32.partialorder %v6632_v8, 0.0  ;;  %v4056_v4 = vsel %vm4024_vm11, 1, %v10520_v11  ;;  %vm4026_vm13 = vcmp.ne.f32.partialorder %v6633_v40, 0.0  ;;  %v6635_v34 = vld [vmem:[%s10457_s23 + $0x40] sm:$0xff]  ;;  %v6638_v8 = vld [vmem:[%s10457_s23 + $0x88] sm:$0xff] }
 0x324   :  { %v1744_v48 = vpack.c.bf16 %v1727_v43, %v1726_v14  ;;  %v4063_v54 = vsel %vm4031_vm12, 1, %v10520_v11  ;;  %vm4033_vm14 = vcmp.ne.f32.partialorder %v6634_v53, 0.0  ;;  %v4058_v47 = vsel %vm4026_vm13, 1, %v10520_v11  ;;  %v7801_v43 = vld [vmem:[%s10416_s8] ss:$0 sm:$0xff] }
 0x325   :  { %4091 = vperm.xlu1 %6158, %v4054_v51   ;;  %vm4028_vm15 = vcmp.ne.f32.partialorder %v6635_v34, 0.0  ;;  %v4065_v17 = vsel %vm4033_vm14, 1, %v10520_v11  ;;  %v6637_v51 = vld [vmem:[%s10457_s23 + $0x50] sm:$0xff]  ;;  %v10584_v41 = vld [vmem:[#allocation10_spill] sm:$0xff]  ;;  %vm2099_vm7 = vcmask 130048  }
 0x326   :  { %6061 = vmatprep.mubr.msk.bf16.mxu0 %vm1762_vm3, %v1744_v48  ;;  %v4060_v48 = vsel %vm4028_vm15, 1, %v10520_v11  ;;  %vm4030_vm1 = vcmp.ne.f32.partialorder %v6637_v51, 0.0  ;;  %v6639_v53 = vld [vmem:[%s10457_s23 + $0x60] sm:$0xff]  ;;  %v6641_v51 = vld [vmem:[%s10457_s23 + $0x70] sm:$0xff] }
 0x327   :  { %6062 = vmatmul.mubr.msk.bf16.gmra.mrb[140].mxu0 %vm1762_vm3, %v1745_v1  ;;  %4097 = vperm.xlu0 %6159, %v4056_v4   ;;  %v6636_v1 = vld [vmem:[%s10457_s23 + $0x78] sm:$0xff]  ;;  %vm4037_vm3 = vcmp.ne.f32.partialorder %v6638_v8, 0.0  ;;  %v4062_v4 = vsel %vm4030_vm1, 1, %v10520_v11  ;;  %vm4032_vm4 = vcmp.ne.f32.partialorder %v6639_v53, 0.0  ;;  %vm4034_vm6 = vcmp.ne.f32.partialorder %v6641_v51, 0.0  ;;  %v6645_v53 = vld [vmem:[%s10457_s23 + $0x90] sm:$0xff] }
 0x328   :  { %vm4035_vm0 = vcmp.ne.f32.partialorder %v6636_v1, 0.0  ;;  %vm4038_vm11 = vcmp.ne.f32.partialorder %v6645_v53, 0.0  ;;  %v10588_v51 = vld [vmem:[#allocation18_spill] sm:$0xff]  ;;  %v6649_v53 = vld [vmem:[%s10457_s23 + $0xb0] sm:$0xff] }
 0x329   :  { %4094 = vperm.xlu1 %6158, %v4055_v46   ;;  %v4067_v21 = vsel %vm4035_vm0, 1, %v10520_v11  ;;  %vm4042_vm15 = vcmp.ne.f32.partialorder %v6649_v53, 0.0  ;;  %v10592_v53 = vld [vmem:[#allocation26_spill] sm:$0xff] }
 0x32b   :  { %4103 = vperm.xlu0 %6159, %v4058_v47  }
 0x32d   :  { %4100 = vperm.xlu1 %6158, %v4057_v33  }
 0x32f   :  { %4109 = vperm.xlu0 %6159, %v4060_v48   ;;  %v6640_v48 = vld [vmem:[%s10457_s23 + $0x98] sm:$0xff] }
 0x330   :  { %vm4039_vm5 = vcmp.ne.f32.partialorder %v6640_v48, 0.0 }
 0x331   :  { %4106 = vperm.xlu1 %6158, %v4059_v52  }
 0x333   :  { %4115 = vperm.xlu0 %6159, %v4062_v4   ;;  %v10585_v4 = vld [vmem:[#allocation20_spill] sm:$0xff] }
 0x335   :  { %4112 = vperm.xlu1 %6158, %v4061_v49  }
 0x339   :  { %4118 = vperm.xlu1 %6158, %v4063_v54  }
 0x33d   :  { %4124 = vperm.xlu1 %6158, %v4065_v17  }
 0x341   :  { %4130 = vperm.xlu1 %6158, %v4067_v21   ;;  %v6643_v21 = vld [vmem:[%s10457_s23 + $0x80] sm:$0xff] }
 0x342   :  { %vm4036_vm9 = vcmp.ne.f32.partialorder %v6643_v21, 0.0 }
 0x343   :  { %v4068_v8 = vsel %vm4036_vm9, 1, %v10520_v11 }
 0x39a   :  { %v6035_v14 = vpop.f32.mrb[112].mxu0 }
 0x39b   :  { %v1854_v5 = vadd.f32 %v6035_v14, %v10581_v3  ;;  %v1845_v62 = vpop.f32.mrb[113].mxu0  ;;  %v4069_v14 = vsel %vm4037_vm3, 1, %v10520_v11  ;;  %v4064_v3 = vsel %vm4032_vm4, 1, %v10520_v11 }
 0x39c   :  { %v1846_v46 = vadd.f32 %v1845_v62, %v10582_v45  ;;  %v6036_v37 = vpop.f32.mrb[114].mxu0  ;;  %4136 = vperm.xlu1 %6158, %v4069_v14   ;;  %4121 = vperm.xlu0 %6159, %v4064_v3  }
 0x39d   :  { %v1981_v33 = vadd.f32 %v7801_v43, %v1854_v5  ;;  %v1857_v52 = vadd.f32 %v6036_v37, %v10583_v13  ;;  %v1848_v18 = vpop.f32.mrb[115].mxu0  ;;  %v4071_v13 = vsel %vm4039_vm5, 1, %v10520_v11 }
 0x39e   :  { %v1979_v60 = vadd.f32 %v7801_v43, %v1846_v46  ;;  %v1849_v49 = vadd.f32 %v1848_v18, %v10584_v41  ;;  %v6642_v18 = vld [vmem:[%s10457_s23 + $0xa8] sm:$0xff] }
 0x39f   :  { %v2013_v40 = vmul.f32 0.2, %v1981_v33  ;;  %v1982_v54 = vadd.f32 %v7801_v43, %v1857_v52  ;;  %vm4041_vm8 = vcmp.ne.f32.partialorder %v6642_v18, 0.0  ;;  %v6647_v18 = vld [vmem:[%s10457_s23 + $0xa0] sm:$0xff] }
 0x3a0   :  { %v2011_v47 = vmul.f32 0.2, %v1979_v60  ;;  %v1980_v34 = vadd.f32 %v7801_v43, %v1849_v49  ;;  %4142 = vperm.xlu1 %6158, %v4071_v13   ;;  %v6644_v49 = vld [vmem:[%s10457_s23 + $0xb8] sm:$0xff]  ;;  %vm4040_vm13 = vcmp.ne.f32.partialorder %v6647_v18, 0.0  ;;  %v6653_v18 = vld [vmem:[%s10457_s23 + $0xd0] sm:$0xff] }
 0x3a1   :  { %v2014_v17 = vmul.f32 0.2, %v1982_v54  ;;  %v2045_v5 = vmax.f32 %v1981_v33, %v2013_v40  ;;  %v4066_v33 = vsel %vm4034_vm6, 1, %v10520_v11  ;;  %vm4043_vm10 = vcmp.ne.f32.partialorder %v6644_v49, 0.0 }
 0x3a2   :  { %v2012_v1 = vmul.f32 0.2, %v1980_v34  ;;  %v2043_v45 = vmax.f32 %v1979_v60, %v2011_v47  ;;  %v4073_v60 = vsel %vm4041_vm8, 1, %v10520_v11  ;;  %4127 = vperm.xlu0 %6159, %v4066_v33   ;;  %v10586_v47 = vld [vmem:[#allocation16_spill] sm:$0xff]  ;;  %vm4046_vm4 = vcmp.ne.f32.partialorder %v6653_v18, 0.0 }
 0x3a3   :  { %v2046_v62 = vmax.f32 %v1982_v54, %v2014_v17  ;;  %v10593_v18 = vld [vmem:[#allocation36_spill] sm:$0xff]  ;;  %vm5470_vm8 = vcmask 23552  }
 0x3a4   :  { %v2044_v46 = vmax.f32 %v1980_v34, %v2012_v1  ;;  %4148 = vperm.xlu1 %6158, %v4073_v60   ;;  %v10587_v1 = vld [vmem:[#allocation22_spill] sm:$0xff] }
 0x3a5   :  { %v2076_v37 = vpack.c.bf16 %v2046_v62, %v2045_v5  ;;  %v4075_v5 = vsel %vm4043_vm10, 1, %v10520_v11 }
 0x3a6   :  { %v2075_v52 = vpack.c.bf16 %v2044_v46, %v2043_v45  ;;  %4133 = vperm.xlu0 %6159, %v4068_v8   ;;  %v6646_v46 = vld [vmem:[%s10457_s23 + $0xc8] sm:$0xff]  ;;  %v6648_v8 = vld [vmem:[%s10457_s23 + $0xd8] sm:$0xff] }
 0x3a7   :  { %vm4045_vm12 = vcmp.ne.f32.partialorder %v6646_v46, 0.0  ;;  %vm4047_vm14 = vcmp.ne.f32.partialorder %v6648_v8, 0.0 }
 0x3a8   :  { %6067 = vmatprep.mubr.msk.bf16.mxu1 %vm2099_vm7, %v2075_v52  ;;  %4154 = vperm.xlu1 %6158, %v4075_v5   ;;  %v6651_v5 = vld [vmem:[%s10457_s23 + $0xc0] sm:$0xff] }
 0x3a9   :  { %6068 = vmatmul.mubr.msk.bf16.vlgmr.msra.gmra.mrb[144].mxu1 %vm2099_vm7, %v2076_v37  ;;  %v4070_v37 = vsel %vm4038_vm11, 1, %v10520_v11  ;;  %vm4044_vm1 = vcmp.ne.f32.partialorder %v6651_v5, 0.0 }
 0x3aa   :  { %v6039_v41 = vpop.f32.mrb[116].mxu0  ;;  %4139 = vperm.xlu0 %6159, %v4070_v37   ;;  %v4076_v46 = vsel %vm4044_vm1, 1, %v10520_v11  ;;  %v10589_v37 = vld [vmem:[#allocation28_spill] sm:$0xff] }
 0x3ab   :  { %v1870_v40 = vadd.f32 %v6039_v41, %v10585_v4  ;;  %v1861_v54 = vpop.f32.mrb[117].mxu0  ;;  %v4077_v41 = vsel %vm4045_vm12, 1, %v10520_v11  ;;  %v4072_v4 = vsel %vm4040_vm13, 1, %v10520_v11 }
 0x3ac   :  { %v1862_v34 = vadd.f32 %v1861_v54, %v10586_v47  ;;  %v6040_v17 = vpop.f32.mrb[118].mxu0  ;;  %4160 = vperm.xlu1 %6158, %v4077_v41  }
 0x3ad   :  { %v1985_v14 = vadd.f32 %v7801_v43, %v1870_v40  ;;  %v1873_v48 = vadd.f32 %v6040_v17, %v10587_v1  ;;  %v1864_v3 = vpop.f32.mrb[119].mxu0  ;;  %v4079_v1 = vsel %vm4047_vm14, 1, %v10520_v11 }
 0x3ae   :  { %v1983_v62 = vadd.f32 %v7801_v43, %v1862_v34  ;;  %v1865_v45 = vadd.f32 %v1864_v3, %v10588_v51  ;;  %4145 = vperm.xlu0 %6159, %v4072_v4   ;;  %v6650_v3 = vld [vmem:[%s10457_s23 + $0xe8] sm:$0xff] }
 0x3af   :  { %v2017_v13 = vmul.f32 0.2, %v1985_v14  ;;  %v1986_v52 = vadd.f32 %v7801_v43, %v1873_v48  ;;  %vm4049_vm0 = vcmp.ne.f32.partialorder %v6650_v3, 0.0 }
 0x3b0   :  { %v2015_v33 = vmul.f32 0.2, %v1983_v62  ;;  %v1984_v21 = vadd.f32 %v7801_v43, %v1865_v45  ;;  %4166 = vperm.xlu1 %6158, %v4079_v1   ;;  %v6652_v45 = vld [vmem:[%s10457_s23 + $0xf8] sm:$0xff] }
 0x3b1   :  { %v2018_v60 = vmul.f32 0.2, %v1986_v52  ;;  %v2049_v40 = vmax.f32 %v1985_v14, %v2017_v13  ;;  %v4074_v14 = vsel %vm4042_vm15, 1, %v10520_v11  ;;  %vm4051_vm3 = vcmp.ne.f32.partialorder %v6652_v45, 0.0 }
 0x3b2   :  { %v2016_v49 = vmul.f32 0.2, %v1984_v21  ;;  %v2047_v47 = vmax.f32 %v1983_v62, %v2015_v33  ;;  %v4081_v62 = vsel %vm4049_vm0, 1, %v10520_v11  ;;  %4151 = vperm.xlu0 %6159, %v4074_v14   ;;  %v10590_v33 = vld [vmem:[#allocation24_spill] sm:$0xff] }
 0x3b3   :  { %v2050_v54 = vmax.f32 %v1986_v52, %v2018_v60 }
 0x3b4   :  { %v2048_v34 = vmax.f32 %v1984_v21, %v2016_v49  ;;  %4172 = vperm.xlu1 %6158, %v4081_v62   ;;  %v10591_v49 = vld [vmem:[#allocation30_spill] sm:$0xff] }
 0x3b5   :  { %v2078_v17 = vpack.c.bf16 %v2050_v54, %v2049_v40  ;;  %v4083_v40 = vsel %vm4051_vm3, 1, %v10520_v11 }
 0x3b6   :  { %v2077_v48 = vpack.c.bf16 %v2048_v34, %v2047_v47  ;;  %4157 = vperm.xlu0 %6159, %v4076_v46   ;;  %v4078_v34 = vsel %vm4046_vm4, 1, %v10520_v11 }
 0x3b8   :  { %6071 = vmatprep.mubr.msk.bf16.mxu1 %vm2099_vm7, %v2077_v48  ;;  %4178 = vperm.xlu1 %6158, %v4083_v40  }
 0x3b9   :  { %6072 = vmatmul.mubr.msk.bf16.gmra.mrb[148].mxu1 %vm2099_vm7, %v2078_v17 }
 0x3ba   :  { %v6043_v51 = vpop.f32.mrb[120].mxu0  ;;  %4163 = vperm.xlu0 %6159, %v4078_v34  }
 0x3bb   :  { %v1886_v13 = vadd.f32 %v6043_v51, %v10589_v37  ;;  %v1877_v52 = vpop.f32.mrb[121].mxu0 }
 0x3bc   :  { %v1878_v21 = vadd.f32 %v1877_v52, %v10590_v33  ;;  %v6044_v60 = vpop.f32.mrb[122].mxu0  ;;  %6160 = vset.pattern.permute.xlu1 %v10520_v11 }
 0x3bd   :  { %v1989_v41 = vadd.f32 %v7801_v43, %v1886_v13  ;;  %v1889_v8 = vadd.f32 %v6044_v60, %v10591_v49  ;;  %v1880_v4 = vpop.f32.mrb[123].mxu0  ;;  %v10594_v60 = vld [vmem:[#allocation32_spill] sm:$0xff] }
 0x3be   :  { %v1987_v54 = vadd.f32 %v7801_v43, %v1878_v21  ;;  %v1881_v47 = vadd.f32 %v1880_v4, %v10592_v53  ;;  %v10595_v4 = vld [vmem:[#allocation37_spill] sm:$0xff] }
 0x3bf   :  { %v2021_v17 = vmul.f32 0.2, %v1989_v41  ;;  %v1990_v1 = vadd.f32 %v7801_v43, %v1889_v8 }
 0x3c0   :  { %v2019_v48 = vmul.f32 0.2, %v1987_v54  ;;  %v1988_v3 = vadd.f32 %v7801_v43, %v1881_v47  ;;  %v10596_v47 = vld [vmem:[#allocation34_spill] sm:$0xff] }
 0x3c1   :  { %v2022_v14 = vmul.f32 0.2, %v1990_v1  ;;  %v2053_v62 = vmax.f32 %v1989_v41, %v2021_v17 }
 0x3c2   :  { %v2020_v5 = vmul.f32 0.2, %v1988_v3  ;;  %v2051_v45 = vmax.f32 %v1987_v54, %v2019_v48 }
 0x3c3   :  { %v2054_v51 = vmax.f32 %v1990_v1, %v2022_v14 }
 0x3c4   :  { %v2052_v46 = vmax.f32 %v1988_v3, %v2020_v5 }
 0x3c5   :  { %v2080_v37 = vpack.c.bf16 %v2054_v51, %v2053_v62 }
 0x3c6   :  { %v2079_v13 = vpack.c.bf16 %v2052_v46, %v2051_v45 }
 0x3c8   :  { %6075 = vmatprep.mubr.msk.bf16.mxu1 %vm2099_vm7, %v2079_v13 }
 0x3c9   :  { %6076 = vmatmul.mubr.msk.bf16.gmra.mrb[152].mxu1 %vm2099_vm7, %v2080_v37 }
 0x3ca   :  { %v6047_v52 = vpop.f32.mrb[124].mxu0 }
 0x3cb   :  { %v1902_v33 = vadd.f32 %v6047_v52, %v10593_v18  ;;  %v1893_v21 = vpop.f32.mrb[125].mxu0  ;;  %v10597_v18 = vld [vmem:[#allocation40_spill] sm:$0xff] }
 0x3cc   :  { %v1894_v49 = vadd.f32 %v1893_v21, %v10594_v60  ;;  %v6048_v8 = vpop.f32.mrb[126].mxu0  ;;  %v10598_v60 = vld [vmem:[#allocation38_spill] sm:$0xff] }
 0x3cd   :  { %v1993_v41 = vadd.f32 %v7801_v43, %v1902_v33  ;;  %v1905_v40 = vadd.f32 %v6048_v8, %v10595_v4  ;;  %v1896_v54 = vpop.f32.mrb[127].mxu0 }
 0x3ce   :  { %v1991_v53 = vadd.f32 %v7801_v43, %v1894_v49  ;;  %v1897_v34 = vadd.f32 %v1896_v54, %v10596_v47  ;;  %v10600_v47 = vld [vmem:[#allocation39_spill] sm:$0xff] }
 0x3cf   :  { %v2025_v17 = vmul.f32 0.2, %v1993_v41  ;;  %v1994_v1 = vadd.f32 %v7801_v43, %v1905_v40  ;;  %v10599_v40 = vld [vmem:[#allocation41_spill] sm:$0xff] }
 0x3d0   :  { %v2023_v48 = vmul.f32 0.2, %v1991_v53  ;;  %v1992_v3 = vadd.f32 %v7801_v43, %v1897_v34 }
 0x3d1   :  { %v2026_v14 = vmul.f32 0.2, %v1994_v1  ;;  %v2057_v62 = vmax.f32 %v1993_v41, %v2025_v17 }
 0x3d2   :  { %v2024_v5 = vmul.f32 0.2, %v1992_v3  ;;  %v2055_v45 = vmax.f32 %v1991_v53, %v2023_v48 }
 0x3d3   :  { %v2058_v51 = vmax.f32 %v1994_v1, %v2026_v14 }
 0x3d4   :  { %v2056_v46 = vmax.f32 %v1992_v3, %v2024_v5 }
 0x3d5   :  { %v2082_v37 = vpack.c.bf16 %v2058_v51, %v2057_v62 }
 0x3d6   :  { %v2081_v13 = vpack.c.bf16 %v2056_v46, %v2055_v45 }
 0x3d8   :  { %6079 = vmatprep.mubr.msk.bf16.mxu1 %vm2099_vm7, %v2081_v13 }
 0x3d9   :  { %6080 = vmatmul.mubr.msk.bf16.gmra.mrb[156].mxu1 %vm2099_vm7, %v2082_v37 }
 0x3da   :  { %v6051_v52 = vpop.f32.mrb[128].mxu0 }
 0x3db   :  { %v1918_v33 = vadd.f32 %v6051_v52, %v10597_v18  ;;  %v1909_v21 = vpop.f32.mrb[129].mxu0  ;;  %v10601_v18 = vld [vmem:[#allocation45_spill] sm:$0xff] }
 0x3dc   :  { %v1910_v49 = vadd.f32 %v1909_v21, %v10598_v60  ;;  %v6052_v8 = vpop.f32.mrb[130].mxu0  ;;  %v10602_v60 = vld [vmem:[#allocation42_spill] sm:$0xff] }
 0x3dd   :  { %v1997_v4 = vadd.f32 %v7801_v43, %v1918_v33  ;;  %v1921_v41 = vadd.f32 %v6052_v8, %v10599_v40  ;;  %v1912_v54 = vpop.f32.mrb[131].mxu0 }
 0x3de   :  { %v1995_v53 = vadd.f32 %v7801_v43, %v1910_v49  ;;  %v1913_v34 = vadd.f32 %v1912_v54, %v10600_v47  ;;  %v10604_v47 = vld [vmem:[#allocation44_spill] sm:$0xff] }
 0x3df   :  { %v2029_v17 = vmul.f32 0.2, %v1997_v4  ;;  %v1998_v1 = vadd.f32 %v7801_v43, %v1921_v41  ;;  %v10603_v41 = vld [vmem:[#allocation46_spill] sm:$0xff] }
 0x3e0   :  { %v2027_v48 = vmul.f32 0.2, %v1995_v53  ;;  %v1996_v3 = vadd.f32 %v7801_v43, %v1913_v34 }
 0x3e1   :  { %v2030_v14 = vmul.f32 0.2, %v1998_v1  ;;  %v2061_v62 = vmax.f32 %v1997_v4, %v2029_v17 }
 0x3e2   :  { %v2028_v5 = vmul.f32 0.2, %v1996_v3  ;;  %v2059_v45 = vmax.f32 %v1995_v53, %v2027_v48 }
 0x3e3   :  { %v2062_v51 = vmax.f32 %v1998_v1, %v2030_v14 }
 0x3e4   :  { %v2060_v46 = vmax.f32 %v1996_v3, %v2028_v5 }
 0x3e5   :  { %v2084_v37 = vpack.c.bf16 %v2062_v51, %v2061_v62 }
 0x3e6   :  { %v2083_v13 = vpack.c.bf16 %v2060_v46, %v2059_v45  ;;  %v10605_v46 = vld [vmem:[#allocation52_spill] sm:$0xff] }
 0x3e8   :  { %6083 = vmatprep.mubr.msk.bf16.mxu1 %vm2099_vm7, %v2083_v13 }
 0x3e9   :  { %6084 = vmatmul.mubr.msk.bf16.gmra.mrb[160].mxu1 %vm2099_vm7, %v2084_v37 }
 0x3ea   :  { %v6055_v52 = vpop.f32.mrb[132].mxu0 }
 0x3eb   :  { %v1934_v33 = vadd.f32 %v6055_v52, %v10601_v18  ;;  %v1925_v21 = vpop.f32.mrb[133].mxu0 }
 0x3ec   :  { %v1926_v49 = vadd.f32 %v1925_v21, %v10602_v60  ;;  %v6056_v8 = vpop.f32.mrb[134].mxu0 }
 0x3ed   :  { %v2001_v40 = vadd.f32 %v7801_v43, %v1934_v33  ;;  %v1937_v4 = vadd.f32 %v6056_v8, %v10603_v41  ;;  %v1928_v54 = vpop.f32.mrb[135].mxu0  ;;  %v10606_v33 = vld [vmem:[#allocation48_spill] sm:$0xff]  ;;  %v10607_v41 = vld [vmem:[#allocation54_spill] sm:$0xff] }
 0x3ee   :  { %v1999_v53 = vadd.f32 %v7801_v43, %v1926_v49  ;;  %v1929_v34 = vadd.f32 %v1928_v54, %v10604_v47 }
 0x3ef   :  { %v2033_v17 = vmul.f32 0.2, %v2001_v40  ;;  %v2002_v1 = vadd.f32 %v7801_v43, %v1937_v4 }
 0x3f0   :  { %v2031_v48 = vmul.f32 0.2, %v1999_v53  ;;  %v2000_v3 = vadd.f32 %v7801_v43, %v1929_v34 }
 0x3f1   :  { %v2034_v14 = vmul.f32 0.2, %v2002_v1  ;;  %v2065_v51 = vmax.f32 %v2001_v40, %v2033_v17 }
 0x3f2   :  { %v2032_v5 = vmul.f32 0.2, %v2000_v3  ;;  %v6059_v62 = vpop.f32.mrb[136].mxu0  ;;  %v2063_v52 = vmax.f32 %v1999_v53, %v2031_v48 }
 0x3f3   :  { %v2066_v45 = vmax.f32 %v2002_v1, %v2034_v14  ;;  %v1950_v37 = vadd.f32 %v6059_v62, %v10605_v46  ;;  %v1941_v13 = vpop.f32.mrb[137].mxu0 }
 0x3f4   :  { %v2064_v18 = vmax.f32 %v2000_v3, %v2032_v5  ;;  %v1942_v21 = vadd.f32 %v1941_v13, %v10606_v33  ;;  %v6060_v60 = vpop.f32.mrb[138].mxu0 }
 0x3f5   :  { %v2086_v49 = vpack.c.bf16 %v2066_v45, %v2065_v51  ;;  %v2005_v8 = vadd.f32 %v7801_v43, %v1950_v37  ;;  %v1953_v4 = vadd.f32 %v6060_v60, %v10607_v41  ;;  %v1944_v54 = vpop.f32.mrb[139].mxu0  ;;  %v10609_v45 = vld [vmem:[#allocation60_spill] sm:$0xff] }
 0x3f6   :  { %v2085_v47 = vpack.c.bf16 %v2064_v18, %v2063_v52  ;;  %v2003_v34 = vadd.f32 %v7801_v43, %v1942_v21  ;;  %v1945_v40 = vadd.f32 %v1944_v54, %v10608_v7  ;;  %v6654_v7 = vld [vmem:[%s10457_s23 + $0xe0] sm:$0xff]  ;;  %v10610_v18 = vld [vmem:[#allocation56_spill] sm:$0xff] }
 0x3f7   :  { %v2037_v17 = vmul.f32 0.2, %v2005_v8  ;;  %v2006_v1 = vadd.f32 %v7801_v43, %v1953_v4  ;;  %vm4048_vm5 = vcmp.ne.f32.partialorder %v6654_v7, 0.0 }
 0x3f8   :  { %v2035_v14 = vmul.f32 0.2, %v2003_v34  ;;  %v2004_v53 = vadd.f32 %v7801_v43, %v1945_v40  ;;  %6087 = vmatprep.mubr.msk.bf16.mxu1 %vm2099_vm7, %v2085_v47  ;;  %v4080_v60 = vsel %vm4048_vm5, 1, %v10520_v11 }
 0x3f9   :  { %v2038_v48 = vmul.f32 0.2, %v2006_v1  ;;  %6088 = vmatmul.mubr.msk.bf16.gmra.mrb[164].mxu1 %vm2099_vm7, %v2086_v49  ;;  %v2069_v62 = vmax.f32 %v2005_v8, %v2037_v17  ;;  %v10611_v8 = vld [vmem:[#allocation62_spill] sm:$0xff]  ;;  %4169 = vperm.xlu0 %6159, %v4080_v60  }
 0x3fa   :  { %v2036_v3 = vmul.f32 0.2, %v2004_v53  ;;  %v6063_v5 = vpop.f32.mrb[140].mxu0  ;;  %v2067_v13 = vmax.f32 %v2003_v34, %v2035_v14  ;;  %v10612_v17 = vld [vmem:[#allocation58_spill] sm:$0xff]  ;;  %v6655_v14 = vld [vmem:[%s10457_s23 + $0xf0] sm:$0xff] }
 0x3fb   :  { %v2070_v51 = vmax.f32 %v2006_v1, %v2038_v48  ;;  %v1966_v46 = vadd.f32 %v6063_v5, %v10609_v45  ;;  %v1957_v37 = vpop.f32.mrb[141].mxu0  ;;  %vm4050_vm6 = vcmp.ne.f32.partialorder %v6655_v14, 0.0  ;;  %v10436_v14 = vmov 2  }
 0x3fc   :  { %v2068_v52 = vmax.f32 %v2004_v53, %v2036_v3  ;;  %v1958_v33 = vadd.f32 %v1957_v37, %v10610_v18  ;;  %v6064_v21 = vpop.f32.mrb[142].mxu0  ;;  %v4082_v5 = vsel %vm4050_vm6, 1, %v10520_v11  ;;  %v7969_v18 = vld [vmem:[%s10417_s10] ss:$0 sm:$0xff] }
 0x3fd   :  { %v2088_v49 = vpack.c.bf16 %v2070_v51, %v2069_v62  ;;  %v2009_v41 = vadd.f32 %v7801_v43, %v1966_v46  ;;  %v1969_v4 = vadd.f32 %v6064_v21, %v10611_v8  ;;  %v1960_v54 = vpop.f32.mrb[143].mxu0  ;;  %4175 = vperm.xlu0 %6159, %v4082_v5  }
 0x3fe   :  { %v2087_v47 = vpack.c.bf16 %v2068_v52, %v2067_v13  ;;  %v2007_v40 = vadd.f32 %v7801_v43, %v1958_v33  ;;  %v1961_v1 = vadd.f32 %v1960_v54, %v10612_v17 }
 0x3ff   :  { %v2041_v48 = vmul.f32 0.2, %v2009_v41  ;;  %v2010_v34 = vadd.f32 %v7801_v43, %v1969_v4 }
 0x400   :  { %v2039_v53 = vmul.f32 0.2, %v2007_v40  ;;  %v2008_v3 = vadd.f32 %v7801_v43, %v1961_v1  ;;  %6091 = vmatprep.mubr.msk.bf16.mxu1 %vm2099_vm7, %v2087_v47 }
 0x401   :  { %v2042_v62 = vmul.f32 0.2, %v2010_v34  ;;  %6092 = vmatmul.mubr.msk.bf16.gmra.mrb[168].mxu1 %vm2099_vm7, %v2088_v49  ;;  %v2073_v45 = vmax.f32 %v2009_v41, %v2041_v48  ;;  %6168 = vset.pattern.permute.xlu0 %v10520_v11 }
 0x402   :  { %v2040_v51 = vmul.f32 0.2, %v2008_v3  ;;  %v2071_v37 = vmax.f32 %v2007_v40, %v2039_v53 }
 0x403   :  { %v2074_v46 = vmax.f32 %v2010_v34, %v2042_v62  ;;  %v10613_v62 = vmov 3  }
 0x404   :  { %v2072_v7 = vmax.f32 %v2008_v3, %v2040_v51 }
 0x405   :  { %v2090_v13 = vpack.c.bf16 %v2074_v46, %v2073_v45  ;;  %v10446_v46 = vmov 7  }
 0x406   :  { %v2089_v52 = vpack.c.bf16 %v2072_v7, %v2071_v37 }
 0x408   :  { %6095 = vmatprep.mubr.msk.bf16.mxu1 %vm2099_vm7, %v2089_v52 }
 0x409   :  { %6096 = vmatmul.mubr.msk.bf16.gmra.mrb[172].mxu1 %vm2099_vm7, %v2090_v13 }
 0x47c   :  { %v6069_v43 = vpop.f32.mrb[144].mxu1 }
 0x47d   :  { %v2191_v33 = vadd.f32 %v6069_v43, %v7541_v6  ;;  %v2182_v21 = vpop.f32.mrb[145].mxu1  ;;  %v10440_v6 = vmov 1  }
 0x47e   :  { %v2183_v60 = vadd.f32 %v2182_v21, %v7533_v30  ;;  %v6070_v49 = vpop.f32.mrb[146].mxu1 }
 0x47f   :  { %v2318_v41 = vadd.f32 %v7969_v18, %v2191_v33  ;;  %v2194_v8 = vadd.f32 %v6070_v49, %v7545_v58  ;;  %v2185_v4 = vpop.f32.mrb[147].mxu1  ;;  %v10444_v49 = vmov 6  }
 0x480   :  { %v2316_v54 = vadd.f32 %v7969_v18, %v2183_v60  ;;  %v2186_v47 = vadd.f32 %v2185_v4, %v7537_v35  ;;  %v8019_v60 = vpop.permute.xlu1 %4085 }
 0x481   :  { %v2350_v40 = vmul.f32 0.2, %v2318_v41  ;;  %vm4180_vm9 = vcmp.eq.s32.totalorder %v8019_v60, 1 }
 0x482   :  { %v2348_v17 = vmul.f32 0.2, %v2316_v54 }
 0x483   :  { %v2382_v1 = vmax.f32 %v2318_v41, %v2350_v40 }
 0x484   :  { %v7977_v48 = vmax.f32 %v2316_v54, %v2348_v17 }
 0x485   :  { %2425 = vperm.xlu1 %6160, %v2382_v1  }
 0x486   :  { %2415 = vperm.xlu0 %6168, %v7977_v48  }
 0x489   :  { %6161 = vset.pattern.permute.xlu1 %v10440_v6 }
 0x48a   :  { %2618 = vperm.xlu1 %6161, %v2382_v1   ;;  %6169 = vset.pattern.permute.xlu0 %v10440_v6 }
 0x48b   :  { %2610 = vperm.xlu0 %6169, %v7977_v48  }
 0x48c   :  { %v6073_v30 = vpop.f32.mrb[148].mxu1 }
 0x48d   :  { %v7984_v58 = vadd.f32 %v6073_v30, %v7560_v56  ;;  %v2198_v35 = vpop.f32.mrb[149].mxu1  ;;  %v2319_v56 = vadd.f32 %v7969_v18, %v2194_v8 }
 0x48e   :  { %v7987_v34 = vadd.f32 %v2198_v35, %v7549_v29  ;;  %6162 = vset.pattern.permute.xlu1 %v10436_v14  ;;  %v6074_v53 = vpop.f32.mrb[150].mxu1  ;;  %v10442_v29 = vmov 5  }
 0x48f   :  { %v7991_v3 = vadd.f32 %v6074_v53, %v7564_v15  ;;  %2814 = vperm.xlu1 %6162, %v2382_v1   ;;  %v2201_v5 = vpop.f32.mrb[151].mxu1  ;;  %6171 = vset.pattern.permute.xlu0 %v10613_v62  ;;  %v10438_v15 = vmov 4   ;;  %v2351_v45 = vmul.f32 0.2, %v2319_v56 }
 0x490   :  { %v7995_v51 = vadd.f32 %v2201_v5, %v7553_v22  ;;  %3002 = vperm.xlu0 %6171, %v7977_v48  }
 0x491   :  { %v8005_v37 = vmax.f32 %v2319_v56, %v2351_v45  ;;  %v2322_v56 = vadd.f32 %v7969_v18, %v7984_v58 }
 0x493   :  { %6163 = vset.pattern.permute.xlu1 %v10613_v62 }
 0x494   :  { %3010 = vperm.xlu1 %6163, %v2382_v1   ;;  %6173 = vset.pattern.permute.xlu0 %v10442_v29 }
 0x495   :  { %3394 = vperm.xlu0 %6173, %v7977_v48  }
 0x498   :  { %6164 = vset.pattern.permute.xlu1 %v10438_v15 }
 0x499   :  { %3206 = vperm.xlu1 %6164, %v2382_v1   ;;  %6175 = vset.pattern.permute.xlu0 %v10446_v46 }
 0x49a   :  { %3786 = vperm.xlu0 %6175, %v7977_v48  }
 0x49c   :  { %v6077_v22 = vpop.f32.mrb[152].mxu1 }
 0x49d   :  { %v8008_v7 = vadd.f32 %v6077_v22, %v7588_v16  ;;  %6165 = vset.pattern.permute.xlu1 %v10442_v29  ;;  %v2214_v13 = vpop.f32.mrb[153].mxu1 }
 0x49e   :  { %v8012_v52 = vadd.f32 %v2214_v13, %v7568_v55  ;;  %3402 = vperm.xlu1 %6165, %v2382_v1   ;;  %v6078_v43 = vpop.f32.mrb[154].mxu1  ;;  %6177 = vset.pattern.permute.xlu0 %v10440_v6  ;;  %v8027_v55 = vpop.permute.xlu1 %4091 }
 0x49f   :  { %v8016_v33 = vadd.f32 %v6078_v43, %v7593_v2  ;;  %v2217_v21 = vpop.f32.mrb[155].mxu1  ;;  %2622 = vperm.xlu0 %6177, %v8005_v37   ;;  %v2317_v2 = vadd.f32 %v7969_v18, %v2186_v47  ;;  %vm4182_vm7 = vcmp.eq.s32.totalorder %v8027_v55, 1  ;;  %v6656_v55 = vld [vmem:[%s10457_s23 + $0x10] sm:$0xff] }
 0x4a0   :  { %v8022_v16 = vadd.f32 %v2217_v21, %v7572_v27  ;;  %v8033_v27 = vpop.permute.xlu0 %4088 }
 0x4a1   :  { %v2349_v4 = vmul.f32 0.2, %v2317_v2  ;;  %vm4181_vm11 = vcmp.eq.s32.totalorder %v8033_v27, 1  ;;  %v6659_v27 = vld [vmem:[%s10457_s23 + $0x8] sm:$0xff] }
 0x4a2   :  { %6166 = vset.pattern.permute.xlu1 %v10444_v49  ;;  %v8035_v41 = vpop.permute.xlu1 %4094 }
 0x4a3   :  { %3598 = vperm.xlu1 %6166, %v2382_v1   ;;  %6179 = vset.pattern.permute.xlu0 %v10613_v62  ;;  %vm4183_vm10 = vcmp.eq.s32.totalorder %v8035_v41, 1 }
 0x4a4   :  { %3014 = vperm.xlu0 %6179, %v8005_v37   ;;  %v8056_v53 = vpop.permute.xlu0 %4097 }
 0x4a5   :  { %vm4184_vm13 = vcmp.eq.s32.totalorder %v8056_v53, 1 }
 0x4a6   :  { %v8058_v5 = vpop.permute.xlu1 %4100 }
 0x4a7   :  { %6167 = vset.pattern.permute.xlu1 %v10446_v46  ;;  %vm4185_vm15 = vcmp.eq.s32.totalorder %v8058_v5, 1 }
 0x4a8   :  { %3794 = vperm.xlu1 %6167, %v2382_v1   ;;  %6181 = vset.pattern.permute.xlu0 %v10442_v29 }
 0x4a9   :  { %3406 = vperm.xlu0 %6181, %v8005_v37  }
 0x4ac   :  { %6170 = vset.pattern.permute.xlu1 %v10436_v14  ;;  %v6081_v8 = vpop.f32.mrb[156].mxu1 }
 0x4ad   :  { %v8039_v54 = vadd.f32 %v6081_v8, %v7614_v39  ;;  %v2230_v40 = vpop.f32.mrb[157].mxu1  ;;  %2806 = vperm.xlu1 %6170, %v7977_v48   ;;  %6183 = vset.pattern.permute.xlu0 %v10446_v46  ;;  %v8053_v39 = vmax.f32 %v2317_v2, %v2349_v4 }
 0x4ae   :  { %v8044_v47 = vadd.f32 %v2230_v40, %v7597_v20  ;;  %v6082_v17 = vpop.f32.mrb[158].mxu1  ;;  %3798 = vperm.xlu0 %6183, %v8005_v37   ;;  %v8066_v20 = vpop.permute.xlu0 %4103 }
 0x4af   :  { %v8048_v1 = vadd.f32 %v6082_v17, %v7619_v19  ;;  %v2233_v30 = vpop.f32.mrb[159].mxu1  ;;  %vm4186_vm12 = vcmp.eq.s32.totalorder %v8066_v20, 1  ;;  %v6660_v20 = vld [vmem:[%s10457_s23 + $0x30] sm:$0xff] }
 0x4b0   :  { %v8051_v35 = vadd.f32 %v2233_v30, %v7603_v32  ;;  %v8068_v32 = vpop.permute.xlu1 %4106 }
 0x4b1   :  { %6172 = vset.pattern.permute.xlu1 %v10438_v15  ;;  %vm4187_vm14 = vcmp.eq.s32.totalorder %v8068_v32, 1 }
 0x4b2   :  { %3198 = vperm.xlu1 %6172, %v7977_v48   ;;  %6184 = vset.pattern.permute.xlu0 %v10520_v11  ;;  %v8080_v22 = vpop.permute.xlu0 %4109 }
 0x4b3   :  { %2420 = vperm.xlu0 %6184, %v8053_v39   ;;  %vm4188_vm1 = vcmp.eq.s32.totalorder %v8080_v22, 1 }
 0x4b4   :  { %v8082_v13 = vpop.permute.xlu1 %4112 }
 0x4b5   :  { %vm4189_vm4 = vcmp.eq.s32.totalorder %v8082_v13, 1 }
 0x4b6   :  { %6174 = vset.pattern.permute.xlu1 %v10444_v49  ;;  %v8097_v4 = vpop.permute.xlu0 %4115 }
 0x4b7   :  { %3590 = vperm.xlu1 %6174, %v7977_v48   ;;  %6186 = vset.pattern.permute.xlu0 %v10436_v14  ;;  %vm4190_vm0 = vcmp.eq.s32.totalorder %v8097_v4, 1  ;;  %v6665_v4 = vld [vmem:[%s10457_s23 + $0x50] sm:$0xff] }
 0x4b8   :  { %2810 = vperm.xlu0 %6186, %v8053_v39  }
 0x4bb   :  { %6176 = vset.pattern.permute.xlu1 %v10520_v11 }
 0x4bc   :  { %v6085_v19 = vpop.f32.mrb[160].mxu1  ;;  %2430 = vperm.xlu1 %6176, %v8005_v37   ;;  %6188 = vset.pattern.permute.xlu0 %v10438_v15 }
 0x4bd   :  { %v8077_v48 = vadd.f32 %v6085_v19, %v7640_v36  ;;  %v2246_v45 = vpop.f32.mrb[161].mxu1  ;;  %3202 = vperm.xlu0 %6188, %v8053_v39   ;;  %v2354_v36 = vmul.f32 0.2, %v2322_v56 }
 0x4be   :  { %v8085_v43 = vadd.f32 %v2246_v45, %v7623_v61  ;;  %v6086_v21 = vpop.f32.mrb[162].mxu1  ;;  %v8099_v61 = vpop.permute.xlu1 %4118 }
 0x4bf   :  { %v8088_v2 = vadd.f32 %v6086_v21, %v7645_v44  ;;  %v2249_v8 = vpop.f32.mrb[163].mxu1  ;;  %v8101_v40 = vmax.f32 %v2322_v56, %v2354_v36  ;;  %vm4191_vm3 = vcmp.eq.s32.totalorder %v8099_v61, 1 }
 0x4c0   :  { %v8091_v58 = vadd.f32 %v2249_v8, %v7629_v31  ;;  %6178 = vset.pattern.permute.xlu1 %v10436_v14  ;;  %v8107_v31 = vpop.permute.xlu0 %4121 }
 0x4c1   :  { %2818 = vperm.xlu1 %6178, %v8005_v37   ;;  %6190 = vset.pattern.permute.xlu0 %v10444_v49  ;;  %10614 = vst [vmem:[#allocation51_spill] sm:$0xff] %v8107_v31 }
 0x4c2   :  { %3594 = vperm.xlu0 %6190, %v8053_v39   ;;  %v8109_v44 = vpop.permute.xlu1 %4124 }
 0x4c3   :  { %10615 = vst [vmem:[#allocation47_spill] sm:$0xff] %v8109_v44 }
 0x4c5   :  { %6180 = vset.pattern.permute.xlu1 %v10438_v15 }
 0x4c6   :  { %3210 = vperm.xlu1 %6180, %v8005_v37   ;;  %6192 = vset.pattern.permute.xlu0 %v10520_v11  ;;  %v8127_v36 = vpop.permute.xlu1 %4130 }
 0x4c7   :  { %2445 = vperm.xlu0 %6192, %v8101_v40   ;;  %10619 = vst [vmem:[#allocation55_spill] sm:$0xff] %v8127_v36 }
 0x4ca   :  { %6182 = vset.pattern.permute.xlu1 %v10444_v49 }
 0x4cb   :  { %3602 = vperm.xlu1 %6182, %v8005_v37   ;;  %6194 = vset.pattern.permute.xlu0 %v10436_v14  ;;  %v8125_v37 = vpop.permute.xlu0 %4127 }
 0x4cc   :  { %v6089_v17 = vpop.f32.mrb[164].mxu1  ;;  %2830 = vperm.xlu0 %6194, %v8101_v40   ;;  %10618 = vst [vmem:[#allocation59_spill] sm:$0xff] %v8125_v37 }
 0x4cd   :  { %v8116_v30 = vadd.f32 %v6089_v17, %v7666_v9  ;;  %v2262_v19 = vpop.f32.mrb[165].mxu1 }
 0x4ce   :  { %v8119_v56 = vadd.f32 %v2262_v19, %v7649_v28  ;;  %v6090_v45 = vpop.f32.mrb[166].mxu1  ;;  %v2320_v28 = vadd.f32 %v7969_v18, %v7987_v34 }
 0x4cf   :  { %v8122_v21 = vadd.f32 %v6090_v45, %v7671_v38  ;;  %v2265_v8 = vpop.f32.mrb[167].mxu1  ;;  %6185 = vset.pattern.permute.xlu1 %v10440_v6  ;;  %v8145_v45 = vpop.permute.xlu1 %4136 }
 0x4d0   :  { %10616 = vst [vmem:[#allocation53_spill] sm:$0xff] %v8119_v56  ;;  %v8130_v14 = vadd.f32 %v2265_v8, %v7655_v42  ;;  %2614 = vperm.xlu1 %6185, %v8053_v39   ;;  %6196 = vset.pattern.permute.xlu0 %v10438_v15  ;;  %v2352_v38 = vmul.f32 0.2, %v2320_v28  ;;  %v8143_v42 = vpop.permute.xlu0 %4133  ;;  %10623 = vst [vmem:[#allocation8_spill] sm:$0xff] %v8145_v45 }
 0x4d1   :  { %10617 = vst [vmem:[#allocation49_spill] sm:$0xff] %v8122_v21  ;;  %3222 = vperm.xlu0 %6196, %v8101_v40   ;;  %10622 = vst [vmem:[#allocation12_spill] sm:$0xff] %v8143_v42 }
 0x4d2   :  { %10620 = vst [vmem:[#allocation61_spill] sm:$0xff] %v8130_v14  ;;  %v8157_v6 = vmax.f32 %v2320_v28, %v2352_v38 }
 0x4d4   :  { %v6093_v9 = vpop.f32.mrb[168].mxu1  ;;  %6187 = vset.pattern.permute.xlu1 %v10613_v62 }
 0x4d5   :  { %v8139_v17 = vadd.f32 %v6093_v9, %v7692_v25  ;;  %v2278_v19 = vpop.f32.mrb[169].mxu1  ;;  %3006 = vperm.xlu1 %6187, %v8053_v39   ;;  %6198 = vset.pattern.permute.xlu0 %v10444_v49  ;;  %v10632_v49 = vmov 2  }
 0x4d6   :  { %v8148_v34 = vadd.f32 %v2278_v19, %v7675_v23  ;;  %v6094_v8 = vpop.f32.mrb[170].mxu1  ;;  %3614 = vperm.xlu0 %6198, %v8101_v40   ;;  %v8163_v23 = vpop.permute.xlu0 %4139 }
 0x4d7   :  { %10621 = vst [vmem:[#allocation57_spill] sm:$0xff] %v8139_v17  ;;  %v8152_v15 = vadd.f32 %v6094_v8, %v7697_v24  ;;  %v2281_v25 = vpop.f32.mrb[171].mxu1  ;;  %10627 = vst [vmem:[#allocation16_spill] sm:$0xff] %v8163_v23  ;;  %v8165_v19 = vpop.permute.xlu1 %4142 }
 0x4d8   :  { %10624 = vst [vmem:[#allocation14_spill] sm:$0xff] %v8148_v34  ;;  %v8155_v9 = vadd.f32 %v2281_v25, %v7681_v63  ;;  %10628 = vst [vmem:[#allocation22_spill] sm:$0xff] %v8165_v19  ;;  %v2412_v19 = vld [vmem:[%s10418_s11] sm:$0xff] }
 0x4d9   :  { %10625 = vst [vmem:[#allocation10_spill] sm:$0xff] %v8152_v15  ;;  %6189 = vset.pattern.permute.xlu1 %v10442_v29 }
 0x4da   :  { %10626 = vst [vmem:[#allocation20_spill] sm:$0xff] %v8155_v9  ;;  %3398 = vperm.xlu1 %6189, %v8053_v39   ;;  %6200 = vset.pattern.permute.xlu0 %v10520_v11 }
 0x4db   :  { %2435 = vperm.xlu0 %6200, %v8157_v6  }
 0x4dc   :  { %v6097_v24 = vpop.f32.mrb[172].mxu1 }
 0x4dd   :  { %v8168_v8 = vadd.f32 %v6097_v24, %v7718_v59  ;;  %v2294_v63 = vpop.f32.mrb[173].mxu1  ;;  %v8183_v59 = vpop.permute.xlu0 %4145  ;;  %v10636_v24 = vmov 1  }
 0x4de   :  { %v8171_v28 = vadd.f32 %v2294_v63, %v7701_v57  ;;  %v6098_v38 = vpop.f32.mrb[174].mxu1  ;;  %6191 = vset.pattern.permute.xlu1 %v10446_v46  ;;  %10634 = vst [vmem:[#allocation26_spill] sm:$0xff] %v8183_v59  ;;  %v8185_v57 = vpop.permute.xlu1 %4148 }
 0x4df   :  { %10629 = vst [vmem:[#allocation18_spill] sm:$0xff] %v8168_v8  ;;  %v8175_v25 = vadd.f32 %v6098_v38, %v7723_v12  ;;  %v2297_v29 = vpop.f32.mrb[175].mxu1  ;;  %3790 = vperm.xlu1 %6191, %v8053_v39   ;;  %6202 = vset.pattern.permute.xlu0 %v10632_v49  ;;  %10635 = vst [vmem:[#allocation36_spill] sm:$0xff] %v8185_v57  ;;  %v10637_v12 = vmov 4   ;;  %v2323_v39 = vadd.f32 %v7969_v18, %v7991_v3  ;;  %v10640_v38 = vmov 6  }
 0x4e0   :  { %10630 = vst [vmem:[#allocation28_spill] sm:$0xff] %v8171_v28  ;;  %v8180_v0 = vadd.f32 %v2297_v29, %v7707_v10  ;;  %2822 = vperm.xlu0 %6202, %v8157_v6   ;;  %v10644_v57 = vmov 7  }
 0x4e1   :  { %10631 = vst [vmem:[#allocation24_spill] sm:$0xff] %v8175_v25  ;;  %v8193_v63 = vpop.permute.xlu0 %4151  ;;  %v2355_v29 = vmul.f32 0.2, %v2323_v39 }
 0x4e2   :  { %10633 = vst [vmem:[#allocation30_spill] sm:$0xff] %v8180_v0  ;;  %10638 = vst [vmem:[#allocation32_spill] sm:$0xff] %v8193_v63  ;;  %v8195_v10 = vpop.permute.xlu1 %4154 }
 0x4e3   :  { %6193 = vset.pattern.permute.xlu1 %v10636_v24  ;;  %10639 = vst [vmem:[#allocation37_spill] sm:$0xff] %v8195_v10  ;;  %v8201_v46 = vmax.f32 %v2323_v39, %v2355_v29 }
 0x4e4   :  { %2634 = vperm.xlu1 %6193, %v8101_v40   ;;  %6204 = vset.pattern.permute.xlu0 %v10637_v12 }
 0x4e5   :  { %3214 = vperm.xlu0 %6204, %v8157_v6   ;;  %v8204_v3 = vpop.permute.xlu0 %4157 }
 0x4e6   :  { %10642 = vst [vmem:[#allocation34_spill] sm:$0xff] %v8204_v3  ;;  %v8206_v50 = vpop.permute.xlu1 %4160 }
 0x4e7   :  { %10643 = vst [vmem:[#allocation40_spill] sm:$0xff] %v8206_v50  ;;  %v2321_v50 = vadd.f32 %v7969_v18, %v7995_v51 }
 0x4e8   :  { %6195 = vset.pattern.permute.xlu1 %v10613_v62 }
 0x4e9   :  { %3026 = vperm.xlu1 %6195, %v8101_v40   ;;  %6206 = vset.pattern.permute.xlu0 %v10640_v38  ;;  %v8214_v39 = vpop.permute.xlu0 %4163 }
 0x4ea   :  { %3606 = vperm.xlu0 %6206, %v8157_v6   ;;  %10645 = vst [vmem:[#allocation38_spill] sm:$0xff] %v8214_v39  ;;  %v8216_v29 = vpop.permute.xlu1 %4166 }
 0x4eb   :  { %10646 = vst [vmem:[#allocation41_spill] sm:$0xff] %v8216_v29  ;;  %v2353_v29 = vmul.f32 0.2, %v2321_v50 }
 0x4ed   :  { %6197 = vset.pattern.permute.xlu1 %v10641_v26  ;;  %v8237_v51 = vmax.f32 %v2321_v50, %v2353_v29 }
 0x4ee   :  { %3418 = vperm.xlu1 %6197, %v8101_v40   ;;  %6209 = vset.pattern.permute.xlu0 %v10636_v24  ;;  %v8227_v3 = vpop.permute.xlu1 %4172 }
 0x4ef   :  { %2638 = vperm.xlu0 %6209, %v8201_v46   ;;  %10648 = vst [vmem:[#allocation45_spill] sm:$0xff] %v8227_v3 }
 0x4f2   :  { %6199 = vset.pattern.permute.xlu1 %v10644_v57  ;;  %v8235_v10 = vpop.permute.xlu1 %4178 }
 0x4f3   :  { %3810 = vperm.xlu1 %6199, %v8101_v40   ;;  %6211 = vset.pattern.permute.xlu0 %v10613_v62  ;;  %v8225_v40 = vpop.permute.xlu0 %4169  ;;  %10650 = vst [vmem:[#allocation46_spill] sm:$0xff] %v8235_v10  ;;  %v2573_v10 = vlaneseq }
 0x4f4   :  { %3030 = vperm.xlu0 %6211, %v8201_v46   ;;  %10647 = vst [vmem:[#allocation39_spill] sm:$0xff] %v8225_v40 }
 0x4f5   :  { %v8259_v59 = vshrl.u32 %v2573_v10, 7 }
 0x4f7   :  { %6201 = vset.pattern.permute.xlu1 %v10636_v24  ;;  %v8233_v39 = vpop.permute.xlu0 %4175  ;;  %10651 = vst [vmem:[#allocation44_spill] sm:$0xff] %v8259_v59  ;;  %v10448_v63 = vsub.s32 1, %v8259_v59  ;;  %v3131_v45 = vsub.s32 3, %v8259_v59  ;;  %v3327_v15 = vsub.s32 4, %v8259_v59  ;;  %v3523_v17 = vsub.s32 5, %v8259_v59 }
 0x4f8   :  { %2626 = vperm.xlu1 %6201, %v8157_v6   ;;  %6213 = vset.pattern.permute.xlu0 %v10641_v26  ;;  %10649 = vst [vmem:[#allocation42_spill] sm:$0xff] %v8233_v39  ;;  %v2326_v39 = vadd.f32 %v7969_v18, %v8008_v7  ;;  %v10449_v7 = vsub.s32 0, %v8259_v59 }
 0x4f9   :  { %3422 = vperm.xlu0 %6213, %v8201_v46   ;;  %v8278_v9 = vrot.slane %v2412_v19, %v10448_v63  ;;  %v8297_v44 = vrot.slane %v2412_v19, %v3131_v45  ;;  %v8304_v36 = vrot.slane %v2412_v19, %v3327_v15  ;;  %v8311_v37 = vrot.slane %v2412_v19, %v3523_v17 }
 0x4fa   :  { %v2358_v25 = vmul.f32 0.2, %v2326_v39  ;;  %v3915_v17 = vsub.s32 7, %v8259_v59 }
 0x4fc   :  { %6203 = vset.pattern.permute.xlu1 %v10613_v62  ;;  %v8270_v10 = vmax.f32 %v2326_v39, %v2358_v25  ;;  %v8286_v25 = vrot.slane %v2412_v19, %v10449_v7  ;;  %v10652_v39 = vsub.s32 2, %v8259_v59 }
 0x4fd   :  { %3018 = vperm.xlu1 %6203, %v8157_v6   ;;  %6215 = vset.pattern.permute.xlu0 %v10644_v57 }
 0x4fe   :  { %3814 = vperm.xlu0 %6215, %v8201_v46   ;;  %v8290_v42 = vrot.slane %v2412_v19, %v10652_v39 }
 0x501   :  { %6205 = vset.pattern.permute.xlu1 %v10641_v26 }
 0x502   :  { %3410 = vperm.xlu1 %6205, %v8157_v6   ;;  %6217 = vset.pattern.permute.xlu0 %v10636_v24 }
 0x503   :  { %2630 = vperm.xlu0 %6217, %v8237_v51  }
 0x504   :  { %v2426_v3 = vpop.permute.xlu1 %2425 }
 0x505   :  { %v8243_v40 = vpop.permute.xlu0 %2415  ;;  %v2579_v39 = vmul.f32 %v8286_v25, %v2426_v3 }
 0x506   :  { %6207 = vset.pattern.permute.xlu1 %v10644_v57 }
 0x507   :  { %3802 = vperm.xlu1 %6207, %v8157_v6   ;;  %6219 = vset.pattern.permute.xlu0 %v10613_v62 }
 0x508   :  { %3022 = vperm.xlu0 %6219, %v8237_v51  }
 0x509   :  { %v2619_v50 = vpop.permute.xlu1 %2618 }
 0x50a   :  { %v8249_v29 = vpop.permute.xlu0 %2610  ;;  %v2743_v34 = vmul.f32 %v8278_v9, %v2619_v50  ;;  %v3719_v50 = vsub.s32 6, %v8259_v59 }
 0x50b   :  { %6208 = vset.pattern.permute.xlu1 %v10520_v11 }
 0x50c   :  { %2450 = vperm.xlu1 %6208, %v8201_v46   ;;  %6221 = vset.pattern.permute.xlu0 %v10641_v26  ;;  %v2775_v31 = vadd.f32 %v2743_v34, %v2579_v39  ;;  %v8317_v15 = vrot.slane %v2412_v19, %v3719_v50  ;;  %v2324_v34 = vadd.f32 %v7969_v18, %v8012_v52 }
 0x50d   :  { %3414 = vperm.xlu0 %6221, %v8237_v51   ;;  %v8330_v52 = vrot.slane %v2412_v19, %v3915_v17  ;;  %v2577_v17 = vmul.f32 %v8286_v25, %v8243_v40 }
 0x50e   :  { %v2815_v6 = vpop.permute.xlu1 %2814  ;;  %v2356_v50 = vmul.f32 0.2, %v2324_v34 }
 0x50f   :  { %v8257_v0 = vpop.permute.xlu0 %3002  ;;  %v2939_v7 = vmul.f32 %v8290_v42, %v2815_v6 }
 0x510   :  { %6210 = vset.pattern.permute.xlu1 %v10632_v49 }
 0x511   :  { %2834 = vperm.xlu1 %6210, %v8201_v46   ;;  %6223 = vset.pattern.permute.xlu0 %v10644_v57 }
 0x512   :  { %3806 = vperm.xlu0 %6223, %v8237_v51  }
 0x513   :  { %v3011_v28 = vpop.permute.xlu1 %3010 }
 0x514   :  { %v8268_v8 = vpop.permute.xlu0 %3394  ;;  %v3135_v45 = vmul.f32 %v8297_v44, %v3011_v28 }
 0x515   :  { %6212 = vset.pattern.permute.xlu1 %v10637_v12 }
 0x516   :  { %3226 = vperm.xlu1 %6212, %v8201_v46   ;;  %6224 = vset.pattern.permute.xlu0 %v10520_v11 }
 0x517   :  { %2465 = vperm.xlu0 %6224, %v8270_v10  }
 0x518   :  { %v3207_v63 = vpop.permute.xlu1 %3206 }
 0x519   :  { %v8293_v23 = vpop.permute.xlu0 %3786  ;;  %v3331_v3 = vmul.f32 %v8304_v36, %v3207_v63 }
 0x51a   :  { %6214 = vset.pattern.permute.xlu1 %v10640_v38 }
 0x51b   :  { %3618 = vperm.xlu1 %6214, %v8201_v46   ;;  %6226 = vset.pattern.permute.xlu0 %v10632_v49  ;;  %v2971_v46 = vadd.f32 %v2939_v7, %v2775_v31 }
 0x51c   :  { %2846 = vperm.xlu0 %6226, %v8270_v10  }
 0x51d   :  { %v3403_v14 = vpop.permute.xlu1 %3402  ;;  %v3167_v28 = vadd.f32 %v3135_v45, %v2971_v46 }
 0x51e   :  { %v8309_v21 = vpop.permute.xlu0 %2622  ;;  %v3527_v6 = vmul.f32 %v8311_v37, %v3403_v14 }
 0x51f   :  { %6216 = vset.pattern.permute.xlu1 %v10520_v11  ;;  %v3363_v63 = vadd.f32 %v3331_v3, %v3167_v28  ;;  %v8336_v3 = vmax.f32 %v2324_v34, %v2356_v50  ;;  %v2741_v28 = vmul.f32 %v8278_v9, %v8249_v29  ;;  %v3133_v50 = vmul.f32 %v8297_v44, %v8257_v0 }
 0x520   :  { %2440 = vperm.xlu1 %6216, %v8237_v51   ;;  %6228 = vset.pattern.permute.xlu0 %v10637_v12 }
 0x521   :  { %3238 = vperm.xlu0 %6228, %v8270_v10   ;;  %v3559_v45 = vadd.f32 %v3527_v6, %v3363_v63  ;;  %v2773_v6 = vadd.f32 %v2741_v28, %v2577_v17  ;;  %v3525_v28 = vmul.f32 %v8311_v37, %v8268_v8  ;;  %v2327_v17 = vadd.f32 %v7969_v18, %v8016_v33 }
 0x522   :  { %v3599_v39 = vpop.permute.xlu1 %3598  ;;  %v3917_v8 = vmul.f32 %v8330_v52, %v8293_v23  ;;  %v2744_v23 = vmul.f32 %v8278_v9, %v8309_v21 }
 0x523   :  { %v8324_v31 = vpop.permute.xlu0 %3014  ;;  %v3723_v7 = vmul.f32 %v8317_v15, %v3599_v39  ;;  %v8343_v39 = vld [vmem:[%s10419_s12] ss:$0 sm:$0xff] }
 0x524   :  { %6218 = vset.pattern.permute.xlu1 %v10632_v49  ;;  %v3136_v21 = vmul.f32 %v8297_v44, %v8324_v31 }
 0x525   :  { %2826 = vperm.xlu1 %6218, %v8237_v51   ;;  %6230 = vset.pattern.permute.xlu0 %v10640_v38  ;;  %v3755_v14 = vadd.f32 %v3723_v7, %v3559_v45 }
 0x526   :  { %3630 = vperm.xlu0 %6230, %v8270_v10  }
 0x527   :  { %v3795_v46 = vpop.permute.xlu1 %3794 }
 0x528   :  { %v3919_v59 = vmul.f32 %v8330_v52, %v3795_v46  ;;  %v8334_v56 = vpop.permute.xlu0 %3406 }
 0x529   :  { %6220 = vset.pattern.permute.xlu1 %v10637_v12 }
 0x52a   :  { %v3951_v19 = vadd.f32 %v3919_v59, %v3755_v14  ;;  %3218 = vperm.xlu1 %6220, %v8237_v51   ;;  %6232 = vset.pattern.permute.xlu0 %v10520_v11 }
 0x52b   :  { %2455 = vperm.xlu0 %6232, %v8336_v3  }
 0x52c   :  { %v3990_v34 = vadd.f32 %v8343_v39, %v3951_v19  ;;  %v2807_v29 = vpop.permute.xlu1 %2806 }
 0x52d   :  { %v2937_v63 = vmul.f32 %v8290_v42, %v2807_v29  ;;  %v8354_v7 = vpop.permute.xlu0 %3798 }
 0x52e   :  { %v4214_v59 = vsel %vm4182_vm7, %v3990_v34, 0.0  ;;  %6222 = vset.pattern.permute.xlu1 %v10640_v38 }
 0x52f   :  { %v2969_v40 = vadd.f32 %v2937_v63, %v2773_v6  ;;  %3610 = vperm.xlu1 %6222, %v8237_v51   ;;  %6234 = vset.pattern.permute.xlu0 %v10632_v49  ;;  %v8364_v45 = vadd.f32 %v6656_v55, %v4214_v59  ;;  %v2359_v59 = vmul.f32 0.2, %v2327_v17 }
 0x530   :  { %2838 = vperm.xlu0 %6234, %v8336_v3  }
 0x531   :  { %v3199_v46 = vpop.permute.xlu1 %3198  ;;  %v3165_v14 = vadd.f32 %v3133_v50, %v2969_v40  ;;  %5473 = vst.msk [vmem:[%s10420_s19 + $0x10] sm:$0xff] %vm5470_vm8, %v8364_v45 }
 0x532   :  { %v3329_v0 = vmul.f32 %v8304_v36, %v3199_v46  ;;  %v8373_v51 = vpop.permute.xlu0 %2420  ;;  %v8394_v46 = vmax.f32 %v2327_v17, %v2359_v59  ;;  %v6657_v17 = vld [vmem:[%s10457_s23] sm:$0xff] }
 0x533   :  { %6225 = vset.pattern.permute.xlu1 %v10636_v24 }
 0x534   :  { %v3361_v19 = vadd.f32 %v3329_v0, %v3165_v14  ;;  %2650 = vperm.xlu1 %6225, %v8270_v10   ;;  %6236 = vset.pattern.permute.xlu0 %v10637_v12 }
 0x535   :  { %3230 = vperm.xlu0 %6236, %v8336_v3  }
 0x536   :  { %v3591_v34 = vpop.permute.xlu1 %3590  ;;  %v3557_v29 = vadd.f32 %v3525_v28, %v3361_v19 }
 0x537   :  { %v3721_v6 = vmul.f32 %v8317_v15, %v3591_v34  ;;  %v8384_v63 = vpop.permute.xlu0 %2810 }
 0x538   :  { %6227 = vset.pattern.permute.xlu1 %v10613_v62 }
 0x539   :  { %v3753_v50 = vadd.f32 %v3721_v6, %v3557_v29  ;;  %3042 = vperm.xlu1 %6227, %v8270_v10   ;;  %6238 = vset.pattern.permute.xlu0 %v10640_v38 }
 0x53a   :  { %3622 = vperm.xlu0 %6238, %v8336_v3  }
 0x53b   :  { %v3949_v33 = vadd.f32 %v3917_v8, %v3753_v50  ;;  %v2431_v40 = vpop.permute.xlu1 %2430 }
 0x53c   :  { %v8392_v55 = vpop.permute.xlu0 %3202  ;;  %v2580_v0 = vmul.f32 %v8286_v25, %v2431_v40 }
 0x53d   :  { %v3988_v14 = vadd.f32 %v8343_v39, %v3949_v33  ;;  %6229 = vset.pattern.permute.xlu1 %v10641_v26 }
 0x53e   :  { %3434 = vperm.xlu1 %6229, %v8270_v10   ;;  %6241 = vset.pattern.permute.xlu0 %v10636_v24  ;;  %v2776_v29 = vadd.f32 %v2744_v23, %v2580_v0 }
 0x53f   :  { %2654 = vperm.xlu0 %6241, %v8394_v46   ;;  %v4212_v28 = vsel %vm4180_vm9, %v3988_v14, 0.0  ;;  %v3528_v14 = vmul.f32 %v8311_v37, %v8334_v56  ;;  %v3920_v56 = vmul.f32 %v8330_v52, %v8354_v7 }
 0x540   :  { %v2819_v19 = vpop.permute.xlu1 %2818  ;;  %v8408_v34 = vadd.f32 %v6657_v17, %v4212_v28 }
 0x541   :  { %v2940_v60 = vmul.f32 %v8290_v42, %v2819_v19  ;;  %v8411_v6 = vpop.permute.xlu0 %3594 }
 0x542   :  { %6231 = vset.pattern.permute.xlu1 %v10644_v57  ;;  %5471 = vst.msk [vmem:[%s10420_s19] sm:$0xff] %vm5470_vm8, %v8408_v34 }
 0x543   :  { %v2972_v59 = vadd.f32 %v2940_v60, %v2776_v29  ;;  %3826 = vperm.xlu1 %6231, %v8270_v10   ;;  %6243 = vset.pattern.permute.xlu0 %v10613_v62  ;;  %v2325_v10 = vadd.f32 %v7969_v18, %v8022_v16 }
 0x544   :  { %3046 = vperm.xlu0 %6243, %v8394_v46  }
 0x545   :  { %v3211_v8 = vpop.permute.xlu1 %3210  ;;  %v3168_v50 = vadd.f32 %v3136_v21, %v2972_v59  ;;  %v2357_v17 = vmul.f32 0.2, %v2325_v10  ;;  %v2578_v21 = vmul.f32 %v8286_v25, %v8373_v51 }
 0x546   :  { %v3332_v33 = vmul.f32 %v8304_v36, %v3211_v8  ;;  %v8425_v40 = vpop.permute.xlu0 %2445 }
 0x547   :  { %6233 = vset.pattern.permute.xlu1 %v10636_v24 }
 0x548   :  { %v3364_v0 = vadd.f32 %v3332_v33, %v3168_v50  ;;  %2642 = vperm.xlu1 %6233, %v8336_v3   ;;  %6245 = vset.pattern.permute.xlu0 %v10641_v26  ;;  %v8449_v50 = vmax.f32 %v2325_v10, %v2357_v17  ;;  %v2938_v33 = vmul.f32 %v8290_v42, %v8384_v63 }
 0x549   :  { %3438 = vperm.xlu0 %6245, %v8394_v46   ;;  %v3330_v63 = vmul.f32 %v8304_v36, %v8392_v55 }
 0x54a   :  { %v3603_v31 = vpop.permute.xlu1 %3602  ;;  %v3560_v23 = vadd.f32 %v3528_v14, %v3364_v0 }
 0x54b   :  { %v3724_v28 = vmul.f32 %v8317_v15, %v3603_v31  ;;  %v8436_v19 = vpop.permute.xlu0 %2830  ;;  %v6658_v31 = vld [vmem:[%s10457_s23 + $0x18] sm:$0xff] }
 0x54c   :  { %6235 = vset.pattern.permute.xlu1 %v10613_v62 }
 0x54d   :  { %v3756_v29 = vadd.f32 %v3724_v28, %v3560_v23  ;;  %3034 = vperm.xlu1 %6235, %v8336_v3   ;;  %6247 = vset.pattern.permute.xlu0 %v10644_v57 }
 0x54e   :  { %3830 = vperm.xlu0 %6247, %v8394_v46  }
 0x54f   :  { %v3952_v16 = vadd.f32 %v3920_v56, %v3756_v29  ;;  %v2615_v60 = vpop.permute.xlu1 %2614 }
 0x550   :  { %v2742_v59 = vmul.f32 %v8278_v9, %v2615_v60  ;;  %v8447_v8 = vpop.permute.xlu0 %3222 }
 0x551   :  { %v3991_v7 = vadd.f32 %v8343_v39, %v3952_v16  ;;  %6237 = vset.pattern.permute.xlu1 %v10641_v26 }
 0x552   :  { %v2774_v14 = vadd.f32 %v2742_v59, %v2578_v21  ;;  %3426 = vperm.xlu1 %6237, %v8336_v3   ;;  %6249 = vset.pattern.permute.xlu0 %v10636_v24  ;;  %v3722_v21 = vmul.f32 %v8317_v15, %v8411_v6 }
 0x553   :  { %2646 = vperm.xlu0 %6249, %v8449_v50   ;;  %v4215_v51 = vsel %vm4183_vm10, %v3991_v7, 0.0 }
 0x554   :  { %v3007_v0 = vpop.permute.xlu1 %3006  ;;  %v2970_v10 = vadd.f32 %v2938_v33, %v2774_v14  ;;  %v8462_v23 = vadd.f32 %v6658_v31, %v4215_v51 }
 0x555   :  { %v3134_v41 = vmul.f32 %v8297_v44, %v3007_v0  ;;  %v3615_v28 = vpop.permute.xlu0 %3614 }
 0x556   :  { %6239 = vset.pattern.permute.xlu1 %v10644_v57  ;;  %5474 = vst.msk [vmem:[%s10420_s19 + $0x18] sm:$0xff] %vm5470_vm8, %v8462_v23 }
 0x557   :  { %v3166_v17 = vadd.f32 %v3134_v41, %v2970_v10  ;;  %3818 = vperm.xlu1 %6239, %v8336_v3   ;;  %6251 = vset.pattern.permute.xlu0 %v10613_v62  ;;  %v2330_v3 = vadd.f32 %v7969_v18, %v8039_v54  ;;  %v2583_v10 = vmul.f32 %v8286_v25, %v8425_v40 }
 0x558   :  { %3038 = vperm.xlu0 %6251, %v8449_v50  }
 0x559   :  { %v3399_v56 = vpop.permute.xlu1 %3398  ;;  %v3362_v29 = vadd.f32 %v3330_v63, %v3166_v17  ;;  %v2362_v51 = vmul.f32 0.2, %v2330_v3 }
 0x55a   :  { %v3526_v16 = vmul.f32 %v8311_v37, %v3399_v56  ;;  %v8477_v60 = vpop.permute.xlu0 %2435  ;;  %v2943_v56 = vmul.f32 %v8290_v42, %v8436_v19 }
 0x55b   :  { %6240 = vset.pattern.permute.xlu1 %v10520_v11  ;;  %v8501_v63 = vmax.f32 %v2330_v3, %v2362_v51  ;;  %v3335_v3 = vmul.f32 %v8304_v36, %v8447_v8 }
 0x55c   :  { %v3558_v59 = vadd.f32 %v3526_v16, %v3362_v29  ;;  %2470 = vperm.xlu1 %6240, %v8394_v46   ;;  %6253 = vset.pattern.permute.xlu0 %v10641_v26 }
 0x55d   :  { %3430 = vperm.xlu0 %6253, %v8449_v50  }
 0x55e   :  { %v3791_v55 = vpop.permute.xlu1 %3790  ;;  %v3754_v7 = vadd.f32 %v3722_v21, %v3558_v59 }
 0x55f   :  { %v3918_v33 = vmul.f32 %v8330_v52, %v3791_v55  ;;  %v8488_v14 = vpop.permute.xlu0 %2822 }
 0x560   :  { %6242 = vset.pattern.permute.xlu1 %v10632_v49 }
 0x561   :  { %v3950_v6 = vadd.f32 %v3918_v33, %v3754_v7  ;;  %2850 = vperm.xlu1 %6242, %v8394_v46   ;;  %6255 = vset.pattern.permute.xlu0 %v10644_v57 }
 0x562   :  { %3822 = vperm.xlu0 %6255, %v8449_v50  }
 0x563   :  { %v3989_v54 = vadd.f32 %v8343_v39, %v3950_v6  ;;  %v2635_v0 = vpop.permute.xlu1 %2634 }
 0x564   :  { %v2747_v31 = vmul.f32 %v8278_v9, %v2635_v0  ;;  %v8499_v41 = vpop.permute.xlu0 %3214 }
 0x565   :  { %v4213_v17 = vsel %vm4181_vm11, %v3989_v54, 0.0  ;;  %6244 = vset.pattern.permute.xlu1 %v10637_v12  ;;  %v3727_v54 = vmul.f32 %v8317_v15, %v3615_v28 }
 0x566   :  { %v2779_v29 = vadd.f32 %v2747_v31, %v2583_v10  ;;  %3242 = vperm.xlu1 %6244, %v8394_v46   ;;  %6256 = vset.pattern.permute.xlu0 %v10520_v11  ;;  %v8511_v40 = vadd.f32 %v6659_v27, %v4213_v17 }
 0x567   :  { %2485 = vperm.xlu0 %6256, %v8501_v63  }
 0x568   :  { %v3027_v16 = vpop.permute.xlu1 %3026  ;;  %v2975_v21 = vadd.f32 %v2943_v56, %v2779_v29  ;;  %5472 = vst.msk [vmem:[%s10420_s19 + $0x8] sm:$0xff] %vm5470_vm8, %v8511_v40  ;;  %v2581_v29 = vmul.f32 %v8286_v25, %v8477_v60 }
 0x569   :  { %v3139_v19 = vmul.f32 %v8297_v44, %v3027_v16  ;;  %v3607_v59 = vpop.permute.xlu0 %3606 }
 0x56a   :  { %6246 = vset.pattern.permute.xlu1 %v10640_v38 }
 0x56b   :  { %v3171_v55 = vadd.f32 %v3139_v19, %v2975_v21  ;;  %3634 = vperm.xlu1 %6246, %v8394_v46   ;;  %6258 = vset.pattern.permute.xlu0 %v10632_v49  ;;  %v2328_v46 = vadd.f32 %v7969_v18, %v8044_v47 }
 0x56c   :  { %2862 = vperm.xlu0 %6258, %v8501_v63  }
 0x56d   :  { %v3419_v7 = vpop.permute.xlu1 %3418  ;;  %v3367_v33 = vadd.f32 %v3335_v3, %v3171_v55  ;;  %v2360_v56 = vmul.f32 0.2, %v2328_v46  ;;  %v2941_v3 = vmul.f32 %v8290_v42, %v8488_v14 }
 0x56e   :  { %v3531_v51 = vmul.f32 %v8311_v37, %v3419_v7  ;;  %v8527_v6 = vpop.permute.xlu0 %2638 }
 0x56f   :  { %6248 = vset.pattern.permute.xlu1 %v10520_v11  ;;  %v8550_v21 = vmax.f32 %v2328_v46, %v2360_v56  ;;  %v3725_v56 = vmul.f32 %v8317_v15, %v3607_v59  ;;  %v2748_v53 = vmul.f32 %v8278_v9, %v8527_v6 }
 0x570   :  { %v3563_v0 = vadd.f32 %v3531_v51, %v3367_v33  ;;  %2460 = vperm.xlu1 %6248, %v8449_v50   ;;  %6260 = vset.pattern.permute.xlu0 %v10637_v12 }
 0x571   :  { %3254 = vperm.xlu0 %6260, %v8501_v63  }
 0x572   :  { %v3811_v8 = vpop.permute.xlu1 %3810  ;;  %v3759_v10 = vadd.f32 %v3727_v54, %v3563_v0  ;;  %v3333_v54 = vmul.f32 %v8304_v36, %v8499_v41 }
 0x573   :  { %v3923_v31 = vmul.f32 %v8330_v52, %v3811_v8  ;;  %v8537_v17 = vpop.permute.xlu0 %3030 }
 0x574   :  { %6250 = vset.pattern.permute.xlu1 %v10632_v49 }
 0x575   :  { %v3955_v28 = vadd.f32 %v3923_v31, %v3759_v10  ;;  %2842 = vperm.xlu1 %6250, %v8449_v50   ;;  %6262 = vset.pattern.permute.xlu0 %v10640_v38 }
 0x576   :  { %3646 = vperm.xlu0 %6262, %v8501_v63  }
 0x577   :  { %v3994_v18 = vadd.f32 %v8343_v39, %v3955_v28  ;;  %v2627_v47 = vpop.permute.xlu1 %2626 }
 0x578   :  { %v2745_v27 = vmul.f32 %v8278_v9, %v2627_v47  ;;  %v8548_v16 = vpop.permute.xlu0 %3422 }
 0x579   :  { %v4218_v19 = vsel %vm4186_vm12, %v3994_v18, 0.0  ;;  %6252 = vset.pattern.permute.xlu1 %v10637_v12 }
 0x57a   :  { %v2777_v55 = vadd.f32 %v2745_v27, %v2581_v29  ;;  %3234 = vperm.xlu1 %6252, %v8449_v50   ;;  %6264 = vset.pattern.permute.xlu0 %v10520_v11  ;;  %v8560_v60 = vadd.f32 %v6660_v20, %v4218_v19 }
 0x57b   :  { %2475 = vperm.xlu0 %6264, %v8550_v21  }
 0x57c   :  { %v3019_v7 = vpop.permute.xlu1 %3018  ;;  %v2973_v33 = vadd.f32 %v2941_v3, %v2777_v55  ;;  %5477 = vst.msk [vmem:[%s10420_s19 + $0x30] sm:$0xff] %vm5470_vm8, %v8560_v60 }
 0x57d   :  { %v3137_v14 = vmul.f32 %v8297_v44, %v3019_v7  ;;  %v8569_v51 = vpop.permute.xlu0 %3814 }
 0x57e   :  { %6254 = vset.pattern.permute.xlu1 %v10640_v38 }
 0x57f   :  { %v3169_v0 = vadd.f32 %v3137_v14, %v2973_v33  ;;  %3626 = vperm.xlu1 %6254, %v8449_v50   ;;  %6266 = vset.pattern.permute.xlu0 %v10632_v49  ;;  %v8587_v50 = vld [vmem:[%s10417_s10] ss:$0 sm:$0xff] }
 0x580   :  { %2854 = vperm.xlu0 %6266, %v8550_v21   ;;  %v2331_v41 = vadd.f32 %v8587_v50, %v8048_v1  ;;  %v6662_v14 = vld [vmem:[%s10457_s23 + $0x20] sm:$0xff] }
 0x581   :  { %v3411_v46 = vpop.permute.xlu1 %3410  ;;  %v3365_v8 = vadd.f32 %v3333_v54, %v3169_v0 }
 0x582   :  { %v3529_v10 = vmul.f32 %v8311_v37, %v3411_v46  ;;  %v8578_v31 = vpop.permute.xlu0 %2630  ;;  %v2363_v27 = vmul.f32 0.2, %v2331_v41 }
 0x583   :  { %6257 = vset.pattern.permute.xlu1 %v10636_v24 }
 0x584   :  { %v3561_v28 = vadd.f32 %v3529_v10, %v3365_v8  ;;  %2666 = vperm.xlu1 %6257, %v8501_v63   ;;  %6268 = vset.pattern.permute.xlu0 %v10637_v12  ;;  %v8603_v20 = vmax.f32 %v2331_v41, %v2363_v27 }
 0x585   :  { %3246 = vperm.xlu0 %6268, %v8550_v21  }
 0x586   :  { %v3803_v18 = vpop.permute.xlu1 %3802  ;;  %v3757_v47 = vadd.f32 %v3725_v56, %v3561_v28  ;;  %v3140_v56 = vmul.f32 %v8297_v44, %v8537_v17 }
 0x587   :  { %v3921_v29 = vmul.f32 %v8330_v52, %v3803_v18  ;;  %v8593_v59 = vpop.permute.xlu0 %3022 }
 0x588   :  { %6259 = vset.pattern.permute.xlu1 %v10613_v62 }
 0x589   :  { %v3953_v19 = vadd.f32 %v3921_v29, %v3757_v47  ;;  %3058 = vperm.xlu1 %6259, %v8501_v63   ;;  %6270 = vset.pattern.permute.xlu0 %v10640_v38  ;;  %v3532_v29 = vmul.f32 %v8311_v37, %v8548_v16  ;;  %v3924_v16 = vmul.f32 %v8330_v52, %v8569_v51 }
 0x58a   :  { %3638 = vperm.xlu0 %6270, %v8550_v21   ;;  %v2746_v51 = vmul.f32 %v8278_v9, %v8578_v31  ;;  %v3138_v31 = vmul.f32 %v8297_v44, %v8593_v59 }
 0x58b   :  { %v3992_v1 = vadd.f32 %v8343_v39, %v3953_v19  ;;  %v2451_v3 = vpop.permute.xlu1 %2450 }
 0x58c   :  { %v8601_v55 = vpop.permute.xlu0 %3414  ;;  %v2584_v33 = vmul.f32 %v8286_v25, %v2451_v3 }
 0x58d   :  { %v4216_v7 = vsel %vm4184_vm13, %v3992_v1, 0.0  ;;  %6261 = vset.pattern.permute.xlu1 %v10641_v26 }
 0x58e   :  { %3450 = vperm.xlu1 %6261, %v8501_v63   ;;  %6273 = vset.pattern.permute.xlu0 %v10636_v24  ;;  %v8612_v54 = vadd.f32 %v6662_v14, %v4216_v7  ;;  %v2780_v46 = vadd.f32 %v2748_v53, %v2584_v33 }
 0x58f   :  { %2670 = vperm.xlu0 %6273, %v8603_v20  }
 0x590   :  { %v2835_v0 = vpop.permute.xlu1 %2834  ;;  %5475 = vst.msk [vmem:[%s10420_s19 + $0x20] sm:$0xff] %vm5470_vm8, %v8612_v54 }
 0x591   :  { %v2944_v8 = vmul.f32 %v8290_v42, %v2835_v0  ;;  %v8623_v10 = vpop.permute.xlu0 %3806 }
 0x592   :  { %6263 = vset.pattern.permute.xlu1 %v10644_v57 }
 0x593   :  { %v2976_v6 = vadd.f32 %v2944_v8, %v2780_v46  ;;  %3842 = vperm.xlu1 %6263, %v8501_v63   ;;  %6275 = vset.pattern.permute.xlu0 %v10613_v62  ;;  %v2329_v63 = vadd.f32 %v8587_v50, %v8051_v35 }
 0x594   :  { %3062 = vperm.xlu0 %6275, %v8603_v20  }
 0x595   :  { %v3227_v28 = vpop.permute.xlu1 %3226  ;;  %v3172_v41 = vadd.f32 %v3140_v56, %v2976_v6  ;;  %v2361_v7 = vmul.f32 0.2, %v2329_v63 }
 0x596   :  { %v3336_v18 = vmul.f32 %v8304_v36, %v3227_v28  ;;  %v8632_v47 = vpop.permute.xlu0 %2465  ;;  %v6663_v28 = vld [vmem:[%s10457_s23 + $0x38] sm:$0xff] }
 0x597   :  { %6265 = vset.pattern.permute.xlu1 %v10636_v24  ;;  %v8653_v0 = vmax.f32 %v2329_v63, %v2361_v7  ;;  %v3530_v7 = vmul.f32 %v8311_v37, %v8601_v55  ;;  %v3922_v55 = vmul.f32 %v8330_v52, %v8623_v10 }
 0x598   :  { %v3368_v27 = vadd.f32 %v3336_v18, %v3172_v41  ;;  %2658 = vperm.xlu1 %6265, %v8550_v21   ;;  %6277 = vset.pattern.permute.xlu0 %v10641_v26 }
 0x599   :  { %3454 = vperm.xlu0 %6277, %v8603_v20  }
 0x59a   :  { %v3619_v17 = vpop.permute.xlu1 %3618  ;;  %v3564_v19 = vadd.f32 %v3532_v29, %v3368_v27 }
 0x59b   :  { %v3728_v1 = vmul.f32 %v8317_v15, %v3619_v17  ;;  %v8643_v3 = vpop.permute.xlu0 %2846 }
 0x59c   :  { %6267 = vset.pattern.permute.xlu1 %v10613_v62 }
 0x59d   :  { %v3760_v33 = vadd.f32 %v3728_v1, %v3564_v19  ;;  %3050 = vperm.xlu1 %6267, %v8550_v21   ;;  %6279 = vset.pattern.permute.xlu0 %v10644_v57 }
 0x59e   :  { %3846 = vperm.xlu0 %6279, %v8603_v20  }
 0x59f   :  { %v3956_v35 = vadd.f32 %v3924_v16, %v3760_v33  ;;  %v2441_v14 = vpop.permute.xlu1 %2440 }
 0x5a0   :  { %v8651_v53 = vpop.permute.xlu0 %3238  ;;  %v2582_v8 = vmul.f32 %v8286_v25, %v2441_v14 }
 0x5a1   :  { %v3995_v46 = vadd.f32 %v8343_v39, %v3956_v35  ;;  %6269 = vset.pattern.permute.xlu1 %v10641_v26 }
 0x5a2   :  { %3442 = vperm.xlu1 %6269, %v8550_v21   ;;  %6281 = vset.pattern.permute.xlu0 %v10636_v24  ;;  %v2778_v18 = vadd.f32 %v2746_v51, %v2582_v8 }
 0x5a3   :  { %2662 = vperm.xlu0 %6281, %v8653_v0   ;;  %v4219_v56 = vsel %vm4187_vm14, %v3995_v46, 0.0 }
 0x5a4   :  { %v2827_v6 = vpop.permute.xlu1 %2826  ;;  %v8667_v41 = vadd.f32 %v6663_v28, %v4219_v56  ;;  %v2587_v56 = vmul.f32 %v8286_v25, %v8632_v47 }
 0x5a5   :  { %v2942_v32 = vmul.f32 %v8290_v42, %v2827_v6  ;;  %v8670_v29 = vpop.permute.xlu0 %3630 }
 0x5a6   :  { %6271 = vset.pattern.permute.xlu1 %v10644_v57  ;;  %5478 = vst.msk [vmem:[%s10420_s19 + $0x38] sm:$0xff] %vm5470_vm8, %v8667_v41 }
 0x5a7   :  { %v2974_v27 = vadd.f32 %v2942_v32, %v2778_v18  ;;  %3834 = vperm.xlu1 %6271, %v8550_v21   ;;  %6283 = vset.pattern.permute.xlu0 %v10613_v62  ;;  %v2334_v21 = vadd.f32 %v8587_v50, %v8077_v48  ;;  %v2947_v32 = vmul.f32 %v8290_v42, %v8643_v3 }
 0x5a8   :  { %3054 = vperm.xlu0 %6283, %v8653_v0   ;;  %v3339_v3 = vmul.f32 %v8304_v36, %v8651_v53 }
 0x5a9   :  { %v3219_v63 = vpop.permute.xlu1 %3218  ;;  %v3170_v17 = vadd.f32 %v3138_v31, %v2974_v27  ;;  %v2366_v46 = vmul.f32 0.2, %v2334_v21 }
 0x5aa   :  { %v3334_v19 = vmul.f32 %v8304_v36, %v3219_v63  ;;  %v8684_v1 = vpop.permute.xlu0 %2455 }
 0x5ab   :  { %6272 = vset.pattern.permute.xlu1 %v10520_v11  ;;  %v8708_v18 = vmax.f32 %v2334_v21, %v2366_v46  ;;  %v3731_v46 = vmul.f32 %v8317_v15, %v8670_v29 }
 0x5ac   :  { %v3366_v16 = vadd.f32 %v3334_v19, %v3170_v17  ;;  %2490 = vperm.xlu1 %6272, %v8603_v20   ;;  %6285 = vset.pattern.permute.xlu0 %v10641_v26  ;;  %v6664_v17 = vld [vmem:[%s10457_s23 + $0x28] sm:$0xff] }
 0x5ad   :  { %3446 = vperm.xlu0 %6285, %v8653_v0  }
 0x5ae   :  { %v3611_v59 = vpop.permute.xlu1 %3610  ;;  %v3562_v33 = vadd.f32 %v3530_v7, %v3366_v16 }
 0x5af   :  { %v3726_v35 = vmul.f32 %v8317_v15, %v3611_v59  ;;  %v8695_v14 = vpop.permute.xlu0 %2838 }
 0x5b0   :  { %6274 = vset.pattern.permute.xlu1 %v10632_v49 }
 0x5b1   :  { %v3758_v8 = vadd.f32 %v3726_v35, %v3562_v33  ;;  %2866 = vperm.xlu1 %6274, %v8603_v20   ;;  %6287 = vset.pattern.permute.xlu0 %v10644_v57 }
 0x5b2   :  { %3838 = vperm.xlu0 %6287, %v8653_v0  }
 0x5b3   :  { %v3954_v48 = vadd.f32 %v3922_v55, %v3758_v8  ;;  %v2651_v51 = vpop.permute.xlu1 %2650 }
 0x5b4   :  { %v2751_v6 = vmul.f32 %v8278_v9, %v2651_v51  ;;  %v8706_v28 = vpop.permute.xlu0 %3230 }
 0x5b5   :  { %v3993_v10 = vadd.f32 %v8343_v39, %v3954_v48  ;;  %6276 = vset.pattern.permute.xlu1 %v10637_v12 }
 0x5b6   :  { %v2783_v31 = vadd.f32 %v2751_v6, %v2587_v56  ;;  %3258 = vperm.xlu1 %6276, %v8603_v20   ;;  %6288 = vset.pattern.permute.xlu0 %v10520_v11 }
 0x5b7   :  { %2505 = vperm.xlu0 %6288, %v8708_v18   ;;  %v4217_v47 = vsel %vm4185_vm15, %v3993_v10, 0.0  ;;  %v2585_v10 = vmul.f32 %v8286_v25, %v8684_v1 }
 0x5b8   :  { %v3043_v27 = vpop.permute.xlu1 %3042  ;;  %v2979_v63 = vadd.f32 %v2947_v32, %v2783_v31  ;;  %v8721_v19 = vadd.f32 %v6664_v17, %v4217_v47 }
 0x5b9   :  { %v3143_v5 = vmul.f32 %v8297_v44, %v3043_v27  ;;  %v3623_v7 = vpop.permute.xlu0 %3622 }
 0x5ba   :  { %6278 = vset.pattern.permute.xlu1 %v10640_v38  ;;  %5476 = vst.msk [vmem:[%s10420_s19 + $0x28] sm:$0xff] %vm5470_vm8, %v8721_v19 }
 0x5bb   :  { %v3175_v16 = vadd.f32 %v3143_v5, %v2979_v63  ;;  %3650 = vperm.xlu1 %6278, %v8603_v20   ;;  %6290 = vset.pattern.permute.xlu0 %v10632_v49  ;;  %v2332_v20 = vadd.f32 %v8587_v50, %v8085_v43  ;;  %v2945_v63 = vmul.f32 %v8290_v42, %v8695_v14 }
 0x5bc   :  { %2878 = vperm.xlu0 %6290, %v8708_v18  }
 0x5bd   :  { %v3435_v21 = vpop.permute.xlu1 %3434  ;;  %v3371_v59 = vadd.f32 %v3339_v3, %v3175_v16  ;;  %v2364_v56 = vmul.f32 0.2, %v2332_v20 }
 0x5be   :  { %v3535_v33 = vmul.f32 %v8311_v37, %v3435_v21  ;;  %v8736_v35 = vpop.permute.xlu0 %2654  ;;  %v3337_v21 = vmul.f32 %v8304_v36, %v8706_v28 }
 0x5bf   :  { %6280 = vset.pattern.permute.xlu1 %v10520_v11  ;;  %v8760_v47 = vmax.f32 %v2332_v20, %v2364_v56  ;;  %v2752_v22 = vmul.f32 %v8278_v9, %v8736_v35 }
 0x5c0   :  { %v3567_v55 = vadd.f32 %v3535_v33, %v3371_v59  ;;  %2480 = vperm.xlu1 %6280, %v8653_v0   ;;  %6292 = vset.pattern.permute.xlu0 %v10637_v12 }
 0x5c1   :  { %3270 = vperm.xlu0 %6292, %v8708_v18  }
 0x5c2   :  { %v3827_v53 = vpop.permute.xlu1 %3826  ;;  %v3763_v8 = vadd.f32 %v3731_v46, %v3567_v55 }
 0x5c3   :  { %v3927_v48 = vmul.f32 %v8330_v52, %v3827_v53  ;;  %v8747_v51 = vpop.permute.xlu0 %3046  ;;  %v3729_v53 = vmul.f32 %v8317_v15, %v3623_v7 }
 0x5c4   :  { %6282 = vset.pattern.permute.xlu1 %v10632_v49 }
 0x5c5   :  { %v3959_v29 = vadd.f32 %v3927_v48, %v3763_v8  ;;  %2858 = vperm.xlu1 %6282, %v8653_v0   ;;  %6294 = vset.pattern.permute.xlu0 %v10640_v38 }
 0x5c6   :  { %3662 = vperm.xlu0 %6294, %v8708_v18  }
 0x5c7   :  { %v3998_v43 = vadd.f32 %v8343_v39, %v3959_v29  ;;  %v2643_v6 = vpop.permute.xlu1 %2642 }
 0x5c8   :  { %v2749_v32 = vmul.f32 %v8278_v9, %v2643_v6  ;;  %v8758_v31 = vpop.permute.xlu0 %3438 }
 0x5c9   :  { %v4222_v27 = vsel %vm4190_vm0, %v3998_v43, 0.0  ;;  %6284 = vset.pattern.permute.xlu1 %v10637_v12 }
 0x5ca   :  { %v2781_v17 = vadd.f32 %v2749_v32, %v2585_v10  ;;  %3250 = vperm.xlu1 %6284, %v8653_v0   ;;  %6296 = vset.pattern.permute.xlu0 %v10520_v11  ;;  %v8770_v1 = vadd.f32 %v6665_v4, %v4222_v27 }
 0x5cb   :  { %2495 = vperm.xlu0 %6296, %v8760_v47  }
 0x5cc   :  { %v3035_v5 = vpop.permute.xlu1 %3034  ;;  %v2977_v3 = vadd.f32 %v2945_v63, %v2781_v17  ;;  %5481 = vst.msk [vmem:[%s10420_s19 + $0x50] sm:$0xff] %vm5470_vm8, %v8770_v1  ;;  %v6666_v17 = vld [vmem:[%s10457_s23 + $0x40] sm:$0xff] }
 0x5cd   :  { %v3141_v14 = vmul.f32 %v8297_v44, %v3035_v5  ;;  %v8779_v16 = vpop.permute.xlu0 %3830 }
 0x5ce   :  { %6286 = vset.pattern.permute.xlu1 %v10640_v38 }
 0x5cf   :  { %v3173_v59 = vadd.f32 %v3141_v14, %v2977_v3  ;;  %3642 = vperm.xlu1 %6286, %v8653_v0   ;;  %6298 = vset.pattern.permute.xlu0 %v10632_v49  ;;  %v2335_v0 = vadd.f32 %v8587_v50, %v8088_v2 }
 0x5d0   :  { %2870 = vperm.xlu0 %6298, %v8760_v47  }
 0x5d1   :  { %v3427_v33 = vpop.permute.xlu1 %3426  ;;  %v3369_v46 = vadd.f32 %v3337_v21, %v3173_v59  ;;  %v2367_v43 = vmul.f32 0.2, %v2335_v0  ;;  %v3144_v59 = vmul.f32 %v8297_v44, %v8747_v51 }
 0x5d2   :  { %v3533_v55 = vmul.f32 %v8311_v37, %v3427_v33  ;;  %v8788_v20 = vpop.permute.xlu0 %2646 }
 0x5d3   :  { %6289 = vset.pattern.permute.xlu1 %v10636_v24  ;;  %v8808_v32 = vmax.f32 %v2335_v0, %v2367_v43 }
 0x5d4   :  { %v3565_v8 = vadd.f32 %v3533_v55, %v3369_v46  ;;  %2682 = vperm.xlu1 %6289, %v8708_v18   ;;  %6300 = vset.pattern.permute.xlu0 %v10637_v12 }
 0x5d5   :  { %3262 = vperm.xlu0 %6300, %v8760_v47  }
 0x5d6   :  { %v3819_v28 = vpop.permute.xlu1 %3818  ;;  %v3761_v48 = vadd.f32 %v3729_v53, %v3565_v8  ;;  %v3536_v8 = vmul.f32 %v8311_v37, %v8758_v31  ;;  %v3928_v31 = vmul.f32 %v8330_v52, %v8779_v16  ;;  %v2750_v16 = vmul.f32 %v8278_v9, %v8788_v20 }
 0x5d7   :  { %v3925_v56 = vmul.f32 %v8330_v52, %v3819_v28  ;;  %v8798_v29 = vpop.permute.xlu0 %3038 }
 0x5d8   :  { %6291 = vset.pattern.permute.xlu1 %v10613_v62  ;;  %v3142_v20 = vmul.f32 %v8297_v44, %v8798_v29 }
 0x5d9   :  { %v3957_v7 = vadd.f32 %v3925_v56, %v3761_v48  ;;  %3074 = vperm.xlu1 %6291, %v8708_v18   ;;  %6302 = vset.pattern.permute.xlu0 %v10640_v38 }
 0x5da   :  { %3654 = vperm.xlu0 %6302, %v8760_v47  }
 0x5db   :  { %v3996_v2 = vadd.f32 %v8343_v39, %v3957_v7  ;;  %v2471_v6 = vpop.permute.xlu1 %2470 }
 0x5dc   :  { %v8806_v10 = vpop.permute.xlu0 %3430  ;;  %v2588_v63 = vmul.f32 %v8286_v25, %v2471_v6 }
 0x5dd   :  { %v4220_v27 = vsel %vm4188_vm1, %v3996_v2, 0.0  ;;  %6293 = vset.pattern.permute.xlu1 %v10641_v26 }
 0x5de   :  { %3466 = vperm.xlu1 %6293, %v8708_v18   ;;  %6305 = vset.pattern.permute.xlu0 %v10636_v24  ;;  %v8817_v4 = vadd.f32 %v6666_v17, %v4220_v27  ;;  %v2784_v3 = vadd.f32 %v2752_v22, %v2588_v63 }
 0x5df   :  { %2686 = vperm.xlu0 %6305, %v8808_v32  }
 0x5e0   :  { %v2851_v5 = vpop.permute.xlu1 %2850  ;;  %5479 = vst.msk [vmem:[%s10420_s19 + $0x40] sm:$0xff] %vm5470_vm8, %v8817_v4 }
 0x5e1   :  { %v2948_v14 = vmul.f32 %v8290_v42, %v2851_v5  ;;  %v8828_v21 = vpop.permute.xlu0 %3822 }
 0x5e2   :  { %6295 = vset.pattern.permute.xlu1 %v10644_v57 }
 0x5e3   :  { %v2980_v35 = vadd.f32 %v2948_v14, %v2784_v3  ;;  %3858 = vperm.xlu1 %6295, %v8708_v18   ;;  %6307 = vset.pattern.permute.xlu0 %v10613_v62  ;;  %v2333_v18 = vadd.f32 %v8587_v50, %v8091_v58 }
 0x5e4   :  { %3078 = vperm.xlu0 %6307, %v8808_v32  }
 0x5e5   :  { %v3243_v33 = vpop.permute.xlu1 %3242  ;;  %v3176_v46 = vadd.f32 %v3144_v59, %v2980_v35  ;;  %v2365_v43 = vmul.f32 0.2, %v2333_v18 }
 0x5e6   :  { %v3340_v55 = vmul.f32 %v8304_v36, %v3243_v33  ;;  %v8837_v53 = vpop.permute.xlu0 %2485 }
 0x5e7   :  { %6297 = vset.pattern.permute.xlu1 %v10636_v24  ;;  %v8858_v27 = vmax.f32 %v2333_v18, %v2365_v43 }
 0x5e8   :  { %v3372_v0 = vadd.f32 %v3340_v55, %v3176_v46  ;;  %2674 = vperm.xlu1 %6297, %v8760_v47   ;;  %6309 = vset.pattern.permute.xlu0 %v10641_v26 }
 0x5e9   :  { %3470 = vperm.xlu0 %6309, %v8808_v32  }
 0x5ea   :  { %v3635_v51 = vpop.permute.xlu1 %3634  ;;  %v3568_v28 = vadd.f32 %v3536_v8, %v3372_v0  ;;  %v3534_v0 = vmul.f32 %v8311_v37, %v8806_v10  ;;  %v3926_v10 = vmul.f32 %v8330_v52, %v8828_v21  ;;  %v8918_v21 = vld [vmem:[%s10419_s12] ss:$0 sm:$0xff] }
 0x5eb   :  { %v3732_v48 = vmul.f32 %v8317_v15, %v3635_v51  ;;  %v8848_v56 = vpop.permute.xlu0 %2862 }
 0x5ec   :  { %6299 = vset.pattern.permute.xlu1 %v10613_v62 }
 0x5ed   :  { %v3764_v7 = vadd.f32 %v3732_v48, %v3568_v28  ;;  %3066 = vperm.xlu1 %6299, %v8760_v47   ;;  %6311 = vset.pattern.permute.xlu0 %v10644_v57 }
 0x5ee   :  { %3862 = vperm.xlu0 %6311, %v8808_v32  }
 0x5ef   :  { %v3960_v58 = vadd.f32 %v3928_v31, %v3764_v7  ;;  %v2461_v2 = vpop.permute.xlu1 %2460 }
 0x5f0   :  { %v8856_v6 = vpop.permute.xlu0 %3254  ;;  %v2586_v17 = vmul.f32 %v8286_v25, %v2461_v2 }
 0x5f1   :  { %v3999_v63 = vadd.f32 %v8343_v39, %v3960_v58  ;;  %6301 = vset.pattern.permute.xlu1 %v10641_v26  ;;  %v6667_v39 = vld [vmem:[%s10457_s23 + $0x58] sm:$0xff]  ;;  %v2591_v58 = vmul.f32 %v8286_v25, %v8837_v53  ;;  %v2951_v53 = vmul.f32 %v8290_v42, %v8848_v56  ;;  %v3343_v56 = vmul.f32 %v8304_v36, %v8856_v6 }
 0x5f2   :  { %3458 = vperm.xlu1 %6301, %v8760_v47   ;;  %6313 = vset.pattern.permute.xlu0 %v10636_v24  ;;  %v2782_v14 = vadd.f32 %v2750_v16, %v2586_v17 }
 0x5f3   :  { %2678 = vperm.xlu0 %6313, %v8858_v27   ;;  %v4223_v22 = vsel %vm4191_vm3, %v3999_v63, 0.0 }
 0x5f4   :  { %v2843_v5 = vpop.permute.xlu1 %2842  ;;  %v8872_v3 = vadd.f32 %v6667_v39, %v4223_v22 }
 0x5f5   :  { %v2946_v61 = vmul.f32 %v8290_v42, %v2843_v5  ;;  %v8875_v59 = vpop.permute.xlu0 %3646 }
 0x5f6   :  { %6303 = vset.pattern.permute.xlu1 %v10644_v57  ;;  %5482 = vst.msk [vmem:[%s10420_s19 + $0x58] sm:$0xff] %vm5470_vm8, %v8872_v3 }
 0x5f7   :  { %v2978_v35 = vadd.f32 %v2946_v61, %v2782_v14  ;;  %3850 = vperm.xlu1 %6303, %v8760_v47   ;;  %6315 = vset.pattern.permute.xlu0 %v10613_v62  ;;  %v2338_v47 = vadd.f32 %v8587_v50, %v8116_v30  ;;  %v6669_v61 = vld [vmem:[%s10457_s23 + $0x48] sm:$0xff] }
 0x5f8   :  { %3070 = vperm.xlu0 %6315, %v8858_v27  }
 0x5f9   :  { %v3235_v33 = vpop.permute.xlu1 %3234  ;;  %v3174_v46 = vadd.f32 %v3142_v20, %v2978_v35  ;;  %v2370_v43 = vmul.f32 0.2, %v2338_v47 }
 0x5fa   :  { %v3338_v55 = vmul.f32 %v8304_v36, %v3235_v33  ;;  %v8889_v8 = vpop.permute.xlu0 %2475 }
 0x5fb   :  { %6304 = vset.pattern.permute.xlu1 %v10520_v11  ;;  %v8913_v17 = vmax.f32 %v2338_v47, %v2370_v43  ;;  %v3735_v47 = vmul.f32 %v8317_v15, %v8875_v59 }
 0x5fc   :  { %v3370_v18 = vadd.f32 %v3338_v55, %v3174_v46  ;;  %2510 = vperm.xlu1 %6304, %v8808_v32   ;;  %6317 = vset.pattern.permute.xlu0 %v10641_v26 }
 0x5fd   :  { %3462 = vperm.xlu0 %6317, %v8858_v27  }
 0x5fe   :  { %v3627_v29 = vpop.permute.xlu1 %3626  ;;  %v3566_v51 = vadd.f32 %v3534_v0, %v3370_v18 }
 0x5ff   :  { %v3730_v28 = vmul.f32 %v8317_v15, %v3627_v29  ;;  %v8900_v48 = vpop.permute.xlu0 %2854 }
 0x600   :  { %6306 = vset.pattern.permute.xlu1 %v10632_v49 }
 0x601   :  { %v3762_v31 = vadd.f32 %v3730_v28, %v3566_v51  ;;  %2882 = vperm.xlu1 %6306, %v8808_v32   ;;  %6319 = vset.pattern.permute.xlu0 %v10644_v57 }
 0x602   :  { %3854 = vperm.xlu0 %6319, %v8858_v27  }
 0x603   :  { %v3958_v30 = vadd.f32 %v3926_v10, %v3762_v31  ;;  %v2667_v7 = vpop.permute.xlu1 %2666 }
 0x604   :  { %v2755_v2 = vmul.f32 %v8278_v9, %v2667_v7  ;;  %v8911_v63 = vpop.permute.xlu0 %3246 }
 0x605   :  { %v3997_v16 = vadd.f32 %v8918_v21, %v3958_v30  ;;  %6308 = vset.pattern.permute.xlu1 %v10637_v12 }
 0x606   :  { %v2787_v22 = vadd.f32 %v2755_v2, %v2591_v58  ;;  %3274 = vperm.xlu1 %6308, %v8808_v32   ;;  %6320 = vset.pattern.permute.xlu0 %v10520_v11  ;;  %v10654_v58 = vld [vmem:[#allocation59_spill] sm:$0xff]  ;;  %v2589_v2 = vmul.f32 %v8286_v25, %v8889_v8  ;;  %v6670_v8 = vld [vmem:[%s10457_s23 + $0x70] sm:$0xff] }
 0x607   :  { %2525 = vperm.xlu0 %6320, %v8913_v17   ;;  %v4221_v5 = vsel %vm4189_vm4, %v3997_v16, 0.0  ;;  %vm4194_vm5 = vcmp.eq.s32.totalorder %v10654_v58, 1 }
 0x608   :  { %v3059_v39 = vpop.permute.xlu1 %3058  ;;  %v2983_v14 = vadd.f32 %v2951_v53, %v2787_v22  ;;  %v8931_v20 = vadd.f32 %v6669_v61, %v4221_v5 }
 0x609   :  { %v3147_v13 = vmul.f32 %v8297_v44, %v3059_v39  ;;  %v3639_v35 = vpop.permute.xlu0 %3638  ;;  %v2949_v39 = vmul.f32 %v8290_v42, %v8900_v48 }
 0x60a   :  { %6310 = vset.pattern.permute.xlu1 %v10640_v38  ;;  %5480 = vst.msk [vmem:[%s10420_s19 + $0x48] sm:$0xff] %vm5470_vm8, %v8931_v20 }
 0x60b   :  { %v3179_v33 = vadd.f32 %v3147_v13, %v2983_v14  ;;  %3666 = vperm.xlu1 %6310, %v8808_v32   ;;  %6322 = vset.pattern.permute.xlu0 %v10632_v49  ;;  %v10653_v32 = vld [vmem:[#allocation53_spill] sm:$0xff] }
 0x60c   :  { %2894 = vperm.xlu0 %6322, %v8913_v17   ;;  %v2336_v6 = vadd.f32 %v8587_v50, %v10653_v32 }
 0x60d   :  { %v3451_v46 = vpop.permute.xlu1 %3450  ;;  %v3375_v55 = vadd.f32 %v3343_v56, %v3179_v33 }
 0x60e   :  { %v3539_v0 = vmul.f32 %v8311_v37, %v3451_v46  ;;  %v8946_v18 = vpop.permute.xlu0 %2670  ;;  %v2368_v31 = vmul.f32 0.2, %v2336_v6  ;;  %v3341_v46 = vmul.f32 %v8304_v36, %v8911_v63 }
 0x60f   :  { %6312 = vset.pattern.permute.xlu1 %v10520_v11 }
 0x610   :  { %v3571_v29 = vadd.f32 %v3539_v0, %v3375_v55  ;;  %2500 = vperm.xlu1 %6312, %v8858_v27   ;;  %6324 = vset.pattern.permute.xlu0 %v10637_v12  ;;  %v8970_v22 = vmax.f32 %v2336_v6, %v2368_v31  ;;  %v3733_v6 = vmul.f32 %v8317_v15, %v3639_v35 }
 0x611   :  { %3286 = vperm.xlu0 %6324, %v8913_v17  }
 0x612   :  { %v3843_v51 = vpop.permute.xlu1 %3842  ;;  %v3767_v28 = vadd.f32 %v3735_v47, %v3571_v29 }
 0x613   :  { %v3931_v43 = vmul.f32 %v8330_v52, %v3843_v51  ;;  %v8957_v10 = vpop.permute.xlu0 %3062 }
 0x614   :  { %6314 = vset.pattern.permute.xlu1 %v10632_v49 }
 0x615   :  { %v3963_v59 = vadd.f32 %v3931_v43, %v3767_v28  ;;  %2874 = vperm.xlu1 %6314, %v8858_v27   ;;  %6326 = vset.pattern.permute.xlu0 %v10640_v38 }
 0x616   :  { %3678 = vperm.xlu0 %6326, %v8913_v17  }
 0x617   :  { %v4002_v30 = vadd.f32 %v8918_v21, %v3963_v59  ;;  %v2659_v7 = vpop.permute.xlu1 %2658 }
 0x618   :  { %v2753_v16 = vmul.f32 %v8278_v9, %v2659_v7  ;;  %v8968_v53 = vpop.permute.xlu0 %3454 }
 0x619   :  { %v4226_v5 = vsel %vm4194_vm5, %v4002_v30, 0.0  ;;  %6316 = vset.pattern.permute.xlu1 %v10637_v12 }
 0x61a   :  { %v2785_v14 = vadd.f32 %v2753_v16, %v2589_v2  ;;  %3266 = vperm.xlu1 %6316, %v8858_v27   ;;  %6328 = vset.pattern.permute.xlu0 %v10520_v11  ;;  %v8980_v61 = vadd.f32 %v6670_v8, %v4226_v5  ;;  %v10656_v2 = vld [vmem:[#allocation51_spill] sm:$0xff] }
 0x61b   :  { %2515 = vperm.xlu0 %6328, %v8970_v22   ;;  %vm4192_vm6 = vcmp.eq.s32.totalorder %v10656_v2, 1  ;;  %v6671_v8 = vld [vmem:[%s10457_s23 + $0x60] sm:$0xff] }
 0x61c   :  { %v3051_v13 = vpop.permute.xlu1 %3050  ;;  %v2981_v56 = vadd.f32 %v2949_v39, %v2785_v14  ;;  %5485 = vst.msk [vmem:[%s10420_s19 + $0x70] sm:$0xff] %vm5470_vm8, %v8980_v61 }
 0x61d   :  { %v3145_v48 = vmul.f32 %v8297_v44, %v3051_v13  ;;  %v8989_v33 = vpop.permute.xlu0 %3846 }
 0x61e   :  { %6318 = vset.pattern.permute.xlu1 %v10640_v38 }
 0x61f   :  { %v3177_v55 = vadd.f32 %v3145_v48, %v2981_v56  ;;  %3658 = vperm.xlu1 %6318, %v8858_v27   ;;  %6330 = vset.pattern.permute.xlu0 %v10632_v49  ;;  %v10655_v27 = vld [vmem:[#allocation49_spill] sm:$0xff]  ;;  %v2756_v56 = vmul.f32 %v8278_v9, %v8946_v18 }
 0x620   :  { %2886 = vperm.xlu0 %6330, %v8970_v22   ;;  %v2339_v63 = vadd.f32 %v8587_v50, %v10655_v27 }
 0x621   :  { %v3443_v0 = vpop.permute.xlu1 %3442  ;;  %v3373_v47 = vadd.f32 %v3341_v46, %v3177_v55 }
 0x622   :  { %v3537_v29 = vmul.f32 %v8311_v37, %v3443_v0  ;;  %v8998_v32 = vpop.permute.xlu0 %2662  ;;  %v2371_v30 = vmul.f32 0.2, %v2339_v63 }
 0x623   :  { %6321 = vset.pattern.permute.xlu1 %v10636_v24 }
 0x624   :  { %v3569_v51 = vadd.f32 %v3537_v29, %v3373_v47  ;;  %2698 = vperm.xlu1 %6321, %v8913_v17   ;;  %6332 = vset.pattern.permute.xlu0 %v10637_v12  ;;  %v9018_v5 = vmax.f32 %v2339_v63, %v2371_v30  ;;  %v3148_v47 = vmul.f32 %v8297_v44, %v8957_v10 }
 0x625   :  { %3278 = vperm.xlu0 %6332, %v8970_v22   ;;  %v3540_v63 = vmul.f32 %v8311_v37, %v8968_v53  ;;  %v3932_v53 = vmul.f32 %v8330_v52, %v8989_v33  ;;  %v10658_v33 = vld [vmem:[#allocation55_spill] sm:$0xff] }
 0x626   :  { %v3835_v28 = vpop.permute.xlu1 %3834  ;;  %v3765_v43 = vadd.f32 %v3733_v6, %v3569_v51  ;;  %vm4195_vm7 = vcmp.eq.s32.totalorder %v10658_v33, 1 }
 0x627   :  { %v3929_v31 = vmul.f32 %v8330_v52, %v3835_v28  ;;  %v9008_v59 = vpop.permute.xlu0 %3054 }
 0x628   :  { %6323 = vset.pattern.permute.xlu1 %v10613_v62 }
 0x629   :  { %v3961_v35 = vadd.f32 %v3929_v31, %v3765_v43  ;;  %3090 = vperm.xlu1 %6323, %v8913_v17   ;;  %6334 = vset.pattern.permute.xlu0 %v10640_v38 }
 0x62a   :  { %3670 = vperm.xlu0 %6334, %v8970_v22  }
 0x62b   :  { %v4000_v7 = vadd.f32 %v8918_v21, %v3961_v35  ;;  %v2491_v58 = vpop.permute.xlu1 %2490 }
 0x62c   :  { %v9016_v16 = vpop.permute.xlu0 %3446  ;;  %v2592_v14 = vmul.f32 %v8286_v25, %v2491_v58 }
 0x62d   :  { %v4224_v39 = vsel %vm4192_vm6, %v4000_v7, 0.0  ;;  %6325 = vset.pattern.permute.xlu1 %v10641_v26 }
 0x62e   :  { %3482 = vperm.xlu1 %6325, %v8913_v17   ;;  %6337 = vset.pattern.permute.xlu0 %v10636_v24  ;;  %v9027_v13 = vadd.f32 %v6671_v8, %v4224_v39  ;;  %v2788_v46 = vadd.f32 %v2756_v56, %v2592_v14 }
 0x62f   :  { %2702 = vperm.xlu0 %6337, %v9018_v5  }
 0x630   :  { %v2867_v48 = vpop.permute.xlu1 %2866  ;;  %5483 = vst.msk [vmem:[%s10420_s19 + $0x60] sm:$0xff] %vm5470_vm8, %v9027_v13 }
 0x631   :  { %v2952_v55 = vmul.f32 %v8290_v42, %v2867_v48  ;;  %v9038_v0 = vpop.permute.xlu0 %3838 }
 0x632   :  { %6327 = vset.pattern.permute.xlu1 %v10644_v57 }
 0x633   :  { %v2984_v18 = vadd.f32 %v2952_v55, %v2788_v46  ;;  %3874 = vperm.xlu1 %6327, %v8913_v17   ;;  %6339 = vset.pattern.permute.xlu0 %v10613_v62  ;;  %v10657_v17 = vld [vmem:[#allocation61_spill] sm:$0xff]  ;;  %v2754_v46 = vmul.f32 %v8278_v9, %v8998_v32  ;;  %v3146_v32 = vmul.f32 %v8297_v44, %v9008_v59 }
 0x634   :  { %3094 = vperm.xlu0 %6339, %v9018_v5   ;;  %v2337_v10 = vadd.f32 %v8587_v50, %v10657_v17 }
 0x635   :  { %v3259_v29 = vpop.permute.xlu1 %3258  ;;  %v3180_v6 = vadd.f32 %v3148_v47, %v2984_v18  ;;  %v6672_v18 = vld [vmem:[%s10457_s23 + $0x78] sm:$0xff] }
 0x636   :  { %v3344_v51 = vmul.f32 %v8304_v36, %v3259_v29  ;;  %v9047_v27 = vpop.permute.xlu0 %2505  ;;  %v2369_v7 = vmul.f32 0.2, %v2337_v10 }
 0x637   :  { %6329 = vset.pattern.permute.xlu1 %v10636_v24 }
 0x638   :  { %v3376_v28 = vadd.f32 %v3344_v51, %v3180_v6  ;;  %2690 = vperm.xlu1 %6329, %v8970_v22   ;;  %6341 = vset.pattern.permute.xlu0 %v10641_v26  ;;  %v9068_v8 = vmax.f32 %v2337_v10, %v2369_v7 }
 0x639   :  { %3486 = vperm.xlu0 %6341, %v9018_v5  }
 0x63a   :  { %v3651_v43 = vpop.permute.xlu1 %3650  ;;  %v3572_v31 = vadd.f32 %v3540_v63, %v3376_v28 }
 0x63b   :  { %v3736_v30 = vmul.f32 %v8317_v15, %v3651_v43  ;;  %v9058_v35 = vpop.permute.xlu0 %2878 }
 0x63c   :  { %6331 = vset.pattern.permute.xlu1 %v10613_v62 }
 0x63d   :  { %v3768_v58 = vadd.f32 %v3736_v30, %v3572_v31  ;;  %3082 = vperm.xlu1 %6331, %v8970_v22   ;;  %6343 = vset.pattern.permute.xlu0 %v10644_v57  ;;  %v3538_v30 = vmul.f32 %v8311_v37, %v9016_v16  ;;  %v3930_v16 = vmul.f32 %v8330_v52, %v9038_v0 }
 0x63e   :  { %3878 = vperm.xlu0 %6343, %v9018_v5  }
 0x63f   :  { %v3964_v2 = vadd.f32 %v3932_v53, %v3768_v58  ;;  %v2481_v39 = vpop.permute.xlu1 %2480 }
 0x640   :  { %v9066_v14 = vpop.permute.xlu0 %3270  ;;  %v2590_v48 = vmul.f32 %v8286_v25, %v2481_v39 }
 0x641   :  { %v4003_v56 = vadd.f32 %v8918_v21, %v3964_v2  ;;  %6333 = vset.pattern.permute.xlu1 %v10641_v26 }
 0x642   :  { %3474 = vperm.xlu1 %6333, %v8970_v22   ;;  %6345 = vset.pattern.permute.xlu0 %v10636_v24  ;;  %v2786_v6 = vadd.f32 %v2754_v46, %v2590_v48  ;;  %v2595_v46 = vmul.f32 %v8286_v25, %v9047_v27 }
 0x643   :  { %2694 = vperm.xlu0 %6345, %v9068_v8   ;;  %v4227_v55 = vsel %vm4195_vm7, %v4003_v56, 0.0 }
 0x644   :  { %v2859_v47 = vpop.permute.xlu1 %2858  ;;  %v9082_v29 = vadd.f32 %v6672_v18, %v4227_v55 }
 0x645   :  { %v2950_v51 = vmul.f32 %v8290_v42, %v2859_v47  ;;  %v9085_v63 = vpop.permute.xlu0 %3662 }
 0x646   :  { %6335 = vset.pattern.permute.xlu1 %v10644_v57  ;;  %5486 = vst.msk [vmem:[%s10420_s19 + $0x78] sm:$0xff] %vm5470_vm8, %v9082_v29 }
 0x647   :  { %v2982_v28 = vadd.f32 %v2950_v51, %v2786_v6  ;;  %3866 = vperm.xlu1 %6335, %v8970_v22   ;;  %6347 = vset.pattern.permute.xlu0 %v10613_v62  ;;  %v10659_v22 = vld [vmem:[#allocation57_spill] sm:$0xff]  ;;  %v10660_v6 = vld [vmem:[#allocation47_spill] sm:$0xff]  ;;  %v2955_v51 = vmul.f32 %v8290_v42, %v9058_v35  ;;  %v3347_v35 = vmul.f32 %v8304_v36, %v9066_v14  ;;  %v10661_v14 = vld [vmem:[#allocation14_spill] sm:$0xff] }
 0x648   :  { %3086 = vperm.xlu0 %6347, %v9068_v8   ;;  %v2342_v59 = vadd.f32 %v8587_v50, %v10659_v22  ;;  %vm4193_vm9 = vcmp.eq.s32.totalorder %v10660_v6, 1 }
 0x649   :  { %v3251_v17 = vpop.permute.xlu1 %3250  ;;  %v3178_v10 = vadd.f32 %v3146_v32, %v2982_v28 }
 0x64a   :  { %v3342_v43 = vmul.f32 %v8304_v36, %v3251_v17  ;;  %v9099_v31 = vpop.permute.xlu0 %2495  ;;  %v2374_v56 = vmul.f32 0.2, %v2342_v59 }
 0x64b   :  { %6336 = vset.pattern.permute.xlu1 %v10520_v11 }
 0x64c   :  { %v3374_v7 = vadd.f32 %v3342_v43, %v3178_v10  ;;  %2530 = vperm.xlu1 %6336, %v9018_v5   ;;  %6349 = vset.pattern.permute.xlu0 %v10641_v26  ;;  %v9123_v18 = vmax.f32 %v2342_v59, %v2374_v56  ;;  %v6673_v10 = vld [vmem:[%s10457_s23 + $0x68] sm:$0xff]  ;;  %v3739_v56 = vmul.f32 %v8317_v15, %v9085_v63 }
 0x64d   :  { %3478 = vperm.xlu0 %6349, %v9068_v8  }
 0x64e   :  { %v3643_v53 = vpop.permute.xlu1 %3642  ;;  %v3570_v58 = vadd.f32 %v3538_v30, %v3374_v7 }
 0x64f   :  { %v3734_v2 = vmul.f32 %v8317_v15, %v3643_v53  ;;  %v9110_v39 = vpop.permute.xlu0 %2870 }
 0x650   :  { %6338 = vset.pattern.permute.xlu1 %v10632_v49 }
 0x651   :  { %v3766_v48 = vadd.f32 %v3734_v2, %v3570_v58  ;;  %2898 = vperm.xlu1 %6338, %v9018_v5   ;;  %6351 = vset.pattern.permute.xlu0 %v10644_v57 }
 0x652   :  { %3870 = vperm.xlu0 %6351, %v9068_v8  }
 0x653   :  { %v3962_v50 = vadd.f32 %v3930_v16, %v3766_v48  ;;  %v2683_v33 = vpop.permute.xlu1 %2682 }
 0x654   :  { %v2759_v55 = vmul.f32 %v8278_v9, %v2683_v33  ;;  %v9121_v47 = vpop.permute.xlu0 %3262 }
 0x655   :  { %v4001_v0 = vadd.f32 %v8918_v21, %v3962_v50  ;;  %6340 = vset.pattern.permute.xlu1 %v10637_v12 }
 0x656   :  { %v2791_v32 = vadd.f32 %v2759_v55, %v2595_v46  ;;  %3290 = vperm.xlu1 %6340, %v9018_v5   ;;  %6352 = vset.pattern.permute.xlu0 %v10520_v11 }
 0x657   :  { %2545 = vperm.xlu0 %6352, %v9123_v18   ;;  %v4225_v27 = vsel %vm4193_vm9, %v4001_v0, 0.0 }
 0x658   :  { %v3075_v28 = vpop.permute.xlu1 %3074  ;;  %v2987_v17 = vadd.f32 %v2955_v51, %v2791_v32  ;;  %v9136_v43 = vadd.f32 %v6673_v10, %v4225_v27  ;;  %v10662_v32 = vld [vmem:[#allocation16_spill] sm:$0xff]  ;;  %v2593_v27 = vmul.f32 %v8286_v25, %v9099_v31 }
 0x659   :  { %v3151_v30 = vmul.f32 %v8297_v44, %v3075_v28  ;;  %v3655_v7 = vpop.permute.xlu0 %3654  ;;  %vm4198_vm10 = vcmp.eq.s32.totalorder %v10662_v32, 1  ;;  %v6675_v31 = vld [vmem:[%s10457_s23 + $0x90] sm:$0xff] }
 0x65a   :  { %6342 = vset.pattern.permute.xlu1 %v10640_v38  ;;  %5484 = vst.msk [vmem:[%s10420_s19 + $0x68] sm:$0xff] %vm5470_vm8, %v9136_v43 }
 0x65b   :  { %v3183_v22 = vadd.f32 %v3151_v30, %v2987_v17  ;;  %3682 = vperm.xlu1 %6342, %v9018_v5   ;;  %6354 = vset.pattern.permute.xlu0 %v10632_v49  ;;  %v9161_v5 = vld [vmem:[%s10417_s10] ss:$0 sm:$0xff] }
 0x65c   :  { %2910 = vperm.xlu0 %6354, %v9123_v18   ;;  %v2340_v48 = vadd.f32 %v9161_v5, %v10661_v14 }
 0x65d   :  { %v3467_v59 = vpop.permute.xlu1 %3466  ;;  %v3379_v53 = vadd.f32 %v3347_v35, %v3183_v22  ;;  %v2953_v35 = vmul.f32 %v8290_v42, %v9110_v39 }
 0x65e   :  { %v3543_v58 = vmul.f32 %v8311_v37, %v3467_v59  ;;  %v9151_v2 = vpop.permute.xlu0 %2686  ;;  %v2372_v55 = vmul.f32 0.2, %v2340_v48 }
 0x65f   :  { %6344 = vset.pattern.permute.xlu1 %v10520_v11 }
 0x660   :  { %v3575_v16 = vadd.f32 %v3543_v58, %v3379_v53  ;;  %2520 = vperm.xlu1 %6344, %v9068_v8   ;;  %6356 = vset.pattern.permute.xlu0 %v10637_v12  ;;  %v9180_v10 = vmax.f32 %v2340_v48, %v2372_v55  ;;  %v3737_v55 = vmul.f32 %v8317_v15, %v3655_v7 }
 0x661   :  { %3302 = vperm.xlu0 %6356, %v9123_v18  }
 0x662   :  { %v3859_v50 = vpop.permute.xlu1 %3858  ;;  %v3771_v33 = vadd.f32 %v3739_v56, %v3575_v16  ;;  %v3345_v16 = vmul.f32 %v8304_v36, %v9121_v47 }
 0x663   :  { %v3935_v46 = vmul.f32 %v8330_v52, %v3859_v50  ;;  %v9167_v63 = vpop.permute.xlu0 %3078 }
 0x664   :  { %6346 = vset.pattern.permute.xlu1 %v10632_v49 }
 0x665   :  { %v3967_v0 = vadd.f32 %v3935_v46, %v3771_v33  ;;  %2890 = vperm.xlu1 %6346, %v9068_v8   ;;  %6358 = vset.pattern.permute.xlu0 %v10640_v38 }
 0x666   :  { %3694 = vperm.xlu0 %6358, %v9123_v18  }
 0x667   :  { %v4006_v6 = vadd.f32 %v8918_v21, %v3967_v0  ;;  %v2675_v51 = vpop.permute.xlu1 %2674 }
 0x668   :  { %v2757_v28 = vmul.f32 %v8278_v9, %v2675_v51  ;;  %v9178_v17 = vpop.permute.xlu0 %3470 }
 0x669   :  { %v4230_v30 = vsel %vm4198_vm10, %v4006_v6, 0.0  ;;  %6348 = vset.pattern.permute.xlu1 %v10637_v12 }
 0x66a   :  { %v2789_v22 = vadd.f32 %v2757_v28, %v2593_v27  ;;  %3282 = vperm.xlu1 %6348, %v9068_v8   ;;  %6360 = vset.pattern.permute.xlu0 %v10520_v11  ;;  %v9190_v59 = vadd.f32 %v6675_v31, %v4230_v30 }
 0x66b   :  { %2535 = vperm.xlu0 %6360, %v9180_v10  }
 0x66c   :  { %v3067_v53 = vpop.permute.xlu1 %3066  ;;  %v2985_v58 = vadd.f32 %v2953_v35, %v2789_v22  ;;  %5489 = vst.msk [vmem:[%s10420_s19 + $0x90] sm:$0xff] %vm5470_vm8, %v9190_v59  ;;  %v10664_v22 = vld [vmem:[#allocation12_spill] sm:$0xff] }
 0x66d   :  { %v3149_v39 = vmul.f32 %v8297_v44, %v3067_v53  ;;  %v9199_v56 = vpop.permute.xlu0 %3862  ;;  %vm4196_vm11 = vcmp.eq.s32.totalorder %v10664_v22, 1 }
 0x66e   :  { %6350 = vset.pattern.permute.xlu1 %v10640_v38 }
 0x66f   :  { %v3181_v14 = vadd.f32 %v3149_v39, %v2985_v58  ;;  %3674 = vperm.xlu1 %6350, %v9068_v8   ;;  %6362 = vset.pattern.permute.xlu0 %v10632_v49  ;;  %v10663_v8 = vld [vmem:[#allocation10_spill] sm:$0xff] }
 0x670   :  { %2902 = vperm.xlu0 %6362, %v9180_v10   ;;  %v2343_v47 = vadd.f32 %v9161_v5, %v10663_v8  ;;  %v3152_v8 = vmul.f32 %v8297_v44, %v9167_v63 }
 0x671   :  { %v3459_v48 = vpop.permute.xlu1 %3458  ;;  %v3377_v50 = vadd.f32 %v3345_v16, %v3181_v14  ;;  %v6676_v16 = vld [vmem:[%s10457_s23 + $0x80] sm:$0xff] }
 0x672   :  { %v3541_v33 = vmul.f32 %v8311_v37, %v3459_v48  ;;  %v9208_v46 = vpop.permute.xlu0 %2678  ;;  %v2375_v28 = vmul.f32 0.2, %v2343_v47  ;;  %v2760_v48 = vmul.f32 %v8278_v9, %v9151_v2 }
 0x673   :  { %6353 = vset.pattern.permute.xlu1 %v10636_v24 }
 0x674   :  { %v3573_v0 = vadd.f32 %v3541_v33, %v3377_v50  ;;  %2714 = vperm.xlu1 %6353, %v9123_v18   ;;  %6364 = vset.pattern.permute.xlu0 %v10637_v12  ;;  %v9228_v53 = vmax.f32 %v2343_v47, %v2375_v28  ;;  %v3544_v28 = vmul.f32 %v8311_v37, %v9178_v17 }
 0x675   :  { %3294 = vperm.xlu0 %6364, %v9180_v10   ;;  %v3936_v17 = vmul.f32 %v8330_v52, %v9199_v56  ;;  %v10666_v56 = vld [vmem:[#allocation22_spill] sm:$0xff] }
 0x676   :  { %v3851_v6 = vpop.permute.xlu1 %3850  ;;  %v3769_v51 = vadd.f32 %v3737_v55, %v3573_v0  ;;  %vm4199_vm12 = vcmp.eq.s32.totalorder %v10666_v56, 1 }
 0x677   :  { %v3933_v32 = vmul.f32 %v8330_v52, %v3851_v6  ;;  %v9218_v27 = vpop.permute.xlu0 %3070 }
 0x678   :  { %6355 = vset.pattern.permute.xlu1 %v10613_v62 }
 0x679   :  { %v3965_v7 = vadd.f32 %v3933_v32, %v3769_v51  ;;  %3106 = vperm.xlu1 %6355, %v9123_v18   ;;  %6366 = vset.pattern.permute.xlu0 %v10640_v38 }
 0x67a   :  { %3686 = vperm.xlu0 %6366, %v9180_v10  }
 0x67b   :  { %v4004_v30 = vadd.f32 %v8918_v21, %v3965_v7  ;;  %v2511_v35 = vpop.permute.xlu1 %2510 }
 0x67c   :  { %v9226_v31 = vpop.permute.xlu0 %3462  ;;  %v2596_v39 = vmul.f32 %v8286_v25, %v2511_v35 }
 0x67d   :  { %v4228_v58 = vsel %vm4196_vm11, %v4004_v30, 0.0  ;;  %6357 = vset.pattern.permute.xlu1 %v10641_v26 }
 0x67e   :  { %3498 = vperm.xlu1 %6357, %v9123_v18   ;;  %6369 = vset.pattern.permute.xlu0 %v10636_v24  ;;  %v9237_v14 = vadd.f32 %v6676_v16, %v4228_v58  ;;  %v2792_v33 = vadd.f32 %v2760_v48, %v2596_v39 }
 0x67f   :  { %2718 = vperm.xlu0 %6369, %v9228_v53  }
 0x680   :  { %v2883_v50 = vpop.permute.xlu1 %2882  ;;  %5487 = vst.msk [vmem:[%s10420_s19 + $0x80] sm:$0xff] %vm5470_vm8, %v9237_v14 }
 0x681   :  { %v2956_v55 = vmul.f32 %v8290_v42, %v2883_v50  ;;  %v9248_v0 = vpop.permute.xlu0 %3854 }
 0x682   :  { %6359 = vset.pattern.permute.xlu1 %v10644_v57 }
 0x683   :  { %v2988_v2 = vadd.f32 %v2956_v55, %v2792_v33  ;;  %3890 = vperm.xlu1 %6359, %v9123_v18   ;;  %6371 = vset.pattern.permute.xlu0 %v10613_v62  ;;  %v10665_v18 = vld [vmem:[#allocation20_spill] sm:$0xff] }
 0x684   :  { %3110 = vperm.xlu0 %6371, %v9228_v53   ;;  %v2341_v63 = vadd.f32 %v9161_v5, %v10665_v18 }
 0x685   :  { %v3275_v47 = vpop.permute.xlu1 %3274  ;;  %v3184_v6 = vadd.f32 %v3152_v8, %v2988_v2 }
 0x686   :  { %v3348_v51 = vmul.f32 %v8304_v36, %v3275_v47  ;;  %v9257_v32 = vpop.permute.xlu0 %2525  ;;  %v2373_v39 = vmul.f32 0.2, %v2341_v63  ;;  %v2758_v47 = vmul.f32 %v8278_v9, %v9208_v46  ;;  %v3150_v46 = vmul.f32 %v8297_v44, %v9218_v27 }
 0x687   :  { %6361 = vset.pattern.permute.xlu1 %v10636_v24 }
 0x688   :  { %v3380_v7 = vadd.f32 %v3348_v51, %v3184_v6  ;;  %2706 = vperm.xlu1 %6361, %v9180_v10   ;;  %6373 = vset.pattern.permute.xlu0 %v10641_v26  ;;  %v9278_v55 = vmax.f32 %v2341_v63, %v2373_v39 }
 0x689   :  { %3502 = vperm.xlu0 %6373, %v9228_v53  }
 0x68a   :  { %v3667_v30 = vpop.permute.xlu1 %3666  ;;  %v3576_v35 = vadd.f32 %v3544_v28, %v3380_v7  ;;  %v6677_v28 = vld [vmem:[%s10457_s23 + $0x98] sm:$0xff] }
 0x68b   :  { %v3740_v22 = vmul.f32 %v8317_v15, %v3667_v30  ;;  %v9268_v58 = vpop.permute.xlu0 %2894 }
 0x68c   :  { %6363 = vset.pattern.permute.xlu1 %v10613_v62 }
 0x68d   :  { %v3772_v16 = vadd.f32 %v3740_v22, %v3576_v35  ;;  %3098 = vperm.xlu1 %6363, %v9180_v10   ;;  %6375 = vset.pattern.permute.xlu0 %v10644_v57 }
 0x68e   :  { %3894 = vperm.xlu0 %6375, %v9228_v53  }
 0x68f   :  { %v3968_v48 = vadd.f32 %v3936_v17, %v3772_v16  ;;  %v2501_v50 = vpop.permute.xlu1 %2500 }
 0x690   :  { %v9276_v33 = vpop.permute.xlu0 %3286  ;;  %v2594_v2 = vmul.f32 %v8286_v25, %v2501_v50 }
 0x691   :  { %v4007_v8 = vadd.f32 %v8918_v21, %v3968_v48  ;;  %6365 = vset.pattern.permute.xlu1 %v10641_v26  ;;  %v3542_v48 = vmul.f32 %v8311_v37, %v9226_v31  ;;  %v3934_v31 = vmul.f32 %v8330_v52, %v9248_v0 }
 0x692   :  { %3490 = vperm.xlu1 %6365, %v9180_v10   ;;  %6377 = vset.pattern.permute.xlu0 %v10636_v24  ;;  %v2790_v18 = vadd.f32 %v2758_v47, %v2594_v2 }
 0x693   :  { %2710 = vperm.xlu0 %6377, %v9278_v55   ;;  %v4231_v6 = vsel %vm4199_vm12, %v4007_v8, 0.0 }
 0x694   :  { %v2875_v51 = vpop.permute.xlu1 %2874  ;;  %v9292_v7 = vadd.f32 %v6677_v28, %v4231_v6 }
 0x695   :  { %v2954_v63 = vmul.f32 %v8290_v42, %v2875_v51  ;;  %v9295_v30 = vpop.permute.xlu0 %3678 }
 0x696   :  { %6367 = vset.pattern.permute.xlu1 %v10644_v57  ;;  %5490 = vst.msk [vmem:[%s10420_s19 + $0x98] sm:$0xff] %vm5470_vm8, %v9292_v7 }
 0x697   :  { %v2986_v35 = vadd.f32 %v2954_v63, %v2790_v18  ;;  %3882 = vperm.xlu1 %6367, %v9180_v10   ;;  %6379 = vset.pattern.permute.xlu0 %v10613_v62  ;;  %v10667_v10 = vld [vmem:[#allocation18_spill] sm:$0xff]  ;;  %v2599_v63 = vmul.f32 %v8286_v25, %v9257_v32 }
 0x698   :  { %3102 = vperm.xlu0 %6379, %v9278_v55   ;;  %v2346_v27 = vadd.f32 %v9161_v5, %v10667_v10 }
 0x699   :  { %v3267_v22 = vpop.permute.xlu1 %3266  ;;  %v3182_v39 = vadd.f32 %v3150_v46, %v2986_v35 }
 0x69a   :  { %v3346_v17 = vmul.f32 %v8304_v36, %v3267_v22  ;;  %v9309_v16 = vpop.permute.xlu0 %2515  ;;  %v2378_v6 = vmul.f32 0.2, %v2346_v27 }
 0x69b   :  { %6368 = vset.pattern.permute.xlu1 %v10520_v11 }
 0x69c   :  { %v3378_v50 = vadd.f32 %v3346_v17, %v3182_v39  ;;  %2550 = vperm.xlu1 %6368, %v9228_v53   ;;  %6381 = vset.pattern.permute.xlu0 %v10641_v26  ;;  %v9333_v22 = vmax.f32 %v2346_v27, %v2378_v6  ;;  %v10668_v39 = vld [vmem:[#allocation8_spill] sm:$0xff]  ;;  %v2959_v17 = vmul.f32 %v8290_v42, %v9268_v58 }
 0x69d   :  { %3494 = vperm.xlu0 %6381, %v9278_v55   ;;  %vm4197_vm13 = vcmp.eq.s32.totalorder %v10668_v39, 1  ;;  %v6678_v27 = vld [vmem:[%s10457_s23 + $0x88] sm:$0xff]  ;;  %v3351_v58 = vmul.f32 %v8304_v36, %v9276_v33 }
 0x69e   :  { %v3659_v8 = vpop.permute.xlu1 %3658  ;;  %v3574_v2 = vadd.f32 %v3542_v48, %v3378_v50 }
 0x69f   :  { %v3738_v56 = vmul.f32 %v8317_v15, %v3659_v8  ;;  %v9320_v47 = vpop.permute.xlu0 %2886 }
 0x6a0   :  { %6370 = vset.pattern.permute.xlu1 %v10632_v49 }
 0x6a1   :  { %v3770_v51 = vadd.f32 %v3738_v56, %v3574_v2  ;;  %2914 = vperm.xlu1 %6370, %v9228_v53   ;;  %6383 = vset.pattern.permute.xlu0 %v10644_v57 }
 0x6a2   :  { %3886 = vperm.xlu0 %6383, %v9278_v55  }
 0x6a3   :  { %v3966_v28 = vadd.f32 %v3934_v31, %v3770_v51  ;;  %v2699_v18 = vpop.permute.xlu1 %2698 }
 0x6a4   :  { %v2763_v46 = vmul.f32 %v8278_v9, %v2699_v18  ;;  %v9331_v35 = vpop.permute.xlu0 %3278 }
 0x6a5   :  { %v4005_v0 = vadd.f32 %v8918_v21, %v3966_v28  ;;  %6372 = vset.pattern.permute.xlu1 %v10637_v12 }
 0x6a6   :  { %v2795_v48 = vadd.f32 %v2763_v46, %v2599_v63  ;;  %3306 = vperm.xlu1 %6372, %v9228_v53   ;;  %6384 = vset.pattern.permute.xlu0 %v10520_v11  ;;  %v3743_v63 = vmul.f32 %v8317_v15, %v9295_v30 }
 0x6a7   :  { %2565 = vperm.xlu0 %6384, %v9333_v22   ;;  %v4229_v32 = vsel %vm4197_vm13, %v4005_v0, 0.0 }
 0x6a8   :  { %v3091_v50 = vpop.permute.xlu1 %3090  ;;  %v2991_v10 = vadd.f32 %v2959_v17, %v2795_v48  ;;  %v9346_v8 = vadd.f32 %v6678_v27, %v4229_v32  ;;  %v10670_v27 = vld [vmem:[#allocation32_spill] sm:$0xff] }
 0x6a9   :  { %v3155_v2 = vmul.f32 %v8297_v44, %v3091_v50  ;;  %v3671_v56 = vpop.permute.xlu0 %3670  ;;  %vm4202_vm14 = vcmp.eq.s32.totalorder %v10670_v27, 1 }
 0x6aa   :  { %6374 = vset.pattern.permute.xlu1 %v10640_v38  ;;  %5488 = vst.msk [vmem:[%s10420_s19 + $0x88] sm:$0xff] %vm5470_vm8, %v9346_v8  ;;  %v3741_v27 = vmul.f32 %v8317_v15, %v3671_v56 }
 0x6ab   :  { %v3187_v6 = vadd.f32 %v3155_v2, %v2991_v10  ;;  %3698 = vperm.xlu1 %6374, %v9228_v53   ;;  %6386 = vset.pattern.permute.xlu0 %v10632_v49  ;;  %v10669_v53 = vld [vmem:[#allocation28_spill] sm:$0xff]  ;;  %v2597_v2 = vmul.f32 %v8286_v25, %v9309_v16 }
 0x6ac   :  { %2926 = vperm.xlu0 %6386, %v9333_v22   ;;  %v2344_v33 = vadd.f32 %v9161_v5, %v10669_v53  ;;  %v6679_v16 = vld [vmem:[%s10457_s23 + $0xb0] sm:$0xff] }
 0x6ad   :  { %v3483_v31 = vpop.permute.xlu1 %3482  ;;  %v3383_v51 = vadd.f32 %v3351_v58, %v3187_v6 }
 0x6ae   :  { %v3547_v28 = vmul.f32 %v8311_v37, %v3483_v31  ;;  %v9361_v18 = vpop.permute.xlu0 %2702  ;;  %v2376_v32 = vmul.f32 0.2, %v2344_v33 }
 0x6af   :  { %6376 = vset.pattern.permute.xlu1 %v10520_v11 }
 0x6b0   :  { %v3579_v46 = vadd.f32 %v3547_v28, %v3383_v51  ;;  %2540 = vperm.xlu1 %6376, %v9278_v55   ;;  %6388 = vset.pattern.permute.xlu0 %v10637_v12  ;;  %v9385_v31 = vmax.f32 %v2344_v33, %v2376_v32  ;;  %v2957_v28 = vmul.f32 %v8290_v42, %v9320_v47 }
 0x6b1   :  { %3318 = vperm.xlu0 %6388, %v9333_v22  }
 0x6b2   :  { %v3875_v0 = vpop.permute.xlu1 %3874  ;;  %v3775_v39 = vadd.f32 %v3743_v63, %v3579_v46 }
 0x6b3   :  { %v3939_v17 = vmul.f32 %v8330_v52, %v3875_v0  ;;  %v9372_v48 = vpop.permute.xlu0 %3094 }
 0x6b4   :  { %6378 = vset.pattern.permute.xlu1 %v10632_v49 }
 0x6b5   :  { %v3971_v30 = vadd.f32 %v3939_v17, %v3775_v39  ;;  %2906 = vperm.xlu1 %6378, %v9278_v55   ;;  %6390 = vset.pattern.permute.xlu0 %v10640_v38  ;;  %v3349_v39 = vmul.f32 %v8304_v36, %v9331_v35 }
 0x6b6   :  { %3710 = vperm.xlu0 %6390, %v9333_v22  }
 0x6b7   :  { %v4010_v50 = vadd.f32 %v8918_v21, %v3971_v30  ;;  %v2691_v10 = vpop.permute.xlu1 %2690 }
 0x6b8   :  { %v2761_v58 = vmul.f32 %v8278_v9, %v2691_v10  ;;  %v9383_v6 = vpop.permute.xlu0 %3486 }
 0x6b9   :  { %v4234_v51 = vsel %vm4202_vm14, %v4010_v50, 0.0  ;;  %6380 = vset.pattern.permute.xlu1 %v10637_v12 }
 0x6ba   :  { %v2793_v63 = vadd.f32 %v2761_v58, %v2597_v2  ;;  %3298 = vperm.xlu1 %6380, %v9278_v55   ;;  %6392 = vset.pattern.permute.xlu0 %v10520_v11  ;;  %v9395_v46 = vadd.f32 %v6679_v16, %v4234_v51 }
 0x6bb   :  { %2555 = vperm.xlu0 %6392, %v9385_v31  }
 0x6bc   :  { %v3083_v53 = vpop.permute.xlu1 %3082  ;;  %v2989_v33 = vadd.f32 %v2957_v28, %v2793_v63  ;;  %5493 = vst.msk [vmem:[%s10420_s19 + $0xb0] sm:$0xff] %vm5470_vm8, %v9395_v46 }
 0x6bd   :  { %v3153_v47 = vmul.f32 %v8297_v44, %v3083_v53  ;;  %v9404_v0 = vpop.permute.xlu0 %3878 }
 0x6be   :  { %6382 = vset.pattern.permute.xlu1 %v10640_v38 }
 0x6bf   :  { %v3185_v17 = vadd.f32 %v3153_v47, %v2989_v33  ;;  %3690 = vperm.xlu1 %6382, %v9278_v55   ;;  %6394 = vset.pattern.permute.xlu0 %v10632_v49  ;;  %v10671_v55 = vld [vmem:[#allocation24_spill] sm:$0xff]  ;;  %v10672_v47 = vld [vmem:[#allocation26_spill] sm:$0xff] }
 0x6c0   :  { %2918 = vperm.xlu0 %6394, %v9385_v31   ;;  %v2347_v35 = vadd.f32 %v9161_v5, %v10671_v55  ;;  %vm4200_vm15 = vcmp.eq.s32.totalorder %v10672_v47, 1 }
 0x6c1   :  { %v3475_v32 = vpop.permute.xlu1 %3474  ;;  %v3381_v30 = vadd.f32 %v3349_v39, %v3185_v17 }
 0x6c2   :  { %v3545_v50 = vmul.f32 %v8311_v37, %v3475_v32  ;;  %v9413_v10 = vpop.permute.xlu0 %2694  ;;  %v2379_v16 = vmul.f32 0.2, %v2347_v35 }
 0x6c3   :  { %6385 = vset.pattern.permute.xlu1 %v10636_v24 }
 0x6c4   :  { %v3577_v2 = vadd.f32 %v3545_v50, %v3381_v30  ;;  %2730 = vperm.xlu1 %6385, %v9333_v22   ;;  %6396 = vset.pattern.permute.xlu0 %v10637_v12  ;;  %v9433_v17 = vmax.f32 %v2347_v35, %v2379_v16 }
 0x6c5   :  { %3310 = vperm.xlu0 %6396, %v9385_v31  }
 0x6c6   :  { %v3867_v58 = vpop.permute.xlu1 %3866  ;;  %v3773_v51 = vadd.f32 %v3741_v27, %v3577_v2  ;;  %v2764_v27 = vmul.f32 %v8278_v9, %v9361_v18 }
 0x6c7   :  { %v3937_v28 = vmul.f32 %v8330_v52, %v3867_v58  ;;  %v9423_v63 = vpop.permute.xlu0 %3086 }
 0x6c8   :  { %6387 = vset.pattern.permute.xlu1 %v10613_v62 }
 0x6c9   :  { %v3969_v56 = vadd.f32 %v3937_v28, %v3773_v51  ;;  %3122 = vperm.xlu1 %6387, %v9333_v22   ;;  %6398 = vset.pattern.permute.xlu0 %v10640_v38  ;;  %v3156_v51 = vmul.f32 %v8297_v44, %v9372_v48 }
 0x6ca   :  { %3702 = vperm.xlu0 %6398, %v9385_v31  }
 0x6cb   :  { %v4008_v53 = vadd.f32 %v8918_v21, %v3969_v56  ;;  %v2531_v33 = vpop.permute.xlu1 %2530  ;;  %v6680_v21 = vld [vmem:[%s10457_s23 + $0xa0] sm:$0xff] }
 0x6cc   :  { %v9431_v39 = vpop.permute.xlu0 %3478  ;;  %v2600_v30 = vmul.f32 %v8286_v25, %v2531_v33  ;;  %v3548_v33 = vmul.f32 %v8311_v37, %v9383_v6  ;;  %v3940_v6 = vmul.f32 %v8330_v52, %v9404_v0 }
 0x6cd   :  { %v4232_v32 = vsel %vm4200_vm15, %v4008_v53, 0.0  ;;  %6389 = vset.pattern.permute.xlu1 %v10641_v26 }
 0x6ce   :  { %3514 = vperm.xlu1 %6389, %v9333_v22   ;;  %6401 = vset.pattern.permute.xlu0 %v10636_v24  ;;  %v9442_v50 = vadd.f32 %v6680_v21, %v4232_v32  ;;  %v2796_v55 = vadd.f32 %v2764_v27, %v2600_v30 }
 0x6cf   :  { %2734 = vperm.xlu0 %6401, %v9433_v17  }
 0x6d0   :  { %v2899_v2 = vpop.permute.xlu1 %2898  ;;  %5491 = vst.msk [vmem:[%s10420_s19 + $0xa0] sm:$0xff] %vm5470_vm8, %v9442_v50 }
 0x6d1   :  { %v2960_v35 = vmul.f32 %v8290_v42, %v2899_v2  ;;  %v9453_v58 = vpop.permute.xlu0 %3870 }
 0x6d2   :  { %6391 = vset.pattern.permute.xlu1 %v10644_v57 }
 0x6d3   :  { %v2992_v18 = vadd.f32 %v2960_v35, %v2796_v55  ;;  %3906 = vperm.xlu1 %6391, %v9333_v22   ;;  %6403 = vset.pattern.permute.xlu0 %v10613_v62  ;;  %v10673_v22 = vld [vmem:[#allocation30_spill] sm:$0xff] }
 0x6d4   :  { %3126 = vperm.xlu0 %6403, %v9433_v17   ;;  %v2345_v48 = vadd.f32 %v9161_v5, %v10673_v22 }
 0x6d5   :  { %v3291_v28 = vpop.permute.xlu1 %3290  ;;  %v3188_v16 = vadd.f32 %v3156_v51, %v2992_v18 }
 0x6d6   :  { %v3352_v56 = vmul.f32 %v8304_v36, %v3291_v28  ;;  %v9462_v53 = vpop.permute.xlu0 %2545  ;;  %v2377_v2 = vmul.f32 0.2, %v2345_v48  ;;  %v9486_v28 = vld [vmem:[%s10419_s12] ss:$0 sm:$0xff] }
 0x6d7   :  { %6393 = vset.pattern.permute.xlu1 %v10636_v24 }
 0x6d8   :  { %v3384_v47 = vadd.f32 %v3352_v56, %v3188_v16  ;;  %2722 = vperm.xlu1 %6393, %v9385_v31   ;;  %6405 = vset.pattern.permute.xlu0 %v10641_v26  ;;  %v9481_v18 = vmax.f32 %v2345_v48, %v2377_v2  ;;  %v10674_v56 = vld [vmem:[#allocation37_spill] sm:$0xff] }
 0x6d9   :  { %3518 = vperm.xlu0 %6405, %v9433_v17   ;;  %vm4203_vm0 = vcmp.eq.s32.totalorder %v10674_v56, 1  ;;  %v6682_v48 = vld [vmem:[%s10457_s23 + $0xb8] sm:$0xff] }
 0x6da   :  { %v3683_v32 = vpop.permute.xlu1 %3682  ;;  %v3580_v30 = vadd.f32 %v3548_v33, %v3384_v47  ;;  %v2762_v33 = vmul.f32 %v8278_v9, %v9413_v10  ;;  %v3154_v10 = vmul.f32 %v8297_v44, %v9423_v63 }
 0x6db   :  { %v3744_v21 = vmul.f32 %v8317_v15, %v3683_v32  ;;  %v2911_v27 = vpop.permute.xlu0 %2910 }
 0x6dc   :  { %6395 = vset.pattern.permute.xlu1 %v10613_v62 }
 0x6dd   :  { %v3776_v55 = vadd.f32 %v3744_v21, %v3580_v30  ;;  %3114 = vperm.xlu1 %6395, %v9385_v31   ;;  %6407 = vset.pattern.permute.xlu0 %v10644_v57 }
 0x6de   :  { %3910 = vperm.xlu0 %6407, %v9433_v17  }
 0x6df   :  { %v3972_v5 = vadd.f32 %v3940_v6, %v3776_v55  ;;  %v2521_v35 = vpop.permute.xlu1 %2520 }
 0x6e0   :  { %v9479_v51 = vpop.permute.xlu0 %3302  ;;  %v2598_v16 = vmul.f32 %v8286_v25, %v2521_v35 }
 0x6e1   :  { %v4011_v0 = vadd.f32 %v9486_v28, %v3972_v5  ;;  %6397 = vset.pattern.permute.xlu1 %v10641_v26 }
 0x6e2   :  { %3506 = vperm.xlu1 %6397, %v9385_v31   ;;  %6409 = vset.pattern.permute.xlu0 %v10636_v24  ;;  %v2794_v30 = vadd.f32 %v2762_v33, %v2598_v16  ;;  %v3546_v16 = vmul.f32 %v8311_v37, %v9431_v39  ;;  %v3938_v33 = vmul.f32 %v8330_v52, %v9453_v58  ;;  %v10675_v58 = vld [vmem:[#allocation36_spill] sm:$0xff] }
 0x6e3   :  { %2726 = vperm.xlu0 %6409, %v9481_v18   ;;  %v4235_v47 = vsel %vm4203_vm0, %v4011_v0, 0.0  ;;  %vm4201_vm1 = vcmp.eq.s32.totalorder %v10675_v58, 1 }
 0x6e4   :  { %v2891_v22 = vpop.permute.xlu1 %2890  ;;  %v9500_v32 = vadd.f32 %v6682_v48, %v4235_v47  ;;  %v2603_v48 = vmul.f32 %v8286_v25, %v9462_v53 }
 0x6e5   :  { %v2958_v21 = vmul.f32 %v8290_v42, %v2891_v22  ;;  %v3695_v2 = vpop.permute.xlu0 %3694 }
 0x6e6   :  { %6399 = vset.pattern.permute.xlu1 %v10644_v57  ;;  %5494 = vst.msk [vmem:[%s10420_s19 + $0xb8] sm:$0xff] %vm5470_vm8, %v9500_v32 }
 0x6e7   :  { %v2990_v6 = vadd.f32 %v2958_v21, %v2794_v30  ;;  %3898 = vperm.xlu1 %6399, %v9385_v31   ;;  %6411 = vset.pattern.permute.xlu0 %v10613_v62 }
 0x6e8   :  { %3118 = vperm.xlu0 %6411, %v9481_v18  }
 0x6e9   :  { %v3283_v55 = vpop.permute.xlu1 %3282  ;;  %v3186_v5 = vadd.f32 %v3154_v10, %v2990_v6  ;;  %v2963_v10 = vmul.f32 %v8290_v42, %v2911_v27  ;;  %v3355_v27 = vmul.f32 %v8304_v36, %v9479_v51 }
 0x6ea   :  { %v3350_v35 = vmul.f32 %v8304_v36, %v3283_v55  ;;  %v9515_v0 = vpop.permute.xlu0 %2535 }
 0x6eb   :  { %6400 = vset.pattern.permute.xlu1 %v10520_v11 }
 0x6ec   :  { %v3382_v56 = vadd.f32 %v3350_v35, %v3186_v5  ;;  %2570 = vperm.xlu1 %6400, %v9433_v17   ;;  %6413 = vset.pattern.permute.xlu0 %v10641_v26  ;;  %v6683_v35 = vld [vmem:[%s10457_s23 + $0xa8] sm:$0xff] }
 0x6ed   :  { %3510 = vperm.xlu0 %6413, %v9481_v18  }
 0x6ee   :  { %v3675_v62 = vpop.permute.xlu1 %3674  ;;  %v3578_v31 = vadd.f32 %v3546_v16, %v3382_v56 }
 0x6ef   :  { %v3742_v63 = vmul.f32 %v8317_v15, %v3675_v62  ;;  %v2903_v22 = vpop.permute.xlu0 %2902 }
 0x6f0   :  { %6402 = vset.pattern.permute.xlu1 %v10632_v49 }
 0x6f1   :  { %v3774_v47 = vadd.f32 %v3742_v63, %v3578_v31  ;;  %2930 = vperm.xlu1 %6402, %v9433_v17   ;;  %6415 = vset.pattern.permute.xlu0 %v10644_v57 }
 0x6f2   :  { %3902 = vperm.xlu0 %6415, %v9481_v18  }
 0x6f3   :  { %v3970_v26 = vadd.f32 %v3938_v33, %v3774_v47  ;;  %v2715_v39 = vpop.permute.xlu1 %2714 }
 0x6f4   :  { %v2767_v30 = vmul.f32 %v8278_v9, %v2715_v39  ;;  %v3295_v57 = vpop.permute.xlu0 %3294 }
 0x6f5   :  { %v4009_v21 = vadd.f32 %v9486_v28, %v3970_v26  ;;  %6404 = vset.pattern.permute.xlu1 %v10637_v12  ;;  %v3747_v26 = vmul.f32 %v8317_v15, %v3695_v2 }
 0x6f6   :  { %v2799_v6 = vadd.f32 %v2767_v30, %v2603_v48  ;;  %3322 = vperm.xlu1 %6404, %v9433_v17   ;;  %6419 = vset.pattern.permute.xlu0 %v10520_v11 }
 0x6f7   :  { %4318 = vperm.xlu0 %6419, %v8408_v34   ;;  %v4233_v55 = vsel %vm4201_vm1, %v4009_v21, 0.0 }
 0x6f8   :  { %v3107_v53 = vpop.permute.xlu1 %3106  ;;  %v2995_v5 = vadd.f32 %v2963_v10, %v2799_v6  ;;  %v9543_v16 = vadd.f32 %v6683_v35, %v4233_v55  ;;  %v10676_v10 = vld [vmem:[#allocation38_spill] sm:$0xff]  ;;  %v2601_v6 = vmul.f32 %v8286_v25, %v9515_v0  ;;  %v2961_v35 = vmul.f32 %v8290_v42, %v2903_v22 }
 0x6f9   :  { %v3159_v56 = vmul.f32 %v8297_v44, %v3107_v53  ;;  %v3687_v31 = vpop.permute.xlu0 %3686  ;;  %vm4206_vm3 = vcmp.eq.s32.totalorder %v10676_v10, 1  ;;  %v3353_v22 = vmul.f32 %v8304_v36, %v3295_v57 }
 0x6fa   :  { %6406 = vset.pattern.permute.xlu1 %v10640_v38  ;;  %5492 = vst.msk [vmem:[%s10420_s19 + $0xa8] sm:$0xff] %vm5470_vm8, %v9543_v16 }
 0x6fb   :  { %v3191_v62 = vadd.f32 %v3159_v56, %v2995_v5  ;;  %3714 = vperm.xlu1 %6406, %v9433_v17   ;;  %6421 = vset.pattern.permute.xlu0 %v10632_v49 }
 0x6fc   :  { %4741 = vperm.xlu0 %6421, %v8408_v34  }
 0x6fd   :  { %v3499_v63 = vpop.permute.xlu1 %3498  ;;  %v3387_v33 = vadd.f32 %v3355_v27, %v3191_v62  ;;  %v6684_v27 = vld [vmem:[%s10457_s23 + $0xd0] sm:$0xff] }
 0x6fe   :  { %v3551_v47 = vmul.f32 %v8311_v37, %v3499_v63  ;;  %v2719_v48 = vpop.permute.xlu0 %2718 }
 0x6ff   :  { %6408 = vset.pattern.permute.xlu1 %v10520_v11 }
 0x700   :  { %v3583_v39 = vadd.f32 %v3551_v47, %v3387_v33  ;;  %2560 = vperm.xlu1 %6408, %v9481_v18   ;;  %6422 = vset.pattern.permute.xlu0 %v10520_v11 }
 0x701   :  { %4333 = vperm.xlu0 %6422, %v8462_v23  }
 0x702   :  { %v3891_v17 = vpop.permute.xlu1 %3890  ;;  %v3779_v51 = vadd.f32 %v3747_v26, %v3583_v39 }
 0x703   :  { %v3943_v30 = vmul.f32 %v8330_v52, %v3891_v17  ;;  %v3111_v5 = vpop.permute.xlu0 %3110 }
 0x704   :  { %6410 = vset.pattern.permute.xlu1 %v10632_v49 }
 0x705   :  { %v3975_v21 = vadd.f32 %v3943_v30, %v3779_v51  ;;  %2922 = vperm.xlu1 %6410, %v9481_v18   ;;  %6423 = vset.pattern.permute.xlu0 %v10632_v49  ;;  %v3745_v51 = vmul.f32 %v8317_v15, %v3687_v31 }
 0x706   :  { %4753 = vperm.xlu0 %6423, %v8462_v23  }
 0x707   :  { %v4014_v2 = vadd.f32 %v9486_v28, %v3975_v21  ;;  %v2707_v58 = vpop.permute.xlu1 %2706 }
 0x708   :  { %v2765_v55 = vmul.f32 %v8278_v9, %v2707_v58  ;;  %v3503_v33 = vpop.permute.xlu0 %3502 }
 0x709   :  { %v4238_v53 = vsel %vm4206_vm3, %v4014_v2, 0.0  ;;  %6412 = vset.pattern.permute.xlu1 %v10637_v12 }
 0x70a   :  { %v2797_v56 = vadd.f32 %v2765_v55, %v2601_v6  ;;  %3314 = vperm.xlu1 %6412, %v9481_v18   ;;  %6425 = vset.pattern.permute.xlu0 %v10636_v24  ;;  %v9580_v62 = vadd.f32 %v6684_v27, %v4238_v53  ;;  %v10677_v6 = vld [vmem:[#allocation34_spill] sm:$0xff]  ;;  %v2768_v27 = vmul.f32 %v8278_v9, %v2719_v48 }
 0x70b   :  { %4549 = vperm.xlu0 %6425, %v8511_v40   ;;  %vm4204_vm4 = vcmp.eq.s32.totalorder %v10677_v6, 1  ;;  %v6558_v6 = vld [vmem:[%s10421_s15 + $0x10] sm:$0xff]  }
 0x70c   :  { %v3099_v0 = vpop.permute.xlu1 %3098  ;;  %v2993_v63 = vadd.f32 %v2961_v35, %v2797_v56  ;;  %5497 = vst.msk [vmem:[%s10420_s19 + $0xd0] sm:$0xff] %vm5470_vm8, %v9580_v62  ;;  %v6685_v35 = vld [vmem:[%s10457_s23 + $0xc0] sm:$0xff] }
 0x70d   :  { %v3157_v12 = vmul.f32 %v8297_v44, %v3099_v0 }
 0x70e   :  { %6414 = vset.pattern.permute.xlu1 %v10640_v38  ;;  %v3895_v38 = vpop.permute.xlu0 %3894 }
 0x70f   :  { %v3189_v47 = vadd.f32 %v3157_v12, %v2993_v63  ;;  %3706 = vperm.xlu1 %6414, %v9481_v18   ;;  %6432 = vset.pattern.permute.xlu0 %v10632_v49 }
 0x710   :  { %4757 = vperm.xlu0 %6432, %v8612_v54  }
 0x711   :  { %v3491_v26 = vpop.permute.xlu1 %3490  ;;  %v3385_v39 = vadd.f32 %v3353_v22, %v3189_v47  ;;  %v3160_v22 = vmul.f32 %v8297_v44, %v3111_v5 }
 0x712   :  { %v3549_v17 = vmul.f32 %v8311_v37, %v3491_v26  ;;  %v2711_v31 = vpop.permute.xlu0 %2710 }
 0x713   :  { %6416 = vset.pattern.permute.xlu1 %v10520_v11 }
 0x714   :  { %v3581_v30 = vadd.f32 %v3549_v17, %v3385_v39  ;;  %4328 = vperm.xlu1 %6416, %v8364_v45   ;;  %6433 = vset.pattern.permute.xlu0 %v10520_v11 }
 0x715   :  { %4353 = vperm.xlu0 %6433, %v8667_v41  }
 0x716   :  { %v3883_v18 = vpop.permute.xlu1 %3882  ;;  %v3777_v57 = vadd.f32 %v3745_v51, %v3581_v30  ;;  %v3552_v51 = vmul.f32 %v8311_v37, %v3503_v33  ;;  %v3944_v33 = vmul.f32 %v8330_v52, %v3895_v38  ;;  %v10678_v38 = vld [vmem:[#allocation41_spill] sm:$0xff] }
 0x717   :  { %v3941_v21 = vmul.f32 %v8330_v52, %v3883_v18  ;;  %vm4207_vm5 = vcmp.eq.s32.totalorder %v10678_v38, 1 }
 0x718   :  { %6417 = vset.pattern.permute.xlu1 %v10636_v24 }
 0x719   :  { %v3973_v2 = vadd.f32 %v3941_v21, %v3777_v57  ;;  %4553 = vperm.xlu1 %6417, %v8364_v45   ;;  %6434 = vset.pattern.permute.xlu0 %v10632_v49 }
 0x71a   :  { %4769 = vperm.xlu0 %6434, %v8667_v41  }
 0x71b   :  { %v4012_v58 = vadd.f32 %v9486_v28, %v3973_v2  ;;  %v2551_v10 = vpop.permute.xlu1 %2550 }
 0x71c   :  { %v2604_v53 = vmul.f32 %v8286_v25, %v2551_v10 }
 0x71d   :  { %v4236_v55 = vsel %vm4204_vm4, %v4012_v58, 0.0  ;;  %6418 = vset.pattern.permute.xlu1 %v10632_v49 }
 0x71e   :  { %4749 = vperm.xlu1 %6418, %v8364_v45   ;;  %6435 = vset.pattern.permute.xlu0 %v10520_v11  ;;  %v9614_v56 = vadd.f32 %v6685_v35, %v4236_v55  ;;  %v3103_v45 = vpop.permute.xlu0 %3102  ;;  %v2800_v63 = vadd.f32 %v2768_v27, %v2604_v53  ;;  %v2766_v35 = vmul.f32 %v8278_v9, %v2711_v31 }
 0x71f   :  { %4343 = vperm.xlu0 %6435, %v8721_v19   ;;  %v3158_v31 = vmul.f32 %v8297_v44, %v3103_v45 }
 0x720   :  { %v2915_v0 = vpop.permute.xlu1 %2914  ;;  %5495 = vst.msk [vmem:[%s10420_s19 + $0xc0] sm:$0xff] %vm5470_vm8, %v9614_v56 }
 0x721   :  { %v2964_v12 = vmul.f32 %v8290_v42, %v2915_v0 }
 0x722   :  { %6420 = vset.pattern.permute.xlu1 %v10636_v24  ;;  %v3495_v17 = vpop.permute.xlu0 %3494 }
 0x723   :  { %v2996_v47 = vadd.f32 %v2964_v12, %v2800_v63  ;;  %4545 = vperm.xlu1 %6420, %v8408_v34   ;;  %6436 = vset.pattern.permute.xlu0 %v10636_v24  ;;  %v6556_v34 = vld [vmem:[%s10421_s15] sm:$0xff]   ;;  %v6686_v12 = vld [vmem:[%s10457_s23 + $0xd8] sm:$0xff] }
 0x724   :  { %4565 = vperm.xlu0 %6436, %v8721_v19   ;;  %6099 = vmatprep.subr.bf16.mxu0 %v6556_v34 }
 0x725   :  { %v3307_v48 = vpop.permute.xlu1 %3306  ;;  %v3192_v26 = vadd.f32 %v3160_v22, %v2996_v47  ;;  %6100 = vmatpush3.bf16.msra.mxu0 %v6556_v34 }
 0x726   :  { %v3356_v39 = vmul.f32 %v8304_v36, %v3307_v48  ;;  %v3887_v21 = vpop.permute.xlu0 %3886 }
 0x727   :  { %4557 = vperm.xlu1 %6420, %v8462_v23   ;;  %v6557_v23 = vld [vmem:[%s10421_s15 + $0x8] sm:$0xff]  }
 0x728   :  { %v3388_v30 = vadd.f32 %v3356_v39, %v3192_v26  ;;  %4585 = vperm.xlu0 %6436, %v8770_v1   ;;  %6101 = vmatprep.subr.bf16.mxu0 %v6557_v23 }
 0x729   :  { %6102 = vmatpush3.bf16.msra.mxu0 %v6557_v23 }
 0x72a   :  { %v3699_v5 = vpop.permute.xlu1 %3698  ;;  %v3584_v18 = vadd.f32 %v3552_v51, %v3388_v30  ;;  %6103 = vmatprep.subr.bf16.mxu0 %v6558_v6  ;;  %v2566_v27 = vpop.permute.xlu0 %2565 }
 0x72b   :  { %v3748_v57 = vmul.f32 %v8317_v15, %v3699_v5  ;;  %6424 = vset.pattern.permute.xlu1 %v10520_v11  ;;  %v3550_v5 = vmul.f32 %v8311_v37, %v3495_v17  ;;  %v2607_v17 = vmul.f32 %v8286_v25, %v2566_v27 }
 0x72c   :  { %4323 = vperm.xlu1 %6424, %v8511_v40   ;;  %6443 = vset.pattern.permute.xlu0 %v10520_v11 }
 0x72d   :  { %v3780_v2 = vadd.f32 %v3748_v57, %v3584_v18  ;;  %4373 = vperm.xlu0 %6443, %v8872_v3   ;;  %6104 = vmatpush3.bf16.msra.mxu0 %v6558_v6 }
 0x72e   :  { %v2927_v39 = vpop.permute.xlu0 %2926 }
 0x72f   :  { %v3976_v58 = vadd.f32 %v3944_v33, %v3780_v2  ;;  %v2541_v10 = vpop.permute.xlu1 %2540  ;;  %v3942_v2 = vmul.f32 %v8330_v52, %v3887_v21  ;;  %v2967_v21 = vmul.f32 %v8290_v42, %v2927_v39 }
 0x730   :  { %6426 = vset.pattern.permute.xlu1 %v10632_v49  ;;  %v2602_v53 = vmul.f32 %v8286_v25, %v2541_v10 }
 0x731   :  { %v4015_v55 = vadd.f32 %v9486_v28, %v3976_v58  ;;  %4745 = vperm.xlu1 %6426, %v8511_v40   ;;  %4363 = vperm.xlu0 %6443, %v8931_v20   ;;  %v6559_v40 = vld [vmem:[%s10421_s15 + $0x18] sm:$0xff]  }
 0x732   :  { %v2798_v47 = vadd.f32 %v2766_v35, %v2602_v53  ;;  %6105 = vmatprep.subr.bf16.mxu0 %v6559_v40  ;;  %v3319_v23 = vpop.permute.xlu0 %3318 }
 0x733   :  { %v4239_v0 = vsel %vm4207_vm5, %v4015_v55, 0.0  ;;  %6106 = vmatpush3.bf16.msra.mxu0 %v6559_v40 }
 0x734   :  { %v2907_v63 = vpop.permute.xlu1 %2906  ;;  %v9658_v22 = vadd.f32 %v6686_v12, %v4239_v0  ;;  %v6687_v12 = vld [vmem:[%s10457_s23 + $0xc8] sm:$0xff] }
 0x735   :  { %v2962_v48 = vmul.f32 %v8290_v42, %v2907_v63  ;;  %6427 = vset.pattern.permute.xlu1 %v10520_v11  ;;  %6447 = vset.pattern.permute.xlu0 %v10632_v49 }
 0x736   :  { %4348 = vperm.xlu1 %6427, %v8560_v60   ;;  %4777 = vperm.xlu0 %6447, %v8931_v20   ;;  %5498 = vst.msk [vmem:[%s10420_s19 + $0xd8] sm:$0xff] %vm5470_vm8, %v9658_v22  ;;  %v3711_v53 = vpop.permute.xlu0 %3710 }
 0x737   :  { %v2994_v26 = vadd.f32 %v2962_v48, %v2798_v47  ;;  %v3359_v48 = vmul.f32 %v8304_v36, %v3319_v23 }
 0x739   :  { %v3299_v51 = vpop.permute.xlu1 %3298  ;;  %v3190_v30 = vadd.f32 %v3158_v31, %v2994_v26 }
 0x73a   :  { %v3354_v34 = vmul.f32 %v8304_v36, %v3299_v51  ;;  %6428 = vset.pattern.permute.xlu1 %v10636_v24  ;;  %6451 = vset.pattern.permute.xlu0 %v10520_v11  ;;  %v2556_v31 = vpop.permute.xlu0 %2555 }
 0x73b   :  { %4569 = vperm.xlu1 %6428, %v8560_v60   ;;  %4378 = vperm.xlu0 %6451, %v9027_v13  }
 0x73c   :  { %v3386_v18 = vadd.f32 %v3354_v34, %v3190_v30 }
 0x73e   :  { %v3691_v45 = vpop.permute.xlu1 %3690  ;;  %v3582_v57 = vadd.f32 %v3550_v5, %v3386_v18 }
 0x73f   :  { %v3746_v33 = vmul.f32 %v8317_v15, %v3691_v45  ;;  %6429 = vset.pattern.permute.xlu1 %v10632_v49  ;;  %6453 = vset.pattern.permute.xlu0 %v10632_v49  ;;  %v2919_v5 = vpop.permute.xlu0 %2918 }
 0x740   :  { %4765 = vperm.xlu1 %6429, %v8560_v60   ;;  %4789 = vperm.xlu0 %6453, %v9027_v13   ;;  %v10679_v60 = vld [vmem:[#allocation40_spill] sm:$0xff] }
 0x741   :  { %v3778_v58 = vadd.f32 %v3746_v33, %v3582_v57  ;;  %vm4205_vm6 = vcmp.eq.s32.totalorder %v10679_v60, 1 }
 0x743   :  { %v3974_v10 = vadd.f32 %v3942_v2, %v3778_v58  ;;  %v2731_v6 = vpop.permute.xlu1 %2730  ;;  %v10680_v58 = vld [vmem:[#allocation42_spill] sm:$0xff] }
 0x744   :  { %v2771_v55 = vmul.f32 %v8278_v9, %v2731_v6  ;;  %6430 = vset.pattern.permute.xlu1 %v10520_v11  ;;  %6454 = vset.pattern.permute.xlu0 %v10520_v11  ;;  %vm4210_vm7 = vcmp.eq.s32.totalorder %v10680_v58, 1 }
 0x745   :  { %v4013_v38 = vadd.f32 %v9486_v28, %v3974_v10  ;;  %4338 = vperm.xlu1 %6430, %v8612_v54   ;;  %4393 = vperm.xlu0 %6454, %v9082_v29   ;;  %v2605_v10 = vmul.f32 %v8286_v25, %v2556_v31 }
 0x746   :  { %v2803_v35 = vadd.f32 %v2771_v55, %v2607_v17  ;;  %v2965_v17 = vmul.f32 %v8290_v42, %v2919_v5 }
 0x747   :  { %v4237_v0 = vsel %vm4205_vm6, %v4013_v38, 0.0 }
 0x748   :  { %v3123_v27 = vpop.permute.xlu1 %3122  ;;  %v2999_v63 = vadd.f32 %v2967_v21, %v2803_v35  ;;  %v9698_v40 = vadd.f32 %v6687_v12, %v4237_v0 }
 0x749   :  { %v3163_v47 = vmul.f32 %v8297_v44, %v3123_v27  ;;  %6431 = vset.pattern.permute.xlu1 %v10636_v24  ;;  %6455 = vset.pattern.permute.xlu0 %v10632_v49 }
 0x74a   :  { %4561 = vperm.xlu1 %6431, %v8612_v54   ;;  %4801 = vperm.xlu0 %6455, %v9082_v29   ;;  %5496 = vst.msk [vmem:[%s10420_s19 + $0xc8] sm:$0xff] %vm5470_vm8, %v9698_v40  ;;  %v3751_v54 = vmul.f32 %v8317_v15, %v3711_v53  ;;  %v6688_v53 = vld [vmem:[%s10457_s23 + $0xf0] sm:$0xff] }
 0x74b   :  { %v3195_v26 = vadd.f32 %v3163_v47, %v2999_v63 }
 0x74d   :  { %v3515_v39 = vpop.permute.xlu1 %3514  ;;  %v3391_v51 = vadd.f32 %v3359_v48, %v3195_v26 }
 0x74e   :  { %v3555_v30 = vmul.f32 %v8311_v37, %v3515_v39  ;;  %4573 = vperm.xlu1 %6431, %v8667_v41   ;;  %6457 = vset.pattern.permute.xlu0 %v10636_v24  ;;  %v3311_v41 = vpop.permute.xlu0 %3310 }
 0x74f   :  { %4597 = vperm.xlu0 %6457, %v9136_v43   ;;  %v3357_v27 = vmul.f32 %v8304_v36, %v3311_v41  ;;  %v6689_v41 = vld [vmem:[%s10457_s23 + $0xe0] sm:$0xff] }
 0x750   :  { %v3587_v34 = vadd.f32 %v3555_v30, %v3391_v51 }
 0x752   :  { %v3907_v18 = vpop.permute.xlu1 %3906  ;;  %v3783_v45 = vadd.f32 %v3751_v54, %v3587_v34  ;;  %6437 = vset.pattern.permute.xlu1 %v10632_v49  ;;  %v3703_v35 = vpop.permute.xlu0 %3702 }
 0x753   :  { %v3947_v57 = vmul.f32 %v8330_v52, %v3907_v18  ;;  %4761 = vperm.xlu1 %6437, %v8721_v19   ;;  %4609 = vperm.xlu0 %6457, %v9237_v14   ;;  %v3749_v26 = vmul.f32 %v8317_v15, %v3703_v35 }
 0x755   :  { %v3979_v23 = vadd.f32 %v3947_v57, %v3783_v45  ;;  %v10681_v45 = vld [vmem:[#allocation39_spill] sm:$0xff] }
 0x756   :  { %v2735_v31 = vpop.permute.xlu0 %2734  ;;  %vm4208_vm9 = vcmp.eq.s32.totalorder %v10681_v45, 1 }
 0x757   :  { %v4018_v33 = vadd.f32 %v9486_v28, %v3979_v23  ;;  %v2723_v2 = vpop.permute.xlu1 %2722  ;;  %6438 = vset.pattern.permute.xlu1 %v10520_v11  ;;  %4621 = vperm.xlu0 %6457, %v9292_v7  }
 0x758   :  { %v2769_v6 = vmul.f32 %v8278_v9, %v2723_v2  ;;  %4368 = vperm.xlu1 %6438, %v8770_v1   ;;  %v2772_v2 = vmul.f32 %v8278_v9, %v2735_v31 }
 0x759   :  { %v4242_v19 = vsel %vm4210_vm7, %v4018_v33, 0.0 }
 0x75a   :  { %v2801_v55 = vadd.f32 %v2769_v6, %v2605_v10  ;;  %v9731_v38 = vadd.f32 %v6688_v53, %v4242_v19  ;;  %v3127_v54 = vpop.permute.xlu0 %3126 }
 0x75b   :  { %6466 = vset.pattern.permute.xlu0 %v10520_v11  ;;  %v3164_v19 = vmul.f32 %v8297_v44, %v3127_v54 }
 0x75c   :  { %v3115_v60 = vpop.permute.xlu1 %3114  ;;  %v2997_v21 = vadd.f32 %v2965_v17, %v2801_v55  ;;  %6439 = vset.pattern.permute.xlu1 %v10632_v49  ;;  %4403 = vperm.xlu0 %6466, %v9346_v8   ;;  %5501 = vst.msk [vmem:[%s10420_s19 + $0xf0] sm:$0xff] %vm5470_vm8, %v9731_v38 }
 0x75d   :  { %v3161_v0 = vmul.f32 %v8297_v44, %v3115_v60  ;;  %4781 = vperm.xlu1 %6439, %v8770_v1  }
 0x75e   :  { %v3519_v58 = vpop.permute.xlu0 %3518 }
 0x75f   :  { %v3193_v63 = vadd.f32 %v3161_v0, %v2997_v21  ;;  %v3556_v35 = vmul.f32 %v8311_v37, %v3519_v58 }
 0x760   :  { %6468 = vset.pattern.permute.xlu0 %v10632_v49 }
 0x761   :  { %v3507_v12 = vpop.permute.xlu1 %3506  ;;  %v3389_v47 = vadd.f32 %v3357_v27, %v3193_v63  ;;  %6440 = vset.pattern.permute.xlu1 %v10520_v11  ;;  %4809 = vperm.xlu0 %6468, %v9346_v8  }
 0x762   :  { %v3553_v48 = vmul.f32 %v8311_v37, %v3507_v12  ;;  %4358 = vperm.xlu1 %6440, %v8817_v4   ;;  %v3911_v55 = vpop.permute.xlu0 %3910 }
 0x764   :  { %v3585_v39 = vadd.f32 %v3553_v48, %v3389_v47  ;;  %v3948_v48 = vmul.f32 %v8330_v52, %v3911_v55 }
 0x765   :  { %6472 = vset.pattern.permute.xlu0 %v10520_v11 }
 0x766   :  { %v3899_v1 = vpop.permute.xlu1 %3898  ;;  %v3781_v51 = vadd.f32 %v3749_v26, %v3585_v39  ;;  %6441 = vset.pattern.permute.xlu1 %v10636_v24  ;;  %4418 = vperm.xlu0 %6472, %v9442_v50   ;;  %v2727_v12 = vpop.permute.xlu0 %2726 }
 0x767   :  { %v3945_v30 = vmul.f32 %v8330_v52, %v3899_v1  ;;  %4577 = vperm.xlu1 %6441, %v8817_v4  }
 0x769   :  { %v3977_v34 = vadd.f32 %v3945_v30, %v3781_v51  ;;  %v10682_v30 = vld [vmem:[#allocation46_spill] sm:$0xff] }
 0x76a   :  { %6474 = vset.pattern.permute.xlu0 %v10632_v49  ;;  %v3119_v39 = vpop.permute.xlu0 %3118  ;;  %vm4211_vm10 = vcmp.eq.s32.totalorder %v10682_v30, 1 }
 0x76b   :  { %v4016_v5 = vadd.f32 %v9486_v28, %v3977_v34  ;;  %v2571_v18 = vpop.permute.xlu1 %2570  ;;  %6442 = vset.pattern.permute.xlu1 %v10632_v49  ;;  %4821 = vperm.xlu0 %6474, %v9442_v50  }
 0x76c   :  { %4773 = vperm.xlu1 %6442, %v8817_v4   ;;  %v2608_v23 = vmul.f32 %v8286_v25, %v2571_v18 }
 0x76d   :  { %v4240_v57 = vsel %vm4208_vm9, %v4016_v5, 0.0  ;;  %v6690_v5 = vld [vmem:[%s10457_s23 + $0xf8] sm:$0xff] }
 0x76e   :  { %v9765_v33 = vadd.f32 %v6689_v41, %v4240_v57  ;;  %v2804_v4 = vadd.f32 %v2772_v2, %v2608_v23 }
 0x76f   :  { %6475 = vset.pattern.permute.xlu0 %v10520_v11 }
 0x770   :  { %v2931_v10 = vpop.permute.xlu1 %2930  ;;  %6444 = vset.pattern.permute.xlu1 %v10636_v24  ;;  %4433 = vperm.xlu0 %6475, %v9500_v32   ;;  %5499 = vst.msk [vmem:[%s10420_s19 + $0xe0] sm:$0xff] %vm5470_vm8, %v9765_v33 }
 0x771   :  { %v2968_v6 = vmul.f32 %v8290_v42, %v2931_v10  ;;  %4589 = vperm.xlu1 %6444, %v8872_v3  }
 0x773   :  { %v3000_v17 = vadd.f32 %v2968_v6, %v2804_v4 }
 0x774   :  { %6476 = vset.pattern.permute.xlu0 %v10632_v49 }
 0x775   :  { %v3323_v53 = vpop.permute.xlu1 %3322  ;;  %v3196_v60 = vadd.f32 %v3164_v19, %v3000_v17  ;;  %6445 = vset.pattern.permute.xlu1 %v10632_v49  ;;  %4833 = vperm.xlu0 %6476, %v9500_v32  }
 0x776   :  { %v3360_v21 = vmul.f32 %v8304_v36, %v3323_v53  ;;  %4785 = vperm.xlu1 %6445, %v8872_v3  }
 0x778   :  { %v3392_v0 = vadd.f32 %v3360_v21, %v3196_v60  ;;  %v10683_v60 = vld [vmem:[#allocation45_spill] sm:$0xff] }
 0x779   :  { %6478 = vset.pattern.permute.xlu0 %v10636_v24  ;;  %vm4209_vm11 = vcmp.eq.s32.totalorder %v10683_v60, 1 }
 0x77a   :  { %v3715_v27 = vpop.permute.xlu1 %3714  ;;  %v3588_v63 = vadd.f32 %v3556_v35, %v3392_v0  ;;  %6446 = vset.pattern.permute.xlu1 %v10636_v24  ;;  %4629 = vperm.xlu0 %6478, %v9543_v16   ;;  %v10684_v0 = vld [vmem:[#allocation44_spill] sm:$0xff] }
 0x77b   :  { %v3752_v47 = vmul.f32 %v8317_v15, %v3715_v27  ;;  %4581 = vperm.xlu1 %6446, %v8931_v20   ;;  %v2770_v20 = vmul.f32 %v8278_v9, %v2727_v12  ;;  %v3162_v9 = vmul.f32 %v8297_v44, %v3119_v39  ;;  %v10685_v27 = vsub.s32 0, %v10684_v0 }
 0x77d   :  { %v3784_v31 = vadd.f32 %v3752_v47, %v3588_v63  ;;  %v10686_v47 = vsub.s32 1, %v10684_v0 }
 0x77e   :  { %4641 = vperm.xlu0 %6478, %v9614_v56  }
 0x77f   :  { %v3980_v3 = vadd.f32 %v3948_v48, %v3784_v31  ;;  %v2561_v26 = vpop.permute.xlu1 %2560  ;;  %6448 = vset.pattern.permute.xlu1 %v10520_v11 }
 0x780   :  { %4388 = vperm.xlu1 %6448, %v8980_v61   ;;  %v2606_v51 = vmul.f32 %v8286_v25, %v2561_v26  ;;  %v3511_v25 = vpop.permute.xlu0 %3510  ;;  %v10687_v26 = vld [vmem:[#allocation5_spill] sm:$0xff] }
 0x781   :  { %v4019_v1 = vadd.f32 %v9486_v28, %v3980_v3  ;;  %v3554_v58 = vmul.f32 %v8311_v37, %v3511_v25 }
 0x782   :  { %4653 = vperm.xlu0 %6478, %v9658_v22   ;;  %v2802_v45 = vadd.f32 %v2770_v20, %v2606_v51 }
 0x783   :  { %v4243_v54 = vsel %vm4211_vm10, %v4019_v1, 0.0  ;;  %v10688_v1 = vsub.s32 2, %v10684_v0 }
 0x784   :  { %v2923_v34 = vpop.permute.xlu1 %2922  ;;  %6449 = vset.pattern.permute.xlu1 %v10636_v24  ;;  %v9803_v18 = vadd.f32 %v6690_v5, %v4243_v54  ;;  %v3903_v44 = vpop.permute.xlu0 %3902  ;;  %v10689_v54 = vld [vmem:[#allocation3_spill] sm:$0xff] }
 0x785   :  { %v2966_v57 = vmul.f32 %v8290_v42, %v2923_v34  ;;  %4601 = vperm.xlu1 %6449, %v8980_v61  }
 0x786   :  { %6487 = vset.pattern.permute.xlu0 %v10520_v11  ;;  %5502 = vst.msk [vmem:[%s10420_s19 + $0xf8] sm:$0xff] %vm5470_vm8, %v9803_v18 }
 0x787   :  { %v2998_v23 = vadd.f32 %v2966_v57, %v2802_v45  ;;  %4443 = vperm.xlu0 %6487, %v9698_v40  }
 0x788   :  { %v4319_v37 = vpop.permute.xlu0 %4318 }
 0x789   :  { %v3315_v41 = vpop.permute.xlu1 %3314  ;;  %v3194_v2 = vadd.f32 %v3162_v9, %v2998_v23  ;;  %6450 = vset.pattern.permute.xlu1 %v10632_v49 }
 0x78a   :  { %v3358_v42 = vmul.f32 %v8304_v36, %v3315_v41  ;;  %4797 = vperm.xlu1 %6450, %v8980_v61   ;;  %v3946_v36 = vmul.f32 %v8330_v52, %v3903_v44 }
 0x78b   :  { %6489 = vset.pattern.permute.xlu0 %v10632_v49 }
 0x78c   :  { %v3390_v10 = vadd.f32 %v3358_v42, %v3194_v2  ;;  %4841 = vperm.xlu0 %6489, %v9698_v40   ;;  %v10690_v42 = vld [vmem:[#allocation4_spill] sm:$0xff] }
 0x78e   :  { %v3707_v4 = vpop.permute.xlu1 %3706  ;;  %v3586_v6 = vadd.f32 %v3554_v58, %v3390_v10  ;;  %6452 = vset.pattern.permute.xlu1 %v10636_v24 }
 0x78f   :  { %v3750_v19 = vmul.f32 %v8317_v15, %v3707_v4  ;;  %4593 = vperm.xlu1 %6452, %v9027_v13   ;;  %v6691_v13 = vld [vmem:[%s10457_s23 + $0xe8] sm:$0xff] }
 0x790   :  { %6492 = vset.pattern.permute.xlu0 %v10520_v11 }
 0x791   :  { %v3782_v61 = vadd.f32 %v3750_v19, %v3586_v6  ;;  %4458 = vperm.xlu0 %6492, %v9765_v33  }
 0x793   :  { %v3978_v17 = vadd.f32 %v3946_v36, %v3782_v61  ;;  %v4329_v55 = vpop.permute.xlu1 %4328  ;;  %4605 = vperm.xlu1 %6452, %v9082_v29   ;;  %v4742_v29 = vpop.permute.xlu0 %4741 }
 0x795   :  { %v4017_v53 = vadd.f32 %v9486_v28, %v3978_v17  ;;  %6493 = vset.pattern.permute.xlu0 %v10632_v49  ;;  %v4276_v28 = vld [vmem:[%s10422_s13] sm:$0x7] }
 0x796   :  { %4853 = vperm.xlu0 %6493, %v9765_v33   ;;  %v9853_v63 = vrot.slane %v4276_v28, %v10685_v27  ;;  %v9859_v48 = vrot.slane %v4276_v28, %v10686_v47  ;;  %v9873_v51 = vrot.slane %v4276_v28, %v10688_v1 }
 0x797   :  { %6456 = vset.pattern.permute.xlu1 %v10520_v11  ;;  %v4241_v15 = vsel %vm4209_vm11, %v4017_v53, 0.0  ;;  %v4334_v12 = vpop.permute.xlu0 %4333 }
 0x798   :  { %v4554_v52 = vpop.permute.xlu1 %4553  ;;  %4383 = vperm.xlu1 %6456, %v9136_v43   ;;  %v9837_v21 = vadd.f32 %v6691_v13, %v4241_v15  ;;  %v4482_v31 = vmul.f32 %v9853_v63, %v4329_v55  ;;  %v4483_v30 = vmul.f32 %v9853_v63, %v4334_v12  ;;  %v4480_v25 = vmul.f32 %v9853_v63, %v4319_v37  ;;  %v10691_v37 = vld [vmem:[#allocation6_spill] sm:$0xff] }
 0x799   :  { %v4678_v20 = vmul.f32 %v9859_v48, %v4554_v52 }
 0x79a   :  { %6494 = vset.pattern.permute.xlu0 %v10520_v11  ;;  %5500 = vst.msk [vmem:[%s10420_s19 + $0xe8] sm:$0xff] %vm5470_vm8, %v9837_v21 }
 0x79b   :  { %4473 = vperm.xlu0 %6494, %v9803_v18   ;;  %v4754_v5 = vpop.permute.xlu0 %4753 }
 0x79c   :  { %6458 = vset.pattern.permute.xlu1 %v10632_v49  ;;  %v4875_v10 = vmul.f32 %v9873_v51, %v4754_v5 }
 0x79d   :  { %v4750_v35 = vpop.permute.xlu1 %4749  ;;  %4793 = vperm.xlu1 %6458, %v9136_v43   ;;  %v9866_v43 = vld [vmem:[%s10423_s14] ss:$0 sm:$0xff] }
 0x79e   :  { %v4286_v39 = vadd.f32 %v9866_v43, %v10687_v26  ;;  %v4287_v34 = vadd.f32 %v9866_v43, %v10689_v54  ;;  %v4874_v57 = vmul.f32 %v9873_v51, %v4750_v35  ;;  %v4284_v58 = vadd.f32 %v9866_v43, %v10690_v42 }
 0x79f   :  { %6496 = vset.pattern.permute.xlu0 %v10636_v24  ;;  %v4550_v36 = vpop.permute.xlu0 %4549  ;;  %v4285_v55 = vadd.f32 %v9866_v43, %v10691_v37  ;;  %v4872_v35 = vmul.f32 %v9873_v51, %v4742_v29 }
 0x7a0   :  { %4661 = vperm.xlu0 %6496, %v9837_v21   ;;  %v4514_v45 = vadd.f32 %v4482_v31, %v4286_v39  ;;  %v4515_v23 = vadd.f32 %v4483_v30, %v4287_v34  ;;  %v4512_v19 = vadd.f32 %v4480_v25, %v4284_v58  ;;  %v4677_v13 = vmul.f32 %v9859_v48, %v4550_v36  ;;  %v10692_v25 = vld [vmem:[#allocation65_spill] sm:$0xff]  ;;  %v10694_v58 = vld [vmem:[#allocation66_spill] sm:$0xff] }
 0x7a1   :  { %6459 = vset.pattern.permute.xlu1 %v10520_v11 }
 0x7a2   :  { %v4546_v3 = vpop.permute.xlu1 %4545  ;;  %4408 = vperm.xlu1 %6459, %v9190_v59   ;;  %v4710_v41 = vadd.f32 %v4678_v20, %v4514_v45 }
 0x7a3   :  { %v4676_v4 = vmul.f32 %v9859_v48, %v4546_v3 }
 0x7a4   :  { %6498 = vset.pattern.permute.xlu0 %v10632_v49  ;;  %v4906_v44 = vadd.f32 %v4874_v57, %v4710_v41 }
 0x7a5   :  { %4865 = vperm.xlu0 %6498, %v9803_v18   ;;  %v4708_v15 = vadd.f32 %v4676_v4, %v4512_v19 }
 0x7a6   :  { %v4558_v9 = vpop.permute.xlu1 %4557  ;;  %6460 = vset.pattern.permute.xlu1 %v10636_v24  ;;  %v4938_v60 = vmax.f32 %v4906_v44, 0.0 }
 0x7a7   :  { %v4679_v2 = vmul.f32 %v9859_v48, %v4558_v9  ;;  %4617 = vperm.xlu1 %6460, %v9190_v59   ;;  %v4904_v47 = vadd.f32 %v4872_v35, %v4708_v15 }
 0x7a9   :  { %v4711_v6 = vadd.f32 %v4679_v2, %v4515_v23  ;;  %v4936_v26 = vmax.f32 %v4904_v47, 0.0  ;;  %v4290_v23 = vadd.f32 %v9866_v43, %v10692_v25  ;;  %v10693_v2 = vld [vmem:[#allocation63_spill] sm:$0xff] }
 0x7ab   :  { %v4907_v61 = vadd.f32 %v4875_v10, %v4711_v6  ;;  %v4324_v17 = vpop.permute.xlu1 %4323  ;;  %6461 = vset.pattern.permute.xlu1 %v10632_v49  ;;  %v4291_v10 = vadd.f32 %v9866_v43, %v10694_v58 }
 0x7ac   :  { %v4481_v53 = vmul.f32 %v9853_v63, %v4324_v17  ;;  %4813 = vperm.xlu1 %6461, %v9190_v59   ;;  %v4758_v59 = vpop.permute.xlu0 %4757 }
 0x7ad   :  { %v4939_v52 = vmax.f32 %v4907_v61, 0.0 }
 0x7ae   :  { %v4513_v28 = vadd.f32 %v4481_v53, %v4285_v55  ;;  %v10695_v53 = vld [vmem:[#allocation64_spill] sm:$0xff] }
 0x7af   :  { %v4969_v0 = vpack.c.bf16 %v4939_v52, %v4938_v60  ;;  %v4289_v60 = vadd.f32 %v9866_v43, %v10695_v53 }
 0x7b0   :  { %v4746_v27 = vpop.permute.xlu1 %4745  ;;  %v4709_v12 = vadd.f32 %v4677_v13, %v4513_v28  ;;  %6462 = vset.pattern.permute.xlu1 %v10520_v11  ;;  %v4354_v30 = vpop.permute.xlu0 %4353 }
 0x7b1   :  { %v4873_v31 = vmul.f32 %v9873_v51, %v4746_v27  ;;  %4398 = vperm.xlu1 %6462, %v9237_v14   ;;  %v4487_v41 = vmul.f32 %v9853_v63, %v4354_v30 }
 0x7b3   :  { %v4905_v3 = vadd.f32 %v4873_v31, %v4709_v12  ;;  %v4519_v17 = vadd.f32 %v4487_v41, %v4291_v10 }
 0x7b4   :  { %v4770_v34 = vpop.permute.xlu0 %4769 }
 0x7b5   :  { %v4937_v39 = vmax.f32 %v4905_v3, 0.0  ;;  %v4349_v1 = vpop.permute.xlu1 %4348  ;;  %6463 = vset.pattern.permute.xlu1 %v10632_v49  ;;  %v4879_v13 = vmul.f32 %v9873_v51, %v4770_v34 }
 0x7b6   :  { %4805 = vperm.xlu1 %6463, %v9237_v14   ;;  %v4486_v45 = vmul.f32 %v9853_v63, %v4349_v1 }
 0x7b7   :  { %v4968_v29 = vpack.c.bf16 %v4937_v39, %v4936_v26 }
 0x7b8   :  { %v4344_v14 = vpop.permute.xlu0 %4343  ;;  %v4518_v4 = vadd.f32 %v4486_v45, %v4290_v23 }
 0x7b9   :  { %6107 = vmatprep.mubr.msk.bf16.mxu0 %vm1417_vm2, %v4968_v29  ;;  %v4485_v19 = vmul.f32 %v9853_v63, %v4344_v14 }
 0x7ba   :  { %v4570_v20 = vpop.permute.xlu1 %4569  ;;  %6464 = vset.pattern.permute.xlu1 %v10520_v11  ;;  %6108 = vmatmul.mubr.msk.bf16.vlgmr.msra.gmra.mrb[144].mxu0 %vm1417_vm2, %v4969_v0  ;;  %v4876_v0 = vmul.f32 %v9873_v51, %v4758_v59 }
 0x7bb   :  { %4413 = vperm.xlu1 %6464, %v9292_v7   ;;  %v4517_v27 = vadd.f32 %v4485_v19, %v4289_v60 }
 0x7bc   :  { %v4566_v44 = vpop.permute.xlu0 %4565 }
 0x7bd   :  { %v4681_v15 = vmul.f32 %v9859_v48, %v4566_v44 }
 0x7bf   :  { %v4766_v54 = vpop.permute.xlu1 %4765  ;;  %6465 = vset.pattern.permute.xlu1 %v10632_v49  ;;  %v4713_v31 = vadd.f32 %v4681_v15, %v4517_v27 }
 0x7c0   :  { %4817 = vperm.xlu1 %6465, %v9292_v7   ;;  %v4682_v7 = vmul.f32 %v9859_v48, %v4570_v20  ;;  %v4878_v6 = vmul.f32 %v9873_v51, %v4766_v54  ;;  %v4586_v45 = vpop.permute.xlu0 %4585 }
 0x7c1   :  { %v4686_v41 = vmul.f32 %v9859_v48, %v4586_v45 }
 0x7c2   :  { %v4714_v37 = vadd.f32 %v4682_v7, %v4518_v4 }
 0x7c4   :  { %v4339_v5 = vpop.permute.xlu1 %4338  ;;  %6467 = vset.pattern.permute.xlu1 %v10636_v24  ;;  %v4910_v28 = vadd.f32 %v4878_v6, %v4714_v37  ;;  %v10698_v37 = vld [vmem:[#allocation67_spill] sm:$0xff] }
 0x7c5   :  { %4613 = vperm.xlu1 %6467, %v9346_v8   ;;  %v4484_v57 = vmul.f32 %v9853_v63, %v4339_v5  ;;  %v4288_v8 = vadd.f32 %v9866_v43, %v10693_v2 }
 0x7c6   :  { %v4942_v39 = vmax.f32 %v4910_v28, 0.0 }
 0x7c7   :  { %v4516_v36 = vadd.f32 %v4484_v57, %v4288_v8 }
 0x7c9   :  { %v4562_v9 = vpop.permute.xlu1 %4561  ;;  %6469 = vset.pattern.permute.xlu1 %v10520_v11 }
 0x7ca   :  { %4428 = vperm.xlu1 %6469, %v9395_v46   ;;  %v4680_v42 = vmul.f32 %v9859_v48, %v4562_v9  ;;  %v10696_v9 = vld [vmem:[#allocation11_spill] sm:$0xff] }
 0x7cb   :  { %v4294_v25 = vadd.f32 %v9866_v43, %v10696_v9  ;;  %v10700_v9 = vld [vmem:[#allocation19_spill] sm:$0xff] }
 0x7cc   :  { %v4712_v52 = vadd.f32 %v4680_v42, %v4516_v36 }
 0x7cd   :  { %v4574_v61 = vpop.permute.xlu1 %4573 }
 0x7ce   :  { %v4683_v55 = vmul.f32 %v9859_v48, %v4574_v61  ;;  %6470 = vset.pattern.permute.xlu1 %v10636_v24  ;;  %v4908_v3 = vadd.f32 %v4876_v0, %v4712_v52  ;;  %v10699_v52 = vld [vmem:[#allocation68_spill] sm:$0xff] }
 0x7cf   :  { %4633 = vperm.xlu1 %6470, %v9395_v46  }
 0x7d0   :  { %v4715_v35 = vadd.f32 %v4683_v55, %v4519_v17  ;;  %v4940_v20 = vmax.f32 %v4908_v3, 0.0  ;;  %v4292_v55 = vadd.f32 %v9866_v43, %v10698_v37 }
 0x7d2   :  { %v4911_v12 = vadd.f32 %v4879_v13, %v4715_v35  ;;  %v4762_v47 = vpop.permute.xlu1 %4761  ;;  %v4293_v13 = vadd.f32 %v9866_v43, %v10699_v52 }
 0x7d3   :  { %v4877_v26 = vmul.f32 %v9873_v51, %v4762_v47  ;;  %6471 = vset.pattern.permute.xlu1 %v10632_v49 }
 0x7d4   :  { %v4943_v1 = vmax.f32 %v4911_v12, 0.0  ;;  %4829 = vperm.xlu1 %6471, %v9395_v46  }
 0x7d5   :  { %v4909_v29 = vadd.f32 %v4877_v26, %v4713_v31 }
 0x7d6   :  { %v4971_v30 = vpack.c.bf16 %v4943_v1, %v4942_v39 }
 0x7d7   :  { %v4941_v54 = vmax.f32 %v4909_v29, 0.0  ;;  %v4369_v34 = vpop.permute.xlu1 %4368 }
 0x7d8   :  { %6473 = vset.pattern.permute.xlu1 %v10636_v24 }
 0x7d9   :  { %v4970_v59 = vpack.c.bf16 %v4941_v54, %v4940_v20  ;;  %4625 = vperm.xlu1 %6473, %v9442_v50   ;;  %v4490_v50 = vmul.f32 %v9853_v63, %v4369_v34 }
 0x7db   :  { %6111 = vmatprep.mubr.msk.bf16.mxu0 %vm1417_vm2, %v4970_v59  ;;  %v4522_v23 = vadd.f32 %v4490_v50, %v4294_v25  ;;  %v4298_v25 = vadd.f32 %v9866_v43, %v10700_v9  ;;  %v10706_v9 = vld [vmem:[#allocation21_spill] sm:$0xff] }
 0x7dc   :  { %v4782_v5 = vpop.permute.xlu1 %4781  ;;  %6112 = vmatmul.mubr.msk.bf16.gmra.mrb[148].mxu0 %vm1417_vm2, %v4971_v30 }
 0x7dd   :  { %4637 = vperm.xlu1 %6473, %v9500_v32   ;;  %v4374_v32 = vpop.permute.xlu0 %4373  ;;  %v4718_v42 = vadd.f32 %v4686_v41, %v4522_v23  ;;  %v4882_v58 = vmul.f32 %v9873_v51, %v4782_v5  ;;  %v10701_v41 = vld [vmem:[#allocation15_spill] sm:$0xff] }
 0x7de   :  { %v4491_v7 = vmul.f32 %v9853_v63, %v4374_v32 }
 0x7df   :  { %v4914_v36 = vadd.f32 %v4882_v58, %v4718_v42 }
 0x7e1   :  { %v4359_v14 = vpop.permute.xlu1 %4358  ;;  %6477 = vset.pattern.permute.xlu1 %v10520_v11  ;;  %v4364_v44 = vpop.permute.xlu0 %4363  ;;  %v4946_v27 = vmax.f32 %v4914_v36, 0.0 }
 0x7e2   :  { %4423 = vperm.xlu1 %6477, %v9543_v16   ;;  %v4488_v6 = vmul.f32 %v9853_v63, %v4359_v14  ;;  %v4489_v53 = vmul.f32 %v9853_v63, %v4364_v44 }
 0x7e4   :  { %v4520_v35 = vadd.f32 %v4488_v6, %v4292_v55 }
 0x7e5   :  { %v4778_v28 = vpop.permute.xlu0 %4777 }
 0x7e6   :  { %v4578_v46 = vpop.permute.xlu1 %4577  ;;  %6479 = vset.pattern.permute.xlu1 %v10632_v49  ;;  %v4881_v39 = vmul.f32 %v9873_v51, %v4778_v28 }
 0x7e7   :  { %4825 = vperm.xlu1 %6479, %v9543_v16   ;;  %v10697_v16 = vld [vmem:[#allocation7_spill] sm:$0xff]  ;;  %v4684_v60 = vmul.f32 %v9859_v48, %v4578_v46 }
 0x7e8   :  { %v4295_v8 = vadd.f32 %v9866_v43, %v10697_v16 }
 0x7e9   :  { %v4716_v31 = vadd.f32 %v4684_v60, %v4520_v35  ;;  %v4379_v30 = vpop.permute.xlu0 %4378  ;;  %v10703_v60 = vld [vmem:[#allocation9_spill] sm:$0xff] }
 0x7ea   :  { %v4523_v4 = vadd.f32 %v4491_v7, %v4295_v8  ;;  %v4299_v7 = vadd.f32 %v9866_v43, %v10701_v41  ;;  %v4492_v42 = vmul.f32 %v9853_v63, %v4379_v30 }
 0x7eb   :  { %v4774_v57 = vpop.permute.xlu1 %4773  ;;  %6480 = vset.pattern.permute.xlu1 %v10520_v11 }
 0x7ec   :  { %4448 = vperm.xlu1 %6480, %v9580_v62   ;;  %v4880_v0 = vmul.f32 %v9873_v51, %v4774_v57 }
 0x7ed   :  { %v4790_v46 = vpop.permute.xlu0 %4789 }
 0x7ee   :  { %v4912_v1 = vadd.f32 %v4880_v0, %v4716_v31 }
 0x7f0   :  { %v4590_v2 = vpop.permute.xlu1 %4589  ;;  %6481 = vset.pattern.permute.xlu1 %v10636_v24  ;;  %v4944_v34 = vmax.f32 %v4912_v1, 0.0 }
 0x7f1   :  { %4649 = vperm.xlu1 %6481, %v9580_v62   ;;  %v4687_v10 = vmul.f32 %v9859_v48, %v4590_v2  ;;  %v4394_v50 = vpop.permute.xlu0 %4393 }
 0x7f2   :  { %v4495_v32 = vmul.f32 %v9853_v63, %v4394_v50  ;;  %v10705_v50 = vld [vmem:[#allocation23_spill] sm:$0xff] }
 0x7f3   :  { %v4719_v61 = vadd.f32 %v4687_v10, %v4523_v4  ;;  %v10702_v4 = vld [vmem:[#allocation13_spill] sm:$0xff] }
 0x7f4   :  { %v4527_v58 = vadd.f32 %v4495_v32, %v4299_v7  ;;  %v4296_v6 = vadd.f32 %v9866_v43, %v10702_v4  ;;  %v10707_v4 = vld [vmem:[#allocation17_spill] sm:$0xff] }
 0x7f5   :  { %v4786_v19 = vpop.permute.xlu1 %4785  ;;  %6482 = vset.pattern.permute.xlu1 %v10632_v49  ;;  %v4802_v2 = vpop.permute.xlu0 %4801 }
 0x7f6   :  { %v4883_v17 = vmul.f32 %v9873_v51, %v4786_v19  ;;  %4845 = vperm.xlu1 %6482, %v9580_v62   ;;  %v4521_v62 = vadd.f32 %v4489_v53, %v4293_v13 }
 0x7f8   :  { %v4915_v15 = vadd.f32 %v4883_v17, %v4719_v61  ;;  %v4524_v17 = vadd.f32 %v4492_v42, %v4296_v6  ;;  %v4301_v6 = vadd.f32 %v9866_v43, %v10707_v4 }
 0x7f9   :  { %v4598_v37 = vpop.permute.xlu0 %4597 }
 0x7fa   :  { %v4947_v12 = vmax.f32 %v4915_v15, 0.0  ;;  %v4582_v47 = vpop.permute.xlu1 %4581  ;;  %6483 = vset.pattern.permute.xlu1 %v10520_v11  ;;  %v4297_v15 = vadd.f32 %v9866_v43, %v10703_v60  ;;  %v4689_v0 = vmul.f32 %v9859_v48, %v4598_v37 }
 0x7fb   :  { %v4685_v3 = vmul.f32 %v9859_v48, %v4582_v47  ;;  %4438 = vperm.xlu1 %6483, %v9614_v56  }
 0x7fc   :  { %v4973_v26 = vpack.c.bf16 %v4947_v12, %v4946_v27  ;;  %v4884_v12 = vmul.f32 %v9873_v51, %v4790_v46 }
 0x7fd   :  { %v4717_v29 = vadd.f32 %v4685_v3, %v4521_v62 }
 0x7ff   :  { %v4913_v20 = vadd.f32 %v4881_v39, %v4717_v29  ;;  %v4389_v54 = vpop.permute.xlu1 %4388  ;;  %6484 = vset.pattern.permute.xlu1 %v10632_v49 }
 0x800   :  { %4837 = vperm.xlu1 %6484, %v9614_v56   ;;  %v4494_v56 = vmul.f32 %v9853_v63, %v4389_v54 }
 0x801   :  { %v4945_v59 = vmax.f32 %v4913_v20, 0.0 }
 0x803   :  { %v4972_v5 = vpack.c.bf16 %v4945_v59, %v4944_v34  ;;  %v4610_v34 = vpop.permute.xlu0 %4609 }
 0x804   :  { %v4602_v14 = vpop.permute.xlu1 %4601  ;;  %6485 = vset.pattern.permute.xlu1 %v10520_v11 }
 0x805   :  { %4453 = vperm.xlu1 %6485, %v9658_v22   ;;  %6115 = vmatprep.mubr.msk.bf16.mxu0 %vm1417_vm2, %v4972_v5  ;;  %v4690_v23 = vmul.f32 %v9859_v48, %v4602_v14  ;;  %v10704_v5 = vld [vmem:[#allocation27_spill] sm:$0xff] }
 0x806   :  { %6116 = vmatmul.mubr.msk.bf16.gmra.mrb[152].mxu0 %vm1417_vm2, %v4973_v26  ;;  %v4302_v14 = vadd.f32 %v9866_v43, %v10704_v5 }
 0x807   :  { %v4622_v59 = vpop.permute.xlu0 %4621 }
 0x808   :  { %v4695_v32 = vmul.f32 %v9859_v48, %v4622_v59 }
 0x809   :  { %v4798_v45 = vpop.permute.xlu1 %4797  ;;  %6486 = vset.pattern.permute.xlu1 %v10632_v49 }
 0x80a   :  { %4849 = vperm.xlu1 %6486, %v9658_v22   ;;  %v4526_v22 = vadd.f32 %v4494_v56, %v4298_v25  ;;  %v4886_v16 = vmul.f32 %v9873_v51, %v4798_v45  ;;  %v4300_v25 = vadd.f32 %v9866_v43, %v10706_v9 }
 0x80c   :  { %v4722_v10 = vadd.f32 %v4690_v23, %v4526_v22  ;;  %v4404_v23 = vpop.permute.xlu0 %4403 }
 0x80e   :  { %v4594_v57 = vpop.permute.xlu1 %4593  ;;  %6488 = vset.pattern.permute.xlu1 %v10636_v24  ;;  %v4918_v19 = vadd.f32 %v4886_v16, %v4722_v10  ;;  %v4497_v10 = vmul.f32 %v9853_v63, %v4404_v23 }
 0x80f   :  { %4645 = vperm.xlu1 %6488, %v9698_v40   ;;  %v4887_v40 = vmul.f32 %v9873_v51, %v4802_v2  ;;  %v4688_v36 = vmul.f32 %v9859_v48, %v4594_v57 }
 0x810   :  { %v4950_v13 = vmax.f32 %v4918_v19, 0.0 }
 0x811   :  { %v4720_v28 = vadd.f32 %v4688_v36, %v4524_v17 }
 0x812   :  { %v4606_v8 = vpop.permute.xlu1 %4605 }
 0x813   :  { %v4691_v44 = vmul.f32 %v9859_v48, %v4606_v8  ;;  %6490 = vset.pattern.permute.xlu1 %v10520_v11  ;;  %v4916_v3 = vadd.f32 %v4884_v12, %v4720_v28 }
 0x814   :  { %4468 = vperm.xlu1 %6490, %v9731_v38  }
 0x815   :  { %v4723_v61 = vadd.f32 %v4691_v44, %v4527_v58  ;;  %v4692_v58 = vmul.f32 %v9859_v48, %v4610_v34 }
 0x817   :  { %v4919_v55 = vadd.f32 %v4887_v40, %v4723_v61  ;;  %v4384_v53 = vpop.permute.xlu1 %4383  ;;  %v4810_v40 = vpop.permute.xlu0 %4809 }
 0x818   :  { %v4493_v52 = vmul.f32 %v9853_v63, %v4384_v53  ;;  %6491 = vset.pattern.permute.xlu1 %v10636_v24  ;;  %v4948_v24 = vmax.f32 %v4916_v3, 0.0 }
 0x819   :  { %v4951_v35 = vmax.f32 %v4919_v55, 0.0  ;;  %4665 = vperm.xlu1 %6491, %v9731_v38   ;;  %v4529_v55 = vadd.f32 %v4497_v10, %v4301_v6 }
 0x81a   :  { %v4525_v27 = vadd.f32 %v4493_v52, %v4297_v15  ;;  %v4889_v15 = vmul.f32 %v9873_v51, %v4810_v40 }
 0x81b   :  { %v4975_v47 = vpack.c.bf16 %v4951_v35, %v4950_v13  ;;  %v4419_v28 = vpop.permute.xlu0 %4418 }
 0x81c   :  { %v4794_v62 = vpop.permute.xlu1 %4793  ;;  %v4721_v31 = vadd.f32 %v4689_v0, %v4525_v27  ;;  %v4500_v5 = vmul.f32 %v9853_v63, %v4419_v28 }
 0x81d   :  { %v4885_v26 = vmul.f32 %v9873_v51, %v4794_v62  ;;  %4657 = vperm.xlu1 %6491, %v9765_v33  }
 0x81f   :  { %v4917_v39 = vadd.f32 %v4885_v26, %v4721_v31  ;;  %v4822_v31 = vpop.permute.xlu0 %4821 }
 0x820   :  { %v4892_v10 = vmul.f32 %v9873_v51, %v4822_v31  ;;  %v10713_v31 = vld [vmem:[#allocation71_spill] sm:$0xff] }
 0x821   :  { %v4949_v1 = vmax.f32 %v4917_v39, 0.0  ;;  %v4409_v29 = vpop.permute.xlu1 %4408  ;;  %4669 = vperm.xlu1 %6491, %v9803_v18  }
 0x823   :  { %v4974_v30 = vpack.c.bf16 %v4949_v1, %v4948_v24  ;;  %v4434_v26 = vpop.permute.xlu0 %4433  ;;  %v10708_v1 = vld [vmem:[#allocation35_spill] sm:$0xff] }
 0x825   :  { %6495 = vset.pattern.permute.xlu1 %v10520_v11  ;;  %6119 = vmatprep.mubr.msk.bf16.mxu0 %vm1417_vm2, %v4974_v30  ;;  %v4498_v11 = vmul.f32 %v9853_v63, %v4409_v29  ;;  %v4306_v29 = vadd.f32 %v9866_v43, %v10708_v1  ;;  %v4503_v30 = vmul.f32 %v9853_v63, %v4434_v26 }
 0x826   :  { %v4618_v20 = vpop.permute.xlu1 %4617  ;;  %4463 = vperm.xlu1 %6495, %v9837_v21   ;;  %6120 = vmatmul.mubr.msk.bf16.gmra.mrb[156].mxu0 %vm1417_vm2, %v4975_v47 }
 0x827   :  { %v4694_v46 = vmul.f32 %v9859_v48, %v4618_v20  ;;  %v4834_v34 = vpop.permute.xlu0 %4833 }
 0x82a   :  { %6497 = vset.pattern.permute.xlu1 %v10632_v49  ;;  %v4303_v49 = vadd.f32 %v9866_v43, %v10705_v50  ;;  %v10710_v50 = vld [vmem:[#allocation29_spill] sm:$0xff] }
 0x82b   :  { %v4814_v54 = vpop.permute.xlu1 %4813  ;;  %4857 = vperm.xlu1 %6497, %v9837_v21  }
 0x82c   :  { %v4890_v57 = vmul.f32 %v9873_v51, %v4814_v54  ;;  %v10709_v54 = vld [vmem:[#allocation31_spill] sm:$0xff] }
 0x82f   :  { %4861 = vperm.xlu1 %6497, %v9731_v38   ;;  %v4530_v38 = vadd.f32 %v4498_v11, %v4302_v14 }
 0x830   :  { %v4399_v33 = vpop.permute.xlu1 %4398 }
 0x831   :  { %v4496_v56 = vmul.f32 %v9853_v63, %v4399_v33  ;;  %v4726_v7 = vadd.f32 %v4694_v46, %v4530_v38  ;;  %v4307_v33 = vadd.f32 %v9866_v43, %v10709_v54 }
 0x833   :  { %v4528_v2 = vadd.f32 %v4496_v56, %v4300_v25  ;;  %v4922_v8 = vadd.f32 %v4890_v57, %v4726_v7  ;;  %v4535_v14 = vadd.f32 %v4503_v30, %v4307_v33  ;;  %v4895_v56 = vmul.f32 %v9873_v51, %v4834_v34  ;;  %v4630_v25 = vpop.permute.xlu0 %4629 }
 0x835   :  { %v4806_v18 = vpop.permute.xlu1 %4805  ;;  %v4724_v19 = vadd.f32 %v4692_v58, %v4528_v2  ;;  %v4954_v61 = vmax.f32 %v4922_v8, 0.0 }
 0x836   :  { %v4888_v36 = vmul.f32 %v9873_v51, %v4806_v18 }
 0x838   :  { %v4920_v52 = vadd.f32 %v4888_v36, %v4724_v19 }
 0x83a   :  { %v4414_v45 = vpop.permute.xlu1 %4413  ;;  %v4952_v27 = vmax.f32 %v4920_v52, 0.0 }
 0x83b   :  { %v4499_v21 = vmul.f32 %v9853_v63, %v4414_v45 }
 0x83d   :  { %v4531_v41 = vadd.f32 %v4499_v21, %v4303_v49  ;;  %v4304_v49 = vadd.f32 %v9866_v43, %v10710_v50  ;;  %v10081_v50 = vld [vmem:[%s10425_s16] ss:$0 sm:$0xff]  ;;  %s6700_s16 = smov 3  }
 0x83f   :  { %v4818_v22 = vpop.permute.xlu1 %4817  ;;  %v4727_v16 = vadd.f32 %v4695_v32, %v4531_v41  ;;  %v4532_v9 = vadd.f32 %v4500_v5, %v4304_v49  ;;  %v10711_v41 = vld [vmem:[#allocation25_spill] sm:$0xff] }
 0x840   :  { %v4891_v42 = vmul.f32 %v9873_v51, %v4818_v22  ;;  %v4305_v7 = vadd.f32 %v9866_v43, %v10711_v41 }
 0x842   :  { %v4923_v44 = vadd.f32 %v4891_v42, %v4727_v16  ;;  %v4697_v42 = vmul.f32 %v9859_v48, %v4630_v25 }
 0x844   :  { %v4955_v17 = vmax.f32 %v4923_v44, 0.0  ;;  %v4614_v37 = vpop.permute.xlu1 %4613 }
 0x845   :  { %v4693_v53 = vmul.f32 %v9859_v48, %v4614_v37 }
 0x846   :  { %v4977_v60 = vpack.c.bf16 %v4955_v17, %v4954_v61 }
 0x847   :  { %v4725_v13 = vadd.f32 %v4693_v53, %v4529_v55 }
 0x849   :  { %v4921_v35 = vadd.f32 %v4889_v15, %v4725_v13  ;;  %v4429_v0 = vpop.permute.xlu1 %4428  ;;  %v4642_v15 = vpop.permute.xlu0 %4641 }
 0x84a   :  { %v4502_v39 = vmul.f32 %v9853_v63, %v4429_v0  ;;  %v10712_v0 = vld [vmem:[#allocation70_spill] sm:$0xff]  ;;  %v4700_v5 = vmul.f32 %v9859_v48, %v4642_v15 }
 0x84b   :  { %v4953_v12 = vmax.f32 %v4921_v35, 0.0 }
 0x84c   :  { %v4534_v18 = vadd.f32 %v4502_v39, %v4306_v29  ;;  %v10714_v39 = vld [vmem:[#allocation33_spill] sm:$0xff] }
 0x84d   :  { %v4976_v47 = vpack.c.bf16 %v4953_v12, %v4952_v27  ;;  %v4654_v28 = vpop.permute.xlu0 %4653  ;;  %v4310_v27 = vadd.f32 %v9866_v43, %v10712_v0 }
 0x84e   :  { %v4634_v62 = vpop.permute.xlu1 %4633 }
 0x84f   :  { %6123 = vmatprep.mubr.msk.bf16.mxu0 %vm1417_vm2, %v4976_v47  ;;  %v4698_v20 = vmul.f32 %v9859_v48, %v4634_v62 }
 0x850   :  { %6124 = vmatmul.mubr.msk.bf16.gmra.mrb[160].mxu0 %vm1417_vm2, %v4977_v60 }
 0x851   :  { %v4730_v46 = vadd.f32 %v4698_v20, %v4534_v18  ;;  %v4444_v1 = vpop.permute.xlu0 %4443  ;;  %v4703_v20 = vmul.f32 %v9859_v48, %v4654_v28  ;;  %v24_v18 = vstv %s10424_s18 }
 0x852   :  { %25 = vst [vmem:[#allocation2] sm:$0x1] %v24_v18 }
 0x853   :  { %v4830_v3 = vpop.permute.xlu1 %4829 }
 0x854   :  { %v4894_v59 = vmul.f32 %v9873_v51, %v4830_v3  ;;  %v4311_v3 = vadd.f32 %v9866_v43, %v10713_v31 }
 0x855   :  { %v4842_v49 = vpop.permute.xlu0 %4841 }
 0x856   :  { %v4926_v21 = vadd.f32 %v4894_v59, %v4730_v46 }
 0x858   :  { %v4626_v24 = vpop.permute.xlu1 %4625  ;;  %v4958_v22 = vmax.f32 %v4926_v21, 0.0 }
 0x859   :  { %v4696_v38 = vmul.f32 %v9859_v48, %v4626_v24  ;;  %v4308_v24 = vadd.f32 %v9866_v43, %v10714_v39 }
 0x85b   :  { %v4728_v16 = vadd.f32 %v4696_v38, %v4532_v9 }
 0x85c   :  { %v4638_v11 = vpop.permute.xlu1 %4637 }
 0x85d   :  { %v4699_v45 = vmul.f32 %v9859_v48, %v4638_v11  ;;  %v4924_v40 = vadd.f32 %v4892_v10, %v4728_v16  ;;  %v10090_v16 = vld [vmem:[%s10426_s17] ss:$0 sm:$0xff] }
 0x85f   :  { %v4731_v57 = vadd.f32 %v4699_v45, %v4535_v14  ;;  %v4956_v61 = vmax.f32 %v4924_v40, 0.0  ;;  %v4505_v45 = vmul.f32 %v9853_v63, %v4444_v1 }
 0x861   :  { %v4927_v32 = vadd.f32 %v4895_v56, %v4731_v57  ;;  %v4424_v23 = vpop.permute.xlu1 %4423  ;;  %v10715_v57 = vld [vmem:[#allocation69_spill] sm:$0xff] }
 0x862   :  { %v4501_v2 = vmul.f32 %v9853_v63, %v4424_v23  ;;  %v4309_v9 = vadd.f32 %v9866_v43, %v10715_v57 }
 0x863   :  { %v4959_v8 = vmax.f32 %v4927_v32, 0.0 }
 0x864   :  { %v4533_v58 = vadd.f32 %v4501_v2, %v4305_v7 }
 0x865   :  { %v4979_v44 = vpack.c.bf16 %v4959_v8, %v4958_v22  ;;  %v4537_v22 = vadd.f32 %v4505_v45, %v4309_v9  ;;  %v10718_v45 = vld [vmem:[#allocation74_spill] sm:$0xff] }
 0x866   :  { %v4826_v4 = vpop.permute.xlu1 %4825  ;;  %v4729_v6 = vadd.f32 %v4697_v42, %v4533_v58 }
 0x867   :  { %v4893_v19 = vmul.f32 %v9873_v51, %v4826_v4 }
 0x869   :  { %v4925_v36 = vadd.f32 %v4893_v19, %v4729_v6  ;;  %v4897_v19 = vmul.f32 %v9873_v51, %v4842_v49  ;;  %v4315_v49 = vadd.f32 %v9866_v43, %v10718_v45 }
 0x86b   :  { %v4957_v17 = vmax.f32 %v4925_v36, 0.0  ;;  %v4449_v37 = vpop.permute.xlu1 %4448 }
 0x86c   :  { %v4506_v35 = vmul.f32 %v9853_v63, %v4449_v37  ;;  %v4459_v37 = vpop.permute.xlu0 %4458 }
 0x86d   :  { %v4978_v55 = vpack.c.bf16 %v4957_v17, %v4956_v61 }
 0x86e   :  { %v4538_v29 = vadd.f32 %v4506_v35, %v4310_v27 }
 0x86f   :  { %6127 = vmatprep.mubr.msk.bf16.mxu0 %vm1417_vm2, %v4978_v55 }
 0x870   :  { %v4650_v53 = vpop.permute.xlu1 %4649  ;;  %6128 = vmatmul.mubr.msk.bf16.gmra.mrb[164].mxu0 %vm1417_vm2, %v4979_v44 }
 0x871   :  { %v4702_v12 = vmul.f32 %v9859_v48, %v4650_v53 }
 0x873   :  { %v4734_v33 = vadd.f32 %v4702_v12, %v4538_v29 }
 0x875   :  { %v4846_v60 = vpop.permute.xlu1 %4845 }
 0x876   :  { %v4898_v30 = vmul.f32 %v9873_v51, %v4846_v60 }
 0x878   :  { %v4930_v14 = vadd.f32 %v4898_v30, %v4734_v33  ;;  %v4508_v30 = vmul.f32 %v9853_v63, %v4459_v37 }
 0x87a   :  { %v4439_v52 = vpop.permute.xlu1 %4438  ;;  %v4962_v32 = vmax.f32 %v4930_v14, 0.0 }
 0x87b   :  { %v4504_v47 = vmul.f32 %v9853_v63, %v4439_v52 }
 0x87d   :  { %v4536_v34 = vadd.f32 %v4504_v47, %v4308_v24 }
 0x87f   :  { %v4838_v13 = vpop.permute.xlu1 %4837  ;;  %v4732_v56 = vadd.f32 %v4700_v5, %v4536_v34  ;;  %v10717_v5 = vld [vmem:[#allocation73_spill] sm:$0xff] }
 0x880   :  { %v4896_v21 = vmul.f32 %v9873_v51, %v4838_v13  ;;  %v4313_v14 = vadd.f32 %v9866_v43, %v10717_v5 }
 0x882   :  { %v4928_v10 = vadd.f32 %v4896_v21, %v4732_v56 }
 0x884   :  { %v4454_v62 = vpop.permute.xlu1 %4453  ;;  %v4960_v28 = vmax.f32 %v4928_v10, 0.0 }
 0x885   :  { %v4507_v26 = vmul.f32 %v9853_v63, %v4454_v62 }
 0x887   :  { %v4539_v54 = vadd.f32 %v4507_v26, %v4311_v3  ;;  %v4854_v3 = vpop.permute.xlu0 %4853 }
 0x889   :  { %v4850_v59 = vpop.permute.xlu1 %4849  ;;  %v4735_v11 = vadd.f32 %v4703_v20, %v4539_v54  ;;  %v10716_v20 = vld [vmem:[#allocation72_spill] sm:$0xff] }
 0x88a   :  { %v4899_v46 = vmul.f32 %v9873_v51, %v4850_v59  ;;  %v4312_v54 = vadd.f32 %v9866_v43, %v10716_v20 }
 0x88b   :  { %v4474_v1 = vpop.permute.xlu0 %4473 }
 0x88c   :  { %v4931_v38 = vadd.f32 %v4899_v46, %v4735_v11  ;;  %v4540_v18 = vadd.f32 %v4508_v30, %v4312_v54  ;;  %v4511_v59 = vmul.f32 %v9853_v63, %v4474_v1 }
 0x88d   :  { %v6109_v25 = vpop.f32.mrb[144].mxu0 }
 0x88e   :  { %v4963_v23 = vmax.f32 %v4931_v38, 0.0  ;;  %v5114_v41 = vadd.f32 %v6109_v25, %v10081_v50  ;;  %v4646_v7 = vpop.permute.xlu1 %4645  ;;  %v5105_v2 = vpop.f32.mrb[145].mxu0  ;;  %v4900_v25 = vmul.f32 %v9873_v51, %v4854_v3 }
 0x88f   :  { %v4701_v8 = vmul.f32 %v9859_v48, %v4646_v7  ;;  %v5106_v42 = vadd.f32 %v10081_v50, %v5105_v2  ;;  %v6110_v58 = vpop.f32.mrb[146].mxu0  ;;  %v4662_v34 = vpop.permute.xlu0 %4661 }
 0x890   :  { %v4981_v44 = vpack.c.bf16 %v4963_v23, %v4962_v32  ;;  %v5234_v4 = vmax.f32 %v5114_v41, 0.0  ;;  %v5117_v6 = vadd.f32 %v6110_v58, %v10081_v50  ;;  %v5108_v40 = vpop.f32.mrb[147].mxu0  ;;  %v4705_v38 = vmul.f32 %v9859_v48, %v4662_v34  ;;  %v10719_v23 = vld [vmem:[#allocation43_spill] sm:$0xff] }
 0x891   :  { %v4733_v36 = vadd.f32 %v4701_v8, %v4537_v22  ;;  %v5232_v61 = vmax.f32 %v5106_v42, 0.0  ;;  %v5109_v17 = vadd.f32 %v10081_v50, %v5108_v40  ;;  %v4543_v32 = vadd.f32 %v4511_v59, %v4315_v49 }
 0x892   :  { %v5273_v55 = vmul.f32 %v10090_v16, %v5234_v4  ;;  %v5235_v53 = vmax.f32 %v5117_v6, 0.0  ;;  %v4314_v41 = vadd.f32 %v9866_v43, %v10719_v23 }
 0x893   :  { %v4929_v60 = vadd.f32 %v4897_v19, %v4733_v36  ;;  %v5271_v15 = vmul.f32 %v10090_v16, %v5232_v61  ;;  %v5233_v52 = vmax.f32 %v5109_v17, 0.0  ;;  %v4469_v13 = vpop.permute.xlu1 %4468  ;;  %v4866_v7 = vpop.permute.xlu0 %4865 }
 0x894   :  { %v5309_v35 = vsel %vm1417_vm2, %v5273_v55, 0.0  ;;  %v5274_v27 = vmul.f32 %v10090_v16, %v5235_v53  ;;  %v4510_v57 = vmul.f32 %v9853_v63, %v4469_v13  ;;  %v4903_v4 = vmul.f32 %v9873_v51, %v4866_v7 }
 0x895   :  { %v4961_v0 = vmax.f32 %v4929_v60, 0.0  ;;  %v5272_v12 = vmul.f32 %v10090_v16, %v5233_v52  ;;  %5310 = vadd.xlane.f32.xlu0 %v5309_v35  ;;  %v5303_v47 = vsel %vm1417_vm2, %v5271_v15, 0.0 }
 0x896   :  { %5304 = vadd.xlane.f32.xlu1 %v5303_v47  ;;  %v5312_v39 = vsel %vm1417_vm2, %v5274_v27, 0.0 }
 0x897   :  { %v4980_v62 = vpack.c.bf16 %v4961_v0, %v4960_v28  ;;  %v5306_v31 = vsel %vm1417_vm2, %v5272_v12, 0.0 }
 0x898   :  { %v4666_v26 = vpop.permute.xlu1 %4665 }
 0x899   :  { %5307 = vadd.xlane.f32.xlu0 %v5306_v31  ;;  %6131 = vmatprep.mubr.msk.bf16.mxu0 %vm1417_vm2, %v4980_v62  ;;  %v4706_v2 = vmul.f32 %v9859_v48, %v4666_v26 }
 0x89a   :  { %5313 = vadd.xlane.f32.xlu1 %v5312_v39  ;;  %6132 = vmatmul.mubr.msk.bf16.gmra.mrb[168].mxu0 %vm1417_vm2, %v4981_v44  ;;  %v4542_v44 = vadd.f32 %v4510_v57, %v4314_v41 }
 0x89c   :  { %v4658_v24 = vpop.permute.xlu1 %4657  ;;  %v4738_v6 = vadd.f32 %v4706_v2, %v4542_v44 }
 0x89d   :  { %v4704_v33 = vmul.f32 %v9859_v48, %v4658_v24 }
 0x89f   :  { %v4736_v56 = vadd.f32 %v4704_v33, %v4540_v18 }
 0x8a0   :  { %v4670_v29 = vpop.permute.xlu1 %4669 }
 0x8a1   :  { %v4707_v21 = vmul.f32 %v9859_v48, %v4670_v29  ;;  %v4932_v42 = vadd.f32 %v4900_v25, %v4736_v56 }
 0x8a3   :  { %v4739_v58 = vadd.f32 %v4707_v21, %v4543_v32  ;;  %v4964_v19 = vmax.f32 %v4932_v42, 0.0 }
 0x8a5   :  { %v4464_v11 = vpop.permute.xlu1 %4463  ;;  %v4935_v36 = vadd.f32 %v4903_v4, %v4739_v58 }
 0x8a6   :  { %v4509_v46 = vmul.f32 %v9853_v63, %v4464_v11 }
 0x8a7   :  { %v4967_v35 = vmax.f32 %v4935_v36, 0.0 }
 0x8a8   :  { %v4541_v9 = vadd.f32 %v4509_v46, %v4313_v14 }
 0x8aa   :  { %v4858_v22 = vpop.permute.xlu1 %4857  ;;  %v4737_v8 = vadd.f32 %v4705_v38, %v4541_v9 }
 0x8ab   :  { %v4901_v10 = vmul.f32 %v9873_v51, %v4858_v22 }
 0x8ad   :  { %v4933_v63 = vadd.f32 %v4901_v10, %v4737_v8 }
 0x8ae   :  { %v4862_v40 = vpop.permute.xlu1 %4861 }
 0x8af   :  { %v4965_v61 = vmax.f32 %v4933_v63, 0.0  ;;  %v4902_v43 = vmul.f32 %v9873_v51, %v4862_v40  ;;  %v6113_v17 = vpop.f32.mrb[148].mxu0 }
 0x8b0   :  { %v5130_v48 = vadd.f32 %v6113_v17, %v10081_v50  ;;  %v5121_v37 = vpop.f32.mrb[149].mxu0 }
 0x8b1   :  { %v4982_v55 = vpack.c.bf16 %v4965_v61, %v4964_v19  ;;  %v4934_v53 = vadd.f32 %v4902_v43, %v4738_v6  ;;  %v5122_v60 = vadd.f32 %v10081_v50, %v5121_v37  ;;  %v6114_v15 = vpop.f32.mrb[150].mxu0 }
 0x8b2   :  { %v5238_v52 = vmax.f32 %v5130_v48, 0.0  ;;  %v5133_v13 = vadd.f32 %v6114_v15, %v10081_v50  ;;  %v5124_v28 = vpop.f32.mrb[151].mxu0 }
 0x8b3   :  { %v4966_v0 = vmax.f32 %v4934_v53, 0.0  ;;  %v5236_v27 = vmax.f32 %v5122_v60, 0.0  ;;  %v5125_v12 = vadd.f32 %v10081_v50, %v5124_v28  ;;  %6135 = vmatprep.mubr.msk.bf16.mxu0 %vm1417_vm2, %v4982_v55 }
 0x8b4   :  { %v5277_v51 = vmul.f32 %v10090_v16, %v5238_v52  ;;  %v5239_v47 = vmax.f32 %v5133_v13, 0.0 }
 0x8b5   :  { %v4983_v62 = vpack.c.bf16 %v4967_v35, %v4966_v0  ;;  %v5237_v31 = vmax.f32 %v5125_v12, 0.0  ;;  %v5275_v3 = vmul.f32 %v10090_v16, %v5236_v27 }
 0x8b6   :  { %v5278_v26 = vmul.f32 %v10090_v16, %v5239_v47  ;;  %v5321_v39 = vsel %vm1417_vm2, %v5277_v51, 0.0 }
 0x8b7   :  { %5322 = vadd.xlane.f32.xlu0 %v5321_v39  ;;  %6136 = vmatmul.mubr.msk.bf16.gmra.mrb[172].mxu0 %vm1417_vm2, %v4983_v62  ;;  %v5276_v24 = vmul.f32 %v10090_v16, %v5237_v31  ;;  %v5315_v29 = vsel %vm1417_vm2, %v5275_v3, 0.0 }
 0x8b8   :  { %v5324_v1 = vsel %vm1417_vm2, %v5278_v26, 0.0 }
 0x8b9   :  { %5325 = vadd.xlane.f32.xlu1 %v5324_v1  ;;  %v5318_v30 = vsel %vm1417_vm2, %v5276_v24, 0.0 }
 0x8bb   :  { %5316 = vadd.xlane.f32.xlu0 %v5315_v29 }
 0x8bd   :  { %5319 = vadd.xlane.f32.xlu1 %v5318_v30 }
 0x8d9   :  { %v6117_v20 = vpop.f32.mrb[152].mxu0 }
 0x8da   :  { %v5146_v54 = vadd.f32 %v6117_v20, %v10081_v50  ;;  %v5137_v33 = vpop.f32.mrb[153].mxu0 }
 0x8db   :  { %v5138_v34 = vadd.f32 %v10081_v50, %v5137_v33  ;;  %v6118_v18 = vpop.f32.mrb[154].mxu0 }
 0x8dc   :  { %v5242_v59 = vmax.f32 %v5146_v54, 0.0  ;;  %v5149_v11 = vadd.f32 %v6118_v18, %v10081_v50  ;;  %v5140_v5 = vpop.f32.mrb[155].mxu0 }
 0x8dd   :  { %v5240_v14 = vmax.f32 %v5138_v34, 0.0  ;;  %v5141_v46 = vadd.f32 %v10081_v50, %v5140_v5 }
 0x8de   :  { %v5281_v45 = vmul.f32 %v10090_v16, %v5242_v59  ;;  %v5243_v49 = vmax.f32 %v5149_v11, 0.0 }
 0x8df   :  { %v5241_v56 = vmax.f32 %v5141_v46, 0.0  ;;  %v5279_v21 = vmul.f32 %v10090_v16, %v5240_v14 }
 0x8e0   :  { %v5282_v38 = vmul.f32 %v10090_v16, %v5243_v49  ;;  %v5333_v57 = vsel %vm1417_vm2, %v5281_v45, 0.0 }
 0x8e1   :  { %5334 = vadd.xlane.f32.xlu0 %v5333_v57  ;;  %v5280_v9 = vmul.f32 %v10090_v16, %v5241_v56  ;;  %v5327_v32 = vsel %vm1417_vm2, %v5279_v21, 0.0 }
 0x8e2   :  { %v5336_v25 = vsel %vm1417_vm2, %v5282_v38, 0.0 }
 0x8e3   :  { %5337 = vadd.xlane.f32.xlu1 %v5336_v25  ;;  %v5330_v23 = vsel %vm1417_vm2, %v5280_v9, 0.0 }
 0x8e5   :  { %5328 = vadd.xlane.f32.xlu0 %v5327_v32 }
 0x8e7   :  { %5331 = vadd.xlane.f32.xlu1 %v5330_v23 }
 0x8f9   :  { %v6121_v41 = vpop.f32.mrb[156].mxu0 }
 0x8fa   :  { %v5162_v7 = vadd.f32 %v6121_v41, %v10081_v50  ;;  %v5153_v2 = vpop.f32.mrb[157].mxu0 }
 0x8fb   :  { %v5154_v22 = vadd.f32 %v10081_v50, %v5153_v2  ;;  %v6122_v8 = vpop.f32.mrb[158].mxu0 }
 0x8fc   :  { %v5246_v42 = vmax.f32 %v5162_v7, 0.0  ;;  %v5165_v58 = vadd.f32 %v6122_v8, %v10081_v50  ;;  %v5156_v10 = vpop.f32.mrb[159].mxu0 }
 0x8fd   :  { %v5244_v44 = vmax.f32 %v5154_v22, 0.0  ;;  %v5157_v4 = vadd.f32 %v10081_v50, %v5156_v10 }
 0x8fe   :  { %v5285_v63 = vmul.f32 %v10090_v16, %v5246_v42  ;;  %v5247_v6 = vmax.f32 %v5165_v58, 0.0 }
 0x8ff   :  { %v5245_v40 = vmax.f32 %v5157_v4, 0.0  ;;  %v5283_v19 = vmul.f32 %v10090_v16, %v5244_v44 }
 0x900   :  { %v5286_v36 = vmul.f32 %v10090_v16, %v5247_v6  ;;  %v5345_v61 = vsel %vm1417_vm2, %v5285_v63, 0.0 }
 0x901   :  { %5346 = vadd.xlane.f32.xlu0 %v5345_v61  ;;  %v5284_v43 = vmul.f32 %v10090_v16, %v5245_v40  ;;  %v5339_v48 = vsel %vm1417_vm2, %v5283_v19, 0.0 }
 0x902   :  { %v5348_v17 = vsel %vm1417_vm2, %v5286_v36, 0.0 }
 0x903   :  { %5349 = vadd.xlane.f32.xlu1 %v5348_v17  ;;  %v5342_v37 = vsel %vm1417_vm2, %v5284_v43, 0.0 }
 0x905   :  { %5340 = vadd.xlane.f32.xlu0 %v5339_v48 }
 0x907   :  { %5343 = vadd.xlane.f32.xlu1 %v5342_v37 }
 0x923   :  { %v6125_v55 = vpop.f32.mrb[160].mxu0 }
 0x924   :  { %v5178_v53 = vadd.f32 %v6125_v55, %v10081_v50  ;;  %v5169_v60 = vpop.f32.mrb[161].mxu0 }
 0x925   :  { %v5170_v15 = vadd.f32 %v10081_v50, %v5169_v60  ;;  %v6126_v52 = vpop.f32.mrb[162].mxu0 }
 0x926   :  { %v5250_v13 = vmax.f32 %v5178_v53, 0.0  ;;  %v5181_v28 = vadd.f32 %v6126_v52, %v10081_v50  ;;  %v5172_v35 = vpop.f32.mrb[163].mxu0 }
 0x927   :  { %v5248_v0 = vmax.f32 %v5170_v15, 0.0  ;;  %v5173_v27 = vadd.f32 %v10081_v50, %v5172_v35 }
 0x928   :  { %v5289_v12 = vmul.f32 %v10090_v16, %v5250_v13  ;;  %v5251_v51 = vmax.f32 %v5181_v28, 0.0 }
 0x929   :  { %v5249_v47 = vmax.f32 %v5173_v27, 0.0  ;;  %v5287_v62 = vmul.f32 %v10090_v16, %v5248_v0  ;;  %v5311_v0 = vpop.xlane.xlu0 %5310 }
 0x92a   :  { %v5290_v31 = vmul.f32 %v10090_v16, %v5251_v51  ;;  %v5357_v3 = vsel %vm1417_vm2, %v5289_v12, 0.0 }
 0x92b   :  { %5358 = vadd.xlane.f32.xlu0 %v5357_v3  ;;  %v5288_v26 = vmul.f32 %v10090_v16, %v5249_v47  ;;  %v5351_v24 = vsel %vm1417_vm2, %v5287_v62, 0.0  ;;  %v5305_v3 = vpop.xlane.xlu1 %5304 }
 0x92c   :  { %v5360_v39 = vsel %vm1417_vm2, %v5290_v31, 0.0 }
 0x92d   :  { %5361 = vadd.xlane.f32.xlu1 %v5360_v39  ;;  %v5354_v1 = vsel %vm1417_vm2, %v5288_v26, 0.0 }
 0x92f   :  { %5352 = vadd.xlane.f32.xlu0 %v5351_v24  ;;  %v5308_v24 = vpop.xlane.xlu0 %5307 }
 0x931   :  { %5355 = vadd.xlane.f32.xlu1 %v5354_v1  ;;  %v10212_v1 = vld [vmem:[#allocation2] ss:$0 sm:$0xff] }
 0x943   :  { %v6129_v29 = vpop.f32.mrb[164].mxu0 }
 0x944   :  { %v5194_v30 = vadd.f32 %v6129_v29, %v10081_v50  ;;  %v5185_v20 = vpop.f32.mrb[165].mxu0 }
 0x945   :  { %v5186_v54 = vadd.f32 %v10081_v50, %v5185_v20  ;;  %v6130_v33 = vpop.f32.mrb[166].mxu0  ;;  %v5323_v20 = vpop.xlane.xlu0 %5322 }
 0x946   :  { %v5254_v34 = vmax.f32 %v5194_v30, 0.0  ;;  %v5197_v18 = vadd.f32 %v6130_v33, %v10081_v50  ;;  %v5188_v59 = vpop.f32.mrb[167].mxu0  ;;  %v5314_v30 = vpop.xlane.xlu1 %5313 }
 0x947   :  { %v5252_v11 = vmax.f32 %v5186_v54, 0.0  ;;  %v5189_v5 = vadd.f32 %v10081_v50, %v5188_v59  ;;  %v5408_v54 = vadd.f32 %v10212_v1, %v5311_v0  ;;  %v5409_v59 = vadd.f32 %v10212_v1, %v5314_v30 }
 0x948   :  { %v5293_v14 = vmul.f32 %v10090_v16, %v5254_v34  ;;  %v5255_v46 = vmax.f32 %v5197_v18, 0.0  ;;  %v5406_v34 = vadd.f32 %v10212_v1, %v5305_v3 }
 0x949   :  { %v5253_v45 = vmax.f32 %v5189_v5, 0.0  ;;  %v5291_v49 = vmul.f32 %v10090_v16, %v5252_v11  ;;  %6560 = vtanh.f32 %v5408_v54  ;;  %v5317_v18 = vpop.xlane.xlu0 %5316  ;;  %v5412_v11 = vadd.f32 %v10212_v1, %v5323_v20 }
 0x94a   :  { %v5294_v56 = vmul.f32 %v10090_v16, %v5255_v46  ;;  %v5369_v21 = vsel %vm1417_vm2, %v5293_v14, 0.0  ;;  %v5326_v33 = vpop.xlane.xlu1 %5325  ;;  %6562 = vtanh.f32 %v5406_v34 }
 0x94b   :  { %5370 = vadd.xlane.f32.xlu0 %v5369_v21  ;;  %v5292_v38 = vmul.f32 %v10090_v16, %v5253_v45  ;;  %v5363_v9 = vsel %vm1417_vm2, %v5291_v49, 0.0  ;;  %v5413_v46 = vadd.f32 %v10212_v1, %v5326_v33  ;;  %v5410_v45 = vadd.f32 %v10212_v1, %v5317_v18 }
 0x94c   :  { %v5372_v57 = vsel %vm1417_vm2, %v5294_v56, 0.0 }
 0x94d   :  { %5373 = vadd.xlane.f32.xlu1 %v5372_v57  ;;  %v5366_v25 = vsel %vm1417_vm2, %v5292_v38, 0.0 }
 0x94e   :  { %v5320_v5 = vpop.xlane.xlu1 %5319 }
 0x94f   :  { %5364 = vadd.xlane.f32.xlu0 %v5363_v9  ;;  %v5411_v21 = vadd.f32 %v10212_v1, %v5320_v5 }
 0x951   :  { %5367 = vadd.xlane.f32.xlu1 %v5366_v25 }
 0x953   :  { %v6561_v56 = vpop.eup %6560 }
 0x954   :  { %v6563_v9 = vpop.eup %6562 }
 0x96d   :  { %v6133_v32 = vpop.f32.mrb[168].mxu0 }
 0x96e   :  { %v5210_v23 = vadd.f32 %v6133_v32, %v10081_v50  ;;  %v5201_v41 = vpop.f32.mrb[169].mxu0  ;;  %v5335_v14 = vpop.xlane.xlu0 %5334 }
 0x96f   :  { %v5202_v7 = vadd.f32 %v10081_v50, %v5201_v41  ;;  %v6134_v2 = vpop.f32.mrb[170].mxu0  ;;  %v5416_v57 = vadd.f32 %v10212_v1, %v5335_v14 }
 0x970   :  { %v5258_v22 = vmax.f32 %v5210_v23, 0.0  ;;  %v5213_v8 = vadd.f32 %v6134_v2, %v10081_v50  ;;  %v5204_v42 = vpop.f32.mrb[171].mxu0  ;;  %v5338_v49 = vpop.xlane.xlu1 %5337 }
 0x971   :  { %v5256_v58 = vmax.f32 %v5202_v7, 0.0  ;;  %v5205_v10 = vadd.f32 %v10081_v50, %v5204_v42  ;;  %v5417_v23 = vadd.f32 %v10212_v1, %v5338_v49 }
 0x972   :  { %v5297_v44 = vmul.f32 %v10090_v16, %v5258_v22  ;;  %v5259_v4 = vmax.f32 %v5213_v8, 0.0  ;;  %v5329_v38 = vpop.xlane.xlu0 %5328 }
 0x973   :  { %v5257_v63 = vmax.f32 %v5205_v10, 0.0  ;;  %v5295_v6 = vmul.f32 %v10090_v16, %v5256_v58  ;;  %v5414_v7 = vadd.f32 %v10212_v1, %v5329_v38 }
 0x974   :  { %v5298_v40 = vmul.f32 %v10090_v16, %v5259_v4  ;;  %v5381_v19 = vsel %vm1417_vm2, %v5297_v44, 0.0  ;;  %v5332_v32 = vpop.xlane.xlu1 %5331 }
 0x975   :  { %5382 = vadd.xlane.f32.xlu0 %v5381_v19  ;;  %v5296_v36 = vmul.f32 %v10090_v16, %v5257_v63  ;;  %v5375_v43 = vsel %vm1417_vm2, %v5295_v6, 0.0  ;;  %v5415_v42 = vadd.f32 %v10212_v1, %v5332_v32 }
 0x976   :  { %v5384_v61 = vsel %vm1417_vm2, %v5298_v40, 0.0 }
 0x977   :  { %5385 = vadd.xlane.f32.xlu1 %v5384_v61  ;;  %v5378_v17 = vsel %vm1417_vm2, %v5296_v36, 0.0 }
 0x979   :  { %5376 = vadd.xlane.f32.xlu0 %v5375_v43 }
 0x97b   :  { %5379 = vadd.xlane.f32.xlu1 %v5378_v17 }
 0x98a   :  { %v6137_v48 = vpop.f32.mrb[172].mxu0 }
 0x98b   :  { %v5226_v37 = vadd.f32 %v6137_v48, %v10081_v50  ;;  %v5217_v55 = vpop.f32.mrb[173].mxu0 }
 0x98c   :  { %v5218_v53 = vadd.f32 %v10081_v50, %v5217_v55  ;;  %v6138_v60 = vpop.f32.mrb[174].mxu0 }
 0x98d   :  { %v5262_v15 = vmax.f32 %v5226_v37, 0.0  ;;  %v5229_v52 = vadd.f32 %v6138_v60, %v10081_v50  ;;  %v5220_v13 = vpop.f32.mrb[175].mxu0 }
 0x98e   :  { %v5260_v28 = vmax.f32 %v5218_v53, 0.0  ;;  %v5221_v35 = vadd.f32 %v10081_v50, %v5220_v13  ;;  %v5347_v41 = vpop.xlane.xlu0 %5346 }
 0x98f   :  { %v5301_v27 = vmul.f32 %v10090_v16, %v5262_v15  ;;  %v5263_v12 = vmax.f32 %v5229_v52, 0.0  ;;  %v5420_v58 = vadd.f32 %v10212_v1, %v5347_v41 }
 0x990   :  { %v5261_v51 = vmax.f32 %v5221_v35, 0.0  ;;  %v5299_v47 = vmul.f32 %v10090_v16, %v5260_v28  ;;  %v5350_v8 = vpop.xlane.xlu1 %5349 }
 0x991   :  { %v5302_v62 = vmul.f32 %v10090_v16, %v5263_v12  ;;  %v5393_v31 = vsel %vm1417_vm2, %v5301_v27, 0.0  ;;  %v5421_v63 = vadd.f32 %v10212_v1, %v5350_v8 }
 0x992   :  { %5394 = vadd.xlane.f32.xlu0 %v5393_v31  ;;  %v5300_v26 = vmul.f32 %v10090_v16, %v5261_v51  ;;  %v5387_v50 = vsel %vm1417_vm2, %v5299_v47, 0.0  ;;  %v5407_v16 = vadd.f32 %v10212_v1, %v5308_v24  ;;  %v5341_v44 = vpop.xlane.xlu0 %5340 }
 0x993   :  { %v5396_v39 = vsel %vm1417_vm2, %v5302_v62, 0.0  ;;  %v5418_v6 = vadd.f32 %v10212_v1, %v5341_v44 }
 0x994   :  { %5397 = vadd.xlane.f32.xlu1 %v5396_v39  ;;  %v5390_v29 = vsel %vm1417_vm2, %v5300_v26, 0.0  ;;  %6564 = vtanh.f32 %v5407_v16  ;;  %v5344_v40 = vpop.xlane.xlu1 %5343  ;;  %vm5631_vm2 = vcmask 31768  }
 0x995   :  { %6566 = vtanh.f32 %v5409_v59  ;;  %v5419_v43 = vadd.f32 %v10212_v1, %v5344_v40 }
 0x996   :  { %5388 = vadd.xlane.f32.xlu0 %v5387_v50  ;;  %6568 = vtanh.f32 %v5412_v11 }
 0x997   :  { %6570 = vtanh.f32 %v5413_v46 }
 0x998   :  { %5391 = vadd.xlane.f32.xlu1 %v5390_v29  ;;  %6572 = vtanh.f32 %v5410_v45 }
 0x999   :  { %6574 = vtanh.f32 %v5411_v21 }
 0x99a   :  { %6576 = vtanh.f32 %v5416_v57 }
 0x99b   :  { %6578 = vtanh.f32 %v5417_v23 }
 0x99c   :  { %6580 = vtanh.f32 %v5414_v7 }
 0x99d   :  { %6582 = vtanh.f32 %v5415_v42 }
 0x99e   :  { %v6565_v25 = vpop.eup %6564  ;;  %6584 = vtanh.f32 %v5420_v58 }
 0x99f   :  { %v6567_v2 = vpop.eup %6566  ;;  %6586 = vtanh.f32 %v5421_v63 }
 0x9a0   :  { %v6569_v22 = vpop.eup %6568  ;;  %6588 = vtanh.f32 %v5418_v6 }
 0x9a1   :  { %v6571_v10 = vpop.eup %6570  ;;  %6590 = vtanh.f32 %v5419_v43 }
 0x9a2   :  { %v6573_v4 = vpop.eup %6572 }
 0x9a3   :  { %v6575_v19 = vpop.eup %6574 }
 0x9a4   :  { %v6577_v36 = vpop.eup %6576 }
 0x9a5   :  { %v6579_v37 = vpop.eup %6578 }
 0x9a6   :  { %v6581_v55 = vpop.eup %6580 }
 0x9a7   :  { %v6583_v13 = vpop.eup %6582 }
 0x9a8   :  { %v6585_v28 = vpop.eup %6584 }
 0x9a9   :  { %5539 = vrot.lane.b32.xlu1 %v6561_v56, %s6700_s16  ;;  %v6587_v0 = vpop.eup %6586 }
 0x9aa   :  { %v6589_v27 = vpop.eup %6588 }
 0x9ab   :  { %v6591_v12 = vpop.eup %6590 }
 0x9ac   :  { %5535 = vrot.lane.b32.xlu0 %v6563_v9, %s6700_s16 }
 0x9ad   :  { %5537 = vrot.lane.b32.xlu1 %v6565_v25, %s6700_s16 }
 0x9b0   :  { %5541 = vrot.lane.b32.xlu0 %v6567_v2, %s6700_s16 }
 0x9b1   :  { %5547 = vrot.lane.b32.xlu1 %v6569_v22, %s6700_s16 }
 0x9b4   :  { %5549 = vrot.lane.b32.xlu0 %v6571_v10, %s6700_s16 }
 0x9b5   :  { %5543 = vrot.lane.b32.xlu1 %v6573_v4, %s6700_s16 }
 0x9b8   :  { %5545 = vrot.lane.b32.xlu0 %v6575_v19, %s6700_s16  ;;  %v5359_v61 = vpop.xlane.xlu0 %5358 }
 0x9b9   :  { %5555 = vrot.lane.b32.xlu1 %v6577_v36, %s6700_s16  ;;  %v5424_v17 = vadd.f32 %v10212_v1, %v5359_v61 }
 0x9ba   :  { %v5362_v48 = vpop.xlane.xlu1 %5361 }
 0x9bb   :  { %v5425_v60 = vadd.f32 %v10212_v1, %v5362_v48  ;;  %6592 = vtanh.f32 %v5424_v17 }
 0x9bc   :  { %5557 = vrot.lane.b32.xlu0 %v6579_v37, %s6700_s16  ;;  %v5353_v53 = vpop.xlane.xlu0 %5352 }
 0x9bd   :  { %5551 = vrot.lane.b32.xlu1 %v6581_v55, %s6700_s16  ;;  %v5422_v15 = vadd.f32 %v10212_v1, %v5353_v53  ;;  %6594 = vtanh.f32 %v5425_v60 }
 0x9be   :  { %v5356_v52 = vpop.xlane.xlu1 %5355 }
 0x9bf   :  { %v5423_v35 = vadd.f32 %v10212_v1, %v5356_v52  ;;  %6596 = vtanh.f32 %v5422_v15 }
 0x9c0   :  { %5553 = vrot.lane.b32.xlu0 %v6583_v13, %s6700_s16 }
 0x9c1   :  { %5563 = vrot.lane.b32.xlu1 %v6585_v28, %s6700_s16  ;;  %6598 = vtanh.f32 %v5423_v35 }
 0x9c4   :  { %5565 = vrot.lane.b32.xlu0 %v6587_v0, %s6700_s16 }
 0x9c5   :  { %5559 = vrot.lane.b32.xlu1 %v6589_v27, %s6700_s16  ;;  %v6593_v51 = vpop.eup %6592 }
 0x9c7   :  { %v6595_v47 = vpop.eup %6594 }
 0x9c8   :  { %5561 = vrot.lane.b32.xlu0 %v6591_v12, %s6700_s16 }
 0x9c9   :  { %5571 = vrot.lane.b32.xlu1 %v6593_v51, %s6700_s16  ;;  %v6597_v62 = vpop.eup %6596 }
 0x9cb   :  { %v6599_v31 = vpop.eup %6598 }
 0x9cc   :  { %5573 = vrot.lane.b32.xlu0 %v6595_v47, %s6700_s16 }
 0x9cd   :  { %5567 = vrot.lane.b32.xlu1 %v6597_v62, %s6700_s16 }
 0x9d0   :  { %5569 = vrot.lane.b32.xlu0 %v6599_v31, %s6700_s16 }
 0x9d8   :  { %v5371_v3 = vpop.xlane.xlu0 %5370 }
 0x9d9   :  { %v5428_v26 = vadd.f32 %v10212_v1, %v5371_v3 }
 0x9da   :  { %v5374_v39 = vpop.xlane.xlu1 %5373 }
 0x9db   :  { %6600 = vtanh.f32 %v5428_v26  ;;  %v5429_v24 = vadd.f32 %v10212_v1, %v5374_v39 }
 0x9dc   :  { %v5365_v50 = vpop.xlane.xlu0 %5364 }
 0x9dd   :  { %6602 = vtanh.f32 %v5429_v24  ;;  %v5426_v29 = vadd.f32 %v10212_v1, %v5365_v50 }
 0x9de   :  { %v5368_v30 = vpop.xlane.xlu1 %5367 }
 0x9df   :  { %6604 = vtanh.f32 %v5426_v29  ;;  %v5427_v20 = vadd.f32 %v10212_v1, %v5368_v30 }
 0x9e1   :  { %6606 = vtanh.f32 %v5427_v20 }
 0x9e5   :  { %v6601_v54 = vpop.eup %6600 }
 0x9e6   :  { %5579 = vrot.lane.b32.xlu1 %v6601_v54, %s6700_s16 }
 0x9e7   :  { %v6603_v33 = vpop.eup %6602 }
 0x9e8   :  { %5581 = vrot.lane.b32.xlu0 %v6603_v33, %s6700_s16 }
 0x9e9   :  { %v6605_v34 = vpop.eup %6604 }
 0x9ea   :  { %5575 = vrot.lane.b32.xlu1 %v6605_v34, %s6700_s16 }
 0x9eb   :  { %v6607_v16 = vpop.eup %6606 }
 0x9ec   :  { %5577 = vrot.lane.b32.xlu0 %v6607_v16, %s6700_s16 }
 0xa02   :  { %v5383_v18 = vpop.xlane.xlu0 %5382 }
 0xa03   :  { %v5432_v59 = vadd.f32 %v10212_v1, %v5383_v18 }
 0xa04   :  { %v5386_v11 = vpop.xlane.xlu1 %5385 }
 0xa05   :  { %6608 = vtanh.f32 %v5432_v59  ;;  %v5433_v5 = vadd.f32 %v10212_v1, %v5386_v11 }
 0xa06   :  { %v5377_v14 = vpop.xlane.xlu0 %5376 }
 0xa07   :  { %6610 = vtanh.f32 %v5433_v5  ;;  %v5430_v46 = vadd.f32 %v10212_v1, %v5377_v14 }
 0xa08   :  { %v5380_v45 = vpop.xlane.xlu1 %5379 }
 0xa09   :  { %6612 = vtanh.f32 %v5430_v46  ;;  %v5431_v49 = vadd.f32 %v10212_v1, %v5380_v45 }
 0xa0b   :  { %6614 = vtanh.f32 %v5431_v49 }
 0xa0f   :  { %v6609_v56 = vpop.eup %6608 }
 0xa10   :  { %5587 = vrot.lane.b32.xlu1 %v6609_v56, %s6700_s16 }
 0xa11   :  { %v6611_v21 = vpop.eup %6610 }
 0xa12   :  { %5589 = vrot.lane.b32.xlu0 %v6611_v21, %s6700_s16 }
 0xa13   :  { %v6613_v38 = vpop.eup %6612 }
 0xa14   :  { %5583 = vrot.lane.b32.xlu1 %v6613_v38, %s6700_s16 }
 0xa15   :  { %v6615_v57 = vpop.eup %6614 }
 0xa16   :  { %5585 = vrot.lane.b32.xlu0 %v6615_v57, %s6700_s16 }
 0xa1f   :  { %v5395_v9 = vpop.xlane.xlu0 %5394 }
 0xa20   :  { %v5436_v7 = vadd.f32 %v10212_v1, %v5395_v9 }
 0xa21   :  { %v5398_v25 = vpop.xlane.xlu1 %5397 }
 0xa22   :  { %v5437_v8 = vadd.f32 %v10212_v1, %v5398_v25 }
 0xa23   :  { %v5389_v32 = vpop.xlane.xlu0 %5388 }
 0xa24   :  { %v5434_v23 = vadd.f32 %v10212_v1, %v5389_v32 }
 0xa25   :  { %v5392_v41 = vpop.xlane.xlu1 %5391 }
 0xa26   :  { %6616 = vtanh.f32 %v5434_v23  ;;  %v5435_v2 = vadd.f32 %v10212_v1, %v5392_v41 }
 0xa27   :  { %v5536_v22 = vpop.permute.xlu0 %5535 }
 0xa28   :  { %6618 = vtanh.f32 %v5435_v2  ;;  %5632 = vst.msk [vmem:[%s10420_s19] sm:$0xff] %vm5631_vm2, %v5536_v22 }
 0xa29   :  { %v5540_v42 = vpop.permute.xlu1 %5539  ;;  %6620 = vtanh.f32 %v5436_v7 }
 0xa2a   :  { %5634 = vst.msk [vmem:[%s10420_s19 + $0x10] sm:$0xff] %vm5631_vm2, %v5540_v42  ;;  %6622 = vtanh.f32 %v5437_v8 }
 0xa2b   :  { %v5542_v58 = vpop.permute.xlu0 %5541 }
 0xa2c   :  { %5635 = vst.msk [vmem:[%s10420_s19 + $0x18] sm:$0xff] %vm5631_vm2, %v5542_v58 }
 0xa2d   :  { %v5538_v1 = vpop.permute.xlu1 %5537 }
 0xa2e   :  { %5633 = vst.msk [vmem:[%s10420_s19 + $0x8] sm:$0xff] %vm5631_vm2, %v5538_v1 }
 0xa2f   :  { %v5550_v10 = vpop.permute.xlu0 %5549 }
 0xa30   :  { %v6617_v44 = vpop.eup %6616  ;;  %5639 = vst.msk [vmem:[%s10420_s19 + $0x38] sm:$0xff] %vm5631_vm2, %v5550_v10 }
 0xa31   :  { %v5548_v4 = vpop.permute.xlu1 %5547  ;;  %5591 = vrot.lane.b32.xlu1 %v6617_v44, %s6700_s16 }
 0xa32   :  { %v6619_v63 = vpop.eup %6618  ;;  %5638 = vst.msk [vmem:[%s10420_s19 + $0x30] sm:$0xff] %vm5631_vm2, %v5548_v4 }
 0xa33   :  { %5593 = vrot.lane.b32.xlu0 %v6619_v63, %s6700_s16  ;;  %v5546_v6 = vpop.permute.xlu0 %5545  ;;  %v6621_v40 = vpop.eup %6620 }
 0xa34   :  { %5637 = vst.msk [vmem:[%s10420_s19 + $0x28] sm:$0xff] %vm5631_vm2, %v5546_v6  ;;  %v6623_v36 = vpop.eup %6622 }
 0xa35   :  { %v5544_v19 = vpop.permute.xlu1 %5543  ;;  %5595 = vrot.lane.b32.xlu1 %v6621_v40, %s6700_s16 }
 0xa36   :  { %5636 = vst.msk [vmem:[%s10420_s19 + $0x20] sm:$0xff] %vm5631_vm2, %v5544_v19 }
 0xa37   :  { %5597 = vrot.lane.b32.xlu0 %v6623_v36, %s6700_s16  ;;  %v5558_v61 = vpop.permute.xlu0 %5557 }
 0xa38   :  { %5643 = vst.msk [vmem:[%s10420_s19 + $0x58] sm:$0xff] %vm5631_vm2, %v5558_v61 }
 0xa39   :  { %v5556_v43 = vpop.permute.xlu1 %5555 }
 0xa3a   :  { %5642 = vst.msk [vmem:[%s10420_s19 + $0x50] sm:$0xff] %vm5631_vm2, %v5556_v43 }
 0xa3b   :  { %v5554_v17 = vpop.permute.xlu0 %5553 }
 0xa3c   :  { %5641 = vst.msk [vmem:[%s10420_s19 + $0x48] sm:$0xff] %vm5631_vm2, %v5554_v17 }
 0xa3d   :  { %v5552_v48 = vpop.permute.xlu1 %5551 }
 0xa3e   :  { %5640 = vst.msk [vmem:[%s10420_s19 + $0x40] sm:$0xff] %vm5631_vm2, %v5552_v48 }
 0xa3f   :  { %v5566_v37 = vpop.permute.xlu0 %5565 }
 0xa40   :  { %5647 = vst.msk [vmem:[%s10420_s19 + $0x78] sm:$0xff] %vm5631_vm2, %v5566_v37 }
 0xa41   :  { %v5564_v55 = vpop.permute.xlu1 %5563 }
 0xa42   :  { %5646 = vst.msk [vmem:[%s10420_s19 + $0x70] sm:$0xff] %vm5631_vm2, %v5564_v55 }
 0xa43   :  { %v5562_v53 = vpop.permute.xlu0 %5561 }
 0xa44   :  { %5645 = vst.msk [vmem:[%s10420_s19 + $0x68] sm:$0xff] %vm5631_vm2, %v5562_v53 }
 0xa45   :  { %v5560_v60 = vpop.permute.xlu1 %5559 }
 0xa46   :  { %5644 = vst.msk [vmem:[%s10420_s19 + $0x60] sm:$0xff] %vm5631_vm2, %v5560_v60 }
 0xa47   :  { %v5574_v15 = vpop.permute.xlu0 %5573 }
 0xa48   :  { %5651 = vst.msk [vmem:[%s10420_s19 + $0x98] sm:$0xff] %vm5631_vm2, %v5574_v15 }
 0xa49   :  { %v5572_v52 = vpop.permute.xlu1 %5571 }
 0xa4a   :  { %5650 = vst.msk [vmem:[%s10420_s19 + $0x90] sm:$0xff] %vm5631_vm2, %v5572_v52 }
 0xa4b   :  { %v5570_v13 = vpop.permute.xlu0 %5569 }
 0xa4c   :  { %5649 = vst.msk [vmem:[%s10420_s19 + $0x88] sm:$0xff] %vm5631_vm2, %v5570_v13 }
 0xa4d   :  { %v5568_v28 = vpop.permute.xlu1 %5567 }
 0xa4e   :  { %5648 = vst.msk [vmem:[%s10420_s19 + $0x80] sm:$0xff] %vm5631_vm2, %v5568_v28 }
 0xa58   :  { %v5580_v35 = vpop.permute.xlu1 %5579 }
 0xa59   :  { %5654 = vst.msk [vmem:[%s10420_s19 + $0xb0] sm:$0xff] %vm5631_vm2, %v5580_v35 }
 0xa5a   :  { %v5582_v0 = vpop.permute.xlu0 %5581 }
 0xa5b   :  { %5655 = vst.msk [vmem:[%s10420_s19 + $0xb8] sm:$0xff] %vm5631_vm2, %v5582_v0 }
 0xa5c   :  { %v5576_v27 = vpop.permute.xlu1 %5575 }
 0xa5d   :  { %5652 = vst.msk [vmem:[%s10420_s19 + $0xa0] sm:$0xff] %vm5631_vm2, %v5576_v27 }
 0xa5e   :  { %v5578_v12 = vpop.permute.xlu0 %5577 }
 0xa5f   :  { %5653 = vst.msk [vmem:[%s10420_s19 + $0xa8] sm:$0xff] %vm5631_vm2, %v5578_v12 }
 0xa82   :  { %v5588_v51 = vpop.permute.xlu1 %5587 }
 0xa83   :  { %5658 = vst.msk [vmem:[%s10420_s19 + $0xd0] sm:$0xff] %vm5631_vm2, %v5588_v51 }
 0xa84   :  { %v5590_v47 = vpop.permute.xlu0 %5589 }
 0xa85   :  { %5659 = vst.msk [vmem:[%s10420_s19 + $0xd8] sm:$0xff] %vm5631_vm2, %v5590_v47 }
 0xa86   :  { %v5584_v62 = vpop.permute.xlu1 %5583 }
 0xa87   :  { %5656 = vst.msk [vmem:[%s10420_s19 + $0xc0] sm:$0xff] %vm5631_vm2, %v5584_v62 }
 0xa88   :  { %v5586_v31 = vpop.permute.xlu0 %5585 }
 0xa89   :  { %5657 = vst.msk [vmem:[%s10420_s19 + $0xc8] sm:$0xff] %vm5631_vm2, %v5586_v31 }
 0xaa3   :  { %v5592_v3 = vpop.permute.xlu1 %5591 }
 0xaa4   :  { %5660 = vst.msk [vmem:[%s10420_s19 + $0xe0] sm:$0xff] %vm5631_vm2, %v5592_v3 }
 0xaa5   :  { %v5594_v26 = vpop.permute.xlu0 %5593 }
 0xaa6   :  { %5661 = vst.msk [vmem:[%s10420_s19 + $0xe8] sm:$0xff] %vm5631_vm2, %v5594_v26 }
 0xaa7   :  { %v5596_v39 = vpop.permute.xlu1 %5595 }
 0xaa8   :  { %5662 = vst.msk [vmem:[%s10420_s19 + $0xf0] sm:$0xff] %vm5631_vm2, %v5596_v39 }
 0xaa9   :  { %v5598_v24 = vpop.permute.xlu0 %5597 }
 0xaaa   :  { %5663 = vst.msk [vmem:[%s10420_s19 + $0xf8] sm:$0xff] %vm5631_vm2, %v5598_v24 }

</bundles_post_ra>
